<compile_context>
chip_gen: v6e
topology: v6e:2x2x1
jax: 0.10.0
libtpu: 0.0.40
codegen_flags: <defaults>
</compile_context>

<pallas_src>
import functools
import numpy as np
import jax
import jax.numpy as jnp
from jax.experimental import pallas as pl
from jax.experimental.pallas import tpu as pltpu

_CPARAMS = pltpu.CompilerParams(
    dimension_semantics=("parallel", "parallel", "arbitrary"),
    vmem_limit_bytes=48 * 1024 * 1024,
)


# ---------------------- Pallas kernels (hot path) ----------------------

def _mm_kernel(x_ref, w_ref, shift_ref, o_ref, acc_ref, *, relu):
    @pl.when(pl.program_id(2) == 0)
    def _():
        acc_ref[...] = jnp.zeros_like(acc_ref)

    acc_ref[...] += jnp.dot(x_ref[...], w_ref[...],
                            preferred_element_type=jnp.float32)

    @pl.when(pl.program_id(2) == pl.num_programs(2) - 1)
    def _():
        out = acc_ref[...] + shift_ref[...]
        if relu:
            out = jnp.maximum(out, 0.0)
        o_ref[...] = out.astype(o_ref.dtype)


def _mm_res_kernel(x_ref, w_ref, shift_ref, res_ref, o_ref, acc_ref):
    @pl.when(pl.program_id(2) == 0)
    def _():
        acc_ref[...] = jnp.zeros_like(acc_ref)

    acc_ref[...] += jnp.dot(x_ref[...], w_ref[...],
                            preferred_element_type=jnp.float32)

    @pl.when(pl.program_id(2) == pl.num_programs(2) - 1)
    def _():
        out = acc_ref[...] + shift_ref[...] + res_ref[...].astype(jnp.float32)
        o_ref[...] = jnp.maximum(out, 0.0).astype(o_ref.dtype)


# ---------------------- Pallas wrapper ----------------------

def _pad_axis(a, axis, mult):
    pad = (-a.shape[axis]) % mult
    if pad == 0:
        return a
    widths = [(0, 0)] * a.ndim
    widths[axis] = (0, pad)
    return jnp.pad(a, widths)


def _pick_tile(d, cap):
    for t in (cap, 256, 128):
        if d >= t and d % t == 0:
            return t
    return d  # full dim (small M in deep stages)


def pallas_matmul_fused(x2d, w2d, shift, *, relu, residual=None,
                        out_dtype=jnp.float32,
                        tm_cap=512, tn_cap=256, tk_cap=256):
    """out = relu?( (x2d @ w2d) + shift (+ residual) ), f32 accumulation."""
    M, K = x2d.shape
    N = w2d.shape[1]

    # bf16 MXU operands; 128-aligned lane dims, 16-aligned sublane (M) dim.
    xp = _pad_axis(_pad_axis(x2d.astype(jnp.bfloat16), 0, 16), 1, 128)
    wp = _pad_axis(_pad_axis(w2d.astype(jnp.bfloat16), 0, 128), 1, 128)
    sp = _pad_axis(shift.reshape(1, -1).astype(jnp.float32), 1, 128)
    Mp, Kp = xp.shape
    Np = wp.shape[1]

    tm = _pick_tile(Mp, tm_cap)
    tn = _pick_tile(Np, tn_cap)
    tk = _pick_tile(Kp, tk_cap)
    grid = (Mp // tm, Np // tn, Kp // tk)

    in_specs = [
        pl.BlockSpec((tm, tk), lambda i, j, k: (i, k)),
        pl.BlockSpec((tk, tn), lambda i, j, k: (k, j)),
        pl.BlockSpec((1, tn), lambda i, j, k: (0, j)),
    ]
    args = [xp, wp, sp]
    out_bytes = Mp * Np * jnp.dtype(out_dtype).itemsize
    flops = 2 * Mp * Kp * Np
    bytes_acc = xp.size * 2 + wp.size * 2 + out_bytes + sp.size * 4

    if residual is None:
        kernel = functools.partial(_mm_kernel, relu=relu)
    else:
        rp = _pad_axis(_pad_axis(residual.astype(jnp.bfloat16), 0, 16), 1, 128)
        in_specs.append(pl.BlockSpec((tm, tn), lambda i, j, k: (i, j)))
        args.append(rp)
        bytes_acc += rp.size * 2
        kernel = _mm_res_kernel

    out = pl.pallas_call(
        kernel,
        out_shape=jax.ShapeDtypeStruct((Mp, Np), out_dtype),
        grid=grid,
        in_specs=in_specs,
        out_specs=pl.BlockSpec((tm, tn), lambda i, j, k: (i, j)),
        scratch_shapes=[pltpu.VMEM((tm, tn), jnp.float32)],
        compiler_params=_CPARAMS,
        cost_estimate=pl.CostEstimate(flops=flops, transcendentals=0,
                                      bytes_accessed=bytes_acc),
    )(*args)
    return out[:M, :N]


# ---------------------- JAX glue (NHWC layout / im2col) ----------------------

def _im2col_nhwc(x, kh, kw, stride, pad):
    N, H, W, C = x.shape
    xp = jnp.pad(x, ((0, 0), (pad, pad), (pad, pad), (0, 0)))
    Ho = (H + 2 * pad - kh) // stride + 1
    Wo = (W + 2 * pad - kw) // stride + 1
    cols = []
    for i in range(kh):
        for j in range(kw):
            cols.append(xp[:, i:i + stride * (Ho - 1) + 1:stride,
                              j:j + stride * (Wo - 1) + 1:stride, :])
    patches = jnp.concatenate(cols, axis=-1)       # (N, Ho, Wo, kh*kw*C)
    return patches.reshape(N * Ho * Wo, kh * kw * C), Ho, Wo


def conv_bn(x, w, scale, shift, *, stride, pad, relu=True, residual=None):
    # x: (N, H, W, Cin) ; w: (kh, kw, Cin, Cout) f32 ; scale/shift: (1, Cout)
    kh, kw, cin, cout = w.shape
    N = x.shape[0]
    x2d, Ho, Wo = _im2col_nhwc(x.astype(jnp.bfloat16), kh, kw, stride, pad)
    w2d = w.reshape(kh * kw * cin, cout) * scale   # fold BN scale into weight
    res2d = None
    if residual is not None:
        res2d = residual.reshape(N * Ho * Wo, cout)  # NHWC -> pure view reshape
    out2d = pallas_matmul_fused(x2d, w2d, shift, relu=relu, residual=res2d,
                                out_dtype=jnp.bfloat16)
    return out2d.reshape(N, Ho, Wo, cout)


def maxpool_3x3_s2(x):
    # NHWC, running 9-tap max on strided slices (no 9x stack, no extra kernel).
    N, H, W, C = x.shape
    xp = jnp.pad(x, ((0, 0), (1, 1), (1, 1), (0, 0)),
                 constant_values=-jnp.inf)
    Ho = (H + 2 - 3) // 2 + 1
    Wo = (W + 2 - 3) // 2 + 1
    out = None
    for i in range(3):
        for j in range(3):
            s = xp[:, i:i + 2 * (Ho - 1) + 1:2, j:j + 2 * (Wo - 1) + 1:2, :]
            out = s if out is None else jnp.maximum(out, s)
    return out


# ---------------------- ResNet18 definition ----------------------

def init_params(key, numclasses):
    keys = iter(jax.random.split(key, 256))

    def conv_w(cin, cout, k):
        fan_in = cin * k * k
        return (jax.random.normal(next(keys), (k, k, cin, cout), jnp.float32)
                * np.sqrt(2.0 / fan_in))

    def bn(c):
        gamma = 1.0 + 0.1 * jax.random.normal(next(keys), (c,), jnp.float32)
        beta = 0.1 * jax.random.normal(next(keys), (c,), jnp.float32)
        mean = jnp.zeros((c,), jnp.float32)
        var = jnp.ones((c,), jnp.float32)
        eps = 1e-5
        scale = gamma / jnp.sqrt(var + eps)
        shift = beta - mean * scale
        return scale.reshape(1, c), shift.reshape(1, c)

    p = {'conv1_w': conv_w(3, 64, 7), 'bn1': bn(64), 'layers': []}
    stage_defs = [(64, 64, 1), (64, 128, 2), (128, 256, 2), (256, 512, 2)]
    for cin, cout, stride in stage_defs:
        blocks = []
        for b in range(2):
            s = stride if b == 0 else 1
            ic = cin if b == 0 else cout
            blk = {'conv1_w': conv_w(ic, cout, 3), 'bn1': bn(cout),
                   'conv2_w': conv_w(cout, cout, 3), 'bn2': bn(cout)}
            if s != 1 or ic != cout:
                blk['down_w'] = conv_w(ic, cout, 1)
                blk['down_bn'] = bn(cout)
            blocks.append(blk)
        p['layers'].append(blocks)
    p['fc_w'] = (jax.random.normal(next(keys), (512, numclasses), jnp.float32)
                 * np.sqrt(1.0 / 512))
    p['fc_b'] = 0.01 * jax.random.normal(next(keys), (1, numclasses), jnp.float32)
    return p


def basic_block(x, blk, stride):
    if 'down_w' in blk:
        identity = conv_bn(x, blk['down_w'], *blk['down_bn'],
                           stride=stride, pad=0, relu=False)
    else:
        identity = x
    out = conv_bn(x, blk['conv1_w'], *blk['bn1'], stride=stride, pad=1, relu=True)
    out = conv_bn(out, blk['conv2_w'], *blk['bn2'], stride=1, pad=1,
                  residual=identity)   # fused add + relu inside kernel
    return out


def resnet18_forward(params, x):
    # accept PyTorch-style NCHW input; single transpose to NHWC at entry.
    x = x.transpose(0, 2, 3, 1)
    out = conv_bn(x, params['conv1_w'], *params['bn1'], stride=2, pad=3, relu=True)
    out = maxpool_3x3_s2(out)
    stage_strides = [1, 2, 2, 2]
    for stage_i, blocks in enumerate(params['layers']):
        for b, blk in enumerate(blocks):
            s = stage_strides[stage_i] if b == 0 else 1
            out = basic_block(out, blk, s)
    # adaptive avg pool -> (N, 512); reduce in f32.
    feat = jnp.mean(out.astype(jnp.float32), axis=(1, 2))
    logits = pallas_matmul_fused(feat, params['fc_w'], params['fc_b'],
                                 relu=False, out_dtype=jnp.float32)
    return logits


if __name__ == "__main__":
    numclasses = 10
    key = jax.random.PRNGKey(0)
    pkey, xkey = jax.random.split(key)
    params = init_params(pkey, numclasses)
    # small NCHW input consistent with resnet18 (3 input channels required)
    x = jax.random.normal(xkey, (2, 3, 32, 32), jnp.float32)
    fwd = jax.jit(resnet18_forward)
    logits = fwd(params, x)
    logits = jax.block_until_ready(logits)
    assert logits.shape == (2, numclasses)
    assert bool(jnp.all(jnp.isfinite(logits)))
    print("KERNEL_OK")
</pallas_src>

<mosaic_0001>
module attributes {stable_mosaic.version = 11 : i64} {
  func.func @_mm_kernel(%arg0: i32, %arg1: i32, %arg2: i32, %arg3: memref<512x256xbf16, #tpu.memory_space<vmem>>, %arg4: memref<256x128xbf16, #tpu.memory_space<vmem>>, %arg5: memref<1x128xf32, #tpu.memory_space<vmem>>, %arg6: memref<512x128xbf16, #tpu.memory_space<vmem>>, %arg7: memref<512x128xf32, #tpu.memory_space<vmem>>) attributes {dimension_semantics = [#tpu.dimension_semantics<parallel>, #tpu.dimension_semantics<parallel>, #tpu.dimension_semantics<arbitrary>], iteration_bounds = array<i64: 1, 1, 1>, scalar_prefetch = 0 : i64, scratch_operands = 1 : i64, tpu.core_type = #tpu.core_type<tc>, window_params = [{transform_indices = @transform_0, window_bounds = array<i64: 512, 256>}, {transform_indices = @transform_1, window_bounds = array<i64: 256, 128>}, {transform_indices = @transform_2, window_bounds = array<i64: 1, 128>}, {transform_indices = @transform_3, window_bounds = array<i64: 512, 128>}]} {
    %c0_i32 = arith.constant 0 : i32
    %0 = arith.cmpi eq, %arg2, %c0_i32 : i32
    %1 = arith.extui %0 : i1 to i32
    %c0_i32_0 = arith.constant 0 : i32
    %2 = arith.cmpi ne, %1, %c0_i32_0 : i32
    scf.if %2 {
      %cst_10 = arith.constant 0.000000e+00 : f32
      %12 = vector.broadcast %cst_10 : f32 to vector<512x128xf32>
      %c0_11 = arith.constant 0 : index
      %c0_12 = arith.constant 0 : index
      %13 = vector.load %arg7[%c0_11, %c0_12] : memref<512x128xf32, #tpu.memory_space<vmem>>, vector<512x128xf32>
      tpu.vector_store %arg7[%c0_11, %c0_12], %12 {strides = array<i32>} : memref<512x128xf32, #tpu.memory_space<vmem>>, vector<512x128xf32>,
    } else {
    }
    %c0 = arith.constant 0 : index
    %c0_1 = arith.constant 0 : index
    %3 = vector.load %arg7[%c0, %c0_1] : memref<512x128xf32, #tpu.memory_space<vmem>>, vector<512x128xf32>
    %c0_2 = arith.constant 0 : index
    %c0_3 = arith.constant 0 : index
    %4 = vector.load %arg3[%c0_2, %c0_3] : memref<512x256xbf16, #tpu.memory_space<vmem>>, vector<512x256xbf16>
    %c0_4 = arith.constant 0 : index
    %c0_5 = arith.constant 0 : index
    %5 = vector.load %arg4[%c0_4, %c0_5] : memref<256x128xbf16, #tpu.memory_space<vmem>>, vector<256x128xbf16>
    %cst = arith.constant dense<0.000000e+00> : vector<512x128xf32>
    %6 = tpu.matmul %4, %5, %cst {dimension_numbers = #tpu.dot_dimension_numbers<[1], [0], [0], [1], [0, 0, 1, 1], [], []>} : vector<512x256xbf16>, vector<256x128xbf16>, vector<512x128xf32> -> vector<512x128xf32>
    %7 = arith.addf %3, %6 : vector<512x128xf32>
    %c0_6 = arith.constant 0 : index
    %c0_7 = arith.constant 0 : index
    %8 = vector.load %arg7[%c0_6, %c0_7] : memref<512x128xf32, #tpu.memory_space<vmem>>, vector<512x128xf32>
    tpu.vector_store %arg7[%c0_6, %c0_7], %7 {strides = array<i32>} : memref<512x128xf32, #tpu.memory_space<vmem>>, vector<512x128xf32>,
    %c0_i32_8 = arith.constant 0 : i32
    %9 = arith.cmpi eq, %arg2, %c0_i32_8 : i32
    %10 = arith.extui %9 : i1 to i32
    %c0_i32_9 = arith.constant 0 : i32
    %11 = arith.cmpi ne, %10, %c0_i32_9 : i32
    scf.if %11 {
      %c0_10 = arith.constant 0 : index
      %c0_11 = arith.constant 0 : index
      %12 = vector.load %arg7[%c0_10, %c0_11] : memref<512x128xf32, #tpu.memory_space<vmem>>, vector<512x128xf32>
      %c0_12 = arith.constant 0 : index
      %c0_13 = arith.constant 0 : index
      %13 = vector.load %arg5[%c0_12, %c0_13] : memref<1x128xf32, #tpu.memory_space<vmem>>, vector<1x128xf32>
      %14 = vector.broadcast %13 : vector<1x128xf32> to vector<512x128xf32>
      %15 = arith.addf %12, %14 : vector<512x128xf32>
      %cst_14 = arith.constant 0.000000e+00 : f32
      %16 = vector.broadcast %cst_14 : f32 to vector<512x128xf32>
      %17 = arith.maximumf %15, %16 : vector<512x128xf32>
      %18 = arith.truncf %17 : vector<512x128xf32> to vector<512x128xbf16>
      %c0_15 = arith.constant 0 : index
      %c0_16 = arith.constant 0 : index
      %19 = vector.load %arg6[%c0_15, %c0_16] : memref<512x128xbf16, #tpu.memory_space<vmem>>, vector<512x128xbf16>
      tpu.vector_store %arg6[%c0_15, %c0_16], %18 {strides = array<i32>} : memref<512x128xbf16, #tpu.memory_space<vmem>>, vector<512x128xbf16>,
    } else {
    }
    return
  }
  func.func @transform_0(%arg0: i32, %arg1: i32, %arg2: i32) -> (i32, i32) {
    %c0_i32 = arith.constant 0 : i32
    return %arg0, %arg2 : i32, i32
  }
  func.func @transform_1(%arg0: i32, %arg1: i32, %arg2: i32) -> (i32, i32) {
    %c0_i32 = arith.constant 0 : i32
    return %arg2, %arg1 : i32, i32
  }
  func.func @transform_2(%arg0: i32, %arg1: i32, %arg2: i32) -> (i32, i32) {
    %c0_i32 = arith.constant 0 : i32
    %c0_i32_0 = arith.constant 0 : i32
    return %c0_i32, %arg1 : i32, i32
  }
  func.func @transform_3(%arg0: i32, %arg1: i32, %arg2: i32) -> (i32, i32) {
    %c0_i32 = arith.constant 0 : i32
    return %arg0, %arg1 : i32, i32
  }
}

module attributes {stable_mosaic.version = 11 : i64} {
  func.func @_mm_kernel(%arg0: i32, %arg1: i32, %arg2: i32, %arg3: memref<128x128xbf16, #tpu.memory_space<vmem>>, %arg4: memref<128x128xbf16, #tpu.memory_space<vmem>>, %arg5: memref<1x128xf32, #tpu.memory_space<vmem>>, %arg6: memref<128x128xbf16, #tpu.memory_space<vmem>>, %arg7: memref<128x128xf32, #tpu.memory_space<vmem>>) attributes {dimension_semantics = [#tpu.dimension_semantics<parallel>, #tpu.dimension_semantics<parallel>, #tpu.dimension_semantics<arbitrary>], iteration_bounds = array<i64: 1, 1, 5>, scalar_prefetch = 0 : i64, scratch_operands = 1 : i64, tpu.core_type = #tpu.core_type<tc>, window_params = [{transform_indices = @transform_0, window_bounds = array<i64: 128, 128>}, {transform_indices = @transform_1, window_bounds = array<i64: 128, 128>}, {transform_indices = @transform_2, window_bounds = array<i64: 1, 128>}, {transform_indices = @transform_3, window_bounds = array<i64: 128, 128>}]} {
    %c0_i32 = arith.constant 0 : i32
    %0 = arith.cmpi eq, %arg2, %c0_i32 : i32
    %1 = arith.extui %0 : i1 to i32
    %c0_i32_0 = arith.constant 0 : i32
    %2 = arith.cmpi ne, %1, %c0_i32_0 : i32
    scf.if %2 {
      %cst_9 = arith.constant 0.000000e+00 : f32
      %12 = vector.broadcast %cst_9 : f32 to vector<128x128xf32>
      %c0_10 = arith.constant 0 : index
      %c0_11 = arith.constant 0 : index
      %13 = vector.load %arg7[%c0_10, %c0_11] : memref<128x128xf32, #tpu.memory_space<vmem>>, vector<128x128xf32>
      tpu.vector_store %arg7[%c0_10, %c0_11], %12 {strides = array<i32>} : memref<128x128xf32, #tpu.memory_space<vmem>>, vector<128x128xf32>,
    } else {
    }
    %c0 = arith.constant 0 : index
    %c0_1 = arith.constant 0 : index
    %3 = vector.load %arg7[%c0, %c0_1] : memref<128x128xf32, #tpu.memory_space<vmem>>, vector<128x128xf32>
    %c0_2 = arith.constant 0 : index
    %c0_3 = arith.constant 0 : index
    %4 = vector.load %arg3[%c0_2, %c0_3] : memref<128x128xbf16, #tpu.memory_space<vmem>>, vector<128x128xbf16>
    %c0_4 = arith.constant 0 : index
    %c0_5 = arith.constant 0 : index
    %5 = vector.load %arg4[%c0_4, %c0_5] : memref<128x128xbf16, #tpu.memory_space<vmem>>, vector<128x128xbf16>
    %cst = arith.constant dense<0.000000e+00> : vector<128x128xf32>
    %6 = tpu.matmul %4, %5, %cst {dimension_numbers = #tpu.dot_dimension_numbers<[1], [0], [0], [1], [0, 0, 1, 1], [], []>} : vector<128x128xbf16>, vector<128x128xbf16>, vector<128x128xf32> -> vector<128x128xf32>
    %7 = arith.addf %3, %6 : vector<128x128xf32>
    %c0_6 = arith.constant 0 : index
    %c0_7 = arith.constant 0 : index
    %8 = vector.load %arg7[%c0_6, %c0_7] : memref<128x128xf32, #tpu.memory_space<vmem>>, vector<128x128xf32>
    tpu.vector_store %arg7[%c0_6, %c0_7], %7 {strides = array<i32>} : memref<128x128xf32, #tpu.memory_space<vmem>>, vector<128x128xf32>,
    %c4_i32 = arith.constant 4 : i32
    %9 = arith.cmpi eq, %arg2, %c4_i32 : i32
    %10 = arith.extui %9 : i1 to i32
    %c0_i32_8 = arith.constant 0 : i32
    %11 = arith.cmpi ne, %10, %c0_i32_8 : i32
    scf.if %11 {
      %c0_9 = arith.constant 0 : index
      %c0_10 = arith.constant 0 : index
      %12 = vector.load %arg7[%c0_9, %c0_10] : memref<128x128xf32, #tpu.memory_space<vmem>>, vector<128x128xf32>
      %c0_11 = arith.constant 0 : index
      %c0_12 = arith.constant 0 : index
      %13 = vector.load %arg5[%c0_11, %c0_12] : memref<1x128xf32, #tpu.memory_space<vmem>>, vector<1x128xf32>
      %14 = vector.broadcast %13 : vector<1x128xf32> to vector<128x128xf32>
      %15 = arith.addf %12, %14 : vector<128x128xf32>
      %cst_13 = arith.constant 0.000000e+00 : f32
      %16 = vector.broadcast %cst_13 : f32 to vector<128x128xf32>
      %17 = arith.maximumf %15, %16 : vector<128x128xf32>
      %18 = arith.truncf %17 : vector<128x128xf32> to vector<128x128xbf16>
      %c0_14 = arith.constant 0 : index
      %c0_15 = arith.constant 0 : index
      %19 = vector.load %arg6[%c0_14, %c0_15] : memref<128x128xbf16, #tpu.memory_space<vmem>>, vector<128x128xbf16>
      tpu.vector_store %arg6[%c0_14, %c0_15], %18 {strides = array<i32>} : memref<128x128xbf16, #tpu.memory_space<vmem>>, vector<128x128xbf16>,
    } else {
    }
    return
  }
  func.func @transform_0(%arg0: i32, %arg1: i32, %arg2: i32) -> (i32, i32) {
    %c0_i32 = arith.constant 0 : i32
    return %arg0, %arg2 : i32, i32
  }
  func.func @transform_1(%arg0: i32, %arg1: i32, %arg2: i32) -> (i32, i32) {
    %c0_i32 = arith.constant 0 : i32
    return %arg2, %arg1 : i32, i32
  }
  func.func @transform_2(%arg0: i32, %arg1: i32, %arg2: i32) -> (i32, i32) {
    %c0_i32 = arith.constant 0 : i32
    %c0_i32_0 = arith.constant 0 : i32
    return %c0_i32, %arg1 : i32, i32
  }
  func.func @transform_3(%arg0: i32, %arg1: i32, %arg2: i32) -> (i32, i32) {
    %c0_i32 = arith.constant 0 : i32
    return %arg0, %arg1 : i32, i32
  }
}

module attributes {stable_mosaic.version = 11 : i64} {
  func.func @_mm_res_kernel(%arg0: i32, %arg1: i32, %arg2: i32, %arg3: memref<128x128xbf16, #tpu.memory_space<vmem>>, %arg4: memref<128x128xbf16, #tpu.memory_space<vmem>>, %arg5: memref<1x128xf32, #tpu.memory_space<vmem>>, %arg6: memref<128x128xbf16, #tpu.memory_space<vmem>>, %arg7: memref<128x128xbf16, #tpu.memory_space<vmem>>, %arg8: memref<128x128xf32, #tpu.memory_space<vmem>>) attributes {dimension_semantics = [#tpu.dimension_semantics<parallel>, #tpu.dimension_semantics<parallel>, #tpu.dimension_semantics<arbitrary>], iteration_bounds = array<i64: 1, 1, 5>, scalar_prefetch = 0 : i64, scratch_operands = 1 : i64, tpu.core_type = #tpu.core_type<tc>, window_params = [{transform_indices = @transform_0, window_bounds = array<i64: 128, 128>}, {transform_indices = @transform_1, window_bounds = array<i64: 128, 128>}, {transform_indices = @transform_2, window_bounds = array<i64: 1, 128>}, {transform_indices = @transform_3, window_bounds = array<i64: 128, 128>}, {transform_indices = @transform_4, window_bounds = array<i64: 128, 128>}]} {
    %c0_i32 = arith.constant 0 : i32
    %0 = arith.cmpi eq, %arg2, %c0_i32 : i32
    %1 = arith.extui %0 : i1 to i32
    %c0_i32_0 = arith.constant 0 : i32
    %2 = arith.cmpi ne, %1, %c0_i32_0 : i32
    scf.if %2 {
      %cst_9 = arith.constant 0.000000e+00 : f32
      %12 = vector.broadcast %cst_9 : f32 to vector<128x128xf32>
      %c0_10 = arith.constant 0 : index
      %c0_11 = arith.constant 0 : index
      %13 = vector.load %arg8[%c0_10, %c0_11] : memref<128x128xf32, #tpu.memory_space<vmem>>, vector<128x128xf32>
      tpu.vector_store %arg8[%c0_10, %c0_11], %12 {strides = array<i32>} : memref<128x128xf32, #tpu.memory_space<vmem>>, vector<128x128xf32>,
    } else {
    }
    %c0 = arith.constant 0 : index
    %c0_1 = arith.constant 0 : index
    %3 = vector.load %arg8[%c0, %c0_1] : memref<128x128xf32, #tpu.memory_space<vmem>>, vector<128x128xf32>
    %c0_2 = arith.constant 0 : index
    %c0_3 = arith.constant 0 : index
    %4 = vector.load %arg3[%c0_2, %c0_3] : memref<128x128xbf16, #tpu.memory_space<vmem>>, vector<128x128xbf16>
    %c0_4 = arith.constant 0 : index
    %c0_5 = arith.constant 0 : index
    %5 = vector.load %arg4[%c0_4, %c0_5] : memref<128x128xbf16, #tpu.memory_space<vmem>>, vector<128x128xbf16>
    %cst = arith.constant dense<0.000000e+00> : vector<128x128xf32>
    %6 = tpu.matmul %4, %5, %cst {dimension_numbers = #tpu.dot_dimension_numbers<[1], [0], [0], [1], [0, 0, 1, 1], [], []>} : vector<128x128xbf16>, vector<128x128xbf16>, vector<128x128xf32> -> vector<128x128xf32>
    %7 = arith.addf %3, %6 : vector<128x128xf32>
    %c0_6 = arith.constant 0 : index
    %c0_7 = arith.constant 0 : index
    %8 = vector.load %arg8[%c0_6, %c0_7] : memref<128x128xf32, #tpu.memory_space<vmem>>, vector<128x128xf32>
    tpu.vector_store %arg8[%c0_6, %c0_7], %7 {strides = array<i32>} : memref<128x128xf32, #tpu.memory_space<vmem>>, vector<128x128xf32>,
    %c4_i32 = arith.constant 4 : i32
    %9 = arith.cmpi eq, %arg2, %c4_i32 : i32
    %10 = arith.extui %9 : i1 to i32
    %c0_i32_8 = arith.constant 0 : i32
    %11 = arith.cmpi ne, %10, %c0_i32_8 : i32
    scf.if %11 {
      %c0_9 = arith.constant 0 : index
      %c0_10 = arith.constant 0 : index
      %12 = vector.load %arg8[%c0_9, %c0_10] : memref<128x128xf32, #tpu.memory_space<vmem>>, vector<128x128xf32>
      %c0_11 = arith.constant 0 : index
      %c0_12 = arith.constant 0 : index
      %13 = vector.load %arg5[%c0_11, %c0_12] : memref<1x128xf32, #tpu.memory_space<vmem>>, vector<1x128xf32>
      %14 = vector.broadcast %13 : vector<1x128xf32> to vector<128x128xf32>
      %15 = arith.addf %12, %14 : vector<128x128xf32>
      %c0_13 = arith.constant 0 : index
      %c0_14 = arith.constant 0 : index
      %16 = vector.load %arg6[%c0_13, %c0_14] : memref<128x128xbf16, #tpu.memory_space<vmem>>, vector<128x128xbf16>
      %17 = arith.extf %16 : vector<128x128xbf16> to vector<128x128xf32>
      %18 = arith.addf %15, %17 : vector<128x128xf32>
      %cst_15 = arith.constant 0.000000e+00 : f32
      %19 = vector.broadcast %cst_15 : f32 to vector<128x128xf32>
      %20 = arith.maximumf %18, %19 : vector<128x128xf32>
      %21 = arith.truncf %20 : vector<128x128xf32> to vector<128x128xbf16>
      %c0_16 = arith.constant 0 : index
      %c0_17 = arith.constant 0 : index
      %22 = vector.load %arg7[%c0_16, %c0_17] : memref<128x128xbf16, #tpu.memory_space<vmem>>, vector<128x128xbf16>
      tpu.vector_store %arg7[%c0_16, %c0_17], %21 {strides = array<i32>} : memref<128x128xbf16, #tpu.memory_space<vmem>>, vector<128x128xbf16>,
    } else {
    }
    return
  }
  func.func @transform_0(%arg0: i32, %arg1: i32, %arg2: i32) -> (i32, i32) {
    %c0_i32 = arith.constant 0 : i32
    return %arg0, %arg2 : i32, i32
  }
  func.func @transform_1(%arg0: i32, %arg1: i32, %arg2: i32) -> (i32, i32) {
    %c0_i32 = arith.constant 0 : i32
    return %arg2, %arg1 : i32, i32
  }
  func.func @transform_2(%arg0: i32, %arg1: i32, %arg2: i32) -> (i32, i32) {
    %c0_i32 = arith.constant 0 : i32
    %c0_i32_0 = arith.constant 0 : i32
    return %c0_i32, %arg1 : i32, i32
  }
  func.func @transform_3(%arg0: i32, %arg1: i32, %arg2: i32) -> (i32, i32) {
    %c0_i32 = arith.constant 0 : i32
    return %arg0, %arg1 : i32, i32
  }
  func.func @transform_4(%arg0: i32, %arg1: i32, %arg2: i32) -> (i32, i32) {
    %c0_i32 = arith.constant 0 : i32
    return %arg0, %arg1 : i32, i32
  }
}

module attributes {stable_mosaic.version = 11 : i64} {
  func.func @_mm_kernel(%arg0: i32, %arg1: i32, %arg2: i32, %arg3: memref<32x128xbf16, #tpu.memory_space<vmem>>, %arg4: memref<128x128xbf16, #tpu.memory_space<vmem>>, %arg5: memref<1x128xf32, #tpu.memory_space<vmem>>, %arg6: memref<32x128xbf16, #tpu.memory_space<vmem>>, %arg7: memref<32x128xf32, #tpu.memory_space<vmem>>) attributes {dimension_semantics = [#tpu.dimension_semantics<parallel>, #tpu.dimension_semantics<parallel>, #tpu.dimension_semantics<arbitrary>], iteration_bounds = array<i64: 1, 1, 5>, scalar_prefetch = 0 : i64, scratch_operands = 1 : i64, tpu.core_type = #tpu.core_type<tc>, window_params = [{transform_indices = @transform_0, window_bounds = array<i64: 32, 128>}, {transform_indices = @transform_1, window_bounds = array<i64: 128, 128>}, {transform_indices = @transform_2, window_bounds = array<i64: 1, 128>}, {transform_indices = @transform_3, window_bounds = array<i64: 32, 128>}]} {
    %c0_i32 = arith.constant 0 : i32
    %0 = arith.cmpi eq, %arg2, %c0_i32 : i32
    %1 = arith.extui %0 : i1 to i32
    %c0_i32_0 = arith.constant 0 : i32
    %2 = arith.cmpi ne, %1, %c0_i32_0 : i32
    scf.if %2 {
      %cst_9 = arith.constant 0.000000e+00 : f32
      %12 = vector.broadcast %cst_9 : f32 to vector<32x128xf32>
      %c0_10 = arith.constant 0 : index
      %c0_11 = arith.constant 0 : index
      %13 = vector.load %arg7[%c0_10, %c0_11] : memref<32x128xf32, #tpu.memory_space<vmem>>, vector<32x128xf32>
      tpu.vector_store %arg7[%c0_10, %c0_11], %12 {strides = array<i32>} : memref<32x128xf32, #tpu.memory_space<vmem>>, vector<32x128xf32>,
    } else {
    }
    %c0 = arith.constant 0 : index
    %c0_1 = arith.constant 0 : index
    %3 = vector.load %arg7[%c0, %c0_1] : memref<32x128xf32, #tpu.memory_space<vmem>>, vector<32x128xf32>
    %c0_2 = arith.constant 0 : index
    %c0_3 = arith.constant 0 : index
    %4 = vector.load %arg3[%c0_2, %c0_3] : memref<32x128xbf16, #tpu.memory_space<vmem>>, vector<32x128xbf16>
    %c0_4 = arith.constant 0 : index
    %c0_5 = arith.constant 0 : index
    %5 = vector.load %arg4[%c0_4, %c0_5] : memref<128x128xbf16, #tpu.memory_space<vmem>>, vector<128x128xbf16>
    %cst = arith.constant dense<0.000000e+00> : vector<32x128xf32>
    %6 = tpu.matmul %4, %5, %cst {dimension_numbers = #tpu.dot_dimension_numbers<[1], [0], [0], [1], [0, 0, 1, 1], [], []>} : vector<32x128xbf16>, vector<128x128xbf16>, vector<32x128xf32> -> vector<32x128xf32>
    %7 = arith.addf %3, %6 : vector<32x128xf32>
    %c0_6 = arith.constant 0 : index
    %c0_7 = arith.constant 0 : index
    %8 = vector.load %arg7[%c0_6, %c0_7] : memref<32x128xf32, #tpu.memory_space<vmem>>, vector<32x128xf32>
    tpu.vector_store %arg7[%c0_6, %c0_7], %7 {strides = array<i32>} : memref<32x128xf32, #tpu.memory_space<vmem>>, vector<32x128xf32>,
    %c4_i32 = arith.constant 4 : i32
    %9 = arith.cmpi eq, %arg2, %c4_i32 : i32
    %10 = arith.extui %9 : i1 to i32
    %c0_i32_8 = arith.constant 0 : i32
    %11 = arith.cmpi ne, %10, %c0_i32_8 : i32
    scf.if %11 {
      %c0_9 = arith.constant 0 : index
      %c0_10 = arith.constant 0 : index
      %12 = vector.load %arg7[%c0_9, %c0_10] : memref<32x128xf32, #tpu.memory_space<vmem>>, vector<32x128xf32>
      %c0_11 = arith.constant 0 : index
      %c0_12 = arith.constant 0 : index
      %13 = vector.load %arg5[%c0_11, %c0_12] : memref<1x128xf32, #tpu.memory_space<vmem>>, vector<1x128xf32>
      %14 = vector.broadcast %13 : vector<1x128xf32> to vector<32x128xf32>
      %15 = arith.addf %12, %14 : vector<32x128xf32>
      %cst_13 = arith.constant 0.000000e+00 : f32
      %16 = vector.broadcast %cst_13 : f32 to vector<32x128xf32>
      %17 = arith.maximumf %15, %16 : vector<32x128xf32>
      %18 = arith.truncf %17 : vector<32x128xf32> to vector<32x128xbf16>
      %c0_14 = arith.constant 0 : index
      %c0_15 = arith.constant 0 : index
      %19 = vector.load %arg6[%c0_14, %c0_15] : memref<32x128xbf16, #tpu.memory_space<vmem>>, vector<32x128xbf16>
      tpu.vector_store %arg6[%c0_14, %c0_15], %18 {strides = array<i32>} : memref<32x128xbf16, #tpu.memory_space<vmem>>, vector<32x128xbf16>,
    } else {
    }
    return
  }
  func.func @transform_0(%arg0: i32, %arg1: i32, %arg2: i32) -> (i32, i32) {
    %c0_i32 = arith.constant 0 : i32
    return %arg0, %arg2 : i32, i32
  }
  func.func @transform_1(%arg0: i32, %arg1: i32, %arg2: i32) -> (i32, i32) {
    %c0_i32 = arith.constant 0 : i32
    return %arg2, %arg1 : i32, i32
  }
  func.func @transform_2(%arg0: i32, %arg1: i32, %arg2: i32) -> (i32, i32) {
    %c0_i32 = arith.constant 0 : i32
    %c0_i32_0 = arith.constant 0 : i32
    return %c0_i32, %arg1 : i32, i32
  }
  func.func @transform_3(%arg0: i32, %arg1: i32, %arg2: i32) -> (i32, i32) {
    %c0_i32 = arith.constant 0 : i32
    return %arg0, %arg1 : i32, i32
  }
}

module attributes {stable_mosaic.version = 11 : i64} {
  func.func @_mm_kernel(%arg0: i32, %arg1: i32, %arg2: i32, %arg3: memref<32x128xbf16, #tpu.memory_space<vmem>>, %arg4: memref<128x128xbf16, #tpu.memory_space<vmem>>, %arg5: memref<1x128xf32, #tpu.memory_space<vmem>>, %arg6: memref<32x128xbf16, #tpu.memory_space<vmem>>, %arg7: memref<32x128xf32, #tpu.memory_space<vmem>>) attributes {dimension_semantics = [#tpu.dimension_semantics<parallel>, #tpu.dimension_semantics<parallel>, #tpu.dimension_semantics<arbitrary>], iteration_bounds = array<i64: 1, 1, 1>, scalar_prefetch = 0 : i64, scratch_operands = 1 : i64, tpu.core_type = #tpu.core_type<tc>, window_params = [{transform_indices = @transform_0, window_bounds = array<i64: 32, 128>}, {transform_indices = @transform_1, window_bounds = array<i64: 128, 128>}, {transform_indices = @transform_2, window_bounds = array<i64: 1, 128>}, {transform_indices = @transform_3, window_bounds = array<i64: 32, 128>}]} {
    %c0_i32 = arith.constant 0 : i32
    %0 = arith.cmpi eq, %arg2, %c0_i32 : i32
    %1 = arith.extui %0 : i1 to i32
    %c0_i32_0 = arith.constant 0 : i32
    %2 = arith.cmpi ne, %1, %c0_i32_0 : i32
    scf.if %2 {
      %cst_10 = arith.constant 0.000000e+00 : f32
      %12 = vector.broadcast %cst_10 : f32 to vector<32x128xf32>
      %c0_11 = arith.constant 0 : index
      %c0_12 = arith.constant 0 : index
      %13 = vector.load %arg7[%c0_11, %c0_12] : memref<32x128xf32, #tpu.memory_space<vmem>>, vector<32x128xf32>
      tpu.vector_store %arg7[%c0_11, %c0_12], %12 {strides = array<i32>} : memref<32x128xf32, #tpu.memory_space<vmem>>, vector<32x128xf32>,
    } else {
    }
    %c0 = arith.constant 0 : index
    %c0_1 = arith.constant 0 : index
    %3 = vector.load %arg7[%c0, %c0_1] : memref<32x128xf32, #tpu.memory_space<vmem>>, vector<32x128xf32>
    %c0_2 = arith.constant 0 : index
    %c0_3 = arith.constant 0 : index
    %4 = vector.load %arg3[%c0_2, %c0_3] : memref<32x128xbf16, #tpu.memory_space<vmem>>, vector<32x128xbf16>
    %c0_4 = arith.constant 0 : index
    %c0_5 = arith.constant 0 : index
    %5 = vector.load %arg4[%c0_4, %c0_5] : memref<128x128xbf16, #tpu.memory_space<vmem>>, vector<128x128xbf16>
    %cst = arith.constant dense<0.000000e+00> : vector<32x128xf32>
    %6 = tpu.matmul %4, %5, %cst {dimension_numbers = #tpu.dot_dimension_numbers<[1], [0], [0], [1], [0, 0, 1, 1], [], []>} : vector<32x128xbf16>, vector<128x128xbf16>, vector<32x128xf32> -> vector<32x128xf32>
    %7 = arith.addf %3, %6 : vector<32x128xf32>
    %c0_6 = arith.constant 0 : index
    %c0_7 = arith.constant 0 : index
    %8 = vector.load %arg7[%c0_6, %c0_7] : memref<32x128xf32, #tpu.memory_space<vmem>>, vector<32x128xf32>
    tpu.vector_store %arg7[%c0_6, %c0_7], %7 {strides = array<i32>} : memref<32x128xf32, #tpu.memory_space<vmem>>, vector<32x128xf32>,
    %c0_i32_8 = arith.constant 0 : i32
    %9 = arith.cmpi eq, %arg2, %c0_i32_8 : i32
    %10 = arith.extui %9 : i1 to i32
    %c0_i32_9 = arith.constant 0 : i32
    %11 = arith.cmpi ne, %10, %c0_i32_9 : i32
    scf.if %11 {
      %c0_10 = arith.constant 0 : index
      %c0_11 = arith.constant 0 : index
      %12 = vector.load %arg7[%c0_10, %c0_11] : memref<32x128xf32, #tpu.memory_space<vmem>>, vector<32x128xf32>
      %c0_12 = arith.constant 0 : index
      %c0_13 = arith.constant 0 : index
      %13 = vector.load %arg5[%c0_12, %c0_13] : memref<1x128xf32, #tpu.memory_space<vmem>>, vector<1x128xf32>
      %14 = vector.broadcast %13 : vector<1x128xf32> to vector<32x128xf32>
      %15 = arith.addf %12, %14 : vector<32x128xf32>
      %16 = arith.truncf %15 : vector<32x128xf32> to vector<32x128xbf16>
      %c0_14 = arith.constant 0 : index
      %c0_15 = arith.constant 0 : index
      %17 = vector.load %arg6[%c0_14, %c0_15] : memref<32x128xbf16, #tpu.memory_space<vmem>>, vector<32x128xbf16>
      tpu.vector_store %arg6[%c0_14, %c0_15], %16 {strides = array<i32>} : memref<32x128xbf16, #tpu.memory_space<vmem>>, vector<32x128xbf16>,
    } else {
    }
    return
  }
  func.func @transform_0(%arg0: i32, %arg1: i32, %arg2: i32) -> (i32, i32) {
    %c0_i32 = arith.constant 0 : i32
    return %arg0, %arg2 : i32, i32
  }
  func.func @transform_1(%arg0: i32, %arg1: i32, %arg2: i32) -> (i32, i32) {
    %c0_i32 = arith.constant 0 : i32
    return %arg2, %arg1 : i32, i32
  }
  func.func @transform_2(%arg0: i32, %arg1: i32, %arg2: i32) -> (i32, i32) {
    %c0_i32 = arith.constant 0 : i32
    %c0_i32_0 = arith.constant 0 : i32
    return %c0_i32, %arg1 : i32, i32
  }
  func.func @transform_3(%arg0: i32, %arg1: i32, %arg2: i32) -> (i32, i32) {
    %c0_i32 = arith.constant 0 : i32
    return %arg0, %arg1 : i32, i32
  }
}

module attributes {stable_mosaic.version = 11 : i64} {
  func.func @_mm_res_kernel(%arg0: i32, %arg1: i32, %arg2: i32, %arg3: memref<32x128xbf16, #tpu.memory_space<vmem>>, %arg4: memref<128x128xbf16, #tpu.memory_space<vmem>>, %arg5: memref<1x128xf32, #tpu.memory_space<vmem>>, %arg6: memref<32x128xbf16, #tpu.memory_space<vmem>>, %arg7: memref<32x128xbf16, #tpu.memory_space<vmem>>, %arg8: memref<32x128xf32, #tpu.memory_space<vmem>>) attributes {dimension_semantics = [#tpu.dimension_semantics<parallel>, #tpu.dimension_semantics<parallel>, #tpu.dimension_semantics<arbitrary>], iteration_bounds = array<i64: 1, 1, 9>, scalar_prefetch = 0 : i64, scratch_operands = 1 : i64, tpu.core_type = #tpu.core_type<tc>, window_params = [{transform_indices = @transform_0, window_bounds = array<i64: 32, 128>}, {transform_indices = @transform_1, window_bounds = array<i64: 128, 128>}, {transform_indices = @transform_2, window_bounds = array<i64: 1, 128>}, {transform_indices = @transform_3, window_bounds = array<i64: 32, 128>}, {transform_indices = @transform_4, window_bounds = array<i64: 32, 128>}]} {
    %c0_i32 = arith.constant 0 : i32
    %0 = arith.cmpi eq, %arg2, %c0_i32 : i32
    %1 = arith.extui %0 : i1 to i32
    %c0_i32_0 = arith.constant 0 : i32
    %2 = arith.cmpi ne, %1, %c0_i32_0 : i32
    scf.if %2 {
      %cst_9 = arith.constant 0.000000e+00 : f32
      %12 = vector.broadcast %cst_9 : f32 to vector<32x128xf32>
      %c0_10 = arith.constant 0 : index
      %c0_11 = arith.constant 0 : index
      %13 = vector.load %arg8[%c0_10, %c0_11] : memref<32x128xf32, #tpu.memory_space<vmem>>, vector<32x128xf32>
      tpu.vector_store %arg8[%c0_10, %c0_11], %12 {strides = array<i32>} : memref<32x128xf32, #tpu.memory_space<vmem>>, vector<32x128xf32>,
    } else {
    }
    %c0 = arith.constant 0 : index
    %c0_1 = arith.constant 0 : index
    %3 = vector.load %arg8[%c0, %c0_1] : memref<32x128xf32, #tpu.memory_space<vmem>>, vector<32x128xf32>
    %c0_2 = arith.constant 0 : index
    %c0_3 = arith.constant 0 : index
    %4 = vector.load %arg3[%c0_2, %c0_3] : memref<32x128xbf16, #tpu.memory_space<vmem>>, vector<32x128xbf16>
    %c0_4 = arith.constant 0 : index
    %c0_5 = arith.constant 0 : index
    %5 = vector.load %arg4[%c0_4, %c0_5] : memref<128x128xbf16, #tpu.memory_space<vmem>>, vector<128x128xbf16>
    %cst = arith.constant dense<0.000000e+00> : vector<32x128xf32>
    %6 = tpu.matmul %4, %5, %cst {dimension_numbers = #tpu.dot_dimension_numbers<[1], [0], [0], [1], [0, 0, 1, 1], [], []>} : vector<32x128xbf16>, vector<128x128xbf16>, vector<32x128xf32> -> vector<32x128xf32>
    %7 = arith.addf %3, %6 : vector<32x128xf32>
    %c0_6 = arith.constant 0 : index
    %c0_7 = arith.constant 0 : index
    %8 = vector.load %arg8[%c0_6, %c0_7] : memref<32x128xf32, #tpu.memory_space<vmem>>, vector<32x128xf32>
    tpu.vector_store %arg8[%c0_6, %c0_7], %7 {strides = array<i32>} : memref<32x128xf32, #tpu.memory_space<vmem>>, vector<32x128xf32>,
    %c8_i32 = arith.constant 8 : i32
    %9 = arith.cmpi eq, %arg2, %c8_i32 : i32
    %10 = arith.extui %9 : i1 to i32
    %c0_i32_8 = arith.constant 0 : i32
    %11 = arith.cmpi ne, %10, %c0_i32_8 : i32
    scf.if %11 {
      %c0_9 = arith.constant 0 : index
      %c0_10 = arith.constant 0 : index
      %12 = vector.load %arg8[%c0_9, %c0_10] : memref<32x128xf32, #tpu.memory_space<vmem>>, vector<32x128xf32>
      %c0_11 = arith.constant 0 : index
      %c0_12 = arith.constant 0 : index
      %13 = vector.load %arg5[%c0_11, %c0_12] : memref<1x128xf32, #tpu.memory_space<vmem>>, vector<1x128xf32>
      %14 = vector.broadcast %13 : vector<1x128xf32> to vector<32x128xf32>
      %15 = arith.addf %12, %14 : vector<32x128xf32>
      %c0_13 = arith.constant 0 : index
      %c0_14 = arith.constant 0 : index
      %16 = vector.load %arg6[%c0_13, %c0_14] : memref<32x128xbf16, #tpu.memory_space<vmem>>, vector<32x128xbf16>
      %17 = arith.extf %16 : vector<32x128xbf16> to vector<32x128xf32>
      %18 = arith.addf %15, %17 : vector<32x128xf32>
      %cst_15 = arith.constant 0.000000e+00 : f32
      %19 = vector.broadcast %cst_15 : f32 to vector<32x128xf32>
      %20 = arith.maximumf %18, %19 : vector<32x128xf32>
      %21 = arith.truncf %20 : vector<32x128xf32> to vector<32x128xbf16>
      %c0_16 = arith.constant 0 : index
      %c0_17 = arith.constant 0 : index
      %22 = vector.load %arg7[%c0_16, %c0_17] : memref<32x128xbf16, #tpu.memory_space<vmem>>, vector<32x128xbf16>
      tpu.vector_store %arg7[%c0_16, %c0_17], %21 {strides = array<i32>} : memref<32x128xbf16, #tpu.memory_space<vmem>>, vector<32x128xbf16>,
    } else {
    }
    return
  }
  func.func @transform_0(%arg0: i32, %arg1: i32, %arg2: i32) -> (i32, i32) {
    %c0_i32 = arith.constant 0 : i32
    return %arg0, %arg2 : i32, i32
  }
  func.func @transform_1(%arg0: i32, %arg1: i32, %arg2: i32) -> (i32, i32) {
    %c0_i32 = arith.constant 0 : i32
    return %arg2, %arg1 : i32, i32
  }
  func.func @transform_2(%arg0: i32, %arg1: i32, %arg2: i32) -> (i32, i32) {
    %c0_i32 = arith.constant 0 : i32
    %c0_i32_0 = arith.constant 0 : i32
    return %c0_i32, %arg1 : i32, i32
  }
  func.func @transform_3(%arg0: i32, %arg1: i32, %arg2: i32) -> (i32, i32) {
    %c0_i32 = arith.constant 0 : i32
    return %arg0, %arg1 : i32, i32
  }
  func.func @transform_4(%arg0: i32, %arg1: i32, %arg2: i32) -> (i32, i32) {
    %c0_i32 = arith.constant 0 : i32
    return %arg0, %arg1 : i32, i32
  }
}

module attributes {stable_mosaic.version = 11 : i64} {
  func.func @_mm_kernel(%arg0: i32, %arg1: i32, %arg2: i32, %arg3: memref<32x128xbf16, #tpu.memory_space<vmem>>, %arg4: memref<128x128xbf16, #tpu.memory_space<vmem>>, %arg5: memref<1x128xf32, #tpu.memory_space<vmem>>, %arg6: memref<32x128xbf16, #tpu.memory_space<vmem>>, %arg7: memref<32x128xf32, #tpu.memory_space<vmem>>) attributes {dimension_semantics = [#tpu.dimension_semantics<parallel>, #tpu.dimension_semantics<parallel>, #tpu.dimension_semantics<arbitrary>], iteration_bounds = array<i64: 1, 1, 9>, scalar_prefetch = 0 : i64, scratch_operands = 1 : i64, tpu.core_type = #tpu.core_type<tc>, window_params = [{transform_indices = @transform_0, window_bounds = array<i64: 32, 128>}, {transform_indices = @transform_1, window_bounds = array<i64: 128, 128>}, {transform_indices = @transform_2, window_bounds = array<i64: 1, 128>}, {transform_indices = @transform_3, window_bounds = array<i64: 32, 128>}]} {
    %c0_i32 = arith.constant 0 : i32
    %0 = arith.cmpi eq, %arg2, %c0_i32 : i32
    %1 = arith.extui %0 : i1 to i32
    %c0_i32_0 = arith.constant 0 : i32
    %2 = arith.cmpi ne, %1, %c0_i32_0 : i32
    scf.if %2 {
      %cst_9 = arith.constant 0.000000e+00 : f32
      %12 = vector.broadcast %cst_9 : f32 to vector<32x128xf32>
      %c0_10 = arith.constant 0 : index
      %c0_11 = arith.constant 0 : index
      %13 = vector.load %arg7[%c0_10, %c0_11] : memref<32x128xf32, #tpu.memory_space<vmem>>, vector<32x128xf32>
      tpu.vector_store %arg7[%c0_10, %c0_11], %12 {strides = array<i32>} : memref<32x128xf32, #tpu.memory_space<vmem>>, vector<32x128xf32>,
    } else {
    }
    %c0 = arith.constant 0 : index
    %c0_1 = arith.constant 0 : index
    %3 = vector.load %arg7[%c0, %c0_1] : memref<32x128xf32, #tpu.memory_space<vmem>>, vector<32x128xf32>
    %c0_2 = arith.constant 0 : index
    %c0_3 = arith.constant 0 : index
    %4 = vector.load %arg3[%c0_2, %c0_3] : memref<32x128xbf16, #tpu.memory_space<vmem>>, vector<32x128xbf16>
    %c0_4 = arith.constant 0 : index
    %c0_5 = arith.constant 0 : index
    %5 = vector.load %arg4[%c0_4, %c0_5] : memref<128x128xbf16, #tpu.memory_space<vmem>>, vector<128x128xbf16>
    %cst = arith.constant dense<0.000000e+00> : vector<32x128xf32>
    %6 = tpu.matmul %4, %5, %cst {dimension_numbers = #tpu.dot_dimension_numbers<[1], [0], [0], [1], [0, 0, 1, 1], [], []>} : vector<32x128xbf16>, vector<128x128xbf16>, vector<32x128xf32> -> vector<32x128xf32>
    %7 = arith.addf %3, %6 : vector<32x128xf32>
    %c0_6 = arith.constant 0 : index
    %c0_7 = arith.constant 0 : index
    %8 = vector.load %arg7[%c0_6, %c0_7] : memref<32x128xf32, #tpu.memory_space<vmem>>, vector<32x128xf32>
    tpu.vector_store %arg7[%c0_6, %c0_7], %7 {strides = array<i32>} : memref<32x128xf32, #tpu.memory_space<vmem>>, vector<32x128xf32>,
    %c8_i32 = arith.constant 8 : i32
    %9 = arith.cmpi eq, %arg2, %c8_i32 : i32
    %10 = arith.extui %9 : i1 to i32
    %c0_i32_8 = arith.constant 0 : i32
    %11 = arith.cmpi ne, %10, %c0_i32_8 : i32
    scf.if %11 {
      %c0_9 = arith.constant 0 : index
      %c0_10 = arith.constant 0 : index
      %12 = vector.load %arg7[%c0_9, %c0_10] : memref<32x128xf32, #tpu.memory_space<vmem>>, vector<32x128xf32>
      %c0_11 = arith.constant 0 : index
      %c0_12 = arith.constant 0 : index
      %13 = vector.load %arg5[%c0_11, %c0_12] : memref<1x128xf32, #tpu.memory_space<vmem>>, vector<1x128xf32>
      %14 = vector.broadcast %13 : vector<1x128xf32> to vector<32x128xf32>
      %15 = arith.addf %12, %14 : vector<32x128xf32>
      %cst_13 = arith.constant 0.000000e+00 : f32
      %16 = vector.broadcast %cst_13 : f32 to vector<32x128xf32>
      %17 = arith.maximumf %15, %16 : vector<32x128xf32>
      %18 = arith.truncf %17 : vector<32x128xf32> to vector<32x128xbf16>
      %c0_14 = arith.constant 0 : index
      %c0_15 = arith.constant 0 : index
      %19 = vector.load %arg6[%c0_14, %c0_15] : memref<32x128xbf16, #tpu.memory_space<vmem>>, vector<32x128xbf16>
      tpu.vector_store %arg6[%c0_14, %c0_15], %18 {strides = array<i32>} : memref<32x128xbf16, #tpu.memory_space<vmem>>, vector<32x128xbf16>,
    } else {
    }
    return
  }
  func.func @transform_0(%arg0: i32, %arg1: i32, %arg2: i32) -> (i32, i32) {
    %c0_i32 = arith.constant 0 : i32
    return %arg0, %arg2 : i32, i32
  }
  func.func @transform_1(%arg0: i32, %arg1: i32, %arg2: i32) -> (i32, i32) {
    %c0_i32 = arith.constant 0 : i32
    return %arg2, %arg1 : i32, i32
  }
  func.func @transform_2(%arg0: i32, %arg1: i32, %arg2: i32) -> (i32, i32) {
    %c0_i32 = arith.constant 0 : i32
    %c0_i32_0 = arith.constant 0 : i32
    return %c0_i32, %arg1 : i32, i32
  }
  func.func @transform_3(%arg0: i32, %arg1: i32, %arg2: i32) -> (i32, i32) {
    %c0_i32 = arith.constant 0 : i32
    return %arg0, %arg1 : i32, i32
  }
}

module attributes {stable_mosaic.version = 11 : i64} {
  func.func @_mm_kernel(%arg0: i32, %arg1: i32, %arg2: i32, %arg3: memref<16x128xbf16, #tpu.memory_space<vmem>>, %arg4: memref<128x256xbf16, #tpu.memory_space<vmem>>, %arg5: memref<1x256xf32, #tpu.memory_space<vmem>>, %arg6: memref<16x256xbf16, #tpu.memory_space<vmem>>, %arg7: memref<16x256xf32, #tpu.memory_space<vmem>>) attributes {dimension_semantics = [#tpu.dimension_semantics<parallel>, #tpu.dimension_semantics<parallel>, #tpu.dimension_semantics<arbitrary>], iteration_bounds = array<i64: 1, 1, 9>, scalar_prefetch = 0 : i64, scratch_operands = 1 : i64, tpu.core_type = #tpu.core_type<tc>, window_params = [{transform_indices = @transform_0, window_bounds = array<i64: 16, 128>}, {transform_indices = @transform_1, window_bounds = array<i64: 128, 256>}, {transform_indices = @transform_2, window_bounds = array<i64: 1, 256>}, {transform_indices = @transform_3, window_bounds = array<i64: 16, 256>}]} {
    %c0_i32 = arith.constant 0 : i32
    %0 = arith.cmpi eq, %arg2, %c0_i32 : i32
    %1 = arith.extui %0 : i1 to i32
    %c0_i32_0 = arith.constant 0 : i32
    %2 = arith.cmpi ne, %1, %c0_i32_0 : i32
    scf.if %2 {
      %cst_9 = arith.constant 0.000000e+00 : f32
      %12 = vector.broadcast %cst_9 : f32 to vector<16x256xf32>
      %c0_10 = arith.constant 0 : index
      %c0_11 = arith.constant 0 : index
      %13 = vector.load %arg7[%c0_10, %c0_11] : memref<16x256xf32, #tpu.memory_space<vmem>>, vector<16x256xf32>
      tpu.vector_store %arg7[%c0_10, %c0_11], %12 {strides = array<i32>} : memref<16x256xf32, #tpu.memory_space<vmem>>, vector<16x256xf32>,
    } else {
    }
    %c0 = arith.constant 0 : index
    %c0_1 = arith.constant 0 : index
    %3 = vector.load %arg7[%c0, %c0_1] : memref<16x256xf32, #tpu.memory_space<vmem>>, vector<16x256xf32>
    %c0_2 = arith.constant 0 : index
    %c0_3 = arith.constant 0 : index
    %4 = vector.load %arg3[%c0_2, %c0_3] : memref<16x128xbf16, #tpu.memory_space<vmem>>, vector<16x128xbf16>
    %c0_4 = arith.constant 0 : index
    %c0_5 = arith.constant 0 : index
    %5 = vector.load %arg4[%c0_4, %c0_5] : memref<128x256xbf16, #tpu.memory_space<vmem>>, vector<128x256xbf16>
    %cst = arith.constant dense<0.000000e+00> : vector<16x256xf32>
    %6 = tpu.matmul %4, %5, %cst {dimension_numbers = #tpu.dot_dimension_numbers<[1], [0], [0], [1], [0, 0, 1, 1], [], []>} : vector<16x128xbf16>, vector<128x256xbf16>, vector<16x256xf32> -> vector<16x256xf32>
    %7 = arith.addf %3, %6 : vector<16x256xf32>
    %c0_6 = arith.constant 0 : index
    %c0_7 = arith.constant 0 : index
    %8 = vector.load %arg7[%c0_6, %c0_7] : memref<16x256xf32, #tpu.memory_space<vmem>>, vector<16x256xf32>
    tpu.vector_store %arg7[%c0_6, %c0_7], %7 {strides = array<i32>} : memref<16x256xf32, #tpu.memory_space<vmem>>, vector<16x256xf32>,
    %c8_i32 = arith.constant 8 : i32
    %9 = arith.cmpi eq, %arg2, %c8_i32 : i32
    %10 = arith.extui %9 : i1 to i32
    %c0_i32_8 = arith.constant 0 : i32
    %11 = arith.cmpi ne, %10, %c0_i32_8 : i32
    scf.if %11 {
      %c0_9 = arith.constant 0 : index
      %c0_10 = arith.constant 0 : index
      %12 = vector.load %arg7[%c0_9, %c0_10] : memref<16x256xf32, #tpu.memory_space<vmem>>, vector<16x256xf32>
      %c0_11 = arith.constant 0 : index
      %c0_12 = arith.constant 0 : index
      %13 = vector.load %arg5[%c0_11, %c0_12] : memref<1x256xf32, #tpu.memory_space<vmem>>, vector<1x256xf32>
      %14 = vector.broadcast %13 : vector<1x256xf32> to vector<16x256xf32>
      %15 = arith.addf %12, %14 : vector<16x256xf32>
      %cst_13 = arith.constant 0.000000e+00 : f32
      %16 = vector.broadcast %cst_13 : f32 to vector<16x256xf32>
      %17 = arith.maximumf %15, %16 : vector<16x256xf32>
      %18 = arith.truncf %17 : vector<16x256xf32> to vector<16x256xbf16>
      %c0_14 = arith.constant 0 : index
      %c0_15 = arith.constant 0 : index
      %19 = vector.load %arg6[%c0_14, %c0_15] : memref<16x256xbf16, #tpu.memory_space<vmem>>, vector<16x256xbf16>
      tpu.vector_store %arg6[%c0_14, %c0_15], %18 {strides = array<i32>} : memref<16x256xbf16, #tpu.memory_space<vmem>>, vector<16x256xbf16>,
    } else {
    }
    return
  }
  func.func @transform_0(%arg0: i32, %arg1: i32, %arg2: i32) -> (i32, i32) {
    %c0_i32 = arith.constant 0 : i32
    return %arg0, %arg2 : i32, i32
  }
  func.func @transform_1(%arg0: i32, %arg1: i32, %arg2: i32) -> (i32, i32) {
    %c0_i32 = arith.constant 0 : i32
    return %arg2, %arg1 : i32, i32
  }
  func.func @transform_2(%arg0: i32, %arg1: i32, %arg2: i32) -> (i32, i32) {
    %c0_i32 = arith.constant 0 : i32
    %c0_i32_0 = arith.constant 0 : i32
    return %c0_i32, %arg1 : i32, i32
  }
  func.func @transform_3(%arg0: i32, %arg1: i32, %arg2: i32) -> (i32, i32) {
    %c0_i32 = arith.constant 0 : i32
    return %arg0, %arg1 : i32, i32
  }
}

module attributes {stable_mosaic.version = 11 : i64} {
  func.func @_mm_res_kernel(%arg0: i32, %arg1: i32, %arg2: i32, %arg3: memref<16x256xbf16, #tpu.memory_space<vmem>>, %arg4: memref<256x256xbf16, #tpu.memory_space<vmem>>, %arg5: memref<1x256xf32, #tpu.memory_space<vmem>>, %arg6: memref<16x256xbf16, #tpu.memory_space<vmem>>, %arg7: memref<16x256xbf16, #tpu.memory_space<vmem>>, %arg8: memref<16x256xf32, #tpu.memory_space<vmem>>) attributes {dimension_semantics = [#tpu.dimension_semantics<parallel>, #tpu.dimension_semantics<parallel>, #tpu.dimension_semantics<arbitrary>], iteration_bounds = array<i64: 1, 1, 9>, scalar_prefetch = 0 : i64, scratch_operands = 1 : i64, tpu.core_type = #tpu.core_type<tc>, window_params = [{transform_indices = @transform_0, window_bounds = array<i64: 16, 256>}, {transform_indices = @transform_1, window_bounds = array<i64: 256, 256>}, {transform_indices = @transform_2, window_bounds = array<i64: 1, 256>}, {transform_indices = @transform_3, window_bounds = array<i64: 16, 256>}, {transform_indices = @transform_4, window_bounds = array<i64: 16, 256>}]} {
    %c0_i32 = arith.constant 0 : i32
    %0 = arith.cmpi eq, %arg2, %c0_i32 : i32
    %1 = arith.extui %0 : i1 to i32
    %c0_i32_0 = arith.constant 0 : i32
    %2 = arith.cmpi ne, %1, %c0_i32_0 : i32
    scf.if %2 {
      %cst_9 = arith.constant 0.000000e+00 : f32
      %12 = vector.broadcast %cst_9 : f32 to vector<16x256xf32>
      %c0_10 = arith.constant 0 : index
      %c0_11 = arith.constant 0 : index
      %13 = vector.load %arg8[%c0_10, %c0_11] : memref<16x256xf32, #tpu.memory_space<vmem>>, vector<16x256xf32>
      tpu.vector_store %arg8[%c0_10, %c0_11], %12 {strides = array<i32>} : memref<16x256xf32, #tpu.memory_space<vmem>>, vector<16x256xf32>,
    } else {
    }
    %c0 = arith.constant 0 : index
    %c0_1 = arith.constant 0 : index
    %3 = vector.load %arg8[%c0, %c0_1] : memref<16x256xf32, #tpu.memory_space<vmem>>, vector<16x256xf32>
    %c0_2 = arith.constant 0 : index
    %c0_3 = arith.constant 0 : index
    %4 = vector.load %arg3[%c0_2, %c0_3] : memref<16x256xbf16, #tpu.memory_space<vmem>>, vector<16x256xbf16>
    %c0_4 = arith.constant 0 : index
    %c0_5 = arith.constant 0 : index
    %5 = vector.load %arg4[%c0_4, %c0_5] : memref<256x256xbf16, #tpu.memory_space<vmem>>, vector<256x256xbf16>
    %cst = arith.constant dense<0.000000e+00> : vector<16x256xf32>
    %6 = tpu.matmul %4, %5, %cst {dimension_numbers = #tpu.dot_dimension_numbers<[1], [0], [0], [1], [0, 0, 1, 1], [], []>} : vector<16x256xbf16>, vector<256x256xbf16>, vector<16x256xf32> -> vector<16x256xf32>
    %7 = arith.addf %3, %6 : vector<16x256xf32>
    %c0_6 = arith.constant 0 : index
    %c0_7 = arith.constant 0 : index
    %8 = vector.load %arg8[%c0_6, %c0_7] : memref<16x256xf32, #tpu.memory_space<vmem>>, vector<16x256xf32>
    tpu.vector_store %arg8[%c0_6, %c0_7], %7 {strides = array<i32>} : memref<16x256xf32, #tpu.memory_space<vmem>>, vector<16x256xf32>,
    %c8_i32 = arith.constant 8 : i32
    %9 = arith.cmpi eq, %arg2, %c8_i32 : i32
    %10 = arith.extui %9 : i1 to i32
    %c0_i32_8 = arith.constant 0 : i32
    %11 = arith.cmpi ne, %10, %c0_i32_8 : i32
    scf.if %11 {
      %c0_9 = arith.constant 0 : index
      %c0_10 = arith.constant 0 : index
      %12 = vector.load %arg8[%c0_9, %c0_10] : memref<16x256xf32, #tpu.memory_space<vmem>>, vector<16x256xf32>
      %c0_11 = arith.constant 0 : index
      %c0_12 = arith.constant 0 : index
      %13 = vector.load %arg5[%c0_11, %c0_12] : memref<1x256xf32, #tpu.memory_space<vmem>>, vector<1x256xf32>
      %14 = vector.broadcast %13 : vector<1x256xf32> to vector<16x256xf32>
      %15 = arith.addf %12, %14 : vector<16x256xf32>
      %c0_13 = arith.constant 0 : index
      %c0_14 = arith.constant 0 : index
      %16 = vector.load %arg6[%c0_13, %c0_14] : memref<16x256xbf16, #tpu.memory_space<vmem>>, vector<16x256xbf16>
      %17 = arith.extf %16 : vector<16x256xbf16> to vector<16x256xf32>
      %18 = arith.addf %15, %17 : vector<16x256xf32>
      %cst_15 = arith.constant 0.000000e+00 : f32
      %19 = vector.broadcast %cst_15 : f32 to vector<16x256xf32>
      %20 = arith.maximumf %18, %19 : vector<16x256xf32>
      %21 = arith.truncf %20 : vector<16x256xf32> to vector<16x256xbf16>
      %c0_16 = arith.constant 0 : index
      %c0_17 = arith.constant 0 : index
      %22 = vector.load %arg7[%c0_16, %c0_17] : memref<16x256xbf16, #tpu.memory_space<vmem>>, vector<16x256xbf16>
      tpu.vector_store %arg7[%c0_16, %c0_17], %21 {strides = array<i32>} : memref<16x256xbf16, #tpu.memory_space<vmem>>, vector<16x256xbf16>,
    } else {
    }
    return
  }
  func.func @transform_0(%arg0: i32, %arg1: i32, %arg2: i32) -> (i32, i32) {
    %c0_i32 = arith.constant 0 : i32
    return %arg0, %arg2 : i32, i32
  }
  func.func @transform_1(%arg0: i32, %arg1: i32, %arg2: i32) -> (i32, i32) {
    %c0_i32 = arith.constant 0 : i32
    return %arg2, %arg1 : i32, i32
  }
  func.func @transform_2(%arg0: i32, %arg1: i32, %arg2: i32) -> (i32, i32) {
    %c0_i32 = arith.constant 0 : i32
    %c0_i32_0 = arith.constant 0 : i32
    return %c0_i32, %arg1 : i32, i32
  }
  func.func @transform_3(%arg0: i32, %arg1: i32, %arg2: i32) -> (i32, i32) {
    %c0_i32 = arith.constant 0 : i32
    return %arg0, %arg1 : i32, i32
  }
  func.func @transform_4(%arg0: i32, %arg1: i32, %arg2: i32) -> (i32, i32) {
    %c0_i32 = arith.constant 0 : i32
    return %arg0, %arg1 : i32, i32
  }
}

module attributes {stable_mosaic.version = 11 : i64} {
  func.func @_mm_kernel(%arg0: i32, %arg1: i32, %arg2: i32, %arg3: memref<16x128xbf16, #tpu.memory_space<vmem>>, %arg4: memref<128x256xbf16, #tpu.memory_space<vmem>>, %arg5: memref<1x256xf32, #tpu.memory_space<vmem>>, %arg6: memref<16x256xbf16, #tpu.memory_space<vmem>>, %arg7: memref<16x256xf32, #tpu.memory_space<vmem>>) attributes {dimension_semantics = [#tpu.dimension_semantics<parallel>, #tpu.dimension_semantics<parallel>, #tpu.dimension_semantics<arbitrary>], iteration_bounds = array<i64: 1, 1, 1>, scalar_prefetch = 0 : i64, scratch_operands = 1 : i64, tpu.core_type = #tpu.core_type<tc>, window_params = [{transform_indices = @transform_0, window_bounds = array<i64: 16, 128>}, {transform_indices = @transform_1, window_bounds = array<i64: 128, 256>}, {transform_indices = @transform_2, window_bounds = array<i64: 1, 256>}, {transform_indices = @transform_3, window_bounds = array<i64: 16, 256>}]} {
    %c0_i32 = arith.constant 0 : i32
    %0 = arith.cmpi eq, %arg2, %c0_i32 : i32
    %1 = arith.extui %0 : i1 to i32
    %c0_i32_0 = arith.constant 0 : i32
    %2 = arith.cmpi ne, %1, %c0_i32_0 : i32
    scf.if %2 {
      %cst_10 = arith.constant 0.000000e+00 : f32
      %12 = vector.broadcast %cst_10 : f32 to vector<16x256xf32>
      %c0_11 = arith.constant 0 : index
      %c0_12 = arith.constant 0 : index
      %13 = vector.load %arg7[%c0_11, %c0_12] : memref<16x256xf32, #tpu.memory_space<vmem>>, vector<16x256xf32>
      tpu.vector_store %arg7[%c0_11, %c0_12], %12 {strides = array<i32>} : memref<16x256xf32, #tpu.memory_space<vmem>>, vector<16x256xf32>,
    } else {
    }
    %c0 = arith.constant 0 : index
    %c0_1 = arith.constant 0 : index
    %3 = vector.load %arg7[%c0, %c0_1] : memref<16x256xf32, #tpu.memory_space<vmem>>, vector<16x256xf32>
    %c0_2 = arith.constant 0 : index
    %c0_3 = arith.constant 0 : index
    %4 = vector.load %arg3[%c0_2, %c0_3] : memref<16x128xbf16, #tpu.memory_space<vmem>>, vector<16x128xbf16>
    %c0_4 = arith.constant 0 : index
    %c0_5 = arith.constant 0 : index
    %5 = vector.load %arg4[%c0_4, %c0_5] : memref<128x256xbf16, #tpu.memory_space<vmem>>, vector<128x256xbf16>
    %cst = arith.constant dense<0.000000e+00> : vector<16x256xf32>
    %6 = tpu.matmul %4, %5, %cst {dimension_numbers = #tpu.dot_dimension_numbers<[1], [0], [0], [1], [0, 0, 1, 1], [], []>} : vector<16x128xbf16>, vector<128x256xbf16>, vector<16x256xf32> -> vector<16x256xf32>
    %7 = arith.addf %3, %6 : vector<16x256xf32>
    %c0_6 = arith.constant 0 : index
    %c0_7 = arith.constant 0 : index
    %8 = vector.load %arg7[%c0_6, %c0_7] : memref<16x256xf32, #tpu.memory_space<vmem>>, vector<16x256xf32>
    tpu.vector_store %arg7[%c0_6, %c0_7], %7 {strides = array<i32>} : memref<16x256xf32, #tpu.memory_space<vmem>>, vector<16x256xf32>,
    %c0_i32_8 = arith.constant 0 : i32
    %9 = arith.cmpi eq, %arg2, %c0_i32_8 : i32
    %10 = arith.extui %9 : i1 to i32
    %c0_i32_9 = arith.constant 0 : i32
    %11 = arith.cmpi ne, %10, %c0_i32_9 : i32
    scf.if %11 {
      %c0_10 = arith.constant 0 : index
      %c0_11 = arith.constant 0 : index
      %12 = vector.load %arg7[%c0_10, %c0_11] : memref<16x256xf32, #tpu.memory_space<vmem>>, vector<16x256xf32>
      %c0_12 = arith.constant 0 : index
      %c0_13 = arith.constant 0 : index
      %13 = vector.load %arg5[%c0_12, %c0_13] : memref<1x256xf32, #tpu.memory_space<vmem>>, vector<1x256xf32>
      %14 = vector.broadcast %13 : vector<1x256xf32> to vector<16x256xf32>
      %15 = arith.addf %12, %14 : vector<16x256xf32>
      %16 = arith.truncf %15 : vector<16x256xf32> to vector<16x256xbf16>
      %c0_14 = arith.constant 0 : index
      %c0_15 = arith.constant 0 : index
      %17 = vector.load %arg6[%c0_14, %c0_15] : memref<16x256xbf16, #tpu.memory_space<vmem>>, vector<16x256xbf16>
      tpu.vector_store %arg6[%c0_14, %c0_15], %16 {strides = array<i32>} : memref<16x256xbf16, #tpu.memory_space<vmem>>, vector<16x256xbf16>,
    } else {
    }
    return
  }
  func.func @transform_0(%arg0: i32, %arg1: i32, %arg2: i32) -> (i32, i32) {
    %c0_i32 = arith.constant 0 : i32
    return %arg0, %arg2 : i32, i32
  }
  func.func @transform_1(%arg0: i32, %arg1: i32, %arg2: i32) -> (i32, i32) {
    %c0_i32 = arith.constant 0 : i32
    return %arg2, %arg1 : i32, i32
  }
  func.func @transform_2(%arg0: i32, %arg1: i32, %arg2: i32) -> (i32, i32) {
    %c0_i32 = arith.constant 0 : i32
    %c0_i32_0 = arith.constant 0 : i32
    return %c0_i32, %arg1 : i32, i32
  }
  func.func @transform_3(%arg0: i32, %arg1: i32, %arg2: i32) -> (i32, i32) {
    %c0_i32 = arith.constant 0 : i32
    return %arg0, %arg1 : i32, i32
  }
}

module attributes {stable_mosaic.version = 11 : i64} {
  func.func @_mm_kernel(%arg0: i32, %arg1: i32, %arg2: i32, %arg3: memref<16x256xbf16, #tpu.memory_space<vmem>>, %arg4: memref<256x256xbf16, #tpu.memory_space<vmem>>, %arg5: memref<1x256xf32, #tpu.memory_space<vmem>>, %arg6: memref<16x256xbf16, #tpu.memory_space<vmem>>, %arg7: memref<16x256xf32, #tpu.memory_space<vmem>>) attributes {dimension_semantics = [#tpu.dimension_semantics<parallel>, #tpu.dimension_semantics<parallel>, #tpu.dimension_semantics<arbitrary>], iteration_bounds = array<i64: 1, 1, 9>, scalar_prefetch = 0 : i64, scratch_operands = 1 : i64, tpu.core_type = #tpu.core_type<tc>, window_params = [{transform_indices = @transform_0, window_bounds = array<i64: 16, 256>}, {transform_indices = @transform_1, window_bounds = array<i64: 256, 256>}, {transform_indices = @transform_2, window_bounds = array<i64: 1, 256>}, {transform_indices = @transform_3, window_bounds = array<i64: 16, 256>}]} {
    %c0_i32 = arith.constant 0 : i32
    %0 = arith.cmpi eq, %arg2, %c0_i32 : i32
    %1 = arith.extui %0 : i1 to i32
    %c0_i32_0 = arith.constant 0 : i32
    %2 = arith.cmpi ne, %1, %c0_i32_0 : i32
    scf.if %2 {
      %cst_9 = arith.constant 0.000000e+00 : f32
      %12 = vector.broadcast %cst_9 : f32 to vector<16x256xf32>
      %c0_10 = arith.constant 0 : index
      %c0_11 = arith.constant 0 : index
      %13 = vector.load %arg7[%c0_10, %c0_11] : memref<16x256xf32, #tpu.memory_space<vmem>>, vector<16x256xf32>
      tpu.vector_store %arg7[%c0_10, %c0_11], %12 {strides = array<i32>} : memref<16x256xf32, #tpu.memory_space<vmem>>, vector<16x256xf32>,
    } else {
    }
    %c0 = arith.constant 0 : index
    %c0_1 = arith.constant 0 : index
    %3 = vector.load %arg7[%c0, %c0_1] : memref<16x256xf32, #tpu.memory_space<vmem>>, vector<16x256xf32>
    %c0_2 = arith.constant 0 : index
    %c0_3 = arith.constant 0 : index
    %4 = vector.load %arg3[%c0_2, %c0_3] : memref<16x256xbf16, #tpu.memory_space<vmem>>, vector<16x256xbf16>
    %c0_4 = arith.constant 0 : index
    %c0_5 = arith.constant 0 : index
    %5 = vector.load %arg4[%c0_4, %c0_5] : memref<256x256xbf16, #tpu.memory_space<vmem>>, vector<256x256xbf16>
    %cst = arith.constant dense<0.000000e+00> : vector<16x256xf32>
    %6 = tpu.matmul %4, %5, %cst {dimension_numbers = #tpu.dot_dimension_numbers<[1], [0], [0], [1], [0, 0, 1, 1], [], []>} : vector<16x256xbf16>, vector<256x256xbf16>, vector<16x256xf32> -> vector<16x256xf32>
    %7 = arith.addf %3, %6 : vector<16x256xf32>
    %c0_6 = arith.constant 0 : index
    %c0_7 = arith.constant 0 : index
    %8 = vector.load %arg7[%c0_6, %c0_7] : memref<16x256xf32, #tpu.memory_space<vmem>>, vector<16x256xf32>
    tpu.vector_store %arg7[%c0_6, %c0_7], %7 {strides = array<i32>} : memref<16x256xf32, #tpu.memory_space<vmem>>, vector<16x256xf32>,
    %c8_i32 = arith.constant 8 : i32
    %9 = arith.cmpi eq, %arg2, %c8_i32 : i32
    %10 = arith.extui %9 : i1 to i32
    %c0_i32_8 = arith.constant 0 : i32
    %11 = arith.cmpi ne, %10, %c0_i32_8 : i32
    scf.if %11 {
      %c0_9 = arith.constant 0 : index
      %c0_10 = arith.constant 0 : index
      %12 = vector.load %arg7[%c0_9, %c0_10] : memref<16x256xf32, #tpu.memory_space<vmem>>, vector<16x256xf32>
      %c0_11 = arith.constant 0 : index
      %c0_12 = arith.constant 0 : index
      %13 = vector.load %arg5[%c0_11, %c0_12] : memref<1x256xf32, #tpu.memory_space<vmem>>, vector<1x256xf32>
      %14 = vector.broadcast %13 : vector<1x256xf32> to vector<16x256xf32>
      %15 = arith.addf %12, %14 : vector<16x256xf32>
      %cst_13 = arith.constant 0.000000e+00 : f32
      %16 = vector.broadcast %cst_13 : f32 to vector<16x256xf32>
      %17 = arith.maximumf %15, %16 : vector<16x256xf32>
      %18 = arith.truncf %17 : vector<16x256xf32> to vector<16x256xbf16>
      %c0_14 = arith.constant 0 : index
      %c0_15 = arith.constant 0 : index
      %19 = vector.load %arg6[%c0_14, %c0_15] : memref<16x256xbf16, #tpu.memory_space<vmem>>, vector<16x256xbf16>
      tpu.vector_store %arg6[%c0_14, %c0_15], %18 {strides = array<i32>} : memref<16x256xbf16, #tpu.memory_space<vmem>>, vector<16x256xbf16>,
    } else {
    }
    return
  }
  func.func @transform_0(%arg0: i32, %arg1: i32, %arg2: i32) -> (i32, i32) {
    %c0_i32 = arith.constant 0 : i32
    return %arg0, %arg2 : i32, i32
  }
  func.func @transform_1(%arg0: i32, %arg1: i32, %arg2: i32) -> (i32, i32) {
    %c0_i32 = arith.constant 0 : i32
    return %arg2, %arg1 : i32, i32
  }
  func.func @transform_2(%arg0: i32, %arg1: i32, %arg2: i32) -> (i32, i32) {
    %c0_i32 = arith.constant 0 : i32
    %c0_i32_0 = arith.constant 0 : i32
    return %c0_i32, %arg1 : i32, i32
  }
  func.func @transform_3(%arg0: i32, %arg1: i32, %arg2: i32) -> (i32, i32) {
    %c0_i32 = arith.constant 0 : i32
    return %arg0, %arg1 : i32, i32
  }
}

module attributes {stable_mosaic.version = 11 : i64} {
  func.func @_mm_kernel(%arg0: i32, %arg1: i32, %arg2: i32, %arg3: memref<16x256xbf16, #tpu.memory_space<vmem>>, %arg4: memref<256x256xbf16, #tpu.memory_space<vmem>>, %arg5: memref<1x256xf32, #tpu.memory_space<vmem>>, %arg6: memref<16x256xbf16, #tpu.memory_space<vmem>>, %arg7: memref<16x256xf32, #tpu.memory_space<vmem>>) attributes {dimension_semantics = [#tpu.dimension_semantics<parallel>, #tpu.dimension_semantics<parallel>, #tpu.dimension_semantics<arbitrary>], iteration_bounds = array<i64: 1, 2, 9>, scalar_prefetch = 0 : i64, scratch_operands = 1 : i64, tpu.core_type = #tpu.core_type<tc>, window_params = [{transform_indices = @transform_0, window_bounds = array<i64: 16, 256>}, {transform_indices = @transform_1, window_bounds = array<i64: 256, 256>}, {transform_indices = @transform_2, window_bounds = array<i64: 1, 256>}, {transform_indices = @transform_3, window_bounds = array<i64: 16, 256>}]} {
    %c0_i32 = arith.constant 0 : i32
    %0 = arith.cmpi eq, %arg2, %c0_i32 : i32
    %1 = arith.extui %0 : i1 to i32
    %c0_i32_0 = arith.constant 0 : i32
    %2 = arith.cmpi ne, %1, %c0_i32_0 : i32
    scf.if %2 {
      %cst_9 = arith.constant 0.000000e+00 : f32
      %12 = vector.broadcast %cst_9 : f32 to vector<16x256xf32>
      %c0_10 = arith.constant 0 : index
      %c0_11 = arith.constant 0 : index
      %13 = vector.load %arg7[%c0_10, %c0_11] : memref<16x256xf32, #tpu.memory_space<vmem>>, vector<16x256xf32>
      tpu.vector_store %arg7[%c0_10, %c0_11], %12 {strides = array<i32>} : memref<16x256xf32, #tpu.memory_space<vmem>>, vector<16x256xf32>,
    } else {
    }
    %c0 = arith.constant 0 : index
    %c0_1 = arith.constant 0 : index
    %3 = vector.load %arg7[%c0, %c0_1] : memref<16x256xf32, #tpu.memory_space<vmem>>, vector<16x256xf32>
    %c0_2 = arith.constant 0 : index
    %c0_3 = arith.constant 0 : index
    %4 = vector.load %arg3[%c0_2, %c0_3] : memref<16x256xbf16, #tpu.memory_space<vmem>>, vector<16x256xbf16>
    %c0_4 = arith.constant 0 : index
    %c0_5 = arith.constant 0 : index
    %5 = vector.load %arg4[%c0_4, %c0_5] : memref<256x256xbf16, #tpu.memory_space<vmem>>, vector<256x256xbf16>
    %cst = arith.constant dense<0.000000e+00> : vector<16x256xf32>
    %6 = tpu.matmul %4, %5, %cst {dimension_numbers = #tpu.dot_dimension_numbers<[1], [0], [0], [1], [0, 0, 1, 1], [], []>} : vector<16x256xbf16>, vector<256x256xbf16>, vector<16x256xf32> -> vector<16x256xf32>
    %7 = arith.addf %3, %6 : vector<16x256xf32>
    %c0_6 = arith.constant 0 : index
    %c0_7 = arith.constant 0 : index
    %8 = vector.load %arg7[%c0_6, %c0_7] : memref<16x256xf32, #tpu.memory_space<vmem>>, vector<16x256xf32>
    tpu.vector_store %arg7[%c0_6, %c0_7], %7 {strides = array<i32>} : memref<16x256xf32, #tpu.memory_space<vmem>>, vector<16x256xf32>,
    %c8_i32 = arith.constant 8 : i32
    %9 = arith.cmpi eq, %arg2, %c8_i32 : i32
    %10 = arith.extui %9 : i1 to i32
    %c0_i32_8 = arith.constant 0 : i32
    %11 = arith.cmpi ne, %10, %c0_i32_8 : i32
    scf.if %11 {
      %c0_9 = arith.constant 0 : index
      %c0_10 = arith.constant 0 : index
      %12 = vector.load %arg7[%c0_9, %c0_10] : memref<16x256xf32, #tpu.memory_space<vmem>>, vector<16x256xf32>
      %c0_11 = arith.constant 0 : index
      %c0_12 = arith.constant 0 : index
      %13 = vector.load %arg5[%c0_11, %c0_12] : memref<1x256xf32, #tpu.memory_space<vmem>>, vector<1x256xf32>
      %14 = vector.broadcast %13 : vector<1x256xf32> to vector<16x256xf32>
      %15 = arith.addf %12, %14 : vector<16x256xf32>
      %cst_13 = arith.constant 0.000000e+00 : f32
      %16 = vector.broadcast %cst_13 : f32 to vector<16x256xf32>
      %17 = arith.maximumf %15, %16 : vector<16x256xf32>
      %18 = arith.truncf %17 : vector<16x256xf32> to vector<16x256xbf16>
      %c0_14 = arith.constant 0 : index
      %c0_15 = arith.constant 0 : index
      %19 = vector.load %arg6[%c0_14, %c0_15] : memref<16x256xbf16, #tpu.memory_space<vmem>>, vector<16x256xbf16>
      tpu.vector_store %arg6[%c0_14, %c0_15], %18 {strides = array<i32>} : memref<16x256xbf16, #tpu.memory_space<vmem>>, vector<16x256xbf16>,
    } else {
    }
    return
  }
  func.func @transform_0(%arg0: i32, %arg1: i32, %arg2: i32) -> (i32, i32) {
    %c0_i32 = arith.constant 0 : i32
    return %arg0, %arg2 : i32, i32
  }
  func.func @transform_1(%arg0: i32, %arg1: i32, %arg2: i32) -> (i32, i32) {
    %c0_i32 = arith.constant 0 : i32
    return %arg2, %arg1 : i32, i32
  }
  func.func @transform_2(%arg0: i32, %arg1: i32, %arg2: i32) -> (i32, i32) {
    %c0_i32 = arith.constant 0 : i32
    %c0_i32_0 = arith.constant 0 : i32
    return %c0_i32, %arg1 : i32, i32
  }
  func.func @transform_3(%arg0: i32, %arg1: i32, %arg2: i32) -> (i32, i32) {
    %c0_i32 = arith.constant 0 : i32
    return %arg0, %arg1 : i32, i32
  }
}

module attributes {stable_mosaic.version = 11 : i64} {
  func.func @_mm_kernel(%arg0: i32, %arg1: i32, %arg2: i32, %arg3: memref<16x256xbf16, #tpu.memory_space<vmem>>, %arg4: memref<256x256xbf16, #tpu.memory_space<vmem>>, %arg5: memref<1x256xf32, #tpu.memory_space<vmem>>, %arg6: memref<16x256xbf16, #tpu.memory_space<vmem>>, %arg7: memref<16x256xf32, #tpu.memory_space<vmem>>) attributes {dimension_semantics = [#tpu.dimension_semantics<parallel>, #tpu.dimension_semantics<parallel>, #tpu.dimension_semantics<arbitrary>], iteration_bounds = array<i64: 1, 2, 1>, scalar_prefetch = 0 : i64, scratch_operands = 1 : i64, tpu.core_type = #tpu.core_type<tc>, window_params = [{transform_indices = @transform_0, window_bounds = array<i64: 16, 256>}, {transform_indices = @transform_1, window_bounds = array<i64: 256, 256>}, {transform_indices = @transform_2, window_bounds = array<i64: 1, 256>}, {transform_indices = @transform_3, window_bounds = array<i64: 16, 256>}]} {
    %c0_i32 = arith.constant 0 : i32
    %0 = arith.cmpi eq, %arg2, %c0_i32 : i32
    %1 = arith.extui %0 : i1 to i32
    %c0_i32_0 = arith.constant 0 : i32
    %2 = arith.cmpi ne, %1, %c0_i32_0 : i32
    scf.if %2 {
      %cst_10 = arith.constant 0.000000e+00 : f32
      %12 = vector.broadcast %cst_10 : f32 to vector<16x256xf32>
      %c0_11 = arith.constant 0 : index
      %c0_12 = arith.constant 0 : index
      %13 = vector.load %arg7[%c0_11, %c0_12] : memref<16x256xf32, #tpu.memory_space<vmem>>, vector<16x256xf32>
      tpu.vector_store %arg7[%c0_11, %c0_12], %12 {strides = array<i32>} : memref<16x256xf32, #tpu.memory_space<vmem>>, vector<16x256xf32>,
    } else {
    }
    %c0 = arith.constant 0 : index
    %c0_1 = arith.constant 0 : index
    %3 = vector.load %arg7[%c0, %c0_1] : memref<16x256xf32, #tpu.memory_space<vmem>>, vector<16x256xf32>
    %c0_2 = arith.constant 0 : index
    %c0_3 = arith.constant 0 : index
    %4 = vector.load %arg3[%c0_2, %c0_3] : memref<16x256xbf16, #tpu.memory_space<vmem>>, vector<16x256xbf16>
    %c0_4 = arith.constant 0 : index
    %c0_5 = arith.constant 0 : index
    %5 = vector.load %arg4[%c0_4, %c0_5] : memref<256x256xbf16, #tpu.memory_space<vmem>>, vector<256x256xbf16>
    %cst = arith.constant dense<0.000000e+00> : vector<16x256xf32>
    %6 = tpu.matmul %4, %5, %cst {dimension_numbers = #tpu.dot_dimension_numbers<[1], [0], [0], [1], [0, 0, 1, 1], [], []>} : vector<16x256xbf16>, vector<256x256xbf16>, vector<16x256xf32> -> vector<16x256xf32>
    %7 = arith.addf %3, %6 : vector<16x256xf32>
    %c0_6 = arith.constant 0 : index
    %c0_7 = arith.constant 0 : index
    %8 = vector.load %arg7[%c0_6, %c0_7] : memref<16x256xf32, #tpu.memory_space<vmem>>, vector<16x256xf32>
    tpu.vector_store %arg7[%c0_6, %c0_7], %7 {strides = array<i32>} : memref<16x256xf32, #tpu.memory_space<vmem>>, vector<16x256xf32>,
    %c0_i32_8 = arith.constant 0 : i32
    %9 = arith.cmpi eq, %arg2, %c0_i32_8 : i32
    %10 = arith.extui %9 : i1 to i32
    %c0_i32_9 = arith.constant 0 : i32
    %11 = arith.cmpi ne, %10, %c0_i32_9 : i32
    scf.if %11 {
      %c0_10 = arith.constant 0 : index
      %c0_11 = arith.constant 0 : index
      %12 = vector.load %arg7[%c0_10, %c0_11] : memref<16x256xf32, #tpu.memory_space<vmem>>, vector<16x256xf32>
      %c0_12 = arith.constant 0 : index
      %c0_13 = arith.constant 0 : index
      %13 = vector.load %arg5[%c0_12, %c0_13] : memref<1x256xf32, #tpu.memory_space<vmem>>, vector<1x256xf32>
      %14 = vector.broadcast %13 : vector<1x256xf32> to vector<16x256xf32>
      %15 = arith.addf %12, %14 : vector<16x256xf32>
      %16 = arith.truncf %15 : vector<16x256xf32> to vector<16x256xbf16>
      %c0_14 = arith.constant 0 : index
      %c0_15 = arith.constant 0 : index
      %17 = vector.load %arg6[%c0_14, %c0_15] : memref<16x256xbf16, #tpu.memory_space<vmem>>, vector<16x256xbf16>
      tpu.vector_store %arg6[%c0_14, %c0_15], %16 {strides = array<i32>} : memref<16x256xbf16, #tpu.memory_space<vmem>>, vector<16x256xbf16>,
    } else {
    }
    return
  }
  func.func @transform_0(%arg0: i32, %arg1: i32, %arg2: i32) -> (i32, i32) {
    %c0_i32 = arith.constant 0 : i32
    return %arg0, %arg2 : i32, i32
  }
  func.func @transform_1(%arg0: i32, %arg1: i32, %arg2: i32) -> (i32, i32) {
    %c0_i32 = arith.constant 0 : i32
    return %arg2, %arg1 : i32, i32
  }
  func.func @transform_2(%arg0: i32, %arg1: i32, %arg2: i32) -> (i32, i32) {
    %c0_i32 = arith.constant 0 : i32
    %c0_i32_0 = arith.constant 0 : i32
    return %c0_i32, %arg1 : i32, i32
  }
  func.func @transform_3(%arg0: i32, %arg1: i32, %arg2: i32) -> (i32, i32) {
    %c0_i32 = arith.constant 0 : i32
    return %arg0, %arg1 : i32, i32
  }
}

module attributes {stable_mosaic.version = 11 : i64} {
  func.func @_mm_res_kernel(%arg0: i32, %arg1: i32, %arg2: i32, %arg3: memref<16x256xbf16, #tpu.memory_space<vmem>>, %arg4: memref<256x256xbf16, #tpu.memory_space<vmem>>, %arg5: memref<1x256xf32, #tpu.memory_space<vmem>>, %arg6: memref<16x256xbf16, #tpu.memory_space<vmem>>, %arg7: memref<16x256xbf16, #tpu.memory_space<vmem>>, %arg8: memref<16x256xf32, #tpu.memory_space<vmem>>) attributes {dimension_semantics = [#tpu.dimension_semantics<parallel>, #tpu.dimension_semantics<parallel>, #tpu.dimension_semantics<arbitrary>], iteration_bounds = array<i64: 1, 2, 18>, scalar_prefetch = 0 : i64, scratch_operands = 1 : i64, tpu.core_type = #tpu.core_type<tc>, window_params = [{transform_indices = @transform_0, window_bounds = array<i64: 16, 256>}, {transform_indices = @transform_1, window_bounds = array<i64: 256, 256>}, {transform_indices = @transform_2, window_bounds = array<i64: 1, 256>}, {transform_indices = @transform_3, window_bounds = array<i64: 16, 256>}, {transform_indices = @transform_4, window_bounds = array<i64: 16, 256>}]} {
    %c0_i32 = arith.constant 0 : i32
    %0 = arith.cmpi eq, %arg2, %c0_i32 : i32
    %1 = arith.extui %0 : i1 to i32
    %c0_i32_0 = arith.constant 0 : i32
    %2 = arith.cmpi ne, %1, %c0_i32_0 : i32
    scf.if %2 {
      %cst_9 = arith.constant 0.000000e+00 : f32
      %12 = vector.broadcast %cst_9 : f32 to vector<16x256xf32>
      %c0_10 = arith.constant 0 : index
      %c0_11 = arith.constant 0 : index
      %13 = vector.load %arg8[%c0_10, %c0_11] : memref<16x256xf32, #tpu.memory_space<vmem>>, vector<16x256xf32>
      tpu.vector_store %arg8[%c0_10, %c0_11], %12 {strides = array<i32>} : memref<16x256xf32, #tpu.memory_space<vmem>>, vector<16x256xf32>,
    } else {
    }
    %c0 = arith.constant 0 : index
    %c0_1 = arith.constant 0 : index
    %3 = vector.load %arg8[%c0, %c0_1] : memref<16x256xf32, #tpu.memory_space<vmem>>, vector<16x256xf32>
    %c0_2 = arith.constant 0 : index
    %c0_3 = arith.constant 0 : index
    %4 = vector.load %arg3[%c0_2, %c0_3] : memref<16x256xbf16, #tpu.memory_space<vmem>>, vector<16x256xbf16>
    %c0_4 = arith.constant 0 : index
    %c0_5 = arith.constant 0 : index
    %5 = vector.load %arg4[%c0_4, %c0_5] : memref<256x256xbf16, #tpu.memory_space<vmem>>, vector<256x256xbf16>
    %cst = arith.constant dense<0.000000e+00> : vector<16x256xf32>
    %6 = tpu.matmul %4, %5, %cst {dimension_numbers = #tpu.dot_dimension_numbers<[1], [0], [0], [1], [0, 0, 1, 1], [], []>} : vector<16x256xbf16>, vector<256x256xbf16>, vector<16x256xf32> -> vector<16x256xf32>
    %7 = arith.addf %3, %6 : vector<16x256xf32>
    %c0_6 = arith.constant 0 : index
    %c0_7 = arith.constant 0 : index
    %8 = vector.load %arg8[%c0_6, %c0_7] : memref<16x256xf32, #tpu.memory_space<vmem>>, vector<16x256xf32>
    tpu.vector_store %arg8[%c0_6, %c0_7], %7 {strides = array<i32>} : memref<16x256xf32, #tpu.memory_space<vmem>>, vector<16x256xf32>,
    %c17_i32 = arith.constant 17 : i32
    %9 = arith.cmpi eq, %arg2, %c17_i32 : i32
    %10 = arith.extui %9 : i1 to i32
    %c0_i32_8 = arith.constant 0 : i32
    %11 = arith.cmpi ne, %10, %c0_i32_8 : i32
    scf.if %11 {
      %c0_9 = arith.constant 0 : index
      %c0_10 = arith.constant 0 : index
      %12 = vector.load %arg8[%c0_9, %c0_10] : memref<16x256xf32, #tpu.memory_space<vmem>>, vector<16x256xf32>
      %c0_11 = arith.constant 0 : index
      %c0_12 = arith.constant 0 : index
      %13 = vector.load %arg5[%c0_11, %c0_12] : memref<1x256xf32, #tpu.memory_space<vmem>>, vector<1x256xf32>
      %14 = vector.broadcast %13 : vector<1x256xf32> to vector<16x256xf32>
      %15 = arith.addf %12, %14 : vector<16x256xf32>
      %c0_13 = arith.constant 0 : index
      %c0_14 = arith.constant 0 : index
      %16 = vector.load %arg6[%c0_13, %c0_14] : memref<16x256xbf16, #tpu.memory_space<vmem>>, vector<16x256xbf16>
      %17 = arith.extf %16 : vector<16x256xbf16> to vector<16x256xf32>
      %18 = arith.addf %15, %17 : vector<16x256xf32>
      %cst_15 = arith.constant 0.000000e+00 : f32
      %19 = vector.broadcast %cst_15 : f32 to vector<16x256xf32>
      %20 = arith.maximumf %18, %19 : vector<16x256xf32>
      %21 = arith.truncf %20 : vector<16x256xf32> to vector<16x256xbf16>
      %c0_16 = arith.constant 0 : index
      %c0_17 = arith.constant 0 : index
      %22 = vector.load %arg7[%c0_16, %c0_17] : memref<16x256xbf16, #tpu.memory_space<vmem>>, vector<16x256xbf16>
      tpu.vector_store %arg7[%c0_16, %c0_17], %21 {strides = array<i32>} : memref<16x256xbf16, #tpu.memory_space<vmem>>, vector<16x256xbf16>,
    } else {
    }
    return
  }
  func.func @transform_0(%arg0: i32, %arg1: i32, %arg2: i32) -> (i32, i32) {
    %c0_i32 = arith.constant 0 : i32
    return %arg0, %arg2 : i32, i32
  }
  func.func @transform_1(%arg0: i32, %arg1: i32, %arg2: i32) -> (i32, i32) {
    %c0_i32 = arith.constant 0 : i32
    return %arg2, %arg1 : i32, i32
  }
  func.func @transform_2(%arg0: i32, %arg1: i32, %arg2: i32) -> (i32, i32) {
    %c0_i32 = arith.constant 0 : i32
    %c0_i32_0 = arith.constant 0 : i32
    return %c0_i32, %arg1 : i32, i32
  }
  func.func @transform_3(%arg0: i32, %arg1: i32, %arg2: i32) -> (i32, i32) {
    %c0_i32 = arith.constant 0 : i32
    return %arg0, %arg1 : i32, i32
  }
  func.func @transform_4(%arg0: i32, %arg1: i32, %arg2: i32) -> (i32, i32) {
    %c0_i32 = arith.constant 0 : i32
    return %arg0, %arg1 : i32, i32
  }
}

module attributes {stable_mosaic.version = 11 : i64} {
  func.func @_mm_kernel(%arg0: i32, %arg1: i32, %arg2: i32, %arg3: memref<16x256xbf16, #tpu.memory_space<vmem>>, %arg4: memref<256x256xbf16, #tpu.memory_space<vmem>>, %arg5: memref<1x256xf32, #tpu.memory_space<vmem>>, %arg6: memref<16x256xbf16, #tpu.memory_space<vmem>>, %arg7: memref<16x256xf32, #tpu.memory_space<vmem>>) attributes {dimension_semantics = [#tpu.dimension_semantics<parallel>, #tpu.dimension_semantics<parallel>, #tpu.dimension_semantics<arbitrary>], iteration_bounds = array<i64: 1, 2, 18>, scalar_prefetch = 0 : i64, scratch_operands = 1 : i64, tpu.core_type = #tpu.core_type<tc>, window_params = [{transform_indices = @transform_0, window_bounds = array<i64: 16, 256>}, {transform_indices = @transform_1, window_bounds = array<i64: 256, 256>}, {transform_indices = @transform_2, window_bounds = array<i64: 1, 256>}, {transform_indices = @transform_3, window_bounds = array<i64: 16, 256>}]} {
    %c0_i32 = arith.constant 0 : i32
    %0 = arith.cmpi eq, %arg2, %c0_i32 : i32
    %1 = arith.extui %0 : i1 to i32
    %c0_i32_0 = arith.constant 0 : i32
    %2 = arith.cmpi ne, %1, %c0_i32_0 : i32
    scf.if %2 {
      %cst_9 = arith.constant 0.000000e+00 : f32
      %12 = vector.broadcast %cst_9 : f32 to vector<16x256xf32>
      %c0_10 = arith.constant 0 : index
      %c0_11 = arith.constant 0 : index
      %13 = vector.load %arg7[%c0_10, %c0_11] : memref<16x256xf32, #tpu.memory_space<vmem>>, vector<16x256xf32>
      tpu.vector_store %arg7[%c0_10, %c0_11], %12 {strides = array<i32>} : memref<16x256xf32, #tpu.memory_space<vmem>>, vector<16x256xf32>,
    } else {
    }
    %c0 = arith.constant 0 : index
    %c0_1 = arith.constant 0 : index
    %3 = vector.load %arg7[%c0, %c0_1] : memref<16x256xf32, #tpu.memory_space<vmem>>, vector<16x256xf32>
    %c0_2 = arith.constant 0 : index
    %c0_3 = arith.constant 0 : index
    %4 = vector.load %arg3[%c0_2, %c0_3] : memref<16x256xbf16, #tpu.memory_space<vmem>>, vector<16x256xbf16>
    %c0_4 = arith.constant 0 : index
    %c0_5 = arith.constant 0 : index
    %5 = vector.load %arg4[%c0_4, %c0_5] : memref<256x256xbf16, #tpu.memory_space<vmem>>, vector<256x256xbf16>
    %cst = arith.constant dense<0.000000e+00> : vector<16x256xf32>
    %6 = tpu.matmul %4, %5, %cst {dimension_numbers = #tpu.dot_dimension_numbers<[1], [0], [0], [1], [0, 0, 1, 1], [], []>} : vector<16x256xbf16>, vector<256x256xbf16>, vector<16x256xf32> -> vector<16x256xf32>
    %7 = arith.addf %3, %6 : vector<16x256xf32>
    %c0_6 = arith.constant 0 : index
    %c0_7 = arith.constant 0 : index
    %8 = vector.load %arg7[%c0_6, %c0_7] : memref<16x256xf32, #tpu.memory_space<vmem>>, vector<16x256xf32>
    tpu.vector_store %arg7[%c0_6, %c0_7], %7 {strides = array<i32>} : memref<16x256xf32, #tpu.memory_space<vmem>>, vector<16x256xf32>,
    %c17_i32 = arith.constant 17 : i32
    %9 = arith.cmpi eq, %arg2, %c17_i32 : i32
    %10 = arith.extui %9 : i1 to i32
    %c0_i32_8 = arith.constant 0 : i32
    %11 = arith.cmpi ne, %10, %c0_i32_8 : i32
    scf.if %11 {
      %c0_9 = arith.constant 0 : index
      %c0_10 = arith.constant 0 : index
      %12 = vector.load %arg7[%c0_9, %c0_10] : memref<16x256xf32, #tpu.memory_space<vmem>>, vector<16x256xf32>
      %c0_11 = arith.constant 0 : index
      %c0_12 = arith.constant 0 : index
      %13 = vector.load %arg5[%c0_11, %c0_12] : memref<1x256xf32, #tpu.memory_space<vmem>>, vector<1x256xf32>
      %14 = vector.broadcast %13 : vector<1x256xf32> to vector<16x256xf32>
      %15 = arith.addf %12, %14 : vector<16x256xf32>
      %cst_13 = arith.constant 0.000000e+00 : f32
      %16 = vector.broadcast %cst_13 : f32 to vector<16x256xf32>
      %17 = arith.maximumf %15, %16 : vector<16x256xf32>
      %18 = arith.truncf %17 : vector<16x256xf32> to vector<16x256xbf16>
      %c0_14 = arith.constant 0 : index
      %c0_15 = arith.constant 0 : index
      %19 = vector.load %arg6[%c0_14, %c0_15] : memref<16x256xbf16, #tpu.memory_space<vmem>>, vector<16x256xbf16>
      tpu.vector_store %arg6[%c0_14, %c0_15], %18 {strides = array<i32>} : memref<16x256xbf16, #tpu.memory_space<vmem>>, vector<16x256xbf16>,
    } else {
    }
    return
  }
  func.func @transform_0(%arg0: i32, %arg1: i32, %arg2: i32) -> (i32, i32) {
    %c0_i32 = arith.constant 0 : i32
    return %arg0, %arg2 : i32, i32
  }
  func.func @transform_1(%arg0: i32, %arg1: i32, %arg2: i32) -> (i32, i32) {
    %c0_i32 = arith.constant 0 : i32
    return %arg2, %arg1 : i32, i32
  }
  func.func @transform_2(%arg0: i32, %arg1: i32, %arg2: i32) -> (i32, i32) {
    %c0_i32 = arith.constant 0 : i32
    %c0_i32_0 = arith.constant 0 : i32
    return %c0_i32, %arg1 : i32, i32
  }
  func.func @transform_3(%arg0: i32, %arg1: i32, %arg2: i32) -> (i32, i32) {
    %c0_i32 = arith.constant 0 : i32
    return %arg0, %arg1 : i32, i32
  }
}

module attributes {stable_mosaic.version = 11 : i64} {
  func.func @_mm_kernel(%arg0: i32, %arg1: i32, %arg2: i32, %arg3: memref<16x256xbf16, #tpu.memory_space<vmem>>, %arg4: memref<256x128xbf16, #tpu.memory_space<vmem>>, %arg5: memref<1x128xf32, #tpu.memory_space<vmem>>, %arg6: memref<16x128xf32, #tpu.memory_space<vmem>>, %arg7: memref<16x128xf32, #tpu.memory_space<vmem>>) attributes {dimension_semantics = [#tpu.dimension_semantics<parallel>, #tpu.dimension_semantics<parallel>, #tpu.dimension_semantics<arbitrary>], iteration_bounds = array<i64: 1, 1, 2>, scalar_prefetch = 0 : i64, scratch_operands = 1 : i64, tpu.core_type = #tpu.core_type<tc>, window_params = [{transform_indices = @transform_0, window_bounds = array<i64: 16, 256>}, {transform_indices = @transform_1, window_bounds = array<i64: 256, 128>}, {transform_indices = @transform_2, window_bounds = array<i64: 1, 128>}, {transform_indices = @transform_3, window_bounds = array<i64: 16, 128>}]} {
    %c0_i32 = arith.constant 0 : i32
    %0 = arith.cmpi eq, %arg2, %c0_i32 : i32
    %1 = arith.extui %0 : i1 to i32
    %c0_i32_0 = arith.constant 0 : i32
    %2 = arith.cmpi ne, %1, %c0_i32_0 : i32
    scf.if %2 {
      %cst_9 = arith.constant 0.000000e+00 : f32
      %12 = vector.broadcast %cst_9 : f32 to vector<16x128xf32>
      %c0_10 = arith.constant 0 : index
      %c0_11 = arith.constant 0 : index
      %13 = vector.load %arg7[%c0_10, %c0_11] : memref<16x128xf32, #tpu.memory_space<vmem>>, vector<16x128xf32>
      tpu.vector_store %arg7[%c0_10, %c0_11], %12 {strides = array<i32>} : memref<16x128xf32, #tpu.memory_space<vmem>>, vector<16x128xf32>,
    } else {
    }
    %c0 = arith.constant 0 : index
    %c0_1 = arith.constant 0 : index
    %3 = vector.load %arg7[%c0, %c0_1] : memref<16x128xf32, #tpu.memory_space<vmem>>, vector<16x128xf32>
    %c0_2 = arith.constant 0 : index
    %c0_3 = arith.constant 0 : index
    %4 = vector.load %arg3[%c0_2, %c0_3] : memref<16x256xbf16, #tpu.memory_space<vmem>>, vector<16x256xbf16>
    %c0_4 = arith.constant 0 : index
    %c0_5 = arith.constant 0 : index
    %5 = vector.load %arg4[%c0_4, %c0_5] : memref<256x128xbf16, #tpu.memory_space<vmem>>, vector<256x128xbf16>
    %cst = arith.constant dense<0.000000e+00> : vector<16x128xf32>
    %6 = tpu.matmul %4, %5, %cst {dimension_numbers = #tpu.dot_dimension_numbers<[1], [0], [0], [1], [0, 0, 1, 1], [], []>} : vector<16x256xbf16>, vector<256x128xbf16>, vector<16x128xf32> -> vector<16x128xf32>
    %7 = arith.addf %3, %6 : vector<16x128xf32>
    %c0_6 = arith.constant 0 : index
    %c0_7 = arith.constant 0 : index
    %8 = vector.load %arg7[%c0_6, %c0_7] : memref<16x128xf32, #tpu.memory_space<vmem>>, vector<16x128xf32>
    tpu.vector_store %arg7[%c0_6, %c0_7], %7 {strides = array<i32>} : memref<16x128xf32, #tpu.memory_space<vmem>>, vector<16x128xf32>,
    %c1_i32 = arith.constant 1 : i32
    %9 = arith.cmpi eq, %arg2, %c1_i32 : i32
    %10 = arith.extui %9 : i1 to i32
    %c0_i32_8 = arith.constant 0 : i32
    %11 = arith.cmpi ne, %10, %c0_i32_8 : i32
    scf.if %11 {
      %c0_9 = arith.constant 0 : index
      %c0_10 = arith.constant 0 : index
      %12 = vector.load %arg7[%c0_9, %c0_10] : memref<16x128xf32, #tpu.memory_space<vmem>>, vector<16x128xf32>
      %c0_11 = arith.constant 0 : index
      %c0_12 = arith.constant 0 : index
      %13 = vector.load %arg5[%c0_11, %c0_12] : memref<1x128xf32, #tpu.memory_space<vmem>>, vector<1x128xf32>
      %14 = vector.broadcast %13 : vector<1x128xf32> to vector<16x128xf32>
      %15 = arith.addf %12, %14 : vector<16x128xf32>
      %c0_13 = arith.constant 0 : index
      %c0_14 = arith.constant 0 : index
      %16 = vector.load %arg6[%c0_13, %c0_14] : memref<16x128xf32, #tpu.memory_space<vmem>>, vector<16x128xf32>
      tpu.vector_store %arg6[%c0_13, %c0_14], %15 {strides = array<i32>} : memref<16x128xf32, #tpu.memory_space<vmem>>, vector<16x128xf32>,
    } else {
    }
    return
  }
  func.func @transform_0(%arg0: i32, %arg1: i32, %arg2: i32) -> (i32, i32) {
    %c0_i32 = arith.constant 0 : i32
    return %arg0, %arg2 : i32, i32
  }
  func.func @transform_1(%arg0: i32, %arg1: i32, %arg2: i32) -> (i32, i32) {
    %c0_i32 = arith.constant 0 : i32
    return %arg2, %arg1 : i32, i32
  }
  func.func @transform_2(%arg0: i32, %arg1: i32, %arg2: i32) -> (i32, i32) {
    %c0_i32 = arith.constant 0 : i32
    %c0_i32_0 = arith.constant 0 : i32
    return %c0_i32, %arg1 : i32, i32
  }
  func.func @transform_3(%arg0: i32, %arg1: i32, %arg2: i32) -> (i32, i32) {
    %c0_i32 = arith.constant 0 : i32
    return %arg0, %arg1 : i32, i32
  }
}

</mosaic_0001>

<bundles_post_ra>
// kernel: resnet18_forward.22
= control target key start
LH: loop header
LB: loop body
LE: loop exit
PB: predicated region body
PF: predicated region fallthrough
CT: control target
= control target key end

     0   :  { %s1192_s12 = smov 0   ;;  %s1194_s13 = smov 0   ;;  %s1324_s0 = inlined_call_operand.vmem [shape: bf16[128,640], index: 0, kind: input, shape index: {}]   ;;  %s1325_s1 = inlined_call_operand.vmem [shape: bf16[640,128], index: 1, kind: input, shape index: {}]   ;;  %s1326_s2 = inlined_call_operand.vmem [shape: f32[1,128], index: 2, kind: input, shape index: {}]   ;;  %s1327_s3 = inlined_call_operand.vmem [shape: bf16[128,128], index: 3, kind: output, shape index: {}]  }
   0x1   :  { %s1196_s14 = smov 0   ;;  %s1198_s15 = smov 0  }
   0x2   :  { %s1200_s16 = smov 0  }
   0x3 LB: > { %s25_s17 = sadd.s32 1, %s1165_s15  ;;  %p48_p1 = scmp.ne.s32.totalorder %s1157_s13, %s1153_s12  ;;  %s1169_s16 = sphi %s1200_s16, %s13_s16   ;;  %s1165_s15 = sphi %s1198_s15, %s1331_s15   ;;  %s1161_s14 = sphi %s1196_s14, %s1330_s14   ;;  %s1157_s13 = sphi %s1194_s13, %s1329_s13   ;;  %s1153_s12 = sphi %s1192_s12, %s1328_s12  }
   0x4   : > { %p26_p0 = scmp.ge.s32.totalorder %s25_s17, 5  ;;  %p49_p2 = scmp.eq.s32.totalorder %s1169_s16, 0 }
   0x5   : > { %s41_s19 = sadd.s32 1, %s1157_s13  ;;  %p901_p5 = scmp.ge.s32.totalorder %s1169_s16, 5 }
   0x6   : > { %s1333_s17 = smov (%p26_p0, %s25_s17), 0  ;;  %p50_p3 = por %p49_p2, %p48_p1 }
   0x7   : > { %s37_s18 = ssub.s32 %s1165_s15, %s1333_s17  ;;  %162 = sbr.rel (%p901_p5) target bundleno = 26 (0x1a), region = 20 }
   0x8   : > { %p39_p4 = scmp.eq.s32.totalorder %s37_s18, 0 }
   0xa   : > { %s1227_s20 = scalar_select %p39_p4, %s1157_s13, %s41_s19  }
   0xc   : > { %165 = sbr.rel (!%p50_p3) target bundleno = 26 (0x1a), region = 24  ;;  %s167_s21 = sand.u32 (%p50_p3), 1, %s1157_s13  }
   0xd   : > { %s903_s22 = sshll.u32 (%p50_p3), %s1165_s15, 2  ;;  %s902_s23 = sshll.u32 (%p50_p3), %s167_s21, 6 }
   0xe   : > { %s1235_s26 = scalar_lea.vmem (%p50_p3), %s1324_s0, %s903_s22  ;;  %s169_s27 = scalar_lea.vmem (%p50_p3), [#allocation3], %s902_s23 }
   0xf   : > { %v191_v0 = vld [vmem:[%s1235_s26] sm:$0xf] (%p50_p3)  ;;  %v193_v1 = vld [vmem:[%s1235_s26 + $0x14] sm:$0xf] (%p50_p3)  ;;  %v195_v2 = vld [vmem:[%s1235_s26 + $0x28] sm:$0xf] (%p50_p3) }
  0x10   : > { %192 = vst [vmem:[%s169_s27] sm:$0xf] (%p50_p3), %v191_v0  ;;  %194 = vst [vmem:[%s169_s27 + $0x4] sm:$0xf] (%p50_p3), %v193_v1  ;;  %v197_v3 = vld [vmem:[%s1235_s26 + $0x3c] sm:$0xf] (%p50_p3) }
  0x11   : > { %v199_v4 = vld [vmem:[%s1235_s26 + $0x50] sm:$0xf]  ;;  %196 = vst [vmem:[%s169_s27 + $0x8] sm:$0xf] %v195_v2  ;;  %198 = vst [vmem:[%s169_s27 + $0xc] sm:$0xf] %v197_v3 }
  0x12   : > { %200 = vst [vmem:[%s169_s27 + $0x10] sm:$0xf] %v199_v4  ;;  %v201_v5 = vld [vmem:[%s1235_s26 + $0x64] sm:$0xf]  ;;  %v203_v6 = vld [vmem:[%s1235_s26 + $0x78] sm:$0xf] }
  0x13   : > { %v205_v7 = vld [vmem:[%s1235_s26 + $0x8c] sm:$0xf]  ;;  %202 = vst [vmem:[%s169_s27 + $0x14] sm:$0xf] %v201_v5  ;;  %204 = vst [vmem:[%s169_s27 + $0x18] sm:$0xf] %v203_v6 }
  0x14   : > { %206 = vst [vmem:[%s169_s27 + $0x1c] sm:$0xf] %v205_v7  ;;  %v207_v8 = vld [vmem:[%s1235_s26 + $0xa0] sm:$0xf]  ;;  %v209_v9 = vld [vmem:[%s1235_s26 + $0xb4] sm:$0xf] }
  0x15   : > { %v211_v10 = vld [vmem:[%s1235_s26 + $0xc8] sm:$0xf]  ;;  %208 = vst [vmem:[%s169_s27 + $0x20] sm:$0xf] %v207_v8  ;;  %210 = vst [vmem:[%s169_s27 + $0x24] sm:$0xf] %v209_v9 }
  0x16   : > { %212 = vst [vmem:[%s169_s27 + $0x28] sm:$0xf] %v211_v10  ;;  %v213_v11 = vld [vmem:[%s1235_s26 + $0xdc] sm:$0xf]  ;;  %v215_v12 = vld [vmem:[%s1235_s26 + $0xf0] sm:$0xf] }
  0x17   : > { %v217_v13 = vld [vmem:[%s1235_s26 + $0x104] sm:$0xf]  ;;  %214 = vst [vmem:[%s169_s27 + $0x2c] sm:$0xf] %v213_v11  ;;  %216 = vst [vmem:[%s169_s27 + $0x30] sm:$0xf] %v215_v12 }
  0x18   : > { %218 = vst [vmem:[%s169_s27 + $0x34] sm:$0xf] %v217_v13  ;;  %v219_v14 = vld [vmem:[%s1235_s26 + $0x118] sm:$0xf]  ;;  %v221_v15 = vld [vmem:[%s1235_s26 + $0x12c] sm:$0xf] }
  0x19   : > { %220 = vst [vmem:[%s169_s27 + $0x38] sm:$0xf] %v219_v14  ;;  %222 = vst [vmem:[%s169_s27 + $0x3c] sm:$0xf] %v221_v15 }
  0x1a PF: > { %p904_p6 = scmp.ge.s32.totalorder %s1169_s16, 1  ;;  %p289_p7 = scmp.lt.s32.totalorder %s1169_s16, 6 }
  0x1c   : > { %p290_p8 = pnand %p904_p6, %p289_p7 }
  0x1d   : > { %s296_s28 = sand.u32 (!%p290_p8), 1, %s1153_s12   ;;  %s906_s29 = sshll.u32 (!%p290_p8), %s1161_s14, 4 }
  0x1e   : > { %293 = sbr.rel (%p290_p8) target bundleno = 308 (0x134), region = 69  ;;  %s905_s30 = sshll.u32 (!%p290_p8), %s296_s28, 6 }
  0x1f   : > { %p335_p9 = scmp.lt.s32.totalorder (!%p290_p8), %s906_s29, 79  ;;  %s1262_s8 = scalar_lea.vmem (!%p290_p8), [#allocation3], %s905_s30 }
  0x20   : > { %p908_p10 = scmp.ne.s32.totalorder (!%p290_p8), %s1161_s14, 0 }
  0x23   : > { %s1335_s29 = smov (!%p335_p9, %s906_s29), 79  ;;  %359 = sbr.rel (%p908_p10) target bundleno = 49 (0x31), region = 77 }
  0x24   : > { %s907_s4 = sshll.u32 %s1335_s29, 2 }
  0x25   : > { %s1260_s7 = scalar_lea.vmem %s1325_s1, %s907_s4 }
  0x28   : > { %v1171_v16 = vmov 0.0  }
  0x29   : > { %360 = vst [vmem:[#allocation2 + $0x30] sm:$0xff] %v1171_v16  ;;  %361 = vst [vmem:[#allocation2] sm:$0xff] %v1171_v16 }
  0x2a   : > { %362 = vst [vmem:[#allocation2 + $0x58] sm:$0xff] %v1171_v16  ;;  %363 = vst [vmem:[#allocation2 + $0x18] sm:$0xff] %v1171_v16 }
  0x2b   : > { %364 = vst [vmem:[#allocation2 + $0x50] sm:$0xff] %v1171_v16  ;;  %365 = vst [vmem:[#allocation2 + $0x68] sm:$0xff] %v1171_v16 }
  0x2c   : > { %366 = vst [vmem:[#allocation2 + $0x8] sm:$0xff] %v1171_v16  ;;  %367 = vst [vmem:[#allocation2 + $0x48] sm:$0xff] %v1171_v16 }
  0x2d   : > { %368 = vst [vmem:[#allocation2 + $0x40] sm:$0xff] %v1171_v16  ;;  %369 = vst [vmem:[#allocation2 + $0x20] sm:$0xff] %v1171_v16 }
  0x2e   : > { %370 = vst [vmem:[#allocation2 + $0x10] sm:$0xff] %v1171_v16  ;;  %371 = vst [vmem:[#allocation2 + $0x38] sm:$0xff] %v1171_v16 }
  0x2f   : > { %372 = vst [vmem:[#allocation2 + $0x60] sm:$0xff] %v1171_v16  ;;  %373 = vst [vmem:[#allocation2 + $0x70] sm:$0xff] %v1171_v16 }
  0x30   : > { %374 = vst [vmem:[#allocation2 + $0x78] sm:$0xff] %v1171_v16  ;;  %375 = vst [vmem:[#allocation2 + $0x28] sm:$0xff] %v1171_v16 }
  0x31 PF: > { %v1115_v17 = vld [vmem:[%s1260_s7 + $0x38] sm:$0xff]   ;;  %v1116_v18 = vld [vmem:[%s1260_s7 + $0x30] sm:$0xff]   ;;  %v1117_v19 = vld [vmem:[%s1260_s7 + $0x28] sm:$0xff]   ;;  %p925_p11 = scmp.ne.s32.totalorder %s1161_s14, 4 }
  0x32   : > { %1026 = vmatprep.subr.bf16.mxu0 %v1115_v17  ;;  %1058 = vmatprep.subr.bf16.mxu1 %v1115_v17  ;;  %v1118_v20 = vld [vmem:[%s1260_s7 + $0x20] sm:$0xff]   ;;  %v1119_v23 = vld [vmem:[%s1260_s7 + $0x18] sm:$0xff]   ;;  %v1120_v24 = vld [vmem:[%s1260_s7 + $0x10] sm:$0xff]  }
  0x33   : > { %1027 = vmatpush3.bf16.msra.mxu0 %v1115_v17  ;;  %1066 = vmatpush3.bf16.msra.mxu1 %v1115_v17  ;;  %v1123_v21 = vld [vmem:[%s1262_s8] sm:$0xff]   ;;  %v1121_v25 = vld [vmem:[%s1260_s7 + $0x8] sm:$0xff]   ;;  %v1127_v29 = vld [vmem:[%s1262_s8 + $0x10] sm:$0xff]  }
  0x34   : > { %1028 = vmatprep.subr.bf16.mxu0 %v1116_v18  ;;  %1059 = vmatprep.subr.bf16.mxu1 %v1116_v18  ;;  %v1124_v22 = vld [vmem:[%s1262_s8 + $0x20] sm:$0xff]   ;;  %v1125_v27 = vld [vmem:[%s1262_s8 + $0x8] sm:$0xff]   ;;  %v1128_v30 = vld [vmem:[%s1262_s8 + $0x30] sm:$0xff]  }
  0x35   : > { %1042 = vmatprep.mubr.bf16.mxu0 %v1123_v21  ;;  %1050 = vmatprep.mubr.bf16.mxu1 %v1124_v22  ;;  %v1122_v26 = vld [vmem:[%s1260_s7] sm:$0xff]   ;;  %v1126_v28 = vld [vmem:[%s1262_s8 + $0x28] sm:$0xff]   ;;  %v1129_v31 = vld [vmem:[%s1262_s8 + $0x18] sm:$0xff]  }
  0x36   : > { %v1130_v32 = vld [vmem:[%s1262_s8 + $0x38] sm:$0xff]   ;;  %v386_v34 = vld [vmem:[#allocation2 + $0x10] sm:$0xff]  ;;  %v384_v38 = vld [vmem:[#allocation2 + $0x40] sm:$0xff] }
  0x37   : > { %1029 = vmatpush3.bf16.msra.mxu0 %v1116_v18  ;;  %1067 = vmatpush3.bf16.msra.mxu1 %v1116_v18  ;;  %v378_v33 = vld [vmem:[#allocation2 + $0x58] sm:$0xff]  ;;  %v376_v37 = vld [vmem:[#allocation2 + $0x30] sm:$0xff]  ;;  %v377_v49 = vld [vmem:[#allocation2] sm:$0xff] }
  0x38   : > { %1030 = vmatprep.subr.bf16.mxu0 %v1117_v19  ;;  %1060 = vmatprep.subr.bf16.mxu1 %v1117_v19  ;;  %v379_v43 = vld [vmem:[#allocation2 + $0x18] sm:$0xff]  ;;  %v385_v50 = vld [vmem:[#allocation2 + $0x20] sm:$0xff]  ;;  %v382_v55 = vld [vmem:[#allocation2 + $0x8] sm:$0xff] }
  0x39   : > { %v387_v44 = vld [vmem:[#allocation2 + $0x38] sm:$0xff]  ;;  %v380_v61 = vld [vmem:[#allocation2 + $0x50] sm:$0xff]  ;;  %v388_v62 = vld [vmem:[#allocation2 + $0x60] sm:$0xff] }
  0x3a   : > { %v390_v56 = vld [vmem:[#allocation2 + $0x78] sm:$0xff]  ;;  %v383_v3 = vld [vmem:[#allocation2 + $0x48] sm:$0xff]  ;;  %v389_v10 = vld [vmem:[#allocation2 + $0x70] sm:$0xff] }
  0x3b   : > { %1031 = vmatpush3.bf16.msra.mxu0 %v1117_v19  ;;  %1068 = vmatpush3.bf16.msra.mxu1 %v1117_v19  ;;  %v391_v4 = vld [vmem:[#allocation2 + $0x28] sm:$0xff] }
  0x3c   : > { %1032 = vmatprep.subr.bf16.mxu0 %v1118_v20  ;;  %1061 = vmatprep.subr.bf16.mxu1 %v1118_v20  ;;  %v381_v9 = vld [vmem:[#allocation2 + $0x68] sm:$0xff] }
  0x3f   : > { %1033 = vmatpush3.bf16.msra.mxu0 %v1118_v20  ;;  %1069 = vmatpush3.bf16.msra.mxu1 %v1118_v20 }
  0x40   : > { %1034 = vmatprep.subr.bf16.mxu0 %v1119_v23  ;;  %1062 = vmatprep.subr.bf16.mxu1 %v1119_v23 }
  0x43   : > { %1035 = vmatpush3.bf16.msra.mxu0 %v1119_v23  ;;  %1070 = vmatpush3.bf16.msra.mxu1 %v1119_v23 }
  0x44   : > { %1036 = vmatprep.subr.bf16.mxu0 %v1120_v24  ;;  %1063 = vmatprep.subr.bf16.mxu1 %v1120_v24 }
  0x47   : > { %1037 = vmatpush3.bf16.msra.mxu0 %v1120_v24  ;;  %1071 = vmatpush3.bf16.msra.mxu1 %v1120_v24 }
  0x48   : > { %1038 = vmatprep.subr.bf16.mxu0 %v1121_v25  ;;  %1064 = vmatprep.subr.bf16.mxu1 %v1121_v25 }
  0x4b   : > { %1039 = vmatpush3.bf16.msra.mxu0 %v1121_v25  ;;  %1072 = vmatpush3.bf16.msra.mxu1 %v1121_v25 }
  0x4c   : > { %1040 = vmatprep.subr.bf16.mxu0 %v1122_v26  ;;  %1065 = vmatprep.subr.bf16.mxu1 %v1122_v26 }
  0x4f   : > { %1041 = vmatpush3.bf16.msra.mxu0 %v1122_v26  ;;  %1073 = vmatpush3.bf16.msra.mxu1 %v1122_v26 }
  0x52   : > { %1043 = vmatmul.mubr.bf16.vlgmr.msra.gmra.mxu0 %v1125_v27  ;;  %1051 = vmatmul.mubr.bf16.vlgmr.msra.gmra.mxu1 %v1126_v28 }
  0x53   : > { %1046 = vmatprep.mubr.bf16.mxu0 %v1127_v29  ;;  %1054 = vmatprep.mubr.bf16.mxu1 %v1128_v30 }
  0x5a   : > { %1047 = vmatmul.mubr.bf16.gmra.mxu0 %v1129_v31  ;;  %1055 = vmatmul.mubr.bf16.gmra.mxu1 %v1130_v32 }
 0x112   : > { %v1044_v35 = vpop.f32.mrf.mxu0  ;;  %v1052_v36 = vpop.f32.mrf.mxu1 }
 0x113   : > { %v619_v39 = vadd.f32 %v1044_v35, %v378_v33  ;;  %v627_v40 = vadd.f32 %v1052_v36, %v386_v34 }
 0x114   : > { %v554_v41 = vpop.f32.mrf.mxu0  ;;  %v586_v42 = vpop.f32.mrf.mxu1 }
 0x115   : > { %635 = vst [vmem:[#allocation2 + $0x58] sm:$0xff] %v619_v39  ;;  %643 = vst [vmem:[#allocation2 + $0x10] sm:$0xff] %v627_v40  ;;  %v617_v45 = vadd.f32 %v554_v41, %v376_v37  ;;  %v625_v46 = vadd.f32 %v586_v42, %v384_v38 }
 0x116   : > { %v1045_v47 = vpop.f32.mrf.mxu0  ;;  %v1053_v48 = vpop.f32.mrf.mxu1 }
 0x117   : > { %633 = vst [vmem:[#allocation2 + $0x30] sm:$0xff] %v617_v45  ;;  %641 = vst [vmem:[#allocation2 + $0x40] sm:$0xff] %v625_v46  ;;  %v620_v51 = vadd.f32 %v1045_v47, %v379_v43  ;;  %v628_v52 = vadd.f32 %v1053_v48, %v387_v44 }
 0x118   : > { %v557_v53 = vpop.f32.mrf.mxu0  ;;  %v589_v54 = vpop.f32.mrf.mxu1 }
 0x119   : > { %636 = vst [vmem:[#allocation2 + $0x18] sm:$0xff] %v620_v51  ;;  %644 = vst [vmem:[#allocation2 + $0x38] sm:$0xff] %v628_v52  ;;  %v618_v57 = vadd.f32 %v557_v53, %v377_v49  ;;  %v626_v58 = vadd.f32 %v589_v54, %v385_v50 }
 0x11a   : > { %v1048_v59 = vpop.f32.mrf.mxu0  ;;  %v1056_v60 = vpop.f32.mrf.mxu1 }
 0x11b   : > { %634 = vst [vmem:[#allocation2] sm:$0xff] %v618_v57  ;;  %642 = vst [vmem:[#allocation2 + $0x20] sm:$0xff] %v626_v58  ;;  %v623_v63 = vadd.f32 %v1048_v59, %v382_v55  ;;  %v631_v0 = vadd.f32 %v1056_v60, %v390_v56 }
 0x11c   : > { %v570_v1 = vpop.f32.mrf.mxu0  ;;  %v602_v2 = vpop.f32.mrf.mxu1 }
 0x11d   : > { %639 = vst [vmem:[#allocation2 + $0x8] sm:$0xff] %v623_v63  ;;  %647 = vst [vmem:[#allocation2 + $0x78] sm:$0xff] %v631_v0  ;;  %v621_v5 = vadd.f32 %v570_v1, %v380_v61  ;;  %v629_v6 = vadd.f32 %v602_v2, %v388_v62 }
 0x11e   : > { %v1049_v7 = vpop.f32.mrf.mxu0  ;;  %v1057_v8 = vpop.f32.mrf.mxu1 }
 0x11f   : > { %637 = vst [vmem:[#allocation2 + $0x50] sm:$0xff] %v621_v5  ;;  %645 = vst [vmem:[#allocation2 + $0x60] sm:$0xff] %v629_v6  ;;  %v624_v11 = vadd.f32 %v1049_v7, %v383_v3  ;;  %v632_v12 = vadd.f32 %v1057_v8, %v391_v4  ;;  %652 = sbr.rel (%p925_p11) target bundleno = 308 (0x134), region = 81 }
 0x120   : > { %v573_v13 = vpop.f32.mrf.mxu0  ;;  %v605_v14 = vpop.f32.mrf.mxu1 }
 0x121   : > { %640 = vst [vmem:[#allocation2 + $0x48] sm:$0xff] %v624_v11  ;;  %648 = vst [vmem:[#allocation2 + $0x28] sm:$0xff] %v632_v12  ;;  %v622_v15 = vadd.f32 %v573_v13, %v381_v9  ;;  %v630_v16 = vadd.f32 %v605_v14, %v389_v10 }
 0x123   : > { %638 = vst [vmem:[#allocation2 + $0x68] sm:$0xff] %v622_v15  ;;  %646 = vst [vmem:[#allocation2 + $0x70] sm:$0xff] %v630_v16 }
 0x124   : > { %v653_v17 = vld [vmem:[#allocation2 + $0x30] sm:$0xff]  ;;  %v654_v18 = vld [vmem:[#allocation2] sm:$0xff]  ;;  %v655_v22 = vld [vmem:[#allocation2 + $0x58] sm:$0xff] }
 0x125   : > { %v926_v19 = vld [vmem:[%s1326_s2] ss:$0 sm:$0xff]  ;;  %v656_v23 = vld [vmem:[#allocation2 + $0x18] sm:$0xff]  ;;  %v659_v29 = vld [vmem:[#allocation2 + $0x8] sm:$0xff] }
 0x126   : > { %v676_v20 = vadd.f32 %v926_v19, %v653_v17  ;;  %v677_v21 = vadd.f32 %v926_v19, %v654_v18  ;;  %v657_v24 = vld [vmem:[#allocation2 + $0x50] sm:$0xff]  ;;  %v678_v25 = vadd.f32 %v926_v19, %v655_v22  ;;  %v679_v26 = vadd.f32 %v926_v19, %v656_v23  ;;  %v661_v35 = vld [vmem:[#allocation2 + $0x40] sm:$0xff]  ;;  %v664_v42 = vld [vmem:[#allocation2 + $0x38] sm:$0xff] }
 0x127   : > { %v680_v28 = vadd.f32 %v926_v19, %v657_v24  ;;  %v682_v34 = vadd.f32 %v926_v19, %v659_v29  ;;  %v662_v36 = vld [vmem:[#allocation2 + $0x20] sm:$0xff]  ;;  %v663_v37 = vld [vmem:[#allocation2 + $0x10] sm:$0xff]  ;;  %v684_v47 = vadd.f32 %v926_v19, %v661_v35  ;;  %v667_v53 = vld [vmem:[#allocation2 + $0x78] sm:$0xff]  ;;  %v687_v57 = vadd.f32 %v926_v19, %v664_v42 }
 0x128   : > { %v660_v30 = vld [vmem:[#allocation2 + $0x48] sm:$0xff]  ;;  %v692_v31 = vmax.f32 %v676_v20, 0.0  ;;  %v693_v32 = vmax.f32 %v677_v21, 0.0  ;;  %v694_v38 = vmax.f32 %v678_v25, 0.0  ;;  %v695_v39 = vmax.f32 %v679_v26, 0.0  ;;  %v665_v43 = vld [vmem:[#allocation2 + $0x60] sm:$0xff] }
 0x129   : > { %v696_v40 = vmax.f32 %v680_v28, 0.0  ;;  %v683_v41 = vadd.f32 %v926_v19, %v660_v30  ;;  %v698_v46 = vmax.f32 %v682_v34, 0.0  ;;  %v685_v51 = vadd.f32 %v926_v19, %v662_v36  ;;  %v668_v54 = vld [vmem:[#allocation2 + $0x28] sm:$0xff] }
 0x12a   : > { %v658_v27 = vld [vmem:[#allocation2 + $0x68] sm:$0xff]  ;;  %v966_v44 = vpack.c.bf16 %v693_v32, %v692_v31  ;;  %v666_v48 = vld [vmem:[#allocation2 + $0x70] sm:$0xff]  ;;  %v971_v49 = vpack.c.bf16 %v695_v39, %v694_v38  ;;  %v686_v52 = vadd.f32 %v926_v19, %v663_v37  ;;  %v700_v56 = vmax.f32 %v684_v47, 0.0 }
 0x12b   : > { %v681_v33 = vadd.f32 %v926_v19, %v658_v27  ;;  %v699_v50 = vmax.f32 %v683_v41, 0.0  ;;  %v688_v58 = vadd.f32 %v926_v19, %v665_v43  ;;  %v701_v60 = vmax.f32 %v685_v51, 0.0 }
 0x12c   : > { %967 = vst [vmem:[%s1327_s3] sm:$0xff] %v966_v44   ;;  %1003 = vst [vmem:[%s1327_s3 + $0x8] sm:$0xff] %v971_v49   ;;  %v702_v61 = vmax.f32 %v686_v52, 0.0  ;;  %v689_v62 = vadd.f32 %v926_v19, %v666_v48  ;;  %v703_v63 = vmax.f32 %v687_v57, 0.0  ;;  %v690_v1 = vadd.f32 %v926_v19, %v667_v53 }
 0x12d   : > { %v697_v45 = vmax.f32 %v681_v33, 0.0  ;;  %v981_v59 = vpack.c.bf16 %v699_v50, %v698_v46  ;;  %v704_v0 = vmax.f32 %v688_v58, 0.0  ;;  %v691_v2 = vadd.f32 %v926_v19, %v668_v54 }
 0x12e   : > { %v986_v3 = vpack.c.bf16 %v701_v60, %v700_v56  ;;  %v705_v4 = vmax.f32 %v689_v62, 0.0  ;;  %v991_v5 = vpack.c.bf16 %v703_v63, %v702_v61  ;;  %v706_v6 = vmax.f32 %v690_v1, 0.0 }
 0x12f   : > { %v976_v55 = vpack.c.bf16 %v697_v45, %v696_v40  ;;  %1005 = vst [vmem:[%s1327_s3 + $0x18] sm:$0xff] %v981_v59   ;;  %v707_v7 = vmax.f32 %v691_v2, 0.0 }
 0x130   : > { %1006 = vst [vmem:[%s1327_s3 + $0x20] sm:$0xff] %v986_v3   ;;  %v996_v8 = vpack.c.bf16 %v705_v4, %v704_v0  ;;  %1007 = vst [vmem:[%s1327_s3 + $0x28] sm:$0xff] %v991_v5  }
 0x131   : > { %1004 = vst [vmem:[%s1327_s3 + $0x10] sm:$0xff] %v976_v55   ;;  %v1001_v9 = vpack.c.bf16 %v707_v7, %v706_v6 }
 0x132   : > { %1008 = vst [vmem:[%s1327_s3 + $0x30] sm:$0xff] %v996_v8  }
 0x133   : > { %1009 = vst [vmem:[%s1327_s3 + $0x38] sm:$0xff] %v1001_v9  }
 0x134 PF: > { %s13_s16 = sadd.s32 1, %s1169_s16   ;;  %s1328_s12 = smov %s1157_s13 }
 0x135   : > { %p10_p12 = scmp.ge.s32.totalorder %s13_s16, 7   ;;  %s1329_s13 = smov %s1227_s20 }
 0x136   : > { %s1330_s14 = smov %s1165_s15  ;;  %s1331_s15 = smov %s1333_s17 }
 0x137   :  { %12 = sbr.rel (!%p10_p12) target bundleno = 3 (0x3), region = 122 }

// kernel: resnet18_forward.21
= control target key start
LH: loop header
LB: loop body
LE: loop exit
PB: predicated region body
PF: predicated region fallthrough
CT: control target
= control target key end

     0   :  { %v2147_v0 = vmov 0   ;;  %s2605_s1 = inlined_call_operand.vmem [shape: bf16[256,128], index: 1, kind: input, shape index: {}]   ;;  %s2606_s0 = inlined_call_operand.vmem [shape: bf16[512,256], index: 0, kind: input, shape index: {}]   ;;  %s2607_s2 = inlined_call_operand.vmem [shape: f32[1,128], index: 2, kind: input, shape index: {}]   ;;  %s2608_s3 = inlined_call_operand.vmem [shape: bf16[512,128], index: 3, kind: output, shape index: {}]  }
   0x1   :  { %659 = vmatprep.subr.bf16.mxu0 %v2147_v0  ;;  %2002 = vmatprep.subr.bf16.mxu1 %v2147_v0  ;;  %v2035_v1 = vld [vmem:[%s2605_s1 + $0x38] sm:$0xff]   ;;  %v2036_v2 = vld [vmem:[%s2605_s1 + $0x30] sm:$0xff]   ;;  %v2037_v3 = vld [vmem:[%s2605_s1 + $0x28] sm:$0xff]  }
   0x2   :  { %660 = vmatpush1.bf16.msra.mxu0 %v2035_v1  ;;  %2018 = vmatpush1.bf16.msra.mxu1 %v2035_v1  ;;  %v2038_v4 = vld [vmem:[%s2605_s1 + $0x20] sm:$0xff]   ;;  %v2039_v5 = vld [vmem:[%s2605_s1 + $0x18] sm:$0xff]   ;;  %v2040_v7 = vld [vmem:[%s2605_s1 + $0x10] sm:$0xff]  }
   0x3   :  { %661 = vmatprep.subr.bf16.mxu0 %v2147_v0  ;;  %2003 = vmatprep.subr.bf16.mxu1 %v2147_v0  ;;  %v2053_v6 = vld [vmem:[%s2606_s0 + $0x4] ss:$8 sps:$4 sm:$0xff]   ;;  %v2043_v11 = vld [vmem:[%s2605_s1 + $0x78] sm:$0xff]   ;;  %v2044_v12 = vld [vmem:[%s2605_s1 + $0x70] sm:$0xff]  }
   0x4   :  { %v2056_v8 = vld [vmem:[%s2606_s0 + $0x104] ss:$8 sps:$4 sm:$0xff]   ;;  %691 = vmatprep.mubr.bf16.mxu0 %v2053_v6  ;;  %v2047_v15 = vld [vmem:[%s2605_s1 + $0x58] sm:$0xff]   ;;  %v2048_v16 = vld [vmem:[%s2605_s1 + $0x50] sm:$0xff]  }
   0x5   :  { %819 = vmatprep.mubr.bf16.mxu1 %v2056_v8  ;;  %v2041_v9 = vld [vmem:[%s2605_s1 + $0x8] sm:$0xff]   ;;  %v2042_v10 = vld [vmem:[%s2605_s1] sm:$0xff]   ;;  %v2057_v21 = vld [vmem:[%s2606_s0 + $0x14] ss:$8 sps:$4 sm:$0xff]  }
   0x6   :  { %662 = vmatpush1.bf16.msra.mxu0 %v2036_v2  ;;  %2019 = vmatpush1.bf16.msra.mxu1 %v2036_v2  ;;  %v2045_v13 = vld [vmem:[%s2605_s1 + $0x68] sm:$0xff]   ;;  %v2046_v14 = vld [vmem:[%s2605_s1 + $0x60] sm:$0xff]   ;;  %v2059_v22 = vld [vmem:[%s2606_s0 + $0x114] ss:$8 sps:$4 sm:$0xff]  }
   0x7   :  { %663 = vmatprep.subr.bf16.mxu0 %v2147_v0  ;;  %2004 = vmatprep.subr.bf16.mxu1 %v2147_v0  ;;  %v2049_v17 = vld [vmem:[%s2605_s1 + $0x48] sm:$0xff]   ;;  %v2050_v18 = vld [vmem:[%s2605_s1 + $0x40] sm:$0xff]   ;;  %v2061_v23 = vld [vmem:[%s2606_s0 + $0x10] ss:$8 sps:$4 sm:$0xff]  }
   0x8   :  { %v2051_v19 = vld [vmem:[%s2606_s0] ss:$8 sps:$4 sm:$0xff]   ;;  %v2062_v24 = vld [vmem:[%s2606_s0 + $0x110] ss:$8 sps:$4 sm:$0xff]   ;;  %v2063_v25 = vld [vmem:[%s2606_s0 + $0x24] ss:$8 sps:$4 sm:$0xff]  }
   0x9   :  { %v2054_v20 = vld [vmem:[%s2606_s0 + $0x100] ss:$8 sps:$4 sm:$0xff]   ;;  %v2065_v26 = vld [vmem:[%s2606_s0 + $0x124] ss:$8 sps:$4 sm:$0xff]   ;;  %v2069_v29 = vld [vmem:[%s2606_s0 + $0x34] ss:$8 sps:$4 sm:$0xff]  }
   0xa   :  { %664 = vmatpush1.bf16.msra.mxu0 %v2037_v3  ;;  %2020 = vmatpush1.bf16.msra.mxu1 %v2037_v3  ;;  %v2067_v27 = vld [vmem:[%s2606_s0 + $0x20] ss:$8 sps:$4 sm:$0xff]   ;;  %v2071_v30 = vld [vmem:[%s2606_s0 + $0x134] ss:$8 sps:$4 sm:$0xff]   ;;  %v2073_v31 = vld [vmem:[%s2606_s0 + $0x30] ss:$8 sps:$4 sm:$0xff]  }
   0xb   :  { %665 = vmatprep.subr.bf16.mxu0 %v2147_v0  ;;  %2005 = vmatprep.subr.bf16.mxu1 %v2147_v0  ;;  %v2068_v28 = vld [vmem:[%s2606_s0 + $0x120] ss:$8 sps:$4 sm:$0xff]   ;;  %v2074_v32 = vld [vmem:[%s2606_s0 + $0x130] ss:$8 sps:$4 sm:$0xff]   ;;  %v2075_v33 = vld [vmem:[%s2606_s0 + $0x44] ss:$8 sps:$4 sm:$0xff]  }
   0xc   :  { %v2077_v34 = vld [vmem:[%s2606_s0 + $0x144] ss:$8 sps:$4 sm:$0xff]   ;;  %v2079_v35 = vld [vmem:[%s2606_s0 + $0x40] ss:$8 sps:$4 sm:$0xff]   ;;  %v2081_v37 = vld [vmem:[%s2606_s0 + $0x54] ss:$8 sps:$4 sm:$0xff]  }
   0xd   :  { %v2080_v36 = vld [vmem:[%s2606_s0 + $0x140] ss:$8 sps:$4 sm:$0xff]   ;;  %v2083_v38 = vld [vmem:[%s2606_s0 + $0x154] ss:$8 sps:$4 sm:$0xff]   ;;  %v2085_v39 = vld [vmem:[%s2606_s0 + $0x50] ss:$8 sps:$4 sm:$0xff]  }
   0xe   :  { %666 = vmatpush1.bf16.msra.mxu0 %v2038_v4  ;;  %2021 = vmatpush1.bf16.msra.mxu1 %v2038_v4  ;;  %v2086_v40 = vld [vmem:[%s2606_s0 + $0x150] ss:$8 sps:$4 sm:$0xff]   ;;  %v2087_v41 = vld [vmem:[%s2606_s0 + $0x64] ss:$8 sps:$4 sm:$0xff]   ;;  %v2091_v43 = vld [vmem:[%s2606_s0 + $0x60] ss:$8 sps:$4 sm:$0xff]  }
   0xf   :  { %667 = vmatprep.subr.bf16.mxu0 %v2147_v0  ;;  %2006 = vmatprep.subr.bf16.mxu1 %v2147_v0  ;;  %v2089_v42 = vld [vmem:[%s2606_s0 + $0x164] ss:$8 sps:$4 sm:$0xff]   ;;  %v2092_v44 = vld [vmem:[%s2606_s0 + $0x160] ss:$8 sps:$4 sm:$0xff]   ;;  %v2093_v45 = vld [vmem:[%s2606_s0 + $0x74] ss:$8 sps:$4 sm:$0xff]  }
  0x10   :  { %v2095_v46 = vld [vmem:[%s2606_s0 + $0x174] ss:$8 sps:$4 sm:$0xff]   ;;  %v2097_v47 = vld [vmem:[%s2606_s0 + $0x70] ss:$8 sps:$4 sm:$0xff]   ;;  %v2099_v49 = vld [vmem:[%s2606_s0 + $0x84] ss:$8 sps:$4 sm:$0xff]  }
  0x11   :  { %v2098_v48 = vld [vmem:[%s2606_s0 + $0x170] ss:$8 sps:$4 sm:$0xff]   ;;  %v2101_v50 = vld [vmem:[%s2606_s0 + $0x184] ss:$8 sps:$4 sm:$0xff]   ;;  %v2103_v51 = vld [vmem:[%s2606_s0 + $0x80] ss:$8 sps:$4 sm:$0xff]  }
  0x12   :  { %668 = vmatpush1.bf16.msra.mxu0 %v2039_v5  ;;  %2022 = vmatpush1.bf16.msra.mxu1 %v2039_v5  ;;  %v2104_v52 = vld [vmem:[%s2606_s0 + $0x180] ss:$8 sps:$4 sm:$0xff]   ;;  %v2105_v53 = vld [vmem:[%s2606_s0 + $0x94] ss:$8 sps:$4 sm:$0xff]   ;;  %v2109_v55 = vld [vmem:[%s2606_s0 + $0x90] ss:$8 sps:$4 sm:$0xff]  }
  0x13   :  { %669 = vmatprep.subr.bf16.mxu0 %v2147_v0  ;;  %2007 = vmatprep.subr.bf16.mxu1 %v2147_v0  ;;  %v2107_v54 = vld [vmem:[%s2606_s0 + $0x194] ss:$8 sps:$4 sm:$0xff]   ;;  %v2110_v56 = vld [vmem:[%s2606_s0 + $0x190] ss:$8 sps:$4 sm:$0xff]   ;;  %v2111_v57 = vld [vmem:[%s2606_s0 + $0xa4] ss:$8 sps:$4 sm:$0xff]  }
  0x14   :  { %v2113_v58 = vld [vmem:[%s2606_s0 + $0x1a4] ss:$8 sps:$4 sm:$0xff]   ;;  %v2115_v59 = vld [vmem:[%s2606_s0 + $0xa0] ss:$8 sps:$4 sm:$0xff]   ;;  %v2117_v61 = vld [vmem:[%s2606_s0 + $0xb4] ss:$8 sps:$4 sm:$0xff]  }
  0x15   :  { %v2116_v60 = vld [vmem:[%s2606_s0 + $0x1a0] ss:$8 sps:$4 sm:$0xff]   ;;  %v2119_v62 = vld [vmem:[%s2606_s0 + $0x1b4] ss:$8 sps:$4 sm:$0xff]   ;;  %v2121_v63 = vld [vmem:[%s2606_s0 + $0xb0] ss:$8 sps:$4 sm:$0xff]  }
  0x16   :  { %670 = vmatpush1.bf16.msra.mxu0 %v2040_v7  ;;  %2023 = vmatpush1.bf16.msra.mxu1 %v2040_v7  ;;  %v2123_v1 = vld [vmem:[%s2606_s0 + $0xc4] ss:$8 sps:$4 sm:$0xff]   ;;  %v2127_v3 = vld [vmem:[%s2606_s0 + $0xc0] ss:$8 sps:$4 sm:$0xff]   ;;  %v2129_v5 = vld [vmem:[%s2606_s0 + $0xd4] ss:$8 sps:$4 sm:$0xff]  }
  0x17   :  { %671 = vmatprep.subr.bf16.mxu0 %v2147_v0  ;;  %2008 = vmatprep.subr.bf16.mxu1 %v2147_v0  ;;  %v2125_v2 = vld [vmem:[%s2606_s0 + $0x1c4] ss:$8 sps:$4 sm:$0xff]   ;;  %v2128_v4 = vld [vmem:[%s2606_s0 + $0x1c0] ss:$8 sps:$4 sm:$0xff]   ;;  %v2131_v6 = vld [vmem:[%s2606_s0 + $0x1d4] ss:$8 sps:$4 sm:$0xff]  }
  0x18   :  { %v2133_v7 = vld [vmem:[%s2606_s0 + $0xd0] ss:$8 sps:$4 sm:$0xff]  }
  0x19   :  { %v2134_v8 = vld [vmem:[%s2606_s0 + $0x1d0] ss:$8 sps:$4 sm:$0xff]  }
  0x1a   :  { %672 = vmatpush1.bf16.msra.mxu0 %v2041_v9  ;;  %2024 = vmatpush1.bf16.msra.mxu1 %v2041_v9  ;;  %v2135_v9 = vld [vmem:[%s2606_s0 + $0xe4] ss:$8 sps:$4 sm:$0xff]  }
  0x1b   :  { %673 = vmatprep.subr.bf16.mxu0 %v2147_v0  ;;  %2009 = vmatprep.subr.bf16.mxu1 %v2147_v0 }
  0x1e   :  { %674 = vmatpush1.bf16.msra.mxu0 %v2042_v10  ;;  %2025 = vmatpush1.bf16.msra.mxu1 %v2042_v10  ;;  %v2137_v10 = vld [vmem:[%s2606_s0 + $0x1e4] ss:$8 sps:$4 sm:$0xff]  }
  0x1f   :  { %675 = vmatprep.subr.bf16.mxu0 %v2147_v0  ;;  %2010 = vmatprep.subr.bf16.mxu1 %v2147_v0 }
  0x22   :  { %676 = vmatpush2.bf16.msra.mxu0 %v2043_v11  ;;  %2026 = vmatpush2.bf16.msra.mxu1 %v2043_v11  ;;  %v2139_v11 = vld [vmem:[%s2606_s0 + $0xe0] ss:$8 sps:$4 sm:$0xff]  }
  0x23   :  { %677 = vmatprep.subr.bf16.mxu0 %v2147_v0  ;;  %2011 = vmatprep.subr.bf16.mxu1 %v2147_v0 }
  0x26   :  { %678 = vmatpush2.bf16.msra.mxu0 %v2044_v12  ;;  %2027 = vmatpush2.bf16.msra.mxu1 %v2044_v12  ;;  %v2140_v12 = vld [vmem:[%s2606_s0 + $0x1e0] ss:$8 sps:$4 sm:$0xff]  }
  0x27   :  { %679 = vmatprep.subr.bf16.mxu0 %v2147_v0  ;;  %2012 = vmatprep.subr.bf16.mxu1 %v2147_v0 }
  0x2a   :  { %680 = vmatpush2.bf16.msra.mxu0 %v2045_v13  ;;  %2028 = vmatpush2.bf16.msra.mxu1 %v2045_v13  ;;  %v2141_v13 = vld [vmem:[%s2606_s0 + $0xf4] ss:$8 sps:$4 sm:$0xff]  }
  0x2b   :  { %681 = vmatprep.subr.bf16.mxu0 %v2147_v0  ;;  %2013 = vmatprep.subr.bf16.mxu1 %v2147_v0 }
  0x2e   :  { %682 = vmatpush2.bf16.msra.mxu0 %v2046_v14  ;;  %2029 = vmatpush2.bf16.msra.mxu1 %v2046_v14  ;;  %v2143_v14 = vld [vmem:[%s2606_s0 + $0x1f4] ss:$8 sps:$4 sm:$0xff]  }
  0x2f   :  { %683 = vmatprep.subr.bf16.mxu0 %v2147_v0  ;;  %2014 = vmatprep.subr.bf16.mxu1 %v2147_v0 }
  0x32   :  { %684 = vmatpush2.bf16.msra.mxu0 %v2047_v15  ;;  %2030 = vmatpush2.bf16.msra.mxu1 %v2047_v15  ;;  %v2145_v15 = vld [vmem:[%s2606_s0 + $0xf0] ss:$8 sps:$4 sm:$0xff]  }
  0x33   :  { %685 = vmatprep.subr.bf16.mxu0 %v2147_v0  ;;  %2015 = vmatprep.subr.bf16.mxu1 %v2147_v0 }
  0x36   :  { %686 = vmatpush2.bf16.msra.mxu0 %v2048_v16  ;;  %2031 = vmatpush2.bf16.msra.mxu1 %v2048_v16  ;;  %v2146_v16 = vld [vmem:[%s2606_s0 + $0x1f0] ss:$8 sps:$4 sm:$0xff]  }
  0x37   :  { %687 = vmatprep.subr.bf16.mxu0 %v2147_v0  ;;  %2016 = vmatprep.subr.bf16.mxu1 %v2147_v0 }
  0x3a   :  { %688 = vmatpush2.bf16.msra.mxu0 %v2049_v17  ;;  %2032 = vmatpush2.bf16.msra.mxu1 %v2049_v17 }
  0x3b   :  { %689 = vmatprep.subr.bf16.mxu0 %v2147_v0  ;;  %2017 = vmatprep.subr.bf16.mxu1 %v2147_v0  ;;  %v2122_v0 = vld [vmem:[%s2606_s0 + $0x1b0] ss:$8 sps:$4 sm:$0xff]  }
  0x3e   :  { %690 = vmatpush2.bf16.msra.mxu0 %v2050_v18  ;;  %2033 = vmatpush2.bf16.msra.mxu1 %v2050_v18  ;;  %v2443_v18 = vld [vmem:[%s2607_s2] ss:$0 sm:$0xff] }
  0x41   :  { %692 = vmatmul.mubr.bf16.vlgmr.msra.gmra.mxu0 %v2051_v19  ;;  %820 = vmatmul.mubr.bf16.vlgmr.msra.gmra.mxu1 %v2054_v20 }
  0x42   :  { %699 = vmatprep.mubr.bf16.mxu0 %v2057_v21  ;;  %827 = vmatprep.mubr.bf16.mxu1 %v2059_v22 }
  0x49   :  { %700 = vmatmul.mubr.bf16.gmra.mxu0 %v2061_v23  ;;  %828 = vmatmul.mubr.bf16.gmra.mxu1 %v2062_v24 }
  0x4a   :  { %707 = vmatprep.mubr.bf16.mxu0 %v2063_v25  ;;  %835 = vmatprep.mubr.bf16.mxu1 %v2065_v26 }
  0x51   :  { %708 = vmatmul.mubr.bf16.gmra.mxu0 %v2067_v27  ;;  %836 = vmatmul.mubr.bf16.gmra.mxu1 %v2068_v28 }
  0x52   :  { %715 = vmatprep.mubr.bf16.mxu0 %v2069_v29  ;;  %843 = vmatprep.mubr.bf16.mxu1 %v2071_v30 }
  0x59   :  { %716 = vmatmul.mubr.bf16.gmra.mxu0 %v2073_v31  ;;  %844 = vmatmul.mubr.bf16.gmra.mxu1 %v2074_v32 }
  0x5a   :  { %723 = vmatprep.mubr.bf16.mxu0 %v2075_v33  ;;  %851 = vmatprep.mubr.bf16.mxu1 %v2077_v34 }
  0x61   :  { %724 = vmatmul.mubr.bf16.gmra.mxu0 %v2079_v35  ;;  %852 = vmatmul.mubr.bf16.gmra.mxu1 %v2080_v36 }
  0x62   :  { %731 = vmatprep.mubr.bf16.mxu0 %v2081_v37  ;;  %859 = vmatprep.mubr.bf16.mxu1 %v2083_v38 }
  0x69   :  { %732 = vmatmul.mubr.bf16.gmra.mxu0 %v2085_v39  ;;  %860 = vmatmul.mubr.bf16.gmra.mxu1 %v2086_v40 }
  0x6a   :  { %739 = vmatprep.mubr.bf16.mxu0 %v2087_v41  ;;  %867 = vmatprep.mubr.bf16.mxu1 %v2089_v42 }
  0x71   :  { %740 = vmatmul.mubr.bf16.gmra.mxu0 %v2091_v43  ;;  %868 = vmatmul.mubr.bf16.gmra.mxu1 %v2092_v44 }
  0x72   :  { %747 = vmatprep.mubr.bf16.mxu0 %v2093_v45  ;;  %875 = vmatprep.mubr.bf16.mxu1 %v2095_v46 }
  0x79   :  { %748 = vmatmul.mubr.bf16.gmra.mxu0 %v2097_v47  ;;  %876 = vmatmul.mubr.bf16.gmra.mxu1 %v2098_v48 }
  0x7a   :  { %755 = vmatprep.mubr.bf16.mxu0 %v2099_v49  ;;  %883 = vmatprep.mubr.bf16.mxu1 %v2101_v50 }
  0x81   :  { %756 = vmatmul.mubr.bf16.gmra.mxu0 %v2103_v51  ;;  %884 = vmatmul.mubr.bf16.gmra.mxu1 %v2104_v52 }
  0x82   :  { %763 = vmatprep.mubr.bf16.mxu0 %v2105_v53  ;;  %891 = vmatprep.mubr.bf16.mxu1 %v2107_v54 }
  0x89   :  { %764 = vmatmul.mubr.bf16.gmra.mxu0 %v2109_v55  ;;  %892 = vmatmul.mubr.bf16.gmra.mxu1 %v2110_v56 }
  0x8a   :  { %771 = vmatprep.mubr.bf16.mxu0 %v2111_v57  ;;  %899 = vmatprep.mubr.bf16.mxu1 %v2113_v58 }
  0x91   :  { %772 = vmatmul.mubr.bf16.gmra.mxu0 %v2115_v59  ;;  %900 = vmatmul.mubr.bf16.gmra.mxu1 %v2116_v60 }
  0x92   :  { %779 = vmatprep.mubr.bf16.mxu0 %v2117_v61  ;;  %907 = vmatprep.mubr.bf16.mxu1 %v2119_v62 }
  0x99   :  { %780 = vmatmul.mubr.bf16.gmra.mxu0 %v2121_v63  ;;  %908 = vmatmul.mubr.bf16.gmra.mxu1 %v2122_v0 }
  0x9a   :  { %787 = vmatprep.mubr.bf16.mxu0 %v2123_v1  ;;  %915 = vmatprep.mubr.bf16.mxu1 %v2125_v2 }
  0xa1   :  { %788 = vmatmul.mubr.bf16.gmra.mxu0 %v2127_v3  ;;  %916 = vmatmul.mubr.bf16.gmra.mxu1 %v2128_v4 }
  0xa2   :  { %795 = vmatprep.mubr.bf16.mxu0 %v2129_v5  ;;  %923 = vmatprep.mubr.bf16.mxu1 %v2131_v6 }
  0xa9   :  { %796 = vmatmul.mubr.bf16.gmra.mxu0 %v2133_v7  ;;  %924 = vmatmul.mubr.bf16.gmra.mxu1 %v2134_v8 }
  0xaa   :  { %803 = vmatprep.mubr.bf16.mxu0 %v2135_v9  ;;  %931 = vmatprep.mubr.bf16.mxu1 %v2137_v10 }
  0xb1   :  { %804 = vmatmul.mubr.bf16.gmra.mxu0 %v2139_v11  ;;  %932 = vmatmul.mubr.bf16.gmra.mxu1 %v2140_v12 }
  0xb2   :  { %811 = vmatprep.mubr.bf16.mxu0 %v2141_v13  ;;  %939 = vmatprep.mubr.bf16.mxu1 %v2143_v14 }
  0xb9   :  { %812 = vmatmul.mubr.bf16.gmra.mxu0 %v2145_v15  ;;  %940 = vmatmul.mubr.bf16.gmra.mxu1 %v2146_v16 }
 0x101   :  { %v693_v17 = vpop.f32.mrf.mxu0  ;;  %v821_v19 = vpop.f32.mrf.mxu1 }
 0x102   :  { %v1150_v22 = vadd.f32 %v2443_v18, %v693_v17  ;;  %v1182_v23 = vadd.f32 %v2443_v18, %v821_v19 }
 0x103   :  { %v695_v20 = vpop.f32.mrf.mxu0  ;;  %v823_v21 = vpop.f32.mrf.mxu1 }
 0x104   :  { %v1214_v30 = vmax.f32 %v1150_v22, 0.0  ;;  %v1246_v31 = vmax.f32 %v1182_v23, 0.0 }
 0x105   :  { %v696_v24 = vpop.f32.mrf.mxu0  ;;  %v824_v25 = vpop.f32.mrf.mxu1 }
 0x106   :  { %v1151_v26 = vadd.f32 %v2443_v18, %v696_v24  ;;  %v1183_v27 = vadd.f32 %v2443_v18, %v824_v25 }
 0x107   :  { %v698_v28 = vpop.f32.mrf.mxu0  ;;  %v826_v29 = vpop.f32.mrf.mxu1 }
 0x108   :  { %v1215_v32 = vmax.f32 %v1151_v26, 0.0  ;;  %v1247_v33 = vmax.f32 %v1183_v27, 0.0 }
 0x109   :  { %v701_v34 = vpop.f32.mrf.mxu0  ;;  %v829_v35 = vpop.f32.mrf.mxu1 }
 0x10a   :  { %v1814_v36 = vpack.c.bf16 %v1215_v32, %v1214_v30  ;;  %v1894_v37 = vpack.c.bf16 %v1247_v33, %v1246_v31  ;;  %v1152_v40 = vadd.f32 %v2443_v18, %v701_v34  ;;  %v1184_v41 = vadd.f32 %v2443_v18, %v829_v35 }
 0x10b   :  { %v703_v38 = vpop.f32.mrf.mxu0  ;;  %v831_v39 = vpop.f32.mrf.mxu1 }
 0x10c   :  { %1815 = vst [vmem:[%s2608_s3] sm:$0xff] %v1814_v36   ;;  %1986 = vst [vmem:[%s2608_s3 + $0x80] sm:$0xff] %v1894_v37   ;;  %v1216_v48 = vmax.f32 %v1152_v40, 0.0  ;;  %v1248_v49 = vmax.f32 %v1184_v41, 0.0 }
 0x10d   :  { %v704_v42 = vpop.f32.mrf.mxu0  ;;  %v832_v43 = vpop.f32.mrf.mxu1 }
 0x10e   :  { %v1153_v44 = vadd.f32 %v2443_v18, %v704_v42  ;;  %v1185_v45 = vadd.f32 %v2443_v18, %v832_v43 }
 0x10f   :  { %v706_v46 = vpop.f32.mrf.mxu0  ;;  %v834_v47 = vpop.f32.mrf.mxu1 }
 0x110   :  { %v1217_v50 = vmax.f32 %v1153_v44, 0.0  ;;  %v1249_v51 = vmax.f32 %v1185_v45, 0.0 }
 0x111   :  { %v709_v52 = vpop.f32.mrf.mxu0  ;;  %v837_v53 = vpop.f32.mrf.mxu1 }
 0x112   :  { %v1819_v54 = vpack.c.bf16 %v1217_v50, %v1216_v48  ;;  %v1899_v55 = vpack.c.bf16 %v1249_v51, %v1248_v49  ;;  %v1154_v58 = vadd.f32 %v2443_v18, %v709_v52  ;;  %v1186_v59 = vadd.f32 %v2443_v18, %v837_v53 }
 0x113   :  { %v711_v56 = vpop.f32.mrf.mxu0  ;;  %v839_v57 = vpop.f32.mrf.mxu1 }
 0x114   :  { %1971 = vst [vmem:[%s2608_s3 + $0x8] sm:$0xff] %v1819_v54   ;;  %1987 = vst [vmem:[%s2608_s3 + $0x88] sm:$0xff] %v1899_v55   ;;  %v1218_v2 = vmax.f32 %v1154_v58, 0.0  ;;  %v1250_v3 = vmax.f32 %v1186_v59, 0.0 }
 0x115   :  { %v712_v60 = vpop.f32.mrf.mxu0  ;;  %v840_v61 = vpop.f32.mrf.mxu1 }
 0x116   :  { %v1155_v62 = vadd.f32 %v2443_v18, %v712_v60  ;;  %v1187_v63 = vadd.f32 %v2443_v18, %v840_v61 }
 0x117   :  { %v714_v0 = vpop.f32.mrf.mxu0  ;;  %v842_v1 = vpop.f32.mrf.mxu1 }
 0x118   :  { %v1219_v4 = vmax.f32 %v1155_v62, 0.0  ;;  %v1251_v5 = vmax.f32 %v1187_v63, 0.0 }
 0x119   :  { %v717_v6 = vpop.f32.mrf.mxu0  ;;  %v845_v7 = vpop.f32.mrf.mxu1 }
 0x11a   :  { %v1824_v8 = vpack.c.bf16 %v1219_v4, %v1218_v2  ;;  %v1904_v9 = vpack.c.bf16 %v1251_v5, %v1250_v3  ;;  %v1156_v12 = vadd.f32 %v2443_v18, %v717_v6  ;;  %v1188_v13 = vadd.f32 %v2443_v18, %v845_v7 }
 0x11b   :  { %v719_v10 = vpop.f32.mrf.mxu0  ;;  %v847_v11 = vpop.f32.mrf.mxu1 }
 0x11c   :  { %1972 = vst [vmem:[%s2608_s3 + $0x10] sm:$0xff] %v1824_v8   ;;  %1988 = vst [vmem:[%s2608_s3 + $0x90] sm:$0xff] %v1904_v9   ;;  %v1220_v21 = vmax.f32 %v1156_v12, 0.0  ;;  %v1252_v22 = vmax.f32 %v1188_v13, 0.0 }
 0x11d   :  { %v720_v14 = vpop.f32.mrf.mxu0  ;;  %v848_v15 = vpop.f32.mrf.mxu1 }
 0x11e   :  { %v1157_v16 = vadd.f32 %v2443_v18, %v720_v14  ;;  %v1189_v17 = vadd.f32 %v2443_v18, %v848_v15 }
 0x11f   :  { %v722_v19 = vpop.f32.mrf.mxu0  ;;  %v850_v20 = vpop.f32.mrf.mxu1 }
 0x120   :  { %v1221_v23 = vmax.f32 %v1157_v16, 0.0  ;;  %v1253_v24 = vmax.f32 %v1189_v17, 0.0 }
 0x121   :  { %v725_v25 = vpop.f32.mrf.mxu0  ;;  %v853_v26 = vpop.f32.mrf.mxu1 }
 0x122   :  { %v1829_v27 = vpack.c.bf16 %v1221_v23, %v1220_v21  ;;  %v1909_v28 = vpack.c.bf16 %v1253_v24, %v1252_v22  ;;  %v1158_v31 = vadd.f32 %v2443_v18, %v725_v25  ;;  %v1190_v32 = vadd.f32 %v2443_v18, %v853_v26 }
 0x123   :  { %v727_v29 = vpop.f32.mrf.mxu0  ;;  %v855_v30 = vpop.f32.mrf.mxu1 }
 0x124   :  { %1973 = vst [vmem:[%s2608_s3 + $0x18] sm:$0xff] %v1829_v27   ;;  %1989 = vst [vmem:[%s2608_s3 + $0x98] sm:$0xff] %v1909_v28   ;;  %v1222_v39 = vmax.f32 %v1158_v31, 0.0  ;;  %v1254_v40 = vmax.f32 %v1190_v32, 0.0 }
 0x125   :  { %v728_v33 = vpop.f32.mrf.mxu0  ;;  %v856_v34 = vpop.f32.mrf.mxu1 }
 0x126   :  { %v1159_v35 = vadd.f32 %v2443_v18, %v728_v33  ;;  %v1191_v36 = vadd.f32 %v2443_v18, %v856_v34 }
 0x127   :  { %v730_v37 = vpop.f32.mrf.mxu0  ;;  %v858_v38 = vpop.f32.mrf.mxu1 }
 0x128   :  { %v1223_v41 = vmax.f32 %v1159_v35, 0.0  ;;  %v1255_v42 = vmax.f32 %v1191_v36, 0.0 }
 0x129   :  { %v733_v43 = vpop.f32.mrf.mxu0  ;;  %v861_v44 = vpop.f32.mrf.mxu1 }
 0x12a   :  { %v1834_v45 = vpack.c.bf16 %v1223_v41, %v1222_v39  ;;  %v1914_v46 = vpack.c.bf16 %v1255_v42, %v1254_v40  ;;  %v1160_v49 = vadd.f32 %v2443_v18, %v733_v43  ;;  %v1192_v50 = vadd.f32 %v2443_v18, %v861_v44 }
 0x12b   :  { %v735_v47 = vpop.f32.mrf.mxu0  ;;  %v863_v48 = vpop.f32.mrf.mxu1 }
 0x12c   :  { %1974 = vst [vmem:[%s2608_s3 + $0x20] sm:$0xff] %v1834_v45   ;;  %1990 = vst [vmem:[%s2608_s3 + $0xa0] sm:$0xff] %v1914_v46   ;;  %v1224_v57 = vmax.f32 %v1160_v49, 0.0  ;;  %v1256_v58 = vmax.f32 %v1192_v50, 0.0 }
 0x12d   :  { %v736_v51 = vpop.f32.mrf.mxu0  ;;  %v864_v52 = vpop.f32.mrf.mxu1 }
 0x12e   :  { %v1161_v53 = vadd.f32 %v2443_v18, %v736_v51  ;;  %v1193_v54 = vadd.f32 %v2443_v18, %v864_v52 }
 0x12f   :  { %v738_v55 = vpop.f32.mrf.mxu0  ;;  %v866_v56 = vpop.f32.mrf.mxu1 }
 0x130   :  { %v1225_v59 = vmax.f32 %v1161_v53, 0.0  ;;  %v1257_v60 = vmax.f32 %v1193_v54, 0.0 }
 0x131   :  { %v741_v61 = vpop.f32.mrf.mxu0  ;;  %v869_v62 = vpop.f32.mrf.mxu1 }
 0x132   :  { %v1839_v63 = vpack.c.bf16 %v1225_v59, %v1224_v57  ;;  %v1919_v0 = vpack.c.bf16 %v1257_v60, %v1256_v58  ;;  %v1162_v3 = vadd.f32 %v2443_v18, %v741_v61  ;;  %v1194_v4 = vadd.f32 %v2443_v18, %v869_v62 }
 0x133   :  { %v743_v1 = vpop.f32.mrf.mxu0  ;;  %v871_v2 = vpop.f32.mrf.mxu1 }
 0x134   :  { %1975 = vst [vmem:[%s2608_s3 + $0x28] sm:$0xff] %v1839_v63   ;;  %1991 = vst [vmem:[%s2608_s3 + $0xa8] sm:$0xff] %v1919_v0   ;;  %v1226_v11 = vmax.f32 %v1162_v3, 0.0  ;;  %v1258_v12 = vmax.f32 %v1194_v4, 0.0 }
 0x135   :  { %v744_v5 = vpop.f32.mrf.mxu0  ;;  %v872_v6 = vpop.f32.mrf.mxu1 }
 0x136   :  { %v1163_v7 = vadd.f32 %v2443_v18, %v744_v5  ;;  %v1195_v8 = vadd.f32 %v2443_v18, %v872_v6 }
 0x137   :  { %v746_v9 = vpop.f32.mrf.mxu0  ;;  %v874_v10 = vpop.f32.mrf.mxu1 }
 0x138   :  { %v1227_v13 = vmax.f32 %v1163_v7, 0.0  ;;  %v1259_v14 = vmax.f32 %v1195_v8, 0.0 }
 0x139   :  { %v749_v15 = vpop.f32.mrf.mxu0  ;;  %v877_v16 = vpop.f32.mrf.mxu1 }
 0x13a   :  { %v1844_v17 = vpack.c.bf16 %v1227_v13, %v1226_v11  ;;  %v1924_v19 = vpack.c.bf16 %v1259_v14, %v1258_v12  ;;  %v1164_v22 = vadd.f32 %v2443_v18, %v749_v15  ;;  %v1196_v23 = vadd.f32 %v2443_v18, %v877_v16 }
 0x13b   :  { %v751_v20 = vpop.f32.mrf.mxu0  ;;  %v879_v21 = vpop.f32.mrf.mxu1 }
 0x13c   :  { %1976 = vst [vmem:[%s2608_s3 + $0x30] sm:$0xff] %v1844_v17   ;;  %1992 = vst [vmem:[%s2608_s3 + $0xb0] sm:$0xff] %v1924_v19   ;;  %v1228_v30 = vmax.f32 %v1164_v22, 0.0  ;;  %v1260_v31 = vmax.f32 %v1196_v23, 0.0 }
 0x13d   :  { %v752_v24 = vpop.f32.mrf.mxu0  ;;  %v880_v25 = vpop.f32.mrf.mxu1 }
 0x13e   :  { %v1165_v26 = vadd.f32 %v2443_v18, %v752_v24  ;;  %v1197_v27 = vadd.f32 %v2443_v18, %v880_v25 }
 0x13f   :  { %v754_v28 = vpop.f32.mrf.mxu0  ;;  %v882_v29 = vpop.f32.mrf.mxu1 }
 0x140   :  { %v1229_v32 = vmax.f32 %v1165_v26, 0.0  ;;  %v1261_v33 = vmax.f32 %v1197_v27, 0.0 }
 0x141   :  { %v757_v34 = vpop.f32.mrf.mxu0  ;;  %v885_v35 = vpop.f32.mrf.mxu1 }
 0x142   :  { %v1849_v36 = vpack.c.bf16 %v1229_v32, %v1228_v30  ;;  %v1929_v37 = vpack.c.bf16 %v1261_v33, %v1260_v31  ;;  %v1166_v40 = vadd.f32 %v2443_v18, %v757_v34  ;;  %v1198_v41 = vadd.f32 %v2443_v18, %v885_v35 }
 0x143   :  { %v759_v38 = vpop.f32.mrf.mxu0  ;;  %v887_v39 = vpop.f32.mrf.mxu1 }
 0x144   :  { %1977 = vst [vmem:[%s2608_s3 + $0x38] sm:$0xff] %v1849_v36   ;;  %1993 = vst [vmem:[%s2608_s3 + $0xb8] sm:$0xff] %v1929_v37   ;;  %v1230_v48 = vmax.f32 %v1166_v40, 0.0  ;;  %v1262_v49 = vmax.f32 %v1198_v41, 0.0 }
 0x145   :  { %v760_v42 = vpop.f32.mrf.mxu0  ;;  %v888_v43 = vpop.f32.mrf.mxu1 }
 0x146   :  { %v1167_v44 = vadd.f32 %v2443_v18, %v760_v42  ;;  %v1199_v45 = vadd.f32 %v2443_v18, %v888_v43 }
 0x147   :  { %v762_v46 = vpop.f32.mrf.mxu0  ;;  %v890_v47 = vpop.f32.mrf.mxu1 }
 0x148   :  { %v1231_v50 = vmax.f32 %v1167_v44, 0.0  ;;  %v1263_v51 = vmax.f32 %v1199_v45, 0.0 }
 0x149   :  { %v765_v52 = vpop.f32.mrf.mxu0  ;;  %v893_v53 = vpop.f32.mrf.mxu1 }
 0x14a   :  { %v1854_v54 = vpack.c.bf16 %v1231_v50, %v1230_v48  ;;  %v1934_v55 = vpack.c.bf16 %v1263_v51, %v1262_v49  ;;  %v1168_v58 = vadd.f32 %v2443_v18, %v765_v52  ;;  %v1200_v59 = vadd.f32 %v2443_v18, %v893_v53 }
 0x14b   :  { %v767_v56 = vpop.f32.mrf.mxu0  ;;  %v895_v57 = vpop.f32.mrf.mxu1 }
 0x14c   :  { %1978 = vst [vmem:[%s2608_s3 + $0x40] sm:$0xff] %v1854_v54   ;;  %1994 = vst [vmem:[%s2608_s3 + $0xc0] sm:$0xff] %v1934_v55   ;;  %v1232_v2 = vmax.f32 %v1168_v58, 0.0  ;;  %v1264_v3 = vmax.f32 %v1200_v59, 0.0 }
 0x14d   :  { %v768_v60 = vpop.f32.mrf.mxu0  ;;  %v896_v61 = vpop.f32.mrf.mxu1 }
 0x14e   :  { %v1169_v62 = vadd.f32 %v2443_v18, %v768_v60  ;;  %v1201_v63 = vadd.f32 %v2443_v18, %v896_v61 }
 0x14f   :  { %v770_v0 = vpop.f32.mrf.mxu0  ;;  %v898_v1 = vpop.f32.mrf.mxu1 }
 0x150   :  { %v1233_v4 = vmax.f32 %v1169_v62, 0.0  ;;  %v1265_v5 = vmax.f32 %v1201_v63, 0.0 }
 0x151   :  { %v773_v6 = vpop.f32.mrf.mxu0  ;;  %v901_v7 = vpop.f32.mrf.mxu1 }
 0x152   :  { %v1859_v8 = vpack.c.bf16 %v1233_v4, %v1232_v2  ;;  %v1939_v9 = vpack.c.bf16 %v1265_v5, %v1264_v3  ;;  %v1170_v12 = vadd.f32 %v2443_v18, %v773_v6  ;;  %v1202_v13 = vadd.f32 %v2443_v18, %v901_v7 }
 0x153   :  { %v775_v10 = vpop.f32.mrf.mxu0  ;;  %v903_v11 = vpop.f32.mrf.mxu1 }
 0x154   :  { %1979 = vst [vmem:[%s2608_s3 + $0x48] sm:$0xff] %v1859_v8   ;;  %1995 = vst [vmem:[%s2608_s3 + $0xc8] sm:$0xff] %v1939_v9   ;;  %v1234_v21 = vmax.f32 %v1170_v12, 0.0  ;;  %v1266_v22 = vmax.f32 %v1202_v13, 0.0 }
 0x155   :  { %v776_v14 = vpop.f32.mrf.mxu0  ;;  %v904_v15 = vpop.f32.mrf.mxu1 }
 0x156   :  { %v1171_v16 = vadd.f32 %v2443_v18, %v776_v14  ;;  %v1203_v17 = vadd.f32 %v2443_v18, %v904_v15 }
 0x157   :  { %v778_v19 = vpop.f32.mrf.mxu0  ;;  %v906_v20 = vpop.f32.mrf.mxu1 }
 0x158   :  { %v1235_v23 = vmax.f32 %v1171_v16, 0.0  ;;  %v1267_v24 = vmax.f32 %v1203_v17, 0.0 }
 0x159   :  { %v781_v25 = vpop.f32.mrf.mxu0  ;;  %v909_v26 = vpop.f32.mrf.mxu1 }
 0x15a   :  { %v1864_v27 = vpack.c.bf16 %v1235_v23, %v1234_v21  ;;  %v1944_v28 = vpack.c.bf16 %v1267_v24, %v1266_v22  ;;  %v1172_v31 = vadd.f32 %v2443_v18, %v781_v25  ;;  %v1204_v32 = vadd.f32 %v2443_v18, %v909_v26 }
 0x15b   :  { %v783_v29 = vpop.f32.mrf.mxu0  ;;  %v911_v30 = vpop.f32.mrf.mxu1 }
 0x15c   :  { %1980 = vst [vmem:[%s2608_s3 + $0x50] sm:$0xff] %v1864_v27   ;;  %1996 = vst [vmem:[%s2608_s3 + $0xd0] sm:$0xff] %v1944_v28   ;;  %v1236_v39 = vmax.f32 %v1172_v31, 0.0  ;;  %v1268_v40 = vmax.f32 %v1204_v32, 0.0 }
 0x15d   :  { %v784_v33 = vpop.f32.mrf.mxu0  ;;  %v912_v34 = vpop.f32.mrf.mxu1 }
 0x15e   :  { %v1173_v35 = vadd.f32 %v2443_v18, %v784_v33  ;;  %v1205_v36 = vadd.f32 %v2443_v18, %v912_v34 }
 0x15f   :  { %v786_v37 = vpop.f32.mrf.mxu0  ;;  %v914_v38 = vpop.f32.mrf.mxu1 }
 0x160   :  { %v1237_v41 = vmax.f32 %v1173_v35, 0.0  ;;  %v1269_v42 = vmax.f32 %v1205_v36, 0.0 }
 0x161   :  { %v789_v43 = vpop.f32.mrf.mxu0  ;;  %v917_v44 = vpop.f32.mrf.mxu1 }
 0x162   :  { %v1869_v45 = vpack.c.bf16 %v1237_v41, %v1236_v39  ;;  %v1949_v46 = vpack.c.bf16 %v1269_v42, %v1268_v40  ;;  %v1174_v49 = vadd.f32 %v2443_v18, %v789_v43  ;;  %v1206_v50 = vadd.f32 %v2443_v18, %v917_v44 }
 0x163   :  { %v791_v47 = vpop.f32.mrf.mxu0  ;;  %v919_v48 = vpop.f32.mrf.mxu1 }
 0x164   :  { %1981 = vst [vmem:[%s2608_s3 + $0x58] sm:$0xff] %v1869_v45   ;;  %1997 = vst [vmem:[%s2608_s3 + $0xd8] sm:$0xff] %v1949_v46   ;;  %v1238_v57 = vmax.f32 %v1174_v49, 0.0  ;;  %v1270_v58 = vmax.f32 %v1206_v50, 0.0 }
 0x165   :  { %v792_v51 = vpop.f32.mrf.mxu0  ;;  %v920_v52 = vpop.f32.mrf.mxu1 }
 0x166   :  { %v1175_v53 = vadd.f32 %v2443_v18, %v792_v51  ;;  %v1207_v54 = vadd.f32 %v2443_v18, %v920_v52 }
 0x167   :  { %v794_v55 = vpop.f32.mrf.mxu0  ;;  %v922_v56 = vpop.f32.mrf.mxu1 }
 0x168   :  { %v1239_v59 = vmax.f32 %v1175_v53, 0.0  ;;  %v1271_v60 = vmax.f32 %v1207_v54, 0.0 }
 0x169   :  { %v797_v61 = vpop.f32.mrf.mxu0  ;;  %v925_v62 = vpop.f32.mrf.mxu1 }
 0x16a   :  { %v1874_v63 = vpack.c.bf16 %v1239_v59, %v1238_v57  ;;  %v1954_v0 = vpack.c.bf16 %v1271_v60, %v1270_v58  ;;  %v1176_v3 = vadd.f32 %v2443_v18, %v797_v61  ;;  %v1208_v4 = vadd.f32 %v2443_v18, %v925_v62 }
 0x16b   :  { %v799_v1 = vpop.f32.mrf.mxu0  ;;  %v927_v2 = vpop.f32.mrf.mxu1 }
 0x16c   :  { %1982 = vst [vmem:[%s2608_s3 + $0x60] sm:$0xff] %v1874_v63   ;;  %1998 = vst [vmem:[%s2608_s3 + $0xe0] sm:$0xff] %v1954_v0   ;;  %v1240_v11 = vmax.f32 %v1176_v3, 0.0  ;;  %v1272_v12 = vmax.f32 %v1208_v4, 0.0 }
 0x16d   :  { %v800_v5 = vpop.f32.mrf.mxu0  ;;  %v928_v6 = vpop.f32.mrf.mxu1 }
 0x16e   :  { %v1177_v7 = vadd.f32 %v2443_v18, %v800_v5  ;;  %v1209_v8 = vadd.f32 %v2443_v18, %v928_v6 }
 0x16f   :  { %v802_v9 = vpop.f32.mrf.mxu0  ;;  %v930_v10 = vpop.f32.mrf.mxu1 }
 0x170   :  { %v1241_v13 = vmax.f32 %v1177_v7, 0.0  ;;  %v1273_v14 = vmax.f32 %v1209_v8, 0.0 }
 0x171   :  { %v805_v15 = vpop.f32.mrf.mxu0  ;;  %v933_v16 = vpop.f32.mrf.mxu1 }
 0x172   :  { %v1879_v17 = vpack.c.bf16 %v1241_v13, %v1240_v11  ;;  %v1959_v19 = vpack.c.bf16 %v1273_v14, %v1272_v12  ;;  %v1178_v22 = vadd.f32 %v2443_v18, %v805_v15  ;;  %v1210_v23 = vadd.f32 %v2443_v18, %v933_v16 }
 0x173   :  { %v807_v20 = vpop.f32.mrf.mxu0  ;;  %v935_v21 = vpop.f32.mrf.mxu1 }
 0x174   :  { %1983 = vst [vmem:[%s2608_s3 + $0x68] sm:$0xff] %v1879_v17   ;;  %1999 = vst [vmem:[%s2608_s3 + $0xe8] sm:$0xff] %v1959_v19   ;;  %v1242_v30 = vmax.f32 %v1178_v22, 0.0  ;;  %v1274_v31 = vmax.f32 %v1210_v23, 0.0 }
 0x175   :  { %v808_v24 = vpop.f32.mrf.mxu0  ;;  %v936_v25 = vpop.f32.mrf.mxu1 }
 0x176   :  { %v1179_v26 = vadd.f32 %v2443_v18, %v808_v24  ;;  %v1211_v27 = vadd.f32 %v2443_v18, %v936_v25 }
 0x177   :  { %v810_v28 = vpop.f32.mrf.mxu0  ;;  %v938_v29 = vpop.f32.mrf.mxu1 }
 0x178   :  { %v1243_v32 = vmax.f32 %v1179_v26, 0.0  ;;  %v1275_v33 = vmax.f32 %v1211_v27, 0.0 }
 0x179   :  { %v813_v34 = vpop.f32.mrf.mxu0  ;;  %v941_v35 = vpop.f32.mrf.mxu1 }
 0x17a   :  { %v1884_v36 = vpack.c.bf16 %v1243_v32, %v1242_v30  ;;  %v1964_v37 = vpack.c.bf16 %v1275_v33, %v1274_v31  ;;  %v1180_v40 = vadd.f32 %v2443_v18, %v813_v34  ;;  %v1212_v41 = vadd.f32 %v2443_v18, %v941_v35 }
 0x17b   :  { %v815_v38 = vpop.f32.mrf.mxu0  ;;  %v943_v39 = vpop.f32.mrf.mxu1 }
 0x17c   :  { %1984 = vst [vmem:[%s2608_s3 + $0x70] sm:$0xff] %v1884_v36   ;;  %2000 = vst [vmem:[%s2608_s3 + $0xf0] sm:$0xff] %v1964_v37   ;;  %v1244_v48 = vmax.f32 %v1180_v40, 0.0  ;;  %v1276_v49 = vmax.f32 %v1212_v41, 0.0 }
 0x17d   :  { %v816_v42 = vpop.f32.mrf.mxu0  ;;  %v944_v43 = vpop.f32.mrf.mxu1 }
 0x17e   :  { %v1181_v44 = vadd.f32 %v2443_v18, %v816_v42  ;;  %v1213_v45 = vadd.f32 %v2443_v18, %v944_v43 }
 0x17f   :  { %v818_v46 = vpop.f32.mrf.mxu0  ;;  %v946_v47 = vpop.f32.mrf.mxu1 }
 0x180   :  { %v1245_v50 = vmax.f32 %v1181_v44, 0.0  ;;  %v1277_v51 = vmax.f32 %v1213_v45, 0.0 }
 0x182   :  { %v1889_v52 = vpack.c.bf16 %v1245_v50, %v1244_v48  ;;  %v1969_v53 = vpack.c.bf16 %v1277_v51, %v1276_v49 }
 0x184   :  { %1985 = vst [vmem:[%s2608_s3 + $0x78] sm:$0xff] %v1889_v52   ;;  %2001 = vst [vmem:[%s2608_s3 + $0xf8] sm:$0xff] %v1969_v53  }

// kernel: resnet18_forward.23
= control target key start
LH: loop header
LB: loop body
LE: loop exit
PB: predicated region body
PF: predicated region fallthrough
CT: control target
= control target key end

     0   :  { %s1363_s15 = smov 0   ;;  %s1365_s16 = smov 0   ;;  %s1537_s0 = inlined_call_operand.vmem [shape: bf16[128,640], index: 0, kind: input, shape index: {}]   ;;  %s1538_s1 = inlined_call_operand.vmem [shape: bf16[640,128], index: 1, kind: input, shape index: {}]   ;;  %s1539_s2 = inlined_call_operand.vmem [shape: f32[1,128], index: 2, kind: input, shape index: {}]   ;;  %s1540_s3 = inlined_call_operand.vmem [shape: bf16[128,128], index: 3, kind: input, shape index: {}]   ;;  %s1541_s4 = inlined_call_operand.vmem [shape: bf16[128,128], index: 4, kind: output, shape index: {}]  }
   0x1   :  { %s1367_s17 = smov 0   ;;  %s1369_s18 = smov 0  }
   0x2   :  { %s1371_s19 = smov 0  }
   0x3 LB: > { %s26_s20 = sadd.s32 1, %s1331_s18  ;;  %p49_p1 = scmp.ne.s32.totalorder %s1323_s16, %s1319_s15  ;;  %s1335_s19 = sphi %s1371_s19, %s14_s19   ;;  %s1331_s18 = sphi %s1369_s18, %s1545_s18   ;;  %s1327_s17 = sphi %s1367_s17, %s1544_s17   ;;  %s1323_s16 = sphi %s1365_s16, %s1543_s16   ;;  %s1319_s15 = sphi %s1363_s15, %s1542_s15  }
   0x4   : > { %p27_p0 = scmp.ge.s32.totalorder %s26_s20, 5  ;;  %p50_p2 = scmp.eq.s32.totalorder %s1335_s19, 0 }
   0x5   : > { %s42_s22 = sadd.s32 1, %s1323_s16  ;;  %p1028_p5 = scmp.ge.s32.totalorder %s1335_s19, 5 }
   0x6   : > { %s1547_s20 = smov (%p27_p0, %s26_s20), 0  ;;  %p51_p3 = por %p50_p2, %p49_p1 }
   0x7   : > { %s38_s21 = ssub.s32 %s1331_s18, %s1547_s20  ;;  %203 = sbr.rel (%p1028_p5) target bundleno = 26 (0x1a), region = 24 }
   0x8   : > { %p40_p4 = scmp.eq.s32.totalorder %s38_s21, 0 }
   0xa   : > { %s1398_s23 = scalar_select %p40_p4, %s1323_s16, %s42_s22  }
   0xc   : > { %206 = sbr.rel (!%p51_p3) target bundleno = 26 (0x1a), region = 28  ;;  %s208_s24 = sand.u32 (%p51_p3), 1, %s1323_s16  }
   0xd   : > { %s1030_s25 = sshll.u32 (%p51_p3), %s1331_s18, 2  ;;  %s1029_s26 = sshll.u32 (%p51_p3), %s208_s24, 6 }
   0xe   : > { %s1406_s29 = scalar_lea.vmem (%p51_p3), %s1537_s0, %s1030_s25  ;;  %s210_s30 = scalar_lea.vmem (%p51_p3), [#allocation3], %s1029_s26 }
   0xf   : > { %v232_v0 = vld [vmem:[%s1406_s29] sm:$0xf] (%p51_p3)  ;;  %v234_v1 = vld [vmem:[%s1406_s29 + $0x14] sm:$0xf] (%p51_p3)  ;;  %v236_v2 = vld [vmem:[%s1406_s29 + $0x28] sm:$0xf] (%p51_p3) }
  0x10   : > { %233 = vst [vmem:[%s210_s30] sm:$0xf] (%p51_p3), %v232_v0  ;;  %235 = vst [vmem:[%s210_s30 + $0x4] sm:$0xf] (%p51_p3), %v234_v1  ;;  %v238_v3 = vld [vmem:[%s1406_s29 + $0x3c] sm:$0xf] (%p51_p3) }
  0x11   : > { %v240_v4 = vld [vmem:[%s1406_s29 + $0x50] sm:$0xf]  ;;  %237 = vst [vmem:[%s210_s30 + $0x8] sm:$0xf] %v236_v2  ;;  %239 = vst [vmem:[%s210_s30 + $0xc] sm:$0xf] %v238_v3 }
  0x12   : > { %241 = vst [vmem:[%s210_s30 + $0x10] sm:$0xf] %v240_v4  ;;  %v242_v5 = vld [vmem:[%s1406_s29 + $0x64] sm:$0xf]  ;;  %v244_v6 = vld [vmem:[%s1406_s29 + $0x78] sm:$0xf] }
  0x13   : > { %v246_v7 = vld [vmem:[%s1406_s29 + $0x8c] sm:$0xf]  ;;  %243 = vst [vmem:[%s210_s30 + $0x14] sm:$0xf] %v242_v5  ;;  %245 = vst [vmem:[%s210_s30 + $0x18] sm:$0xf] %v244_v6 }
  0x14   : > { %247 = vst [vmem:[%s210_s30 + $0x1c] sm:$0xf] %v246_v7  ;;  %v248_v8 = vld [vmem:[%s1406_s29 + $0xa0] sm:$0xf]  ;;  %v250_v9 = vld [vmem:[%s1406_s29 + $0xb4] sm:$0xf] }
  0x15   : > { %v252_v10 = vld [vmem:[%s1406_s29 + $0xc8] sm:$0xf]  ;;  %249 = vst [vmem:[%s210_s30 + $0x20] sm:$0xf] %v248_v8  ;;  %251 = vst [vmem:[%s210_s30 + $0x24] sm:$0xf] %v250_v9 }
  0x16   : > { %253 = vst [vmem:[%s210_s30 + $0x28] sm:$0xf] %v252_v10  ;;  %v254_v11 = vld [vmem:[%s1406_s29 + $0xdc] sm:$0xf]  ;;  %v256_v12 = vld [vmem:[%s1406_s29 + $0xf0] sm:$0xf] }
  0x17   : > { %v258_v13 = vld [vmem:[%s1406_s29 + $0x104] sm:$0xf]  ;;  %255 = vst [vmem:[%s210_s30 + $0x2c] sm:$0xf] %v254_v11  ;;  %257 = vst [vmem:[%s210_s30 + $0x30] sm:$0xf] %v256_v12 }
  0x18   : > { %259 = vst [vmem:[%s210_s30 + $0x34] sm:$0xf] %v258_v13  ;;  %v260_v14 = vld [vmem:[%s1406_s29 + $0x118] sm:$0xf]  ;;  %v262_v15 = vld [vmem:[%s1406_s29 + $0x12c] sm:$0xf] }
  0x19   : > { %261 = vst [vmem:[%s210_s30 + $0x38] sm:$0xf] %v260_v14  ;;  %263 = vst [vmem:[%s210_s30 + $0x3c] sm:$0xf] %v262_v15 }
  0x1a PF: > { %p1031_p6 = scmp.ge.s32.totalorder %s1335_s19, 1  ;;  %p330_p7 = scmp.lt.s32.totalorder %s1335_s19, 6 }
  0x1c   : > { %p331_p8 = pnand %p1031_p6, %p330_p7 }
  0x1d   : > { %s337_s5 = sand.u32 (!%p331_p8), 1, %s1319_s15   ;;  %s1033_s6 = sshll.u32 (!%p331_p8), %s1327_s17, 4 }
  0x1e   : > { %334 = sbr.rel (%p331_p8) target bundleno = 318 (0x13e), region = 73  ;;  %s1032_s7 = sshll.u32 (!%p331_p8), %s337_s5, 6 }
  0x1f   : > { %p386_p9 = scmp.lt.s32.totalorder (!%p331_p8), %s1033_s6, 79  ;;  %s1433_s12 = scalar_lea.vmem (!%p331_p8), [#allocation3], %s1032_s7 }
  0x20   : > { %p1035_p10 = scmp.ne.s32.totalorder (!%p331_p8), %s1327_s17, 0 }
  0x23   : > { %s1549_s6 = smov (!%p386_p9, %s1033_s6), 79  ;;  %419 = sbr.rel (%p1035_p10) target bundleno = 49 (0x31), region = 81 }
  0x24   : > { %s1034_s8 = sshll.u32 %s1549_s6, 2 }
  0x25   : > { %s1431_s11 = scalar_lea.vmem %s1538_s1, %s1034_s8 }
  0x28   : > { %v1337_v16 = vmov 0.0  }
  0x29   : > { %420 = vst [vmem:[#allocation2 + $0x30] sm:$0xff] %v1337_v16  ;;  %421 = vst [vmem:[#allocation2] sm:$0xff] %v1337_v16 }
  0x2a   : > { %422 = vst [vmem:[#allocation2 + $0x58] sm:$0xff] %v1337_v16  ;;  %423 = vst [vmem:[#allocation2 + $0x18] sm:$0xff] %v1337_v16 }
  0x2b   : > { %424 = vst [vmem:[#allocation2 + $0x50] sm:$0xff] %v1337_v16  ;;  %425 = vst [vmem:[#allocation2 + $0x68] sm:$0xff] %v1337_v16 }
  0x2c   : > { %426 = vst [vmem:[#allocation2 + $0x8] sm:$0xff] %v1337_v16  ;;  %427 = vst [vmem:[#allocation2 + $0x48] sm:$0xff] %v1337_v16 }
  0x2d   : > { %428 = vst [vmem:[#allocation2 + $0x40] sm:$0xff] %v1337_v16  ;;  %429 = vst [vmem:[#allocation2 + $0x20] sm:$0xff] %v1337_v16 }
  0x2e   : > { %430 = vst [vmem:[#allocation2 + $0x10] sm:$0xff] %v1337_v16  ;;  %431 = vst [vmem:[#allocation2 + $0x38] sm:$0xff] %v1337_v16 }
  0x2f   : > { %432 = vst [vmem:[#allocation2 + $0x60] sm:$0xff] %v1337_v16  ;;  %433 = vst [vmem:[#allocation2 + $0x70] sm:$0xff] %v1337_v16 }
  0x30   : > { %434 = vst [vmem:[#allocation2 + $0x78] sm:$0xff] %v1337_v16  ;;  %435 = vst [vmem:[#allocation2 + $0x28] sm:$0xff] %v1337_v16 }
  0x31 PF: > { %v1281_v17 = vld [vmem:[%s1431_s11 + $0x38] sm:$0xff]   ;;  %v1282_v18 = vld [vmem:[%s1431_s11 + $0x30] sm:$0xff]   ;;  %v1283_v19 = vld [vmem:[%s1431_s11 + $0x28] sm:$0xff]   ;;  %p1052_p11 = scmp.ne.s32.totalorder %s1327_s17, 4 }
  0x32   : > { %1192 = vmatprep.subr.bf16.mxu0 %v1281_v17  ;;  %1224 = vmatprep.subr.bf16.mxu1 %v1281_v17  ;;  %v1284_v20 = vld [vmem:[%s1431_s11 + $0x20] sm:$0xff]   ;;  %v1285_v23 = vld [vmem:[%s1431_s11 + $0x18] sm:$0xff]   ;;  %v1286_v24 = vld [vmem:[%s1431_s11 + $0x10] sm:$0xff]  }
  0x33   : > { %1193 = vmatpush3.bf16.msra.mxu0 %v1281_v17  ;;  %1232 = vmatpush3.bf16.msra.mxu1 %v1281_v17  ;;  %v1289_v21 = vld [vmem:[%s1433_s12] sm:$0xff]   ;;  %v1287_v25 = vld [vmem:[%s1431_s11 + $0x8] sm:$0xff]   ;;  %v1293_v29 = vld [vmem:[%s1433_s12 + $0x10] sm:$0xff]  }
  0x34   : > { %1194 = vmatprep.subr.bf16.mxu0 %v1282_v18  ;;  %1225 = vmatprep.subr.bf16.mxu1 %v1282_v18  ;;  %v1290_v22 = vld [vmem:[%s1433_s12 + $0x20] sm:$0xff]   ;;  %v1291_v27 = vld [vmem:[%s1433_s12 + $0x8] sm:$0xff]   ;;  %v1294_v30 = vld [vmem:[%s1433_s12 + $0x30] sm:$0xff]  }
  0x35   : > { %1208 = vmatprep.mubr.bf16.mxu0 %v1289_v21  ;;  %1216 = vmatprep.mubr.bf16.mxu1 %v1290_v22  ;;  %v1288_v26 = vld [vmem:[%s1431_s11] sm:$0xff]   ;;  %v1292_v28 = vld [vmem:[%s1433_s12 + $0x28] sm:$0xff]   ;;  %v1295_v31 = vld [vmem:[%s1433_s12 + $0x18] sm:$0xff]  }
  0x36   : > { %v1296_v32 = vld [vmem:[%s1433_s12 + $0x38] sm:$0xff]   ;;  %v446_v34 = vld [vmem:[#allocation2 + $0x10] sm:$0xff]  ;;  %v444_v38 = vld [vmem:[#allocation2 + $0x40] sm:$0xff] }
  0x37   : > { %1195 = vmatpush3.bf16.msra.mxu0 %v1282_v18  ;;  %1233 = vmatpush3.bf16.msra.mxu1 %v1282_v18  ;;  %v438_v33 = vld [vmem:[#allocation2 + $0x58] sm:$0xff]  ;;  %v436_v37 = vld [vmem:[#allocation2 + $0x30] sm:$0xff]  ;;  %v437_v49 = vld [vmem:[#allocation2] sm:$0xff] }
  0x38   : > { %1196 = vmatprep.subr.bf16.mxu0 %v1283_v19  ;;  %1226 = vmatprep.subr.bf16.mxu1 %v1283_v19  ;;  %v439_v43 = vld [vmem:[#allocation2 + $0x18] sm:$0xff]  ;;  %v445_v50 = vld [vmem:[#allocation2 + $0x20] sm:$0xff]  ;;  %v442_v55 = vld [vmem:[#allocation2 + $0x8] sm:$0xff] }
  0x39   : > { %v447_v44 = vld [vmem:[#allocation2 + $0x38] sm:$0xff]  ;;  %v440_v61 = vld [vmem:[#allocation2 + $0x50] sm:$0xff]  ;;  %v448_v62 = vld [vmem:[#allocation2 + $0x60] sm:$0xff] }
  0x3a   : > { %v450_v56 = vld [vmem:[#allocation2 + $0x78] sm:$0xff]  ;;  %v443_v3 = vld [vmem:[#allocation2 + $0x48] sm:$0xff]  ;;  %v449_v10 = vld [vmem:[#allocation2 + $0x70] sm:$0xff] }
  0x3b   : > { %1197 = vmatpush3.bf16.msra.mxu0 %v1283_v19  ;;  %1234 = vmatpush3.bf16.msra.mxu1 %v1283_v19  ;;  %v451_v4 = vld [vmem:[#allocation2 + $0x28] sm:$0xff] }
  0x3c   : > { %1198 = vmatprep.subr.bf16.mxu0 %v1284_v20  ;;  %1227 = vmatprep.subr.bf16.mxu1 %v1284_v20  ;;  %v441_v9 = vld [vmem:[#allocation2 + $0x68] sm:$0xff] }
  0x3f   : > { %1199 = vmatpush3.bf16.msra.mxu0 %v1284_v20  ;;  %1235 = vmatpush3.bf16.msra.mxu1 %v1284_v20 }
  0x40   : > { %1200 = vmatprep.subr.bf16.mxu0 %v1285_v23  ;;  %1228 = vmatprep.subr.bf16.mxu1 %v1285_v23 }
  0x43   : > { %1201 = vmatpush3.bf16.msra.mxu0 %v1285_v23  ;;  %1236 = vmatpush3.bf16.msra.mxu1 %v1285_v23 }
  0x44   : > { %1202 = vmatprep.subr.bf16.mxu0 %v1286_v24  ;;  %1229 = vmatprep.subr.bf16.mxu1 %v1286_v24 }
  0x47   : > { %1203 = vmatpush3.bf16.msra.mxu0 %v1286_v24  ;;  %1237 = vmatpush3.bf16.msra.mxu1 %v1286_v24 }
  0x48   : > { %1204 = vmatprep.subr.bf16.mxu0 %v1287_v25  ;;  %1230 = vmatprep.subr.bf16.mxu1 %v1287_v25 }
  0x4b   : > { %1205 = vmatpush3.bf16.msra.mxu0 %v1287_v25  ;;  %1238 = vmatpush3.bf16.msra.mxu1 %v1287_v25 }
  0x4c   : > { %1206 = vmatprep.subr.bf16.mxu0 %v1288_v26  ;;  %1231 = vmatprep.subr.bf16.mxu1 %v1288_v26 }
  0x4f   : > { %1207 = vmatpush3.bf16.msra.mxu0 %v1288_v26  ;;  %1239 = vmatpush3.bf16.msra.mxu1 %v1288_v26 }
  0x52   : > { %1209 = vmatmul.mubr.bf16.vlgmr.msra.gmra.mxu0 %v1291_v27  ;;  %1217 = vmatmul.mubr.bf16.vlgmr.msra.gmra.mxu1 %v1292_v28 }
  0x53   : > { %1212 = vmatprep.mubr.bf16.mxu0 %v1293_v29  ;;  %1220 = vmatprep.mubr.bf16.mxu1 %v1294_v30 }
  0x5a   : > { %1213 = vmatmul.mubr.bf16.gmra.mxu0 %v1295_v31  ;;  %1221 = vmatmul.mubr.bf16.gmra.mxu1 %v1296_v32 }
 0x112   : > { %v1210_v35 = vpop.f32.mrf.mxu0  ;;  %v1218_v36 = vpop.f32.mrf.mxu1 }
 0x113   : > { %v679_v39 = vadd.f32 %v1210_v35, %v438_v33  ;;  %v687_v40 = vadd.f32 %v1218_v36, %v446_v34 }
 0x114   : > { %v614_v41 = vpop.f32.mrf.mxu0  ;;  %v646_v42 = vpop.f32.mrf.mxu1 }
 0x115   : > { %695 = vst [vmem:[#allocation2 + $0x58] sm:$0xff] %v679_v39  ;;  %703 = vst [vmem:[#allocation2 + $0x10] sm:$0xff] %v687_v40  ;;  %v677_v45 = vadd.f32 %v614_v41, %v436_v37  ;;  %v685_v46 = vadd.f32 %v646_v42, %v444_v38 }
 0x116   : > { %v1211_v47 = vpop.f32.mrf.mxu0  ;;  %v1219_v48 = vpop.f32.mrf.mxu1 }
 0x117   : > { %693 = vst [vmem:[#allocation2 + $0x30] sm:$0xff] %v677_v45  ;;  %701 = vst [vmem:[#allocation2 + $0x40] sm:$0xff] %v685_v46  ;;  %v680_v51 = vadd.f32 %v1211_v47, %v439_v43  ;;  %v688_v52 = vadd.f32 %v1219_v48, %v447_v44 }
 0x118   : > { %v617_v53 = vpop.f32.mrf.mxu0  ;;  %v649_v54 = vpop.f32.mrf.mxu1 }
 0x119   : > { %696 = vst [vmem:[#allocation2 + $0x18] sm:$0xff] %v680_v51  ;;  %704 = vst [vmem:[#allocation2 + $0x38] sm:$0xff] %v688_v52  ;;  %v678_v57 = vadd.f32 %v617_v53, %v437_v49  ;;  %v686_v58 = vadd.f32 %v649_v54, %v445_v50 }
 0x11a   : > { %v1214_v59 = vpop.f32.mrf.mxu0  ;;  %v1222_v60 = vpop.f32.mrf.mxu1 }
 0x11b   : > { %694 = vst [vmem:[#allocation2] sm:$0xff] %v678_v57  ;;  %702 = vst [vmem:[#allocation2 + $0x20] sm:$0xff] %v686_v58  ;;  %v683_v63 = vadd.f32 %v1214_v59, %v442_v55  ;;  %v691_v0 = vadd.f32 %v1222_v60, %v450_v56 }
 0x11c   : > { %v630_v1 = vpop.f32.mrf.mxu0  ;;  %v662_v2 = vpop.f32.mrf.mxu1 }
 0x11d   : > { %699 = vst [vmem:[#allocation2 + $0x8] sm:$0xff] %v683_v63  ;;  %707 = vst [vmem:[#allocation2 + $0x78] sm:$0xff] %v691_v0  ;;  %v681_v5 = vadd.f32 %v630_v1, %v440_v61  ;;  %v689_v6 = vadd.f32 %v662_v2, %v448_v62 }
 0x11e   : > { %v1215_v7 = vpop.f32.mrf.mxu0  ;;  %v1223_v8 = vpop.f32.mrf.mxu1 }
 0x11f   : > { %697 = vst [vmem:[#allocation2 + $0x50] sm:$0xff] %v681_v5  ;;  %705 = vst [vmem:[#allocation2 + $0x60] sm:$0xff] %v689_v6  ;;  %v684_v11 = vadd.f32 %v1215_v7, %v443_v3  ;;  %v692_v12 = vadd.f32 %v1223_v8, %v451_v4  ;;  %712 = sbr.rel (%p1052_p11) target bundleno = 318 (0x13e), region = 85 }
 0x120   : > { %v633_v13 = vpop.f32.mrf.mxu0  ;;  %v665_v14 = vpop.f32.mrf.mxu1 }
 0x121   : > { %700 = vst [vmem:[#allocation2 + $0x48] sm:$0xff] %v684_v11  ;;  %708 = vst [vmem:[#allocation2 + $0x28] sm:$0xff] %v692_v12  ;;  %v682_v15 = vadd.f32 %v633_v13, %v441_v9  ;;  %v690_v16 = vadd.f32 %v665_v14, %v449_v10 }
 0x123   : > { %698 = vst [vmem:[#allocation2 + $0x68] sm:$0xff] %v682_v15  ;;  %706 = vst [vmem:[#allocation2 + $0x70] sm:$0xff] %v690_v16 }
 0x124   : > { %v713_v17 = vld [vmem:[#allocation2 + $0x30] sm:$0xff]  ;;  %v714_v18 = vld [vmem:[#allocation2] sm:$0xff]  ;;  %v715_v23 = vld [vmem:[#allocation2 + $0x58] sm:$0xff] }
 0x125   : > { %v1456_v19 = vld [vmem:[%s1539_s2] ss:$0 sm:$0xff]  ;;  %v716_v24 = vld [vmem:[#allocation2 + $0x18] sm:$0xff]  ;;  %v1162_v29 = vld [vmem:[%s1540_s3 + $0x8] sm:$0xff]  }
 0x126   : > { %v736_v20 = vadd.f32 %v1456_v19, %v713_v17  ;;  %v737_v21 = vadd.f32 %v1456_v19, %v714_v18  ;;  %v1091_v22 = vld [vmem:[%s1540_s3] sm:$0xff]   ;;  %v738_v27 = vadd.f32 %v1456_v19, %v715_v23  ;;  %v739_v28 = vadd.f32 %v1456_v19, %v716_v24  ;;  %v717_v30 = vld [vmem:[#allocation2 + $0x50] sm:$0xff]  ;;  %v719_v37 = vld [vmem:[#allocation2 + $0x8] sm:$0xff] }
 0x127   : > { %v1092_v25 = vunpack.c.l.bf16 %v1091_v22  ;;  %v1093_v26 = vunpack.c.h.bf16 %v1091_v22  ;;  %v1096_v32 = vunpack.c.l.bf16 %v1162_v29  ;;  %v1097_v33 = vunpack.c.h.bf16 %v1162_v29  ;;  %v1163_v36 = vld [vmem:[%s1540_s3 + $0x10] sm:$0xff]   ;;  %v1164_v43 = vld [vmem:[%s1540_s3 + $0x18] sm:$0xff]   ;;  %v721_v48 = vld [vmem:[#allocation2 + $0x40] sm:$0xff] }
 0x128   : > { %v740_v34 = vadd.f32 %v1456_v19, %v717_v30  ;;  %v720_v38 = vld [vmem:[#allocation2 + $0x48] sm:$0xff]  ;;  %v1100_v41 = vunpack.c.l.bf16 %v1163_v36  ;;  %v1101_v42 = vunpack.c.h.bf16 %v1163_v36  ;;  %v742_v46 = vadd.f32 %v1456_v19, %v719_v37  ;;  %v722_v53 = vld [vmem:[#allocation2 + $0x20] sm:$0xff]  ;;  %v723_v59 = vld [vmem:[#allocation2 + $0x10] sm:$0xff] }
 0x129   : > { %v784_v39 = vadd.f32 %v1092_v25, %v736_v20  ;;  %v785_v40 = vadd.f32 %v1093_v26, %v737_v21  ;;  %v786_v44 = vadd.f32 %v1096_v32, %v738_v27  ;;  %v787_v45 = vadd.f32 %v1097_v33, %v739_v28  ;;  %v1165_v58 = vld [vmem:[%s1540_s3 + $0x20] sm:$0xff]   ;;  %v724_v0 = vld [vmem:[#allocation2 + $0x38] sm:$0xff]  ;;  %v1166_v1 = vld [vmem:[%s1540_s3 + $0x28] sm:$0xff]  }
 0x12a   : > { %v718_v31 = vld [vmem:[#allocation2 + $0x68] sm:$0xff]  ;;  %v743_v47 = vadd.f32 %v1456_v19, %v720_v38  ;;  %v788_v51 = vadd.f32 %v1100_v41, %v740_v34  ;;  %v1104_v56 = vunpack.c.l.bf16 %v1164_v43  ;;  %v1105_v57 = vunpack.c.h.bf16 %v1164_v43  ;;  %v725_v6 = vld [vmem:[#allocation2 + $0x60] sm:$0xff]  ;;  %v726_v11 = vld [vmem:[#allocation2 + $0x70] sm:$0xff] }
 0x12b   : > { %v741_v35 = vadd.f32 %v1456_v19, %v718_v31  ;;  %v800_v49 = vmax.f32 %v784_v39, 0.0  ;;  %v801_v50 = vmax.f32 %v785_v40, 0.0  ;;  %v802_v54 = vmax.f32 %v786_v44, 0.0  ;;  %v1167_v12 = vld [vmem:[%s1540_s3 + $0x30] sm:$0xff]   ;;  %v727_v22 = vld [vmem:[#allocation2 + $0x78] sm:$0xff]  ;;  %v728_v23 = vld [vmem:[#allocation2 + $0x28] sm:$0xff] }
 0x12c   : > { %v803_v55 = vmax.f32 %v787_v45, 0.0  ;;  %v804_v61 = vmax.f32 %v788_v51, 0.0  ;;  %v744_v63 = vadd.f32 %v1456_v19, %v721_v48  ;;  %v790_v3 = vadd.f32 %v1104_v56, %v742_v46  ;;  %v1168_v28 = vld [vmem:[%s1540_s3 + $0x38] sm:$0xff]  }
 0x12d   : > { %v789_v52 = vadd.f32 %v1101_v42, %v741_v35  ;;  %v1125_v60 = vpack.c.bf16 %v801_v50, %v800_v49  ;;  %v791_v4 = vadd.f32 %v1105_v57, %v743_v47  ;;  %v745_v5 = vadd.f32 %v1456_v19, %v722_v53 }
 0x12e   : > { %v1130_v2 = vpack.c.bf16 %v803_v55, %v802_v54  ;;  %v1108_v8 = vunpack.c.l.bf16 %v1165_v58  ;;  %v1109_v9 = vunpack.c.h.bf16 %v1165_v58  ;;  %v746_v10 = vadd.f32 %v1456_v19, %v723_v59 }
 0x12f   : > { %v805_v62 = vmax.f32 %v789_v52, 0.0  ;;  %1126 = vst [vmem:[%s1541_s4] sm:$0xff] %v1125_v60   ;;  %v806_v13 = vmax.f32 %v790_v3, 0.0  ;;  %v807_v14 = vmax.f32 %v791_v4, 0.0  ;;  %v747_v15 = vadd.f32 %v1456_v19, %v724_v0 }
 0x130   : > { %1169 = vst [vmem:[%s1541_s4 + $0x8] sm:$0xff] %v1130_v2   ;;  %v1112_v16 = vunpack.c.l.bf16 %v1166_v1  ;;  %v792_v17 = vadd.f32 %v1108_v8, %v744_v63  ;;  %v793_v18 = vadd.f32 %v1109_v9, %v745_v5  ;;  %v1113_v20 = vunpack.c.h.bf16 %v1166_v1 }
 0x131   : > { %v1135_v7 = vpack.c.bf16 %v805_v62, %v804_v61  ;;  %v748_v21 = vadd.f32 %v1456_v19, %v725_v6  ;;  %v1140_v24 = vpack.c.bf16 %v807_v14, %v806_v13  ;;  %v749_v26 = vadd.f32 %v1456_v19, %v726_v11 }
 0x132   : > { %v794_v25 = vadd.f32 %v1112_v16, %v746_v10  ;;  %v1116_v27 = vunpack.c.l.bf16 %v1167_v12  ;;  %v808_v29 = vmax.f32 %v792_v17, 0.0  ;;  %v809_v30 = vmax.f32 %v793_v18, 0.0 }
 0x133   : > { %1170 = vst [vmem:[%s1541_s4 + $0x10] sm:$0xff] %v1135_v7   ;;  %v795_v31 = vadd.f32 %v1113_v20, %v747_v15  ;;  %v1117_v32 = vunpack.c.h.bf16 %v1167_v12  ;;  %1171 = vst [vmem:[%s1541_s4 + $0x18] sm:$0xff] %v1140_v24   ;;  %v750_v35 = vadd.f32 %v1456_v19, %v727_v22  ;;  %v751_v36 = vadd.f32 %v1456_v19, %v728_v23 }
 0x134   : > { %v810_v33 = vmax.f32 %v794_v25, 0.0  ;;  %v796_v34 = vadd.f32 %v1116_v27, %v748_v21  ;;  %v1145_v37 = vpack.c.bf16 %v809_v30, %v808_v29  ;;  %v1120_v40 = vunpack.c.l.bf16 %v1168_v28 }
 0x135   : > { %v811_v38 = vmax.f32 %v795_v31, 0.0  ;;  %v797_v39 = vadd.f32 %v1117_v32, %v749_v26  ;;  %v1121_v42 = vunpack.c.h.bf16 %v1168_v28 }
 0x136   : > { %v812_v41 = vmax.f32 %v796_v34, 0.0  ;;  %1172 = vst [vmem:[%s1541_s4 + $0x20] sm:$0xff] %v1145_v37   ;;  %v798_v45 = vadd.f32 %v1120_v40, %v750_v35 }
 0x137   : > { %v1150_v43 = vpack.c.bf16 %v811_v38, %v810_v33  ;;  %v813_v44 = vmax.f32 %v797_v39, 0.0  ;;  %v799_v46 = vadd.f32 %v1121_v42, %v751_v36 }
 0x138   : > { %v814_v19 = vmax.f32 %v798_v45, 0.0 }
 0x139   : > { %1173 = vst [vmem:[%s1541_s4 + $0x28] sm:$0xff] %v1150_v43   ;;  %v1155_v47 = vpack.c.bf16 %v813_v44, %v812_v41  ;;  %v815_v48 = vmax.f32 %v799_v46, 0.0 }
 0x13b   : > { %1174 = vst [vmem:[%s1541_s4 + $0x30] sm:$0xff] %v1155_v47   ;;  %v1160_v49 = vpack.c.bf16 %v815_v48, %v814_v19 }
 0x13d   : > { %1175 = vst [vmem:[%s1541_s4 + $0x38] sm:$0xff] %v1160_v49  }
 0x13e PF: > { %s14_s19 = sadd.s32 1, %s1335_s19   ;;  %s1542_s15 = smov %s1323_s16 }
 0x13f   : > { %p11_p12 = scmp.ge.s32.totalorder %s14_s19, 7   ;;  %s1543_s16 = smov %s1398_s23 }
 0x140   : > { %s1544_s17 = smov %s1331_s18  ;;  %s1545_s18 = smov %s1547_s20 }
 0x141   :  { %13 = sbr.rel (!%p11_p12) target bundleno = 3 (0x3), region = 129 }

// kernel: resnet18_forward.27
= control target key start
LH: loop header
LB: loop body
LE: loop exit
PB: predicated region body
PF: predicated region fallthrough
CT: control target
= control target key end

     0   :  { %s798_s12 = smov 0   ;;  %s800_s13 = smov 0   ;;  %s891_s0 = inlined_call_operand.vmem [shape: bf16[32,640], index: 0, kind: input, shape index: {}]   ;;  %s892_s1 = inlined_call_operand.vmem [shape: bf16[640,128], index: 1, kind: input, shape index: {}]   ;;  %s893_s2 = inlined_call_operand.vmem [shape: f32[1,128], index: 2, kind: input, shape index: {}]   ;;  %s894_s3 = inlined_call_operand.vmem [shape: bf16[32,128], index: 3, kind: output, shape index: {}]  }
   0x1   :  { %s802_s14 = smov 0   ;;  %s804_s15 = smov 0  }
   0x2   :  { %s806_s16 = smov 0  }
   0x3 LB: > { %s25_s17 = sadd.s32 1, %s771_s15  ;;  %p48_p1 = scmp.ne.s32.totalorder %s763_s13, %s759_s12  ;;  %s775_s16 = sphi %s806_s16, %s13_s16   ;;  %s771_s15 = sphi %s804_s15, %s898_s15   ;;  %s767_s14 = sphi %s802_s14, %s897_s14   ;;  %s763_s13 = sphi %s800_s13, %s896_s13   ;;  %s759_s12 = sphi %s798_s12, %s895_s12  }
   0x4   : > { %p26_p0 = scmp.ge.s32.totalorder %s25_s17, 5  ;;  %p49_p2 = scmp.eq.s32.totalorder %s775_s16, 0 }
   0x5   : > { %s41_s19 = sadd.s32 1, %s763_s13  ;;  %p613_p5 = scmp.ge.s32.totalorder %s775_s16, 5 }
   0x6   : > { %s900_s17 = smov (%p26_p0, %s25_s17), 0  ;;  %p50_p3 = por %p49_p2, %p48_p1 }
   0x7   : > { %s37_s18 = ssub.s32 %s771_s15, %s900_s17  ;;  %162 = sbr.rel (%p613_p5) target bundleno = 18 (0x12), region = 20 }
   0x8   : > { %p39_p4 = scmp.eq.s32.totalorder %s37_s18, 0 }
   0xa   : > { %s833_s20 = scalar_select %p39_p4, %s763_s13, %s41_s19  }
   0xc   : > { %165 = sbr.rel (!%p50_p3) target bundleno = 18 (0x12), region = 24  ;;  %s167_s21 = sand.u32 (%p50_p3), 1, %s763_s13  }
   0xd   : > { %s615_s22 = sshll.u32 (%p50_p3), %s771_s15, 2  ;;  %s614_s23 = sshll.u32 (%p50_p3), %s167_s21, 4 }
   0xe   : > { %s174_s26 = scalar_lea.vmem (%p50_p3), %s891_s0, %s615_s22  ;;  %s169_s27 = scalar_lea.vmem (%p50_p3), [#allocation3], %s614_s23 }
   0xf   : > { %v191_v0 = vld [vmem:[%s174_s26] sm:$0xf] (%p50_p3)  ;;  %v193_v1 = vld [vmem:[%s174_s26 + $0x14] sm:$0xf] (%p50_p3)  ;;  %v195_v2 = vld [vmem:[%s174_s26 + $0x28] sm:$0xf] (%p50_p3) }
  0x10   : > { %192 = vst [vmem:[%s169_s27] sm:$0xf] (%p50_p3), %v191_v0  ;;  %194 = vst [vmem:[%s169_s27 + $0x4] sm:$0xf] (%p50_p3), %v193_v1  ;;  %v197_v3 = vld [vmem:[%s174_s26 + $0x3c] sm:$0xf] (%p50_p3) }
  0x11   : > { %196 = vst [vmem:[%s169_s27 + $0x8] sm:$0xf] %v195_v2  ;;  %198 = vst [vmem:[%s169_s27 + $0xc] sm:$0xf] %v197_v3 }
  0x12 PF: > { %p616_p6 = scmp.ge.s32.totalorder %s775_s16, 1  ;;  %p241_p7 = scmp.lt.s32.totalorder %s775_s16, 6 }
  0x14   : > { %p242_p8 = pnand %p616_p6, %p241_p7 }
  0x15   : > { %s248_s28 = sand.u32 (!%p242_p8), 1, %s759_s12   ;;  %s618_s29 = sshll.u32 (!%p242_p8), %s767_s14, 4 }
  0x16   : > { %245 = sbr.rel (%p242_p8) target bundleno = 284 (0x11c), region = 69  ;;  %s845_s30 = sshll.u32 (!%p242_p8), %s248_s28, 4 }
  0x17   : > { %p287_p9 = scmp.lt.s32.totalorder (!%p242_p8), %s618_s29, 79  ;;  %s250_s8 = scalar_lea.vmem (!%p242_p8), [#allocation3], %s845_s30 }
  0x18   : > { %p620_p10 = scmp.ne.s32.totalorder (!%p242_p8), %s767_s14, 0 }
  0x1b   : > { %s902_s29 = smov (!%p287_p9, %s618_s29), 79  ;;  %311 = sbr.rel (%p620_p10) target bundleno = 35 (0x23), region = 77 }
  0x1c   : > { %s619_s4 = sshll.u32 %s902_s29, 2 }
  0x1d   : > { %s850_s7 = scalar_lea.vmem %s892_s1, %s619_s4 }
  0x20   : > { %v777_v4 = vmov 0.0  }
  0x21   : > { %312 = vst [vmem:[#allocation2 + $0x10] sm:$0xff] %v777_v4  ;;  %313 = vst [vmem:[#allocation2] sm:$0xff] %v777_v4 }
  0x22   : > { %314 = vst [vmem:[#allocation2 + $0x18] sm:$0xff] %v777_v4  ;;  %315 = vst [vmem:[#allocation2 + $0x8] sm:$0xff] %v777_v4 }
  0x23 PF: > { %v727_v5 = vld [vmem:[%s850_s7 + $0x38] sm:$0xff]   ;;  %v728_v6 = vld [vmem:[%s850_s7 + $0x30] sm:$0xff]   ;;  %v729_v7 = vld [vmem:[%s850_s7 + $0x28] sm:$0xff]   ;;  %p631_p11 = scmp.ne.s32.totalorder %s767_s14, 4 }
  0x24   : > { %666 = vmatprep.subr.bf16.mxu0 %v727_v5  ;;  %v730_v8 = vld [vmem:[%s850_s7 + $0x20] sm:$0xff]   ;;  %v731_v10 = vld [vmem:[%s850_s7 + $0x18] sm:$0xff]   ;;  %v732_v11 = vld [vmem:[%s850_s7 + $0x10] sm:$0xff]  }
  0x25   : > { %667 = vmatpush3.bf16.msra.mxu0 %v727_v5  ;;  %v735_v9 = vld [vmem:[%s250_s8] sm:$0xff]   ;;  %v733_v12 = vld [vmem:[%s850_s7 + $0x8] sm:$0xff]  }
  0x26   : > { %668 = vmatprep.subr.bf16.mxu0 %v728_v6  ;;  %682 = vmatprep.mubr.bf16.mxu0 %v735_v9  ;;  %v734_v13 = vld [vmem:[%s850_s7] sm:$0xff]   ;;  %v736_v14 = vld [vmem:[%s250_s8 + $0x8] sm:$0xff]  }
  0x28   : > { %v316_v17 = vld [vmem:[#allocation2 + $0x10] sm:$0xff]  ;;  %v317_v23 = vld [vmem:[#allocation2] sm:$0xff] }
  0x29   : > { %669 = vmatpush3.bf16.msra.mxu0 %v728_v6  ;;  %v318_v15 = vld [vmem:[#allocation2 + $0x18] sm:$0xff]  ;;  %v319_v20 = vld [vmem:[#allocation2 + $0x8] sm:$0xff] }
  0x2a   : > { %670 = vmatprep.subr.bf16.mxu0 %v729_v7 }
  0x2d   : > { %671 = vmatpush3.bf16.msra.mxu0 %v729_v7 }
  0x2e   : > { %672 = vmatprep.subr.bf16.mxu0 %v730_v8 }
  0x31   : > { %673 = vmatpush3.bf16.msra.mxu0 %v730_v8 }
  0x32   : > { %674 = vmatprep.subr.bf16.mxu0 %v731_v10 }
  0x35   : > { %675 = vmatpush3.bf16.msra.mxu0 %v731_v10 }
  0x36   : > { %676 = vmatprep.subr.bf16.mxu0 %v732_v11 }
  0x39   : > { %677 = vmatpush3.bf16.msra.mxu0 %v732_v11 }
  0x3a   : > { %678 = vmatprep.subr.bf16.mxu0 %v733_v12 }
  0x3d   : > { %679 = vmatpush3.bf16.msra.mxu0 %v733_v12 }
  0x3e   : > { %680 = vmatprep.subr.bf16.mxu0 %v734_v13 }
  0x41   : > { %681 = vmatpush3.bf16.msra.mxu0 %v734_v13 }
  0x44   : > { %683 = vmatmul.mubr.bf16.vlgmr.msra.gmra.mxu0 %v736_v14 }
 0x104   : > { %v684_v16 = vpop.f32.mrf.mxu0 }
 0x105   : > { %v451_v18 = vadd.f32 %v684_v16, %v318_v15 }
 0x106   : > { %v434_v19 = vpop.f32.mrf.mxu0 }
 0x107   : > { %455 = vst [vmem:[#allocation2 + $0x18] sm:$0xff] %v451_v18  ;;  %v449_v21 = vadd.f32 %v434_v19, %v316_v17 }
 0x108   : > { %v685_v22 = vpop.f32.mrf.mxu0 }
 0x109   : > { %453 = vst [vmem:[#allocation2 + $0x10] sm:$0xff] %v449_v21  ;;  %v452_v24 = vadd.f32 %v685_v22, %v319_v20  ;;  %460 = sbr.rel (%p631_p11) target bundleno = 284 (0x11c), region = 81 }
 0x10a   : > { %v437_v25 = vpop.f32.mrf.mxu0 }
 0x10b   : > { %456 = vst [vmem:[#allocation2 + $0x8] sm:$0xff] %v452_v24  ;;  %v450_v26 = vadd.f32 %v437_v25, %v317_v23 }
 0x10d   : > { %454 = vst [vmem:[#allocation2] sm:$0xff] %v450_v26 }
 0x10e   : > { %v632_v29 = vld [vmem:[%s893_s2] ss:$0 sm:$0xff]  ;;  %v463_v32 = vld [vmem:[#allocation2 + $0x18] sm:$0xff] }
 0x10f   : > { %v474_v34 = vadd.f32 %v632_v29, %v463_v32 }
 0x110   : > { %v461_v27 = vld [vmem:[#allocation2 + $0x10] sm:$0xff] }
 0x111   : > { %v472_v30 = vadd.f32 %v632_v29, %v461_v27  ;;  %v478_v38 = vmax.f32 %v474_v34, 0.0 }
 0x112   : > { %v464_v33 = vld [vmem:[#allocation2 + $0x8] sm:$0xff] }
 0x113   : > { %v475_v35 = vadd.f32 %v632_v29, %v464_v33  ;;  %v476_v36 = vmax.f32 %v472_v30, 0.0 }
 0x114   : > { %v462_v28 = vld [vmem:[#allocation2] sm:$0xff] }
 0x115   : > { %v473_v31 = vadd.f32 %v632_v29, %v462_v28  ;;  %v479_v39 = vmax.f32 %v475_v35, 0.0 }
 0x117   : > { %v477_v37 = vmax.f32 %v473_v31, 0.0  ;;  %v653_v41 = vpack.c.bf16 %v479_v39, %v478_v38 }
 0x119   : > { %v648_v40 = vpack.c.bf16 %v477_v37, %v476_v36  ;;  %655 = vst [vmem:[%s894_s3 + $0x8] sm:$0xff] %v653_v41  }
 0x11b   : > { %649 = vst [vmem:[%s894_s3] sm:$0xff] %v648_v40  }
 0x11c PF: > { %s13_s16 = sadd.s32 1, %s775_s16   ;;  %s895_s12 = smov %s763_s13 }
 0x11d   : > { %p10_p12 = scmp.ge.s32.totalorder %s13_s16, 7   ;;  %s896_s13 = smov %s833_s20 }
 0x11e   : > { %s897_s14 = smov %s771_s15  ;;  %s898_s15 = smov %s900_s17 }
 0x11f   :  { %12 = sbr.rel (!%p10_p12) target bundleno = 3 (0x3), region = 122 }

// kernel: resnet18_forward.26
= control target key start
LH: loop header
LB: loop body
LE: loop exit
PB: predicated region body
PF: predicated region fallthrough
CT: control target
= control target key end

     0   :  { %s335_s1 = inlined_call_operand.vmem [shape: bf16[128,128], index: 1, kind: input, shape index: {}]   ;;  %s336_s0 = inlined_call_operand.vmem [shape: bf16[32,128], index: 0, kind: input, shape index: {}]   ;;  %s337_s2 = inlined_call_operand.vmem [shape: f32[1,128], index: 2, kind: input, shape index: {}]   ;;  %s338_s3 = inlined_call_operand.vmem [shape: bf16[32,128], index: 3, kind: output, shape index: {}]  }
   0x1   :  { %v266_v0 = vld [vmem:[%s335_s1 + $0x38] sm:$0xff]   ;;  %v267_v1 = vld [vmem:[%s335_s1 + $0x30] sm:$0xff]   ;;  %v268_v2 = vld [vmem:[%s335_s1 + $0x28] sm:$0xff]  }
   0x2   :  { %246 = vmatprep.subr.bf16.mxu0 %v266_v0  ;;  %v269_v3 = vld [vmem:[%s335_s1 + $0x20] sm:$0xff]   ;;  %v270_v5 = vld [vmem:[%s335_s1 + $0x18] sm:$0xff]   ;;  %v271_v6 = vld [vmem:[%s335_s1 + $0x10] sm:$0xff]  }
   0x3   :  { %247 = vmatpush3.bf16.msra.mxu0 %v266_v0  ;;  %v274_v4 = vld [vmem:[%s336_s0] sm:$0xff]   ;;  %v272_v7 = vld [vmem:[%s335_s1 + $0x8] sm:$0xff]  }
   0x4   :  { %248 = vmatprep.subr.bf16.mxu0 %v267_v1  ;;  %262 = vmatprep.mubr.bf16.mxu0 %v274_v4  ;;  %v273_v8 = vld [vmem:[%s335_s1] sm:$0xff]   ;;  %v275_v9 = vld [vmem:[%s336_s0 + $0x8] sm:$0xff]  }
   0x5   :  { %v216_v11 = vld [vmem:[%s337_s2] ss:$0 sm:$0xff] }
   0x7   :  { %249 = vmatpush3.bf16.msra.mxu0 %v267_v1 }
   0x8   :  { %250 = vmatprep.subr.bf16.mxu0 %v268_v2 }
   0xb   :  { %251 = vmatpush3.bf16.msra.mxu0 %v268_v2 }
   0xc   :  { %252 = vmatprep.subr.bf16.mxu0 %v269_v3 }
   0xf   :  { %253 = vmatpush3.bf16.msra.mxu0 %v269_v3 }
  0x10   :  { %254 = vmatprep.subr.bf16.mxu0 %v270_v5 }
  0x13   :  { %255 = vmatpush3.bf16.msra.mxu0 %v270_v5 }
  0x14   :  { %256 = vmatprep.subr.bf16.mxu0 %v271_v6 }
  0x17   :  { %257 = vmatpush3.bf16.msra.mxu0 %v271_v6 }
  0x18   :  { %258 = vmatprep.subr.bf16.mxu0 %v272_v7 }
  0x1b   :  { %259 = vmatpush3.bf16.msra.mxu0 %v272_v7 }
  0x1c   :  { %260 = vmatprep.subr.bf16.mxu0 %v273_v8 }
  0x1f   :  { %261 = vmatpush3.bf16.msra.mxu0 %v273_v8 }
  0x22   :  { %263 = vmatmul.mubr.bf16.vlgmr.msra.gmra.mxu0 %v275_v9 }
  0xe2   :  { %v264_v10 = vpop.f32.mrf.mxu0 }
  0xe3   :  { %v180_v14 = vadd.f32 %v264_v10, %v216_v11 }
  0xe4   :  { %v141_v12 = vpop.f32.mrf.mxu0 }
  0xe5   :  { %v178_v17 = vadd.f32 %v216_v11, %v141_v12 }
  0xe6   :  { %v265_v13 = vpop.f32.mrf.mxu0 }
  0xe7   :  { %v181_v15 = vadd.f32 %v265_v13, %v216_v11 }
  0xe8   :  { %v144_v16 = vpop.f32.mrf.mxu0 }
  0xe9   :  { %v233_v18 = vpack.c.bf16 %v181_v15, %v180_v14  ;;  %v179_v19 = vadd.f32 %v216_v11, %v144_v16 }
  0xeb   :  { %235 = vst [vmem:[%s338_s3 + $0x8] sm:$0xff] %v233_v18   ;;  %v228_v20 = vpack.c.bf16 %v179_v19, %v178_v17 }
  0xed   :  { %229 = vst [vmem:[%s338_s3] sm:$0xff] %v228_v20  }

// kernel: resnet18_forward.28
= control target key start
LH: loop header
LB: loop body
LE: loop exit
PB: predicated region body
PF: predicated region fallthrough
CT: control target
= control target key end

     0   :  { %s903_s15 = smov 0   ;;  %s905_s16 = smov 0   ;;  %s1002_s0 = inlined_call_operand.vmem [shape: bf16[32,1152], index: 0, kind: input, shape index: {}]   ;;  %s1003_s1 = inlined_call_operand.vmem [shape: bf16[1152,128], index: 1, kind: input, shape index: {}]   ;;  %s1004_s2 = inlined_call_operand.vmem [shape: f32[1,128], index: 2, kind: input, shape index: {}]   ;;  %s1005_s3 = inlined_call_operand.vmem [shape: bf16[32,128], index: 3, kind: input, shape index: {}]   ;;  %s1006_s4 = inlined_call_operand.vmem [shape: bf16[32,128], index: 4, kind: output, shape index: {}]  }
   0x1   :  { %s907_s17 = smov 0   ;;  %s909_s18 = smov 0  }
   0x2   :  { %s911_s19 = smov 0  }
   0x3 LB: > { %s26_s20 = sadd.s32 1, %s871_s18  ;;  %p49_p1 = scmp.ne.s32.totalorder %s863_s16, %s859_s15  ;;  %s875_s19 = sphi %s911_s19, %s14_s19   ;;  %s871_s18 = sphi %s909_s18, %s1010_s18   ;;  %s867_s17 = sphi %s907_s17, %s1009_s17   ;;  %s863_s16 = sphi %s905_s16, %s1008_s16   ;;  %s859_s15 = sphi %s903_s15, %s1007_s15  }
   0x4   : > { %p27_p0 = scmp.ge.s32.totalorder %s26_s20, 9  ;;  %p50_p2 = scmp.eq.s32.totalorder %s875_s19, 0 }
   0x5   : > { %s42_s22 = sadd.s32 1, %s863_s16  ;;  %p704_p5 = scmp.ge.s32.totalorder %s875_s19, 9 }
   0x6   : > { %s1012_s20 = smov (%p27_p0, %s26_s20), 0  ;;  %p51_p3 = por %p50_p2, %p49_p1 }
   0x7   : > { %s38_s21 = ssub.s32 %s871_s18, %s1012_s20  ;;  %203 = sbr.rel (%p704_p5) target bundleno = 18 (0x12), region = 24 }
   0x8   : > { %p40_p4 = scmp.eq.s32.totalorder %s38_s21, 0 }
   0xa   : > { %s938_s23 = scalar_select %p40_p4, %s863_s16, %s42_s22  }
   0xc   : > { %206 = sbr.rel (!%p51_p3) target bundleno = 18 (0x12), region = 28  ;;  %s208_s24 = sand.u32 (%p51_p3), 1, %s863_s16  }
   0xd   : > { %s706_s25 = sshll.u32 (%p51_p3), %s871_s18, 2  ;;  %s705_s26 = sshll.u32 (%p51_p3), %s208_s24, 4 }
   0xe   : > { %s215_s29 = scalar_lea.vmem (%p51_p3), %s1002_s0, %s706_s25  ;;  %s210_s30 = scalar_lea.vmem (%p51_p3), [#allocation3], %s705_s26 }
   0xf   : > { %v232_v0 = vld [vmem:[%s215_s29] sm:$0xf] (%p51_p3)  ;;  %v234_v1 = vld [vmem:[%s215_s29 + $0x24] sm:$0xf] (%p51_p3)  ;;  %v236_v2 = vld [vmem:[%s215_s29 + $0x48] sm:$0xf] (%p51_p3) }
  0x10   : > { %233 = vst [vmem:[%s210_s30] sm:$0xf] (%p51_p3), %v232_v0  ;;  %235 = vst [vmem:[%s210_s30 + $0x4] sm:$0xf] (%p51_p3), %v234_v1  ;;  %v238_v3 = vld [vmem:[%s215_s29 + $0x6c] sm:$0xf] (%p51_p3) }
  0x11   : > { %237 = vst [vmem:[%s210_s30 + $0x8] sm:$0xf] %v236_v2  ;;  %239 = vst [vmem:[%s210_s30 + $0xc] sm:$0xf] %v238_v3 }
  0x12 PF: > { %p707_p6 = scmp.ge.s32.totalorder %s875_s19, 1  ;;  %p282_p7 = scmp.lt.s32.totalorder %s875_s19, 10 }
  0x14   : > { %p283_p8 = pnand %p707_p6, %p282_p7 }
  0x15   : > { %s289_s5 = sand.u32 (!%p283_p8), 1, %s859_s15   ;;  %s709_s6 = sshll.u32 (!%p283_p8), %s867_s17, 4 }
  0x16   : > { %286 = sbr.rel (%p283_p8) target bundleno = 286 (0x11e), region = 73  ;;  %s950_s7 = sshll.u32 (!%p283_p8), %s289_s5, 4 }
  0x17   : > { %p338_p9 = scmp.lt.s32.totalorder (!%p283_p8), %s709_s6, 143  ;;  %s291_s12 = scalar_lea.vmem (!%p283_p8), [#allocation3], %s950_s7 }
  0x18   : > { %p711_p10 = scmp.ne.s32.totalorder (!%p283_p8), %s867_s17, 0 }
  0x1b   : > { %s1014_s6 = smov (!%p338_p9, %s709_s6), 143  ;;  %371 = sbr.rel (%p711_p10) target bundleno = 35 (0x23), region = 81 }
  0x1c   : > { %s710_s8 = sshll.u32 %s1014_s6, 2 }
  0x1d   : > { %s955_s11 = scalar_lea.vmem %s1003_s1, %s710_s8 }
  0x20   : > { %v877_v4 = vmov 0.0  }
  0x21   : > { %372 = vst [vmem:[#allocation2 + $0x10] sm:$0xff] %v877_v4  ;;  %373 = vst [vmem:[#allocation2] sm:$0xff] %v877_v4 }
  0x22   : > { %374 = vst [vmem:[#allocation2 + $0x18] sm:$0xff] %v877_v4  ;;  %375 = vst [vmem:[#allocation2 + $0x8] sm:$0xff] %v877_v4 }
  0x23 PF: > { %v827_v5 = vld [vmem:[%s955_s11 + $0x38] sm:$0xff]   ;;  %v828_v6 = vld [vmem:[%s955_s11 + $0x30] sm:$0xff]   ;;  %v829_v7 = vld [vmem:[%s955_s11 + $0x28] sm:$0xff]   ;;  %p722_p11 = scmp.ne.s32.totalorder %s867_s17, 8 }
  0x24   : > { %766 = vmatprep.subr.bf16.mxu0 %v827_v5  ;;  %v830_v8 = vld [vmem:[%s955_s11 + $0x20] sm:$0xff]   ;;  %v831_v10 = vld [vmem:[%s955_s11 + $0x18] sm:$0xff]   ;;  %v832_v11 = vld [vmem:[%s955_s11 + $0x10] sm:$0xff]  }
  0x25   : > { %767 = vmatpush3.bf16.msra.mxu0 %v827_v5  ;;  %v835_v9 = vld [vmem:[%s291_s12] sm:$0xff]   ;;  %v833_v12 = vld [vmem:[%s955_s11 + $0x8] sm:$0xff]  }
  0x26   : > { %768 = vmatprep.subr.bf16.mxu0 %v828_v6  ;;  %782 = vmatprep.mubr.bf16.mxu0 %v835_v9  ;;  %v834_v13 = vld [vmem:[%s955_s11] sm:$0xff]   ;;  %v836_v14 = vld [vmem:[%s291_s12 + $0x8] sm:$0xff]  }
  0x28   : > { %v376_v17 = vld [vmem:[#allocation2 + $0x10] sm:$0xff]  ;;  %v377_v23 = vld [vmem:[#allocation2] sm:$0xff] }
  0x29   : > { %769 = vmatpush3.bf16.msra.mxu0 %v828_v6  ;;  %v378_v15 = vld [vmem:[#allocation2 + $0x18] sm:$0xff]  ;;  %v379_v20 = vld [vmem:[#allocation2 + $0x8] sm:$0xff] }
  0x2a   : > { %770 = vmatprep.subr.bf16.mxu0 %v829_v7 }
  0x2d   : > { %771 = vmatpush3.bf16.msra.mxu0 %v829_v7 }
  0x2e   : > { %772 = vmatprep.subr.bf16.mxu0 %v830_v8 }
  0x31   : > { %773 = vmatpush3.bf16.msra.mxu0 %v830_v8 }
  0x32   : > { %774 = vmatprep.subr.bf16.mxu0 %v831_v10 }
  0x35   : > { %775 = vmatpush3.bf16.msra.mxu0 %v831_v10 }
  0x36   : > { %776 = vmatprep.subr.bf16.mxu0 %v832_v11 }
  0x39   : > { %777 = vmatpush3.bf16.msra.mxu0 %v832_v11 }
  0x3a   : > { %778 = vmatprep.subr.bf16.mxu0 %v833_v12 }
  0x3d   : > { %779 = vmatpush3.bf16.msra.mxu0 %v833_v12 }
  0x3e   : > { %780 = vmatprep.subr.bf16.mxu0 %v834_v13 }
  0x41   : > { %781 = vmatpush3.bf16.msra.mxu0 %v834_v13 }
  0x44   : > { %783 = vmatmul.mubr.bf16.vlgmr.msra.gmra.mxu0 %v836_v14 }
 0x104   : > { %v784_v16 = vpop.f32.mrf.mxu0 }
 0x105   : > { %v511_v18 = vadd.f32 %v784_v16, %v378_v15 }
 0x106   : > { %v494_v19 = vpop.f32.mrf.mxu0 }
 0x107   : > { %515 = vst [vmem:[#allocation2 + $0x18] sm:$0xff] %v511_v18  ;;  %v509_v21 = vadd.f32 %v494_v19, %v376_v17 }
 0x108   : > { %v785_v22 = vpop.f32.mrf.mxu0 }
 0x109   : > { %513 = vst [vmem:[#allocation2 + $0x10] sm:$0xff] %v509_v21  ;;  %v512_v24 = vadd.f32 %v785_v22, %v379_v20  ;;  %520 = sbr.rel (%p722_p11) target bundleno = 286 (0x11e), region = 85 }
 0x10a   : > { %v497_v25 = vpop.f32.mrf.mxu0 }
 0x10b   : > { %516 = vst [vmem:[#allocation2 + $0x8] sm:$0xff] %v512_v24  ;;  %v510_v26 = vadd.f32 %v497_v25, %v377_v23 }
 0x10d   : > { %514 = vst [vmem:[#allocation2] sm:$0xff] %v510_v26 }
 0x10e   : > { %v723_v29 = vld [vmem:[%s1004_s2] ss:$0 sm:$0xff]  ;;  %v523_v33 = vld [vmem:[#allocation2 + $0x18] sm:$0xff]  ;;  %v754_v39 = vld [vmem:[%s1005_s3 + $0x8] sm:$0xff]  }
 0x10f   : > { %v737_v32 = vld [vmem:[%s1005_s3] sm:$0xff]   ;;  %v534_v37 = vadd.f32 %v723_v29, %v523_v33  ;;  %v742_v40 = vunpack.c.l.bf16 %v754_v39  ;;  %v743_v41 = vunpack.c.h.bf16 %v754_v39 }
 0x110   : > { %v521_v27 = vld [vmem:[#allocation2 + $0x10] sm:$0xff]  ;;  %v738_v35 = vunpack.c.l.bf16 %v737_v32  ;;  %v739_v36 = vunpack.c.h.bf16 %v737_v32 }
 0x111   : > { %v532_v30 = vadd.f32 %v723_v29, %v521_v27  ;;  %v546_v44 = vadd.f32 %v742_v40, %v534_v37 }
 0x112   : > { %v524_v34 = vld [vmem:[#allocation2 + $0x8] sm:$0xff] }
 0x113   : > { %v535_v38 = vadd.f32 %v723_v29, %v524_v34  ;;  %v544_v42 = vadd.f32 %v738_v35, %v532_v30  ;;  %v550_v48 = vmax.f32 %v546_v44, 0.0 }
 0x114   : > { %v522_v28 = vld [vmem:[#allocation2] sm:$0xff] }
 0x115   : > { %v533_v31 = vadd.f32 %v723_v29, %v522_v28  ;;  %v547_v45 = vadd.f32 %v743_v41, %v535_v38  ;;  %v548_v46 = vmax.f32 %v544_v42, 0.0 }
 0x117   : > { %v545_v43 = vadd.f32 %v739_v36, %v533_v31  ;;  %v551_v49 = vmax.f32 %v547_v45, 0.0 }
 0x119   : > { %v549_v47 = vmax.f32 %v545_v43, 0.0  ;;  %v752_v51 = vpack.c.bf16 %v551_v49, %v550_v48 }
 0x11b   : > { %v747_v50 = vpack.c.bf16 %v549_v47, %v548_v46  ;;  %755 = vst [vmem:[%s1006_s4 + $0x8] sm:$0xff] %v752_v51  }
 0x11d   : > { %748 = vst [vmem:[%s1006_s4] sm:$0xff] %v747_v50  }
 0x11e PF: > { %s14_s19 = sadd.s32 1, %s875_s19   ;;  %s1007_s15 = smov %s863_s16 }
 0x11f   : > { %p11_p12 = scmp.ge.s32.totalorder %s14_s19, 11   ;;  %s1008_s16 = smov %s938_s23 }
 0x120   : > { %s1009_s17 = smov %s871_s18  ;;  %s1010_s18 = smov %s1012_s20 }
 0x121   :  { %13 = sbr.rel (!%p11_p12) target bundleno = 3 (0x3), region = 129 }

// kernel: resnet18_forward.29
= control target key start
LH: loop header
LB: loop body
LE: loop exit
PB: predicated region body
PF: predicated region fallthrough
CT: control target
= control target key end

     0   :  { %s798_s12 = smov 0   ;;  %s800_s13 = smov 0   ;;  %s891_s0 = inlined_call_operand.vmem [shape: bf16[32,1152], index: 0, kind: input, shape index: {}]   ;;  %s892_s1 = inlined_call_operand.vmem [shape: bf16[1152,128], index: 1, kind: input, shape index: {}]   ;;  %s893_s2 = inlined_call_operand.vmem [shape: f32[1,128], index: 2, kind: input, shape index: {}]   ;;  %s894_s3 = inlined_call_operand.vmem [shape: bf16[32,128], index: 3, kind: output, shape index: {}]  }
   0x1   :  { %s802_s14 = smov 0   ;;  %s804_s15 = smov 0  }
   0x2   :  { %s806_s16 = smov 0  }
   0x3 LB: > { %s25_s17 = sadd.s32 1, %s771_s15  ;;  %p48_p1 = scmp.ne.s32.totalorder %s763_s13, %s759_s12  ;;  %s775_s16 = sphi %s806_s16, %s13_s16   ;;  %s771_s15 = sphi %s804_s15, %s898_s15   ;;  %s767_s14 = sphi %s802_s14, %s897_s14   ;;  %s763_s13 = sphi %s800_s13, %s896_s13   ;;  %s759_s12 = sphi %s798_s12, %s895_s12  }
   0x4   : > { %p26_p0 = scmp.ge.s32.totalorder %s25_s17, 9  ;;  %p49_p2 = scmp.eq.s32.totalorder %s775_s16, 0 }
   0x5   : > { %s41_s19 = sadd.s32 1, %s763_s13  ;;  %p613_p5 = scmp.ge.s32.totalorder %s775_s16, 9 }
   0x6   : > { %s900_s17 = smov (%p26_p0, %s25_s17), 0  ;;  %p50_p3 = por %p49_p2, %p48_p1 }
   0x7   : > { %s37_s18 = ssub.s32 %s771_s15, %s900_s17  ;;  %162 = sbr.rel (%p613_p5) target bundleno = 18 (0x12), region = 20 }
   0x8   : > { %p39_p4 = scmp.eq.s32.totalorder %s37_s18, 0 }
   0xa   : > { %s833_s20 = scalar_select %p39_p4, %s763_s13, %s41_s19  }
   0xc   : > { %165 = sbr.rel (!%p50_p3) target bundleno = 18 (0x12), region = 24  ;;  %s167_s21 = sand.u32 (%p50_p3), 1, %s763_s13  }
   0xd   : > { %s615_s22 = sshll.u32 (%p50_p3), %s771_s15, 2  ;;  %s614_s23 = sshll.u32 (%p50_p3), %s167_s21, 4 }
   0xe   : > { %s174_s26 = scalar_lea.vmem (%p50_p3), %s891_s0, %s615_s22  ;;  %s169_s27 = scalar_lea.vmem (%p50_p3), [#allocation3], %s614_s23 }
   0xf   : > { %v191_v0 = vld [vmem:[%s174_s26] sm:$0xf] (%p50_p3)  ;;  %v193_v1 = vld [vmem:[%s174_s26 + $0x24] sm:$0xf] (%p50_p3)  ;;  %v195_v2 = vld [vmem:[%s174_s26 + $0x48] sm:$0xf] (%p50_p3) }
  0x10   : > { %192 = vst [vmem:[%s169_s27] sm:$0xf] (%p50_p3), %v191_v0  ;;  %194 = vst [vmem:[%s169_s27 + $0x4] sm:$0xf] (%p50_p3), %v193_v1  ;;  %v197_v3 = vld [vmem:[%s174_s26 + $0x6c] sm:$0xf] (%p50_p3) }
  0x11   : > { %196 = vst [vmem:[%s169_s27 + $0x8] sm:$0xf] %v195_v2  ;;  %198 = vst [vmem:[%s169_s27 + $0xc] sm:$0xf] %v197_v3 }
  0x12 PF: > { %p616_p6 = scmp.ge.s32.totalorder %s775_s16, 1  ;;  %p241_p7 = scmp.lt.s32.totalorder %s775_s16, 10 }
  0x14   : > { %p242_p8 = pnand %p616_p6, %p241_p7 }
  0x15   : > { %s248_s28 = sand.u32 (!%p242_p8), 1, %s759_s12   ;;  %s618_s29 = sshll.u32 (!%p242_p8), %s767_s14, 4 }
  0x16   : > { %245 = sbr.rel (%p242_p8) target bundleno = 284 (0x11c), region = 69  ;;  %s845_s30 = sshll.u32 (!%p242_p8), %s248_s28, 4 }
  0x17   : > { %p287_p9 = scmp.lt.s32.totalorder (!%p242_p8), %s618_s29, 143  ;;  %s250_s8 = scalar_lea.vmem (!%p242_p8), [#allocation3], %s845_s30 }
  0x18   : > { %p620_p10 = scmp.ne.s32.totalorder (!%p242_p8), %s767_s14, 0 }
  0x1b   : > { %s902_s29 = smov (!%p287_p9, %s618_s29), 143  ;;  %311 = sbr.rel (%p620_p10) target bundleno = 35 (0x23), region = 77 }
  0x1c   : > { %s619_s4 = sshll.u32 %s902_s29, 2 }
  0x1d   : > { %s850_s7 = scalar_lea.vmem %s892_s1, %s619_s4 }
  0x20   : > { %v777_v4 = vmov 0.0  }
  0x21   : > { %312 = vst [vmem:[#allocation2 + $0x10] sm:$0xff] %v777_v4  ;;  %313 = vst [vmem:[#allocation2] sm:$0xff] %v777_v4 }
  0x22   : > { %314 = vst [vmem:[#allocation2 + $0x18] sm:$0xff] %v777_v4  ;;  %315 = vst [vmem:[#allocation2 + $0x8] sm:$0xff] %v777_v4 }
  0x23 PF: > { %v727_v5 = vld [vmem:[%s850_s7 + $0x38] sm:$0xff]   ;;  %v728_v6 = vld [vmem:[%s850_s7 + $0x30] sm:$0xff]   ;;  %v729_v7 = vld [vmem:[%s850_s7 + $0x28] sm:$0xff]   ;;  %p631_p11 = scmp.ne.s32.totalorder %s767_s14, 8 }
  0x24   : > { %666 = vmatprep.subr.bf16.mxu0 %v727_v5  ;;  %v730_v8 = vld [vmem:[%s850_s7 + $0x20] sm:$0xff]   ;;  %v731_v10 = vld [vmem:[%s850_s7 + $0x18] sm:$0xff]   ;;  %v732_v11 = vld [vmem:[%s850_s7 + $0x10] sm:$0xff]  }
  0x25   : > { %667 = vmatpush3.bf16.msra.mxu0 %v727_v5  ;;  %v735_v9 = vld [vmem:[%s250_s8] sm:$0xff]   ;;  %v733_v12 = vld [vmem:[%s850_s7 + $0x8] sm:$0xff]  }
  0x26   : > { %668 = vmatprep.subr.bf16.mxu0 %v728_v6  ;;  %682 = vmatprep.mubr.bf16.mxu0 %v735_v9  ;;  %v734_v13 = vld [vmem:[%s850_s7] sm:$0xff]   ;;  %v736_v14 = vld [vmem:[%s250_s8 + $0x8] sm:$0xff]  }
  0x28   : > { %v316_v17 = vld [vmem:[#allocation2 + $0x10] sm:$0xff]  ;;  %v317_v23 = vld [vmem:[#allocation2] sm:$0xff] }
  0x29   : > { %669 = vmatpush3.bf16.msra.mxu0 %v728_v6  ;;  %v318_v15 = vld [vmem:[#allocation2 + $0x18] sm:$0xff]  ;;  %v319_v20 = vld [vmem:[#allocation2 + $0x8] sm:$0xff] }
  0x2a   : > { %670 = vmatprep.subr.bf16.mxu0 %v729_v7 }
  0x2d   : > { %671 = vmatpush3.bf16.msra.mxu0 %v729_v7 }
  0x2e   : > { %672 = vmatprep.subr.bf16.mxu0 %v730_v8 }
  0x31   : > { %673 = vmatpush3.bf16.msra.mxu0 %v730_v8 }
  0x32   : > { %674 = vmatprep.subr.bf16.mxu0 %v731_v10 }
  0x35   : > { %675 = vmatpush3.bf16.msra.mxu0 %v731_v10 }
  0x36   : > { %676 = vmatprep.subr.bf16.mxu0 %v732_v11 }
  0x39   : > { %677 = vmatpush3.bf16.msra.mxu0 %v732_v11 }
  0x3a   : > { %678 = vmatprep.subr.bf16.mxu0 %v733_v12 }
  0x3d   : > { %679 = vmatpush3.bf16.msra.mxu0 %v733_v12 }
  0x3e   : > { %680 = vmatprep.subr.bf16.mxu0 %v734_v13 }
  0x41   : > { %681 = vmatpush3.bf16.msra.mxu0 %v734_v13 }
  0x44   : > { %683 = vmatmul.mubr.bf16.vlgmr.msra.gmra.mxu0 %v736_v14 }
 0x104   : > { %v684_v16 = vpop.f32.mrf.mxu0 }
 0x105   : > { %v451_v18 = vadd.f32 %v684_v16, %v318_v15 }
 0x106   : > { %v434_v19 = vpop.f32.mrf.mxu0 }
 0x107   : > { %455 = vst [vmem:[#allocation2 + $0x18] sm:$0xff] %v451_v18  ;;  %v449_v21 = vadd.f32 %v434_v19, %v316_v17 }
 0x108   : > { %v685_v22 = vpop.f32.mrf.mxu0 }
 0x109   : > { %453 = vst [vmem:[#allocation2 + $0x10] sm:$0xff] %v449_v21  ;;  %v452_v24 = vadd.f32 %v685_v22, %v319_v20  ;;  %460 = sbr.rel (%p631_p11) target bundleno = 284 (0x11c), region = 81 }
 0x10a   : > { %v437_v25 = vpop.f32.mrf.mxu0 }
 0x10b   : > { %456 = vst [vmem:[#allocation2 + $0x8] sm:$0xff] %v452_v24  ;;  %v450_v26 = vadd.f32 %v437_v25, %v317_v23 }
 0x10d   : > { %454 = vst [vmem:[#allocation2] sm:$0xff] %v450_v26 }
 0x10e   : > { %v632_v29 = vld [vmem:[%s893_s2] ss:$0 sm:$0xff]  ;;  %v463_v32 = vld [vmem:[#allocation2 + $0x18] sm:$0xff] }
 0x10f   : > { %v474_v34 = vadd.f32 %v632_v29, %v463_v32 }
 0x110   : > { %v461_v27 = vld [vmem:[#allocation2 + $0x10] sm:$0xff] }
 0x111   : > { %v472_v30 = vadd.f32 %v632_v29, %v461_v27  ;;  %v478_v38 = vmax.f32 %v474_v34, 0.0 }
 0x112   : > { %v464_v33 = vld [vmem:[#allocation2 + $0x8] sm:$0xff] }
 0x113   : > { %v475_v35 = vadd.f32 %v632_v29, %v464_v33  ;;  %v476_v36 = vmax.f32 %v472_v30, 0.0 }
 0x114   : > { %v462_v28 = vld [vmem:[#allocation2] sm:$0xff] }
 0x115   : > { %v473_v31 = vadd.f32 %v632_v29, %v462_v28  ;;  %v479_v39 = vmax.f32 %v475_v35, 0.0 }
 0x117   : > { %v477_v37 = vmax.f32 %v473_v31, 0.0  ;;  %v653_v41 = vpack.c.bf16 %v479_v39, %v478_v38 }
 0x119   : > { %v648_v40 = vpack.c.bf16 %v477_v37, %v476_v36  ;;  %655 = vst [vmem:[%s894_s3 + $0x8] sm:$0xff] %v653_v41  }
 0x11b   : > { %649 = vst [vmem:[%s894_s3] sm:$0xff] %v648_v40  }
 0x11c PF: > { %s13_s16 = sadd.s32 1, %s775_s16   ;;  %s895_s12 = smov %s763_s13 }
 0x11d   : > { %p10_p12 = scmp.ge.s32.totalorder %s13_s16, 11   ;;  %s896_s13 = smov %s833_s20 }
 0x11e   : > { %s897_s14 = smov %s771_s15  ;;  %s898_s15 = smov %s900_s17 }
 0x11f   :  { %12 = sbr.rel (!%p10_p12) target bundleno = 3 (0x3), region = 122 }

// kernel: resnet18_forward.32
= control target key start
LH: loop header
LB: loop body
LE: loop exit
PB: predicated region body
PF: predicated region fallthrough
CT: control target
= control target key end

     0   :  { %s817_s12 = smov 0   ;;  %s819_s13 = smov 0   ;;  %s916_s0 = inlined_call_operand.vmem [shape: bf16[16,1152], index: 0, kind: input, shape index: {}]   ;;  %s917_s1 = inlined_call_operand.vmem [shape: bf16[1152,256], index: 1, kind: input, shape index: {}]   ;;  %s918_s2 = inlined_call_operand.vmem [shape: f32[1,256], index: 2, kind: input, shape index: {}]   ;;  %s919_s3 = inlined_call_operand.vmem [shape: bf16[16,256], index: 3, kind: output, shape index: {}]  }
   0x1   :  { %s821_s14 = smov 0   ;;  %s823_s15 = smov 0  }
   0x2   :  { %s825_s16 = smov 0  }
   0x3 LB: > { %s25_s17 = sadd.s32 1, %s789_s15  ;;  %p48_p1 = scmp.ne.s32.totalorder %s781_s13, %s777_s12  ;;  %s793_s16 = sphi %s825_s16, %s13_s16   ;;  %s789_s15 = sphi %s823_s15, %s923_s15   ;;  %s785_s14 = sphi %s821_s14, %s922_s14   ;;  %s781_s13 = sphi %s819_s13, %s921_s13   ;;  %s777_s12 = sphi %s817_s12, %s920_s12  }
   0x4   : > { %p26_p0 = scmp.ge.s32.totalorder %s25_s17, 9  ;;  %p49_p2 = scmp.eq.s32.totalorder %s793_s16, 0 }
   0x5   : > { %s41_s19 = sadd.s32 1, %s781_s13  ;;  %p652_p5 = scmp.ge.s32.totalorder %s793_s16, 9 }
   0x6   : > { %s925_s17 = smov (%p26_p0, %s25_s17), 0  ;;  %p50_p3 = por %p49_p2, %p48_p1 }
   0x7   : > { %s37_s18 = ssub.s32 %s789_s15, %s925_s17  ;;  %164 = sbr.rel (%p652_p5) target bundleno = 17 (0x11), region = 20 }
   0x8   : > { %p39_p4 = scmp.eq.s32.totalorder %s37_s18, 0 }
   0xa   : > { %s852_s20 = scalar_select %p39_p4, %s781_s13, %s41_s19  }
   0xc   : > { %167 = sbr.rel (!%p50_p3) target bundleno = 17 (0x11), region = 24  ;;  %s169_s21 = sand.u32 (%p50_p3), 1, %s781_s13  }
   0xd   : > { %s654_s22 = sshll.u32 (%p50_p3), %s789_s15, 2  ;;  %s653_s23 = sshll.u32 (%p50_p3), %s169_s21, 3 }
   0xe   : > { %s176_s26 = scalar_lea.vmem (%p50_p3), %s916_s0, %s654_s22  ;;  %s171_s27 = scalar_lea.vmem (%p50_p3), [#allocation3], %s653_s23 }
   0xf   : > { %v193_v0 = vld [vmem:[%s176_s26] sm:$0xf] (%p50_p3)  ;;  %v195_v1 = vld [vmem:[%s176_s26 + $0x24] sm:$0xf] (%p50_p3) }
  0x10   : > { %194 = vst [vmem:[%s171_s27] sm:$0xf] (%p50_p3), %v193_v0  ;;  %196 = vst [vmem:[%s171_s27 + $0x4] sm:$0xf] (%p50_p3), %v195_v1 }
  0x11 PF: > { %p655_p6 = scmp.ge.s32.totalorder %s793_s16, 1  ;;  %p238_p7 = scmp.lt.s32.totalorder %s793_s16, 10 }
  0x13   : > { %p239_p8 = pnand %p655_p6, %p238_p7 }
  0x14   : > { %s245_s28 = sand.u32 (!%p239_p8), 1, %s777_s12   ;;  %s657_s29 = sshll.u32 (!%p239_p8), %s785_s14, 4 }
  0x15   : > { %242 = sbr.rel (%p239_p8) target bundleno = 284 (0x11c), region = 69  ;;  %s864_s30 = sshll.u32 (!%p239_p8), %s245_s28, 3 }
  0x16   : > { %p290_p9 = scmp.lt.s32.totalorder (!%p239_p8), %s657_s29, 143  ;;  %s247_s8 = scalar_lea.vmem (!%p239_p8), [#allocation3], %s864_s30 }
  0x17   : > { %p660_p10 = scmp.ne.s32.totalorder (!%p239_p8), %s785_s14, 0 }
  0x1a   : > { %s927_s29 = smov (!%p290_p9, %s657_s29), 143  ;;  %321 = sbr.rel (%p660_p10) target bundleno = 34 (0x22), region = 77 }
  0x1b   : > { %s685_s4 = sshll.u32 %s927_s29, 3 }
  0x1c   : > { %s869_s7 = scalar_lea.vmem %s917_s1, %s685_s4 }
  0x1f   : > { %v795_v2 = vmov 0.0  }
  0x20   : > { %322 = vst [vmem:[#allocation2 + $0x10] sm:$0xff] %v795_v2  ;;  %323 = vst [vmem:[#allocation2] sm:$0xff] %v795_v2 }
  0x21   : > { %324 = vst [vmem:[#allocation2 + $0x18] sm:$0xff] %v795_v2  ;;  %325 = vst [vmem:[#allocation2 + $0x8] sm:$0xff] %v795_v2 }
  0x22 PF: > { %v730_v3 = vld [vmem:[%s869_s7 + $0x74] ss:$8 sps:$4 sm:$0xff]   ;;  %v732_v4 = vld [vmem:[%s869_s7 + $0x70] ss:$8 sps:$4 sm:$0xff]   ;;  %v796_v5 = vmov 0   ;;  %v754_v20 = vld [vmem:[%s247_s8] sm:$0xff]  }
  0x23   : > { %466 = vmatprep.mubr.bf16.mxu0 %v796_v5  ;;  %434 = vmatprep.subr.bf16.mxu0 %v730_v3  ;;  %v733_v6 = vld [vmem:[%s869_s7 + $0x64] ss:$8 sps:$4 sm:$0xff]   ;;  %v735_v7 = vld [vmem:[%s869_s7 + $0x60] ss:$8 sps:$4 sm:$0xff]   ;;  %v736_v8 = vld [vmem:[%s869_s7 + $0x54] ss:$8 sps:$4 sm:$0xff]  }
  0x24   : > { %435 = vmatpush1.bf16.msra.mxu0 %v732_v4  ;;  %v738_v9 = vld [vmem:[%s869_s7 + $0x50] ss:$8 sps:$4 sm:$0xff]   ;;  %v739_v10 = vld [vmem:[%s869_s7 + $0x44] ss:$8 sps:$4 sm:$0xff]   ;;  %v741_v11 = vld [vmem:[%s869_s7 + $0x40] ss:$8 sps:$4 sm:$0xff]  }
  0x25   : > { %436 = vmatprep.subr.bf16.mxu0 %v733_v6  ;;  %v742_v12 = vld [vmem:[%s869_s7 + $0x34] ss:$8 sps:$4 sm:$0xff]   ;;  %v744_v13 = vld [vmem:[%s869_s7 + $0x30] ss:$8 sps:$4 sm:$0xff]   ;;  %v745_v14 = vld [vmem:[%s869_s7 + $0x24] ss:$8 sps:$4 sm:$0xff]  }
  0x26   : > { %v747_v15 = vld [vmem:[%s869_s7 + $0x20] ss:$8 sps:$4 sm:$0xff]   ;;  %v748_v16 = vld [vmem:[%s869_s7 + $0x14] ss:$8 sps:$4 sm:$0xff]   ;;  %v750_v17 = vld [vmem:[%s869_s7 + $0x10] ss:$8 sps:$4 sm:$0xff]  }
  0x27   : > { %v751_v18 = vld [vmem:[%s869_s7 + $0x4] ss:$8 sps:$4 sm:$0xff]   ;;  %v753_v19 = vld [vmem:[%s869_s7] ss:$8 sps:$4 sm:$0xff]   ;;  %v326_v21 = vld [vmem:[#allocation2 + $0x10] sm:$0xff]  ;;  %p678_p11 = scmp.ne.s32.totalorder %s785_s14, 8 }
  0x28   : > { %437 = vmatpush1.bf16.msra.mxu0 %v735_v7  ;;  %v327_v23 = vld [vmem:[#allocation2] sm:$0xff]  ;;  %v328_v26 = vld [vmem:[#allocation2 + $0x18] sm:$0xff]  ;;  %v329_v29 = vld [vmem:[#allocation2 + $0x8] sm:$0xff] }
  0x29   : > { %438 = vmatprep.subr.bf16.mxu0 %v736_v8 }
  0x2c   : > { %439 = vmatpush1.bf16.msra.mxu0 %v738_v9 }
  0x2d   : > { %440 = vmatprep.subr.bf16.mxu0 %v739_v10 }
  0x30   : > { %441 = vmatpush1.bf16.msra.mxu0 %v741_v11 }
  0x31   : > { %442 = vmatprep.subr.bf16.mxu0 %v742_v12 }
  0x34   : > { %443 = vmatpush1.bf16.msra.mxu0 %v744_v13 }
  0x35   : > { %444 = vmatprep.subr.bf16.mxu0 %v745_v14 }
  0x38   : > { %445 = vmatpush1.bf16.msra.mxu0 %v747_v15 }
  0x39   : > { %446 = vmatprep.subr.bf16.mxu0 %v748_v16 }
  0x3c   : > { %447 = vmatpush1.bf16.msra.mxu0 %v750_v17 }
  0x3d   : > { %448 = vmatprep.subr.bf16.mxu0 %v751_v18 }
  0x40   : > { %449 = vmatpush1.bf16.msra.mxu0 %v753_v19 }
  0x43   : > { %467 = vmatmul.mubr.bf16.vlgmr.msra.gmra.mxu0 %v754_v20 }
 0x103   : > { %v468_v22 = vpop.f32.mrf.mxu0 }
 0x104   : > { %v477_v24 = vadd.f32 %v468_v22, %v326_v21 }
 0x105   : > { %v470_v25 = vpop.f32.mrf.mxu0 }
 0x106   : > { %481 = vst [vmem:[#allocation2 + $0x10] sm:$0xff] %v477_v24  ;;  %v478_v27 = vadd.f32 %v470_v25, %v327_v23 }
 0x107   : > { %v472_v28 = vpop.f32.mrf.mxu0 }
 0x108   : > { %482 = vst [vmem:[#allocation2] sm:$0xff] %v478_v27  ;;  %v479_v30 = vadd.f32 %v472_v28, %v328_v26  ;;  %488 = sbr.rel (%p678_p11) target bundleno = 284 (0x11c), region = 81 }
 0x109   : > { %v474_v31 = vpop.f32.mrf.mxu0 }
 0x10a   : > { %483 = vst [vmem:[#allocation2 + $0x18] sm:$0xff] %v479_v30  ;;  %v480_v32 = vadd.f32 %v474_v31, %v329_v29 }
 0x10c   : > { %484 = vst [vmem:[#allocation2 + $0x8] sm:$0xff] %v480_v32 }
 0x10d   : > { %v495_v33 = vlaneseq  ;;  %v493_v35 = vld [vmem:[%s918_s2] sm:$0x3]  ;;  %v489_v36 = vld [vmem:[#allocation2 + $0x10] sm:$0xff] }
 0x10f   : > { %v496_v34 = vshrl.u32 %v495_v33, 7  ;;  %v490_v39 = vld [vmem:[#allocation2] sm:$0xff] }
 0x111   : > { %v497_v37 = vsub.s32 0, %v496_v34  ;;  %v501_v38 = vsub.s32 1, %v496_v34  ;;  %v491_v40 = vld [vmem:[#allocation2 + $0x18] sm:$0xff] }
 0x113   : > { %v492_v41 = vld [vmem:[#allocation2 + $0x8] sm:$0xff]  ;;  %v498_v42 = vrot.slane %v493_v35, %v497_v37  ;;  %v502_v43 = vrot.slane %v493_v35, %v501_v38 }
 0x115   : > { %v505_v44 = vadd.f32 %v498_v42, %v489_v36  ;;  %v506_v45 = vadd.f32 %v502_v43, %v490_v39  ;;  %v507_v46 = vadd.f32 %v498_v42, %v491_v40  ;;  %v508_v47 = vadd.f32 %v502_v43, %v492_v41 }
 0x117   : > { %v509_v48 = vmax.f32 %v505_v44, 0.0  ;;  %v510_v49 = vmax.f32 %v506_v45, 0.0  ;;  %v511_v50 = vmax.f32 %v507_v46, 0.0  ;;  %v512_v51 = vmax.f32 %v508_v47, 0.0 }
 0x119   : > { %v686_v52 = vpack.c.bf16 %v510_v49, %v509_v48  ;;  %v687_v53 = vpack.c.bf16 %v512_v51, %v511_v50 }
 0x11b   : > { %525 = vst [vmem:[%s919_s3] sm:$0xff] %v686_v52  ;;  %526 = vst [vmem:[%s919_s3 + $0x8] sm:$0xff] %v687_v53 }
 0x11c PF: > { %s13_s16 = sadd.s32 1, %s793_s16   ;;  %s920_s12 = smov %s781_s13 }
 0x11d   : > { %p10_p12 = scmp.ge.s32.totalorder %s13_s16, 11   ;;  %s921_s13 = smov %s852_s20 }
 0x11e   : > { %s922_s14 = smov %s789_s15  ;;  %s923_s15 = smov %s925_s17 }
 0x11f   :  { %12 = sbr.rel (!%p10_p12) target bundleno = 3 (0x3), region = 122 }

// kernel: resnet18_forward.31
= control target key start
LH: loop header
LB: loop body
LE: loop exit
PB: predicated region body
PF: predicated region fallthrough
CT: control target
= control target key end

     0   :  { %v270_v1 = vmov 0   ;;  %v191_v18 = vlaneseq  ;;  %s351_s1 = inlined_call_operand.vmem [shape: bf16[128,256], index: 1, kind: input, shape index: {}]   ;;  %s352_s0 = inlined_call_operand.vmem [shape: bf16[16,128], index: 0, kind: input, shape index: {}]   ;;  %s353_s2 = inlined_call_operand.vmem [shape: f32[1,256], index: 2, kind: input, shape index: {}]   ;;  %s354_s3 = inlined_call_operand.vmem [shape: bf16[16,256], index: 3, kind: output, shape index: {}]  }
   0x1   :  { %v245_v0 = vld [vmem:[%s351_s1 + $0x74] ss:$8 sps:$4 sm:$0xff]   ;;  %163 = vmatprep.mubr.bf16.mxu0 %v270_v1  ;;  %v247_v2 = vld [vmem:[%s351_s1 + $0x70] ss:$8 sps:$4 sm:$0xff]   ;;  %v248_v3 = vld [vmem:[%s351_s1 + $0x64] ss:$8 sps:$4 sm:$0xff]  }
   0x2   :  { %131 = vmatprep.subr.bf16.mxu0 %v245_v0  ;;  %v250_v4 = vld [vmem:[%s351_s1 + $0x60] ss:$8 sps:$4 sm:$0xff]   ;;  %v251_v5 = vld [vmem:[%s351_s1 + $0x54] ss:$8 sps:$4 sm:$0xff]   ;;  %v253_v6 = vld [vmem:[%s351_s1 + $0x50] ss:$8 sps:$4 sm:$0xff]  }
   0x3   :  { %132 = vmatpush1.bf16.msra.mxu0 %v247_v2  ;;  %v254_v7 = vld [vmem:[%s351_s1 + $0x44] ss:$8 sps:$4 sm:$0xff]   ;;  %v256_v8 = vld [vmem:[%s351_s1 + $0x40] ss:$8 sps:$4 sm:$0xff]   ;;  %v257_v9 = vld [vmem:[%s351_s1 + $0x34] ss:$8 sps:$4 sm:$0xff]  }
   0x4   :  { %133 = vmatprep.subr.bf16.mxu0 %v248_v3  ;;  %v259_v10 = vld [vmem:[%s351_s1 + $0x30] ss:$8 sps:$4 sm:$0xff]   ;;  %v260_v11 = vld [vmem:[%s351_s1 + $0x24] ss:$8 sps:$4 sm:$0xff]   ;;  %v262_v12 = vld [vmem:[%s351_s1 + $0x20] ss:$8 sps:$4 sm:$0xff]  }
   0x5   :  { %v263_v13 = vld [vmem:[%s351_s1 + $0x14] ss:$8 sps:$4 sm:$0xff]   ;;  %v265_v14 = vld [vmem:[%s351_s1 + $0x10] ss:$8 sps:$4 sm:$0xff]   ;;  %v266_v15 = vld [vmem:[%s351_s1 + $0x4] ss:$8 sps:$4 sm:$0xff]  }
   0x6   :  { %v268_v16 = vld [vmem:[%s351_s1] ss:$8 sps:$4 sm:$0xff]   ;;  %v192_v19 = vshrl.u32 %v191_v18, 7 }
   0x7   :  { %134 = vmatpush1.bf16.msra.mxu0 %v250_v4  ;;  %v269_v17 = vld [vmem:[%s352_s0] sm:$0xff]  }
   0x8   :  { %135 = vmatprep.subr.bf16.mxu0 %v251_v5  ;;  %v193_v20 = vsub.s32 0, %v192_v19  ;;  %v197_v21 = vsub.s32 1, %v192_v19  ;;  %v189_v22 = vld [vmem:[%s353_s2] sm:$0x3] }
   0xa   :  { %v194_v23 = vrot.slane %v189_v22, %v193_v20  ;;  %v198_v24 = vrot.slane %v189_v22, %v197_v21 }
   0xb   :  { %136 = vmatpush1.bf16.msra.mxu0 %v253_v6 }
   0xc   :  { %137 = vmatprep.subr.bf16.mxu0 %v254_v7 }
   0xf   :  { %138 = vmatpush1.bf16.msra.mxu0 %v256_v8 }
  0x10   :  { %139 = vmatprep.subr.bf16.mxu0 %v257_v9 }
  0x13   :  { %140 = vmatpush1.bf16.msra.mxu0 %v259_v10 }
  0x14   :  { %141 = vmatprep.subr.bf16.mxu0 %v260_v11 }
  0x17   :  { %142 = vmatpush1.bf16.msra.mxu0 %v262_v12 }
  0x18   :  { %143 = vmatprep.subr.bf16.mxu0 %v263_v13 }
  0x1b   :  { %144 = vmatpush1.bf16.msra.mxu0 %v265_v14 }
  0x1c   :  { %145 = vmatprep.subr.bf16.mxu0 %v266_v15 }
  0x1f   :  { %146 = vmatpush1.bf16.msra.mxu0 %v268_v16 }
  0x22   :  { %164 = vmatmul.mubr.bf16.vlgmr.msra.gmra.mxu0 %v269_v17 }
  0xe2   :  { %v165_v25 = vpop.f32.mrf.mxu0 }
  0xe3   :  { %v201_v27 = vadd.f32 %v194_v23, %v165_v25 }
  0xe4   :  { %v167_v26 = vpop.f32.mrf.mxu0 }
  0xe5   :  { %v202_v28 = vadd.f32 %v198_v24, %v167_v26 }
  0xe6   :  { %v169_v29 = vpop.f32.mrf.mxu0 }
  0xe7   :  { %v242_v30 = vpack.c.bf16 %v202_v28, %v201_v27  ;;  %v203_v32 = vadd.f32 %v194_v23, %v169_v29 }
  0xe8   :  { %v171_v31 = vpop.f32.mrf.mxu0 }
  0xe9   :  { %217 = vst [vmem:[%s354_s3] sm:$0xff] %v242_v30  ;;  %v204_v33 = vadd.f32 %v198_v24, %v171_v31 }
  0xeb   :  { %v243_v34 = vpack.c.bf16 %v204_v33, %v203_v32 }
  0xed   :  { %218 = vst [vmem:[%s354_s3 + $0x8] sm:$0xff] %v243_v34 }

// kernel: resnet18_forward.33
= control target key start
LH: loop header
LB: loop body
LE: loop exit
PB: predicated region body
PF: predicated region fallthrough
CT: control target
= control target key end

     0   :  { %s1059_s15 = smov 0   ;;  %s1061_s16 = smov 0   ;;  %s1182_s0 = inlined_call_operand.vmem [shape: bf16[16,2304], index: 0, kind: input, shape index: {}]   ;;  %s1183_s1 = inlined_call_operand.vmem [shape: bf16[2304,256], index: 1, kind: input, shape index: {}]   ;;  %s1184_s2 = inlined_call_operand.vmem [shape: f32[1,256], index: 2, kind: input, shape index: {}]   ;;  %s1185_s3 = inlined_call_operand.vmem [shape: bf16[16,256], index: 3, kind: input, shape index: {}]   ;;  %s1186_s4 = inlined_call_operand.vmem [shape: bf16[16,256], index: 4, kind: output, shape index: {}]  }
   0x1   :  { %s1063_s17 = smov 0   ;;  %s1065_s18 = smov 0  }
   0x2   :  { %s1067_s19 = smov 0  }
   0x3 LB: > { %s26_s20 = sadd.s32 1, %s1027_s18  ;;  %p49_p1 = scmp.ne.s32.totalorder %s1019_s16, %s1015_s15  ;;  %s1031_s19 = sphi %s1067_s19, %s14_s19   ;;  %s1027_s18 = sphi %s1065_s18, %s1190_s18   ;;  %s1023_s17 = sphi %s1063_s17, %s1189_s17   ;;  %s1019_s16 = sphi %s1061_s16, %s1188_s16   ;;  %s1015_s15 = sphi %s1059_s15, %s1187_s15  }
   0x4   : > { %p27_p0 = scmp.ge.s32.totalorder %s26_s20, 9  ;;  %p50_p2 = scmp.eq.s32.totalorder %s1031_s19, 0 }
   0x5   : > { %s42_s22 = sadd.s32 1, %s1019_s16  ;;  %p846_p5 = scmp.ge.s32.totalorder %s1031_s19, 9 }
   0x6   : > { %s1192_s20 = smov (%p27_p0, %s26_s20), 0  ;;  %p51_p3 = por %p50_p2, %p49_p1 }
   0x7   : > { %s38_s21 = ssub.s32 %s1027_s18, %s1192_s20  ;;  %208 = sbr.rel (%p846_p5) target bundleno = 17 (0x11), region = 24 }
   0x8   : > { %p40_p4 = scmp.eq.s32.totalorder %s38_s21, 0 }
   0xa   : > { %s1094_s23 = scalar_select %p40_p4, %s1019_s16, %s42_s22  }
   0xc   : > { %211 = sbr.rel (!%p51_p3) target bundleno = 17 (0x11), region = 28  ;;  %s213_s24 = sand.u32 (%p51_p3), 1, %s1019_s16  }
   0xd   : > { %s897_s25 = sshll.u32 (%p51_p3), %s1027_s18, 3  ;;  %s847_s26 = sshll.u32 (%p51_p3), %s213_s24, 4 }
   0xe   : > { %s221_s29 = scalar_lea.vmem (%p51_p3), %s1182_s0, %s897_s25  ;;  %s215_s30 = scalar_lea.vmem (%p51_p3), [#allocation3], %s847_s26 }
   0xf   : > { %v252_v0 = vld [vmem:[%s221_s29] sm:$0xff] (%p51_p3)  ;;  %v254_v1 = vld [vmem:[%s221_s29 + $0x48] sm:$0xff] (%p51_p3) }
  0x10   : > { %253 = vst [vmem:[%s215_s30] sm:$0xff] (%p51_p3), %v252_v0  ;;  %255 = vst [vmem:[%s215_s30 + $0x8] sm:$0xff] (%p51_p3), %v254_v1 }
  0x11 PF: > { %p850_p6 = scmp.ge.s32.totalorder %s1031_s19, 1  ;;  %p275_p7 = scmp.lt.s32.totalorder %s1031_s19, 10 }
  0x13   : > { %p276_p8 = pnand %p850_p6, %p275_p7 }
  0x14   : > { %s282_s5 = sand.u32 (!%p276_p8), 1, %s1015_s15   ;;  %s852_s6 = sshll.u32 (!%p276_p8), %s1023_s17, 5 }
  0x15   : > { %279 = sbr.rel (%p276_p8) target bundleno = 318 (0x13e), region = 70  ;;  %s1106_s7 = sshll.u32 (!%p276_p8), %s282_s5, 4 }
  0x16   : > { %p340_p9 = scmp.lt.s32.totalorder (!%p276_p8), %s852_s6, 287  ;;  %s284_s12 = scalar_lea.vmem (!%p276_p8), [#allocation3], %s1106_s7 }
  0x17   : > { %p855_p10 = scmp.ne.s32.totalorder (!%p276_p8), %s1023_s17, 0 }
  0x1a   : > { %s1194_s6 = smov (!%p340_p9, %s852_s6), 287  ;;  %382 = sbr.rel (%p855_p10) target bundleno = 34 (0x22), region = 78 }
  0x1b   : > { %s898_s8 = sshll.u32 %s1194_s6, 3 }
  0x1c   : > { %s1111_s11 = scalar_lea.vmem %s1183_s1, %s898_s8 }
  0x1f   : > { %v1033_v2 = vmov 0.0  }
  0x20   : > { %383 = vst [vmem:[#allocation2 + $0x10] sm:$0xff] %v1033_v2  ;;  %384 = vst [vmem:[#allocation2] sm:$0xff] %v1033_v2 }
  0x21   : > { %385 = vst [vmem:[#allocation2 + $0x18] sm:$0xff] %v1033_v2  ;;  %386 = vst [vmem:[#allocation2 + $0x8] sm:$0xff] %v1033_v2 }
  0x22 PF: > { %v942_v3 = vld [vmem:[%s1111_s11 + $0x74] ss:$8 sps:$4 sm:$0xff]   ;;  %v944_v4 = vld [vmem:[%s1111_s11 + $0x70] ss:$8 sps:$4 sm:$0xff]   ;;  %v945_v5 = vld [vmem:[%s1111_s11 + $0x64] ss:$8 sps:$4 sm:$0xff]  }
  0x23   : > { %595 = vmatprep.subr.bf16.mxu0 %v942_v3  ;;  %v947_v6 = vld [vmem:[%s1111_s11 + $0x60] ss:$8 sps:$4 sm:$0xff]   ;;  %v948_v7 = vld [vmem:[%s1111_s11 + $0x54] ss:$8 sps:$4 sm:$0xff]   ;;  %v950_v8 = vld [vmem:[%s1111_s11 + $0x50] ss:$8 sps:$4 sm:$0xff]  }
  0x24   : > { %596 = vmatpush1.bf16.msra.mxu0 %v944_v4  ;;  %v951_v9 = vld [vmem:[%s1111_s11 + $0x44] ss:$8 sps:$4 sm:$0xff]   ;;  %v953_v10 = vld [vmem:[%s1111_s11 + $0x40] ss:$8 sps:$4 sm:$0xff]   ;;  %v954_v11 = vld [vmem:[%s1111_s11 + $0x34] ss:$8 sps:$4 sm:$0xff]  }
  0x25   : > { %597 = vmatprep.subr.bf16.mxu0 %v945_v5  ;;  %v956_v12 = vld [vmem:[%s1111_s11 + $0x30] ss:$8 sps:$4 sm:$0xff]   ;;  %v957_v13 = vld [vmem:[%s1111_s11 + $0x24] ss:$8 sps:$4 sm:$0xff]   ;;  %v959_v14 = vld [vmem:[%s1111_s11 + $0x20] ss:$8 sps:$4 sm:$0xff]  }
  0x26   : > { %v960_v15 = vld [vmem:[%s1111_s11 + $0x14] ss:$8 sps:$4 sm:$0xff]   ;;  %v962_v17 = vld [vmem:[%s1111_s11 + $0x10] ss:$8 sps:$4 sm:$0xff]   ;;  %v963_v18 = vld [vmem:[%s1111_s11 + $0x4] ss:$8 sps:$4 sm:$0xff]  }
  0x27   : > { %v992_v16 = vld [vmem:[%s284_s12 + $0x4] ss:$8 sps:$4 sm:$0xff]   ;;  %v965_v19 = vld [vmem:[%s1111_s11] ss:$8 sps:$4 sm:$0xff]   ;;  %v968_v21 = vld [vmem:[%s1111_s11 + $0xf0] ss:$8 sps:$4 sm:$0xff]  }
  0x28   : > { %598 = vmatpush1.bf16.msra.mxu0 %v947_v6  ;;  %627 = vmatprep.mubr.bf16.mxu0 %v992_v16  ;;  %v966_v20 = vld [vmem:[%s1111_s11 + $0xf4] ss:$8 sps:$4 sm:$0xff]   ;;  %v969_v22 = vld [vmem:[%s1111_s11 + $0xe4] ss:$8 sps:$4 sm:$0xff]   ;;  %v971_v23 = vld [vmem:[%s1111_s11 + $0xe0] ss:$8 sps:$4 sm:$0xff]  }
  0x29   : > { %599 = vmatprep.subr.bf16.mxu0 %v948_v7  ;;  %v972_v24 = vld [vmem:[%s1111_s11 + $0xd4] ss:$8 sps:$4 sm:$0xff]   ;;  %v974_v25 = vld [vmem:[%s1111_s11 + $0xd0] ss:$8 sps:$4 sm:$0xff]   ;;  %v975_v26 = vld [vmem:[%s1111_s11 + $0xc4] ss:$8 sps:$4 sm:$0xff]  }
  0x2a   : > { %v977_v27 = vld [vmem:[%s1111_s11 + $0xc0] ss:$8 sps:$4 sm:$0xff]   ;;  %v978_v28 = vld [vmem:[%s1111_s11 + $0xb4] ss:$8 sps:$4 sm:$0xff]   ;;  %v980_v29 = vld [vmem:[%s1111_s11 + $0xb0] ss:$8 sps:$4 sm:$0xff]  }
  0x2b   : > { %v981_v30 = vld [vmem:[%s1111_s11 + $0xa4] ss:$8 sps:$4 sm:$0xff]   ;;  %v983_v31 = vld [vmem:[%s1111_s11 + $0xa0] ss:$8 sps:$4 sm:$0xff]   ;;  %v984_v32 = vld [vmem:[%s1111_s11 + $0x94] ss:$8 sps:$4 sm:$0xff]  }
  0x2c   : > { %600 = vmatpush1.bf16.msra.mxu0 %v950_v8  ;;  %v986_v33 = vld [vmem:[%s1111_s11 + $0x90] ss:$8 sps:$4 sm:$0xff]   ;;  %v987_v34 = vld [vmem:[%s1111_s11 + $0x84] ss:$8 sps:$4 sm:$0xff]   ;;  %v989_v35 = vld [vmem:[%s1111_s11 + $0x80] ss:$8 sps:$4 sm:$0xff]  }
  0x2d   : > { %601 = vmatprep.subr.bf16.mxu0 %v951_v9  ;;  %v990_v36 = vld [vmem:[%s284_s12] ss:$8 sps:$4 sm:$0xff]   ;;  %p890_p11 = scmp.ne.s32.totalorder %s1023_s17, 8 }
  0x2e   : > { %v387_v37 = vld [vmem:[#allocation2 + $0x10] sm:$0xff]  ;;  %v388_v39 = vld [vmem:[#allocation2] sm:$0xff]  ;;  %v389_v42 = vld [vmem:[#allocation2 + $0x18] sm:$0xff] }
  0x2f   : > { %v390_v45 = vld [vmem:[#allocation2 + $0x8] sm:$0xff] }
  0x30   : > { %602 = vmatpush1.bf16.msra.mxu0 %v953_v10 }
  0x31   : > { %603 = vmatprep.subr.bf16.mxu0 %v954_v11 }
  0x34   : > { %604 = vmatpush1.bf16.msra.mxu0 %v956_v12 }
  0x35   : > { %605 = vmatprep.subr.bf16.mxu0 %v957_v13 }
  0x38   : > { %606 = vmatpush1.bf16.msra.mxu0 %v959_v14 }
  0x39   : > { %607 = vmatprep.subr.bf16.mxu0 %v960_v15 }
  0x3c   : > { %608 = vmatpush1.bf16.msra.mxu0 %v962_v17 }
  0x3d   : > { %609 = vmatprep.subr.bf16.mxu0 %v963_v18 }
  0x40   : > { %610 = vmatpush1.bf16.msra.mxu0 %v965_v19 }
  0x41   : > { %611 = vmatprep.subr.bf16.mxu0 %v966_v20 }
  0x44   : > { %612 = vmatpush2.bf16.msra.mxu0 %v968_v21 }
  0x45   : > { %613 = vmatprep.subr.bf16.mxu0 %v969_v22 }
  0x48   : > { %614 = vmatpush2.bf16.msra.mxu0 %v971_v23 }
  0x49   : > { %615 = vmatprep.subr.bf16.mxu0 %v972_v24 }
  0x4c   : > { %616 = vmatpush2.bf16.msra.mxu0 %v974_v25 }
  0x4d   : > { %617 = vmatprep.subr.bf16.mxu0 %v975_v26 }
  0x50   : > { %618 = vmatpush2.bf16.msra.mxu0 %v977_v27 }
  0x51   : > { %619 = vmatprep.subr.bf16.mxu0 %v978_v28 }
  0x54   : > { %620 = vmatpush2.bf16.msra.mxu0 %v980_v29 }
  0x55   : > { %621 = vmatprep.subr.bf16.mxu0 %v981_v30 }
  0x58   : > { %622 = vmatpush2.bf16.msra.mxu0 %v983_v31 }
  0x59   : > { %623 = vmatprep.subr.bf16.mxu0 %v984_v32 }
  0x5c   : > { %624 = vmatpush2.bf16.msra.mxu0 %v986_v33 }
  0x5d   : > { %625 = vmatprep.subr.bf16.mxu0 %v987_v34 }
  0x60   : > { %626 = vmatpush2.bf16.msra.mxu0 %v989_v35 }
  0x63   : > { %628 = vmatmul.mubr.bf16.vlgmr.msra.gmra.mxu0 %v990_v36 }
 0x123   : > { %v629_v38 = vpop.f32.mrf.mxu0 }
 0x124   : > { %v638_v40 = vadd.f32 %v629_v38, %v387_v37 }
 0x125   : > { %v631_v41 = vpop.f32.mrf.mxu0 }
 0x126   : > { %642 = vst [vmem:[#allocation2 + $0x10] sm:$0xff] %v638_v40  ;;  %v639_v43 = vadd.f32 %v631_v41, %v388_v39 }
 0x127   : > { %v633_v44 = vpop.f32.mrf.mxu0 }
 0x128   : > { %643 = vst [vmem:[#allocation2] sm:$0xff] %v639_v43  ;;  %v640_v46 = vadd.f32 %v633_v44, %v389_v42  ;;  %649 = sbr.rel (%p890_p11) target bundleno = 318 (0x13e), region = 82 }
 0x129   : > { %v635_v47 = vpop.f32.mrf.mxu0 }
 0x12a   : > { %644 = vst [vmem:[#allocation2 + $0x18] sm:$0xff] %v640_v46  ;;  %v641_v48 = vadd.f32 %v635_v47, %v390_v45 }
 0x12c   : > { %645 = vst [vmem:[#allocation2 + $0x8] sm:$0xff] %v641_v48 }
 0x12d   : > { %v656_v49 = vlaneseq  ;;  %v670_v51 = vld [vmem:[%s1185_s3] sm:$0xff]  ;;  %v671_v53 = vld [vmem:[%s1185_s3 + $0x8] sm:$0xff]  ;;  %v650_v54 = vld [vmem:[#allocation2 + $0x10] sm:$0xff] }
 0x12e   : > { %v654_v52 = vld [vmem:[%s1184_s2] sm:$0x3]  ;;  %v672_v58 = vunpack.c.l.bf16 %v670_v51  ;;  %v673_v59 = vunpack.c.h.bf16 %v670_v51  ;;  %v674_v0 = vunpack.c.l.bf16 %v671_v53  ;;  %v675_v1 = vunpack.c.h.bf16 %v671_v53 }
 0x12f   : > { %v657_v50 = vshrl.u32 %v656_v49, 7  ;;  %v651_v57 = vld [vmem:[#allocation2] sm:$0xff] }
 0x131   : > { %v658_v55 = vsub.s32 0, %v657_v50  ;;  %v662_v56 = vsub.s32 1, %v657_v50  ;;  %v652_v60 = vld [vmem:[#allocation2 + $0x18] sm:$0xff] }
 0x133   : > { %v653_v61 = vld [vmem:[#allocation2 + $0x8] sm:$0xff]  ;;  %v659_v62 = vrot.slane %v654_v52, %v658_v55  ;;  %v663_v63 = vrot.slane %v654_v52, %v662_v56 }
 0x135   : > { %v666_v2 = vadd.f32 %v659_v62, %v650_v54  ;;  %v667_v3 = vadd.f32 %v663_v63, %v651_v57  ;;  %v668_v4 = vadd.f32 %v659_v62, %v652_v60  ;;  %v669_v5 = vadd.f32 %v663_v63, %v653_v61 }
 0x137   : > { %v676_v6 = vadd.f32 %v672_v58, %v666_v2  ;;  %v677_v7 = vadd.f32 %v673_v59, %v667_v3  ;;  %v678_v8 = vadd.f32 %v674_v0, %v668_v4  ;;  %v679_v9 = vadd.f32 %v675_v1, %v669_v5 }
 0x139   : > { %v680_v10 = vmax.f32 %v676_v6, 0.0  ;;  %v681_v11 = vmax.f32 %v677_v7, 0.0  ;;  %v682_v12 = vmax.f32 %v678_v8, 0.0  ;;  %v683_v13 = vmax.f32 %v679_v9, 0.0 }
 0x13b   : > { %v899_v14 = vpack.c.bf16 %v681_v11, %v680_v10  ;;  %v900_v15 = vpack.c.bf16 %v683_v13, %v682_v12 }
 0x13d   : > { %696 = vst [vmem:[%s1186_s4] sm:$0xff] %v899_v14  ;;  %697 = vst [vmem:[%s1186_s4 + $0x8] sm:$0xff] %v900_v15 }
 0x13e PF: > { %s14_s19 = sadd.s32 1, %s1031_s19   ;;  %s1187_s15 = smov %s1019_s16 }
 0x13f   : > { %p11_p12 = scmp.ge.s32.totalorder %s14_s19, 11   ;;  %s1188_s16 = smov %s1094_s23 }
 0x140   : > { %s1189_s17 = smov %s1027_s18  ;;  %s1190_s18 = smov %s1192_s20 }
 0x141   :  { %13 = sbr.rel (!%p11_p12) target bundleno = 3 (0x3), region = 126 }

// kernel: resnet18_forward.34
= control target key start
LH: loop header
LB: loop body
LE: loop exit
PB: predicated region body
PF: predicated region fallthrough
CT: control target
= control target key end

     0   :  { %s954_s12 = smov 0   ;;  %s956_s13 = smov 0   ;;  %s1071_s0 = inlined_call_operand.vmem [shape: bf16[16,2304], index: 0, kind: input, shape index: {}]   ;;  %s1072_s1 = inlined_call_operand.vmem [shape: bf16[2304,256], index: 1, kind: input, shape index: {}]   ;;  %s1073_s2 = inlined_call_operand.vmem [shape: f32[1,256], index: 2, kind: input, shape index: {}]   ;;  %s1074_s3 = inlined_call_operand.vmem [shape: bf16[16,256], index: 3, kind: output, shape index: {}]  }
   0x1   :  { %s958_s14 = smov 0   ;;  %s960_s15 = smov 0  }
   0x2   :  { %s962_s16 = smov 0  }
   0x3 LB: > { %s25_s17 = sadd.s32 1, %s927_s15  ;;  %p48_p1 = scmp.ne.s32.totalorder %s919_s13, %s915_s12  ;;  %s931_s16 = sphi %s962_s16, %s13_s16   ;;  %s927_s15 = sphi %s960_s15, %s1078_s15   ;;  %s923_s14 = sphi %s958_s14, %s1077_s14   ;;  %s919_s13 = sphi %s956_s13, %s1076_s13   ;;  %s915_s12 = sphi %s954_s12, %s1075_s12  }
   0x4   : > { %p26_p0 = scmp.ge.s32.totalorder %s25_s17, 9  ;;  %p49_p2 = scmp.eq.s32.totalorder %s931_s16, 0 }
   0x5   : > { %s41_s19 = sadd.s32 1, %s919_s13  ;;  %p746_p5 = scmp.ge.s32.totalorder %s931_s16, 9 }
   0x6   : > { %s1080_s17 = smov (%p26_p0, %s25_s17), 0  ;;  %p50_p3 = por %p49_p2, %p48_p1 }
   0x7   : > { %s37_s18 = ssub.s32 %s927_s15, %s1080_s17  ;;  %164 = sbr.rel (%p746_p5) target bundleno = 17 (0x11), region = 20 }
   0x8   : > { %p39_p4 = scmp.eq.s32.totalorder %s37_s18, 0 }
   0xa   : > { %s989_s20 = scalar_select %p39_p4, %s919_s13, %s41_s19  }
   0xc   : > { %167 = sbr.rel (!%p50_p3) target bundleno = 17 (0x11), region = 24  ;;  %s169_s21 = sand.u32 (%p50_p3), 1, %s919_s13  }
   0xd   : > { %s797_s22 = sshll.u32 (%p50_p3), %s927_s15, 3  ;;  %s747_s23 = sshll.u32 (%p50_p3), %s169_s21, 4 }
   0xe   : > { %s177_s26 = scalar_lea.vmem (%p50_p3), %s1071_s0, %s797_s22  ;;  %s171_s27 = scalar_lea.vmem (%p50_p3), [#allocation3], %s747_s23 }
   0xf   : > { %v208_v0 = vld [vmem:[%s177_s26] sm:$0xff] (%p50_p3)  ;;  %v210_v1 = vld [vmem:[%s177_s26 + $0x48] sm:$0xff] (%p50_p3) }
  0x10   : > { %209 = vst [vmem:[%s171_s27] sm:$0xff] (%p50_p3), %v208_v0  ;;  %211 = vst [vmem:[%s171_s27 + $0x8] sm:$0xff] (%p50_p3), %v210_v1 }
  0x11 PF: > { %p750_p6 = scmp.ge.s32.totalorder %s931_s16, 1  ;;  %p231_p7 = scmp.lt.s32.totalorder %s931_s16, 10 }
  0x13   : > { %p232_p8 = pnand %p750_p6, %p231_p7 }
  0x14   : > { %s238_s28 = sand.u32 (!%p232_p8), 1, %s915_s12   ;;  %s752_s29 = sshll.u32 (!%p232_p8), %s923_s14, 5 }
  0x15   : > { %235 = sbr.rel (%p232_p8) target bundleno = 316 (0x13c), region = 66  ;;  %s1001_s30 = sshll.u32 (!%p232_p8), %s238_s28, 4 }
  0x16   : > { %p284_p9 = scmp.lt.s32.totalorder (!%p232_p8), %s752_s29, 287  ;;  %s240_s8 = scalar_lea.vmem (!%p232_p8), [#allocation3], %s1001_s30 }
  0x17   : > { %p755_p10 = scmp.ne.s32.totalorder (!%p232_p8), %s923_s14, 0 }
  0x1a   : > { %s1082_s29 = smov (!%p284_p9, %s752_s29), 287  ;;  %314 = sbr.rel (%p755_p10) target bundleno = 34 (0x22), region = 74 }
  0x1b   : > { %s798_s4 = sshll.u32 %s1082_s29, 3 }
  0x1c   : > { %s1006_s7 = scalar_lea.vmem %s1072_s1, %s798_s4 }
  0x1f   : > { %v933_v2 = vmov 0.0  }
  0x20   : > { %315 = vst [vmem:[#allocation2 + $0x10] sm:$0xff] %v933_v2  ;;  %316 = vst [vmem:[#allocation2] sm:$0xff] %v933_v2 }
  0x21   : > { %317 = vst [vmem:[#allocation2 + $0x18] sm:$0xff] %v933_v2  ;;  %318 = vst [vmem:[#allocation2 + $0x8] sm:$0xff] %v933_v2 }
  0x22 PF: > { %v842_v3 = vld [vmem:[%s1006_s7 + $0x74] ss:$8 sps:$4 sm:$0xff]   ;;  %v844_v4 = vld [vmem:[%s1006_s7 + $0x70] ss:$8 sps:$4 sm:$0xff]   ;;  %v845_v5 = vld [vmem:[%s1006_s7 + $0x64] ss:$8 sps:$4 sm:$0xff]  }
  0x23   : > { %527 = vmatprep.subr.bf16.mxu0 %v842_v3  ;;  %v847_v6 = vld [vmem:[%s1006_s7 + $0x60] ss:$8 sps:$4 sm:$0xff]   ;;  %v848_v7 = vld [vmem:[%s1006_s7 + $0x54] ss:$8 sps:$4 sm:$0xff]   ;;  %v850_v8 = vld [vmem:[%s1006_s7 + $0x50] ss:$8 sps:$4 sm:$0xff]  }
  0x24   : > { %528 = vmatpush1.bf16.msra.mxu0 %v844_v4  ;;  %v851_v9 = vld [vmem:[%s1006_s7 + $0x44] ss:$8 sps:$4 sm:$0xff]   ;;  %v853_v10 = vld [vmem:[%s1006_s7 + $0x40] ss:$8 sps:$4 sm:$0xff]   ;;  %v854_v11 = vld [vmem:[%s1006_s7 + $0x34] ss:$8 sps:$4 sm:$0xff]  }
  0x25   : > { %529 = vmatprep.subr.bf16.mxu0 %v845_v5  ;;  %v856_v12 = vld [vmem:[%s1006_s7 + $0x30] ss:$8 sps:$4 sm:$0xff]   ;;  %v857_v13 = vld [vmem:[%s1006_s7 + $0x24] ss:$8 sps:$4 sm:$0xff]   ;;  %v859_v14 = vld [vmem:[%s1006_s7 + $0x20] ss:$8 sps:$4 sm:$0xff]  }
  0x26   : > { %v860_v15 = vld [vmem:[%s1006_s7 + $0x14] ss:$8 sps:$4 sm:$0xff]   ;;  %v862_v17 = vld [vmem:[%s1006_s7 + $0x10] ss:$8 sps:$4 sm:$0xff]   ;;  %v863_v18 = vld [vmem:[%s1006_s7 + $0x4] ss:$8 sps:$4 sm:$0xff]  }
  0x27   : > { %v892_v16 = vld [vmem:[%s240_s8 + $0x4] ss:$8 sps:$4 sm:$0xff]   ;;  %v865_v19 = vld [vmem:[%s1006_s7] ss:$8 sps:$4 sm:$0xff]   ;;  %v868_v21 = vld [vmem:[%s1006_s7 + $0xf0] ss:$8 sps:$4 sm:$0xff]  }
  0x28   : > { %530 = vmatpush1.bf16.msra.mxu0 %v847_v6  ;;  %559 = vmatprep.mubr.bf16.mxu0 %v892_v16  ;;  %v866_v20 = vld [vmem:[%s1006_s7 + $0xf4] ss:$8 sps:$4 sm:$0xff]   ;;  %v869_v22 = vld [vmem:[%s1006_s7 + $0xe4] ss:$8 sps:$4 sm:$0xff]   ;;  %v871_v23 = vld [vmem:[%s1006_s7 + $0xe0] ss:$8 sps:$4 sm:$0xff]  }
  0x29   : > { %531 = vmatprep.subr.bf16.mxu0 %v848_v7  ;;  %v872_v24 = vld [vmem:[%s1006_s7 + $0xd4] ss:$8 sps:$4 sm:$0xff]   ;;  %v874_v25 = vld [vmem:[%s1006_s7 + $0xd0] ss:$8 sps:$4 sm:$0xff]   ;;  %v875_v26 = vld [vmem:[%s1006_s7 + $0xc4] ss:$8 sps:$4 sm:$0xff]  }
  0x2a   : > { %v877_v27 = vld [vmem:[%s1006_s7 + $0xc0] ss:$8 sps:$4 sm:$0xff]   ;;  %v878_v28 = vld [vmem:[%s1006_s7 + $0xb4] ss:$8 sps:$4 sm:$0xff]   ;;  %v880_v29 = vld [vmem:[%s1006_s7 + $0xb0] ss:$8 sps:$4 sm:$0xff]  }
  0x2b   : > { %v881_v30 = vld [vmem:[%s1006_s7 + $0xa4] ss:$8 sps:$4 sm:$0xff]   ;;  %v883_v31 = vld [vmem:[%s1006_s7 + $0xa0] ss:$8 sps:$4 sm:$0xff]   ;;  %v884_v32 = vld [vmem:[%s1006_s7 + $0x94] ss:$8 sps:$4 sm:$0xff]  }
  0x2c   : > { %532 = vmatpush1.bf16.msra.mxu0 %v850_v8  ;;  %v886_v33 = vld [vmem:[%s1006_s7 + $0x90] ss:$8 sps:$4 sm:$0xff]   ;;  %v887_v34 = vld [vmem:[%s1006_s7 + $0x84] ss:$8 sps:$4 sm:$0xff]   ;;  %v889_v35 = vld [vmem:[%s1006_s7 + $0x80] ss:$8 sps:$4 sm:$0xff]  }
  0x2d   : > { %533 = vmatprep.subr.bf16.mxu0 %v851_v9  ;;  %v890_v36 = vld [vmem:[%s240_s8] ss:$8 sps:$4 sm:$0xff]   ;;  %p790_p11 = scmp.ne.s32.totalorder %s923_s14, 8 }
  0x2e   : > { %v319_v37 = vld [vmem:[#allocation2 + $0x10] sm:$0xff]  ;;  %v320_v39 = vld [vmem:[#allocation2] sm:$0xff]  ;;  %v321_v42 = vld [vmem:[#allocation2 + $0x18] sm:$0xff] }
  0x2f   : > { %v322_v45 = vld [vmem:[#allocation2 + $0x8] sm:$0xff] }
  0x30   : > { %534 = vmatpush1.bf16.msra.mxu0 %v853_v10 }
  0x31   : > { %535 = vmatprep.subr.bf16.mxu0 %v854_v11 }
  0x34   : > { %536 = vmatpush1.bf16.msra.mxu0 %v856_v12 }
  0x35   : > { %537 = vmatprep.subr.bf16.mxu0 %v857_v13 }
  0x38   : > { %538 = vmatpush1.bf16.msra.mxu0 %v859_v14 }
  0x39   : > { %539 = vmatprep.subr.bf16.mxu0 %v860_v15 }
  0x3c   : > { %540 = vmatpush1.bf16.msra.mxu0 %v862_v17 }
  0x3d   : > { %541 = vmatprep.subr.bf16.mxu0 %v863_v18 }
  0x40   : > { %542 = vmatpush1.bf16.msra.mxu0 %v865_v19 }
  0x41   : > { %543 = vmatprep.subr.bf16.mxu0 %v866_v20 }
  0x44   : > { %544 = vmatpush2.bf16.msra.mxu0 %v868_v21 }
  0x45   : > { %545 = vmatprep.subr.bf16.mxu0 %v869_v22 }
  0x48   : > { %546 = vmatpush2.bf16.msra.mxu0 %v871_v23 }
  0x49   : > { %547 = vmatprep.subr.bf16.mxu0 %v872_v24 }
  0x4c   : > { %548 = vmatpush2.bf16.msra.mxu0 %v874_v25 }
  0x4d   : > { %549 = vmatprep.subr.bf16.mxu0 %v875_v26 }
  0x50   : > { %550 = vmatpush2.bf16.msra.mxu0 %v877_v27 }
  0x51   : > { %551 = vmatprep.subr.bf16.mxu0 %v878_v28 }
  0x54   : > { %552 = vmatpush2.bf16.msra.mxu0 %v880_v29 }
  0x55   : > { %553 = vmatprep.subr.bf16.mxu0 %v881_v30 }
  0x58   : > { %554 = vmatpush2.bf16.msra.mxu0 %v883_v31 }
  0x59   : > { %555 = vmatprep.subr.bf16.mxu0 %v884_v32 }
  0x5c   : > { %556 = vmatpush2.bf16.msra.mxu0 %v886_v33 }
  0x5d   : > { %557 = vmatprep.subr.bf16.mxu0 %v887_v34 }
  0x60   : > { %558 = vmatpush2.bf16.msra.mxu0 %v889_v35 }
  0x63   : > { %560 = vmatmul.mubr.bf16.vlgmr.msra.gmra.mxu0 %v890_v36 }
 0x123   : > { %v561_v38 = vpop.f32.mrf.mxu0 }
 0x124   : > { %v570_v40 = vadd.f32 %v561_v38, %v319_v37 }
 0x125   : > { %v563_v41 = vpop.f32.mrf.mxu0 }
 0x126   : > { %574 = vst [vmem:[#allocation2 + $0x10] sm:$0xff] %v570_v40  ;;  %v571_v43 = vadd.f32 %v563_v41, %v320_v39 }
 0x127   : > { %v565_v44 = vpop.f32.mrf.mxu0 }
 0x128   : > { %575 = vst [vmem:[#allocation2] sm:$0xff] %v571_v43  ;;  %v572_v46 = vadd.f32 %v565_v44, %v321_v42  ;;  %581 = sbr.rel (%p790_p11) target bundleno = 316 (0x13c), region = 78 }
 0x129   : > { %v567_v47 = vpop.f32.mrf.mxu0 }
 0x12a   : > { %576 = vst [vmem:[#allocation2 + $0x18] sm:$0xff] %v572_v46  ;;  %v573_v48 = vadd.f32 %v567_v47, %v322_v45 }
 0x12c   : > { %577 = vst [vmem:[#allocation2 + $0x8] sm:$0xff] %v573_v48 }
 0x12d   : > { %v588_v49 = vlaneseq  ;;  %v586_v51 = vld [vmem:[%s1073_s2] sm:$0x3]  ;;  %v582_v52 = vld [vmem:[#allocation2 + $0x10] sm:$0xff] }
 0x12f   : > { %v589_v50 = vshrl.u32 %v588_v49, 7  ;;  %v583_v55 = vld [vmem:[#allocation2] sm:$0xff] }
 0x131   : > { %v590_v53 = vsub.s32 0, %v589_v50  ;;  %v594_v54 = vsub.s32 1, %v589_v50  ;;  %v584_v56 = vld [vmem:[#allocation2 + $0x18] sm:$0xff] }
 0x133   : > { %v585_v57 = vld [vmem:[#allocation2 + $0x8] sm:$0xff]  ;;  %v591_v58 = vrot.slane %v586_v51, %v590_v53  ;;  %v595_v59 = vrot.slane %v586_v51, %v594_v54 }
 0x135   : > { %v598_v60 = vadd.f32 %v591_v58, %v582_v52  ;;  %v599_v61 = vadd.f32 %v595_v59, %v583_v55  ;;  %v600_v62 = vadd.f32 %v591_v58, %v584_v56  ;;  %v601_v63 = vadd.f32 %v595_v59, %v585_v57 }
 0x137   : > { %v602_v0 = vmax.f32 %v598_v60, 0.0  ;;  %v603_v1 = vmax.f32 %v599_v61, 0.0  ;;  %v604_v2 = vmax.f32 %v600_v62, 0.0  ;;  %v605_v3 = vmax.f32 %v601_v63, 0.0 }
 0x139   : > { %v799_v4 = vpack.c.bf16 %v603_v1, %v602_v0  ;;  %v800_v5 = vpack.c.bf16 %v605_v3, %v604_v2 }
 0x13b   : > { %618 = vst [vmem:[%s1074_s3] sm:$0xff] %v799_v4  ;;  %619 = vst [vmem:[%s1074_s3 + $0x8] sm:$0xff] %v800_v5 }
 0x13c PF: > { %s13_s16 = sadd.s32 1, %s931_s16   ;;  %s1075_s12 = smov %s919_s13 }
 0x13d   : > { %p10_p12 = scmp.ge.s32.totalorder %s13_s16, 11   ;;  %s1076_s13 = smov %s989_s20 }
 0x13e   : > { %s1077_s14 = smov %s927_s15  ;;  %s1078_s15 = smov %s1080_s17 }
 0x13f   :  { %12 = sbr.rel (!%p10_p12) target bundleno = 3 (0x3), region = 119 }

// kernel: resnet18_forward.37
= control target key start
LH: loop header
LB: loop body
LE: loop exit
PB: predicated region body
PF: predicated region fallthrough
CT: control target
= control target key end

     0   :  { %s1221_s12 = smov 0   ;;  %s1223_s13 = smov 0   ;;  %s1508_s0 = inlined_call_operand.vmem [shape: bf16[16,2304], index: 0, kind: input, shape index: {}]   ;;  %s1509_s1 = inlined_call_operand.vmem [shape: bf16[2304,512], index: 1, kind: input, shape index: {}]   ;;  %s1510_s2 = inlined_call_operand.vmem [shape: f32[1,512], index: 2, kind: input, shape index: {}]   ;;  %s1511_s3 = inlined_call_operand.vmem [shape: bf16[16,512], index: 3, kind: output, shape index: {}]  }
   0x1   :  { %s1225_s14 = smov 0   ;;  %s1227_s15 = smov 0  }
   0x2   :  { %s1229_s16 = smov 0   ;;  %s1231_s17 = smov 0  }
   0x3   :  { %s1233_s18 = smov 0   ;;  %s1235_s19 = smov 0  }
   0x4   :  { %s1237_s20 = smov 0   ;;  %s1239_s21 = smov 0  }
   0x5   :  { %s1241_s22 = smov 0  }
   0x6 LB: > { %s907_s23 = sadd.s32 4294967295, %s1198_s22   ;;  %s25_s24 = sadd.s32 1, %s1190_s20  ;;  %s1198_s22 = sphi %s1241_s22, %s13_s22   ;;  %s1194_s21 = sphi %s1239_s21, %s1532_s21   ;;  %s1190_s20 = sphi %s1237_s20, %s1531_s20   ;;  %s1186_s19 = sphi %s1235_s19, %s1530_s19   ;;  %s1182_s18 = sphi %s1233_s18, %s1529_s18   ;;  %s1178_s17 = sphi %s1231_s17, %s1528_s17   ;;  %s1174_s16 = sphi %s1229_s16, %s1527_s16   ;;  %s1170_s15 = sphi %s1227_s15, %s1526_s15   ;;  %s1166_s14 = sphi %s1225_s14, %s1525_s14   ;;  %s1162_s13 = sphi %s1223_s13, %s1524_s13   ;;  %s1158_s12 = sphi %s1221_s12, %s1523_s12  }
   0x7   : > { %p26_p0 = scmp.ge.s32.totalorder %s25_s24, 9  ;;  %s28_s25 = sadd.s32 1, %s1194_s21 }
   0x8   : > { %s41_s26 = sadd.s32 1, %s1178_s17  ;;  %p48_p1 = scmp.ne.s32.totalorder %s1178_s17, %s1174_s16 }
   0x9   : > { %s1534_s24 = smov (%p26_p0, %s25_s24), 0  ;;  %s1536_s25 = smov (!%p26_p0, %s28_s25), %s1194_s21 }
   0xa   : > { %1514 = sst [smem:[#allocation6_spill]] %s1534_s24  ;;  %s37_s27 = ssub.s32 %s1190_s20, %s1534_s24 }
   0xb   : > { %p49_p2 = scmp.eq.s32.totalorder %s1198_s22, 0  ;;  %p30_p3 = scmp.ge.s32.totalorder %s1536_s25, 2 }
   0xc   : > { %p39_p4 = scmp.eq.s32.totalorder %s37_s27, 0  ;;  %s69_s29 = sadd.s32 1, %s1170_s15 }
   0xd   : > { %p1288_p5 = por %p49_p2, %p48_p1  ;;  %s1538_s25 = smov (%p30_p3, %s1536_s25), 0 }
   0xe   : > { %1516 = sst [smem:[#allocation7_spill]] %s1538_s25  ;;  %s65_s4 = ssub.s32 %s1194_s21, %s1538_s25 }
   0xf   : > { %s1296_s30 = scalar_select %p39_p4, %s1178_s17, %s41_s26  }
  0x10   : > { %p76_p6 = scmp.ne.s32.totalorder %s1170_s15, %s1166_s14  ;;  %s66_s5 = sor.u32 %s65_s4, %s37_s27 }
  0x11   : > { %1517 = sst [smem:[#allocation8_spill]] %s1296_s30  ;;  %p121_p7 = scmp.eq.s32.totalorder %s65_s4, 0 }
  0x12   : > { %p67_p8 = scmp.eq.s32.totalorder %s66_s5, 0  ;;  %p1302_p9 = por %p76_p6, %p49_p2 }
  0x13   : > { %s123_s7 = sadd.s32 1, %s1162_s13  ;;  %p133_p10 = scmp.ne.s32.totalorder %s1162_s13, %s1158_s12 }
  0x14   : > { %s1310_s8 = scalar_select %p67_p8, %s1170_s15, %s69_s29  }
  0x15   : > { %s1313_s9 = scalar_select %p121_p7, %s1162_s13, %s123_s7  }
  0x16   : > { %p134_p11 = scmp.eq.s32.totalorder %s907_s23, 17  ;;  %p910_p13 = scmp.ge.s32.totalorder %s1198_s22, 18 }
  0x18   : > { %p1315_p12 = por %p134_p11, %p133_p10  ;;  %156 = sbr.rel (%p910_p13) target bundleno = 57 (0x39), region = 16 }
  0x1d   : > { %159 = sbr.rel (!%p1288_p5) target bundleno = 34 (0x22), region = 20  ;;  %s161_s11 = sand.u32 (%p1288_p5), 1, %s1178_s17  }
  0x1e   : > { %s967_s26 = sshll.u32 (%p1288_p5), %s1190_s20, 3  ;;  %s911_s27 = sshll.u32 (%p1288_p5), %s161_s11, 4 }
  0x1f   : > { %s169_s5 = scalar_lea.vmem (%p1288_p5), %s1508_s0, %s967_s26  ;;  %s163_s23 = scalar_lea.vmem (%p1288_p5), [#allocation3], %s911_s27 }
  0x20   : > { %v200_v0 = vld [vmem:[%s169_s5] sm:$0xff] (%p1288_p5)  ;;  %v202_v1 = vld [vmem:[%s169_s5 + $0x48] sm:$0xff] (%p1288_p5) }
  0x21   : > { %201 = vst [vmem:[%s163_s23] sm:$0xff] (%p1288_p5), %v200_v0  ;;  %203 = vst [vmem:[%s163_s23 + $0x8] sm:$0xff] (%p1288_p5), %v202_v1 }
  0x22 PF: > { %209 = sbr.rel (!%p1302_p9) target bundleno = 57 (0x39), region = 58  ;;  %s211_s28 = sand.u32 (%p1302_p9), 1, %s1170_s15  }
  0x23   : > { %s916_s7 = sshll.u32 (%p1302_p9), %s1194_s21, 1  ;;  %s914_s25 = sshll.u32 (%p1302_p9), %s211_s28, 8 }
  0x24   : > { %s968_s11 = sshll.u32 (%p1302_p9), %s1190_s20, 7  ;;  %s1340_s6 = scalar_lea.vmem (%p1302_p9), [#allocation4], %s914_s25 }
  0x25   : > { %s217_s24 = sadd.s32 (%p1302_p9), %s968_s11, %s916_s7 }
  0x26   : > { %s918_s30 = sshll.u32 (%p1302_p9), %s217_s24, 2 }
  0x27   : > { %s1335_s4 = scalar_lea.vmem %s1509_s1, %s918_s30 }
  0x28   : > { %v310_v2 = vld [vmem:[%s1335_s4] sm:$0xff]  ;;  %v312_v3 = vld [vmem:[%s1335_s4 + $0x10] sm:$0xff] }
  0x29   : > { %v314_v4 = vld [vmem:[%s1335_s4 + $0x20] sm:$0xff]  ;;  %311 = vst [vmem:[%s1340_s6] sm:$0xff] %v310_v2  ;;  %313 = vst [vmem:[%s1340_s6 + $0x8] sm:$0xff] %v312_v3  ;;  %v316_v5 = vld [vmem:[%s1335_s4 + $0x30] sm:$0xff] }
  0x2a   : > { %315 = vst [vmem:[%s1340_s6 + $0x10] sm:$0xff] %v314_v4  ;;  %v318_v6 = vld [vmem:[%s1335_s4 + $0x40] sm:$0xff]  ;;  %v320_v7 = vld [vmem:[%s1335_s4 + $0x50] sm:$0xff]  ;;  %317 = vst [vmem:[%s1340_s6 + $0x18] sm:$0xff] %v316_v5 }
  0x2b   : > { %319 = vst [vmem:[%s1340_s6 + $0x20] sm:$0xff] %v318_v6  ;;  %321 = vst [vmem:[%s1340_s6 + $0x28] sm:$0xff] %v320_v7  ;;  %v322_v8 = vld [vmem:[%s1335_s4 + $0x60] sm:$0xff]  ;;  %v324_v9 = vld [vmem:[%s1335_s4 + $0x70] sm:$0xff] }
  0x2c   : > { %v326_v10 = vld [vmem:[%s1335_s4 + $0x80] sm:$0xff]  ;;  %323 = vst [vmem:[%s1340_s6 + $0x30] sm:$0xff] %v322_v8  ;;  %325 = vst [vmem:[%s1340_s6 + $0x38] sm:$0xff] %v324_v9  ;;  %v328_v11 = vld [vmem:[%s1335_s4 + $0x90] sm:$0xff] }
  0x2d   : > { %327 = vst [vmem:[%s1340_s6 + $0x40] sm:$0xff] %v326_v10  ;;  %v330_v12 = vld [vmem:[%s1335_s4 + $0xa0] sm:$0xff]  ;;  %v332_v13 = vld [vmem:[%s1335_s4 + $0xb0] sm:$0xff]  ;;  %329 = vst [vmem:[%s1340_s6 + $0x48] sm:$0xff] %v328_v11 }
  0x2e   : > { %331 = vst [vmem:[%s1340_s6 + $0x50] sm:$0xff] %v330_v12  ;;  %333 = vst [vmem:[%s1340_s6 + $0x58] sm:$0xff] %v332_v13  ;;  %v334_v14 = vld [vmem:[%s1335_s4 + $0xc0] sm:$0xff]  ;;  %v336_v15 = vld [vmem:[%s1335_s4 + $0xd0] sm:$0xff] }
  0x2f   : > { %v338_v16 = vld [vmem:[%s1335_s4 + $0xe0] sm:$0xff]  ;;  %335 = vst [vmem:[%s1340_s6 + $0x60] sm:$0xff] %v334_v14  ;;  %337 = vst [vmem:[%s1340_s6 + $0x68] sm:$0xff] %v336_v15  ;;  %v340_v17 = vld [vmem:[%s1335_s4 + $0xf0] sm:$0xff] }
  0x30   : > { %339 = vst [vmem:[%s1340_s6 + $0x70] sm:$0xff] %v338_v16  ;;  %v342_v18 = vld [vmem:[%s1335_s4 + $0x100] sm:$0xff]  ;;  %v344_v19 = vld [vmem:[%s1335_s4 + $0x110] sm:$0xff]  ;;  %341 = vst [vmem:[%s1340_s6 + $0x78] sm:$0xff] %v340_v17 }
  0x31   : > { %343 = vst [vmem:[%s1340_s6 + $0x80] sm:$0xff] %v342_v18  ;;  %345 = vst [vmem:[%s1340_s6 + $0x88] sm:$0xff] %v344_v19  ;;  %v346_v20 = vld [vmem:[%s1335_s4 + $0x120] sm:$0xff]  ;;  %v348_v21 = vld [vmem:[%s1335_s4 + $0x130] sm:$0xff] }
  0x32   : > { %v350_v22 = vld [vmem:[%s1335_s4 + $0x140] sm:$0xff]  ;;  %347 = vst [vmem:[%s1340_s6 + $0x90] sm:$0xff] %v346_v20  ;;  %349 = vst [vmem:[%s1340_s6 + $0x98] sm:$0xff] %v348_v21  ;;  %v352_v23 = vld [vmem:[%s1335_s4 + $0x150] sm:$0xff] }
  0x33   : > { %351 = vst [vmem:[%s1340_s6 + $0xa0] sm:$0xff] %v350_v22  ;;  %v354_v24 = vld [vmem:[%s1335_s4 + $0x160] sm:$0xff]  ;;  %v356_v25 = vld [vmem:[%s1335_s4 + $0x170] sm:$0xff]  ;;  %353 = vst [vmem:[%s1340_s6 + $0xa8] sm:$0xff] %v352_v23 }
  0x34   : > { %355 = vst [vmem:[%s1340_s6 + $0xb0] sm:$0xff] %v354_v24  ;;  %357 = vst [vmem:[%s1340_s6 + $0xb8] sm:$0xff] %v356_v25  ;;  %v358_v26 = vld [vmem:[%s1335_s4 + $0x180] sm:$0xff]  ;;  %v360_v27 = vld [vmem:[%s1335_s4 + $0x190] sm:$0xff] }
  0x35   : > { %v362_v28 = vld [vmem:[%s1335_s4 + $0x1a0] sm:$0xff]  ;;  %359 = vst [vmem:[%s1340_s6 + $0xc0] sm:$0xff] %v358_v26  ;;  %361 = vst [vmem:[%s1340_s6 + $0xc8] sm:$0xff] %v360_v27  ;;  %v364_v29 = vld [vmem:[%s1335_s4 + $0x1b0] sm:$0xff] }
  0x36   : > { %363 = vst [vmem:[%s1340_s6 + $0xd0] sm:$0xff] %v362_v28  ;;  %v366_v30 = vld [vmem:[%s1335_s4 + $0x1c0] sm:$0xff]  ;;  %v368_v31 = vld [vmem:[%s1335_s4 + $0x1d0] sm:$0xff]  ;;  %365 = vst [vmem:[%s1340_s6 + $0xd8] sm:$0xff] %v364_v29 }
  0x37   : > { %367 = vst [vmem:[%s1340_s6 + $0xe0] sm:$0xff] %v366_v30  ;;  %369 = vst [vmem:[%s1340_s6 + $0xe8] sm:$0xff] %v368_v31  ;;  %v370_v32 = vld [vmem:[%s1335_s4 + $0x1e0] sm:$0xff]  ;;  %v372_v33 = vld [vmem:[%s1335_s4 + $0x1f0] sm:$0xff] }
  0x38   : > { %371 = vst [vmem:[%s1340_s6 + $0xf0] sm:$0xff] %v370_v32  ;;  %373 = vst [vmem:[%s1340_s6 + $0xf8] sm:$0xff] %v372_v33 }
  0x39 PF: > { %p919_p0 = scmp.ge.s32.totalorder %s1198_s22, 1  ;;  %p386_p1 = scmp.lt.s32.totalorder %s1198_s22, 19 }
  0x3b   : > { %p387_p2 = pnand %p919_p0, %p386_p1 }
  0x3c   : > { %s393_s24 = sand.u32 (!%p387_p2), 1, %s1174_s16   ;;  %s400_s25 = sand.u32 (!%p387_p2), 1, %s1166_s14  }
  0x3d   : > { %390 = sbr.rel (%p387_p2) target bundleno = 366 (0x16e), region = 100  ;;  %s1407_s30 = sshll.u32 (!%p387_p2), %s393_s24, 4 }
  0x3e   : > { %s921_s27 = sshll.u32 (!%p387_p2), %s400_s25, 8  ;;  %s427_s5 = sand.u32 (!%p387_p2), 1, %s1158_s12  }
  0x3f   : > { %s923_s23 = sshll.u32 (!%p387_p2), %s1186_s19, 1  ;;  %s922_s28 = sshll.u32 (!%p387_p2), %s427_s5, 4 }
  0x40   : > { %p435_p3 = scmp.lt.s32.totalorder (!%p387_p2), %s923_s23, 3  ;;  %s395_s26 = scalar_lea.vmem (!%p387_p2), [#allocation3], %s1407_s30 }
  0x41   : > { %s1418_s4 = scalar_lea.vmem (!%p387_p2), [#allocation4], %s921_s27  ;;  %s1420_s16 = scalar_lea.vmem (!%p387_p2), [#allocation5], %s922_s28 }
  0x42   : > { %s1540_s23 = smov (!%p435_p3, %s923_s23), 3  ;;  %p924_p4 = scmp.ne.s32.totalorder %s1182_s18, 0 }
  0x43   : > { %s437_s29 = scalar_lea.vmem %s1510_s2, %s1540_s23 }
  0x44   : > { %444 = sbr.rel (%p924_p4) target bundleno = 76 (0x4c), region = 112 }
  0x49   : > { %v1200_v34 = vmov 0.0  }
  0x4a   : > { %445 = vst [vmem:[#allocation2 + $0x10] sm:$0xff] %v1200_v34  ;;  %446 = vst [vmem:[#allocation2] sm:$0xff] %v1200_v34 }
  0x4b   : > { %447 = vst [vmem:[#allocation2 + $0x18] sm:$0xff] %v1200_v34  ;;  %448 = vst [vmem:[#allocation2 + $0x8] sm:$0xff] %v1200_v34 }
  0x4c PF: > { %v1061_v35 = vld [vmem:[%s1418_s4 + $0x74] ss:$8 sps:$4 sm:$0xff]   ;;  %v1063_v36 = vld [vmem:[%s1418_s4 + $0x70] ss:$8 sps:$4 sm:$0xff]   ;;  %v1064_v37 = vld [vmem:[%s1418_s4 + $0x64] ss:$8 sps:$4 sm:$0xff]  }
  0x4d   : > { %657 = vmatprep.subr.bf16.mxu0 %v1061_v35  ;;  %v1066_v38 = vld [vmem:[%s1418_s4 + $0x60] ss:$8 sps:$4 sm:$0xff]   ;;  %v1067_v39 = vld [vmem:[%s1418_s4 + $0x54] ss:$8 sps:$4 sm:$0xff]   ;;  %v1069_v40 = vld [vmem:[%s1418_s4 + $0x50] ss:$8 sps:$4 sm:$0xff]  }
  0x4e   : > { %658 = vmatpush1.bf16.msra.mxu0 %v1063_v36  ;;  %v1070_v41 = vld [vmem:[%s1418_s4 + $0x44] ss:$8 sps:$4 sm:$0xff]   ;;  %v1072_v42 = vld [vmem:[%s1418_s4 + $0x40] ss:$8 sps:$4 sm:$0xff]   ;;  %v1073_v43 = vld [vmem:[%s1418_s4 + $0x34] ss:$8 sps:$4 sm:$0xff]  }
  0x4f   : > { %659 = vmatprep.subr.bf16.mxu0 %v1064_v37  ;;  %v1075_v44 = vld [vmem:[%s1418_s4 + $0x30] ss:$8 sps:$4 sm:$0xff]   ;;  %v1076_v45 = vld [vmem:[%s1418_s4 + $0x24] ss:$8 sps:$4 sm:$0xff]   ;;  %v1078_v46 = vld [vmem:[%s1418_s4 + $0x20] ss:$8 sps:$4 sm:$0xff]  }
  0x50   : > { %v1079_v47 = vld [vmem:[%s1418_s4 + $0x14] ss:$8 sps:$4 sm:$0xff]   ;;  %v1081_v49 = vld [vmem:[%s1418_s4 + $0x10] ss:$8 sps:$4 sm:$0xff]   ;;  %v1082_v50 = vld [vmem:[%s1418_s4 + $0x4] ss:$8 sps:$4 sm:$0xff]  }
  0x51   : > { %v1111_v48 = vld [vmem:[%s395_s26 + $0x4] ss:$8 sps:$4 sm:$0xff]   ;;  %v1084_v51 = vld [vmem:[%s1418_s4] ss:$8 sps:$4 sm:$0xff]   ;;  %v1087_v53 = vld [vmem:[%s1418_s4 + $0xf0] ss:$8 sps:$4 sm:$0xff]  }
  0x52   : > { %660 = vmatpush1.bf16.msra.mxu0 %v1066_v38  ;;  %689 = vmatprep.mubr.bf16.mxu0 %v1111_v48  ;;  %v1085_v52 = vld [vmem:[%s1418_s4 + $0xf4] ss:$8 sps:$4 sm:$0xff]   ;;  %v1088_v54 = vld [vmem:[%s1418_s4 + $0xe4] ss:$8 sps:$4 sm:$0xff]   ;;  %v1090_v55 = vld [vmem:[%s1418_s4 + $0xe0] ss:$8 sps:$4 sm:$0xff]  }
  0x53   : > { %661 = vmatprep.subr.bf16.mxu0 %v1067_v39  ;;  %v1091_v56 = vld [vmem:[%s1418_s4 + $0xd4] ss:$8 sps:$4 sm:$0xff]   ;;  %v1093_v57 = vld [vmem:[%s1418_s4 + $0xd0] ss:$8 sps:$4 sm:$0xff]   ;;  %v1094_v58 = vld [vmem:[%s1418_s4 + $0xc4] ss:$8 sps:$4 sm:$0xff]  }
  0x54   : > { %v1096_v59 = vld [vmem:[%s1418_s4 + $0xc0] ss:$8 sps:$4 sm:$0xff]   ;;  %v1097_v60 = vld [vmem:[%s1418_s4 + $0xb4] ss:$8 sps:$4 sm:$0xff]   ;;  %v1099_v61 = vld [vmem:[%s1418_s4 + $0xb0] ss:$8 sps:$4 sm:$0xff]  }
  0x55   : > { %v1100_v62 = vld [vmem:[%s1418_s4 + $0xa4] ss:$8 sps:$4 sm:$0xff]   ;;  %v1102_v63 = vld [vmem:[%s1418_s4 + $0xa0] ss:$8 sps:$4 sm:$0xff]   ;;  %v1103_v0 = vld [vmem:[%s1418_s4 + $0x94] ss:$8 sps:$4 sm:$0xff]  }
  0x56   : > { %662 = vmatpush1.bf16.msra.mxu0 %v1069_v40  ;;  %v1105_v1 = vld [vmem:[%s1418_s4 + $0x90] ss:$8 sps:$4 sm:$0xff]   ;;  %v1106_v2 = vld [vmem:[%s1418_s4 + $0x84] ss:$8 sps:$4 sm:$0xff]   ;;  %v1108_v3 = vld [vmem:[%s1418_s4 + $0x80] ss:$8 sps:$4 sm:$0xff]  }
  0x57   : > { %663 = vmatprep.subr.bf16.mxu0 %v1070_v41  ;;  %v1109_v4 = vld [vmem:[%s395_s26] ss:$8 sps:$4 sm:$0xff]   ;;  %p959_p5 = scmp.ne.s32.totalorder %s1182_s18, 8 }
  0x58   : > { %v449_v5 = vld [vmem:[#allocation2 + $0x10] sm:$0xff]  ;;  %v450_v7 = vld [vmem:[#allocation2] sm:$0xff]  ;;  %v451_v10 = vld [vmem:[#allocation2 + $0x18] sm:$0xff] }
  0x59   : > { %v452_v13 = vld [vmem:[#allocation2 + $0x8] sm:$0xff] }
  0x5a   : > { %664 = vmatpush1.bf16.msra.mxu0 %v1072_v42 }
  0x5b   : > { %665 = vmatprep.subr.bf16.mxu0 %v1073_v43 }
  0x5e   : > { %666 = vmatpush1.bf16.msra.mxu0 %v1075_v44 }
  0x5f   : > { %667 = vmatprep.subr.bf16.mxu0 %v1076_v45 }
  0x62   : > { %668 = vmatpush1.bf16.msra.mxu0 %v1078_v46 }
  0x63   : > { %669 = vmatprep.subr.bf16.mxu0 %v1079_v47 }
  0x66   : > { %670 = vmatpush1.bf16.msra.mxu0 %v1081_v49 }
  0x67   : > { %671 = vmatprep.subr.bf16.mxu0 %v1082_v50 }
  0x6a   : > { %672 = vmatpush1.bf16.msra.mxu0 %v1084_v51 }
  0x6b   : > { %673 = vmatprep.subr.bf16.mxu0 %v1085_v52 }
  0x6e   : > { %674 = vmatpush2.bf16.msra.mxu0 %v1087_v53 }
  0x6f   : > { %675 = vmatprep.subr.bf16.mxu0 %v1088_v54 }
  0x72   : > { %676 = vmatpush2.bf16.msra.mxu0 %v1090_v55 }
  0x73   : > { %677 = vmatprep.subr.bf16.mxu0 %v1091_v56 }
  0x76   : > { %678 = vmatpush2.bf16.msra.mxu0 %v1093_v57 }
  0x77   : > { %679 = vmatprep.subr.bf16.mxu0 %v1094_v58 }
  0x7a   : > { %680 = vmatpush2.bf16.msra.mxu0 %v1096_v59 }
  0x7b   : > { %681 = vmatprep.subr.bf16.mxu0 %v1097_v60 }
  0x7e   : > { %682 = vmatpush2.bf16.msra.mxu0 %v1099_v61 }
  0x7f   : > { %683 = vmatprep.subr.bf16.mxu0 %v1100_v62 }
  0x82   : > { %684 = vmatpush2.bf16.msra.mxu0 %v1102_v63 }
  0x83   : > { %685 = vmatprep.subr.bf16.mxu0 %v1103_v0 }
  0x86   : > { %686 = vmatpush2.bf16.msra.mxu0 %v1105_v1 }
  0x87   : > { %687 = vmatprep.subr.bf16.mxu0 %v1106_v2 }
  0x8a   : > { %688 = vmatpush2.bf16.msra.mxu0 %v1108_v3 }
  0x8d   : > { %690 = vmatmul.mubr.bf16.vlgmr.msra.gmra.mxu0 %v1109_v4 }
 0x14d   : > { %v691_v6 = vpop.f32.mrf.mxu0 }
 0x14e   : > { %v700_v8 = vadd.f32 %v691_v6, %v449_v5 }
 0x14f   : > { %v693_v9 = vpop.f32.mrf.mxu0 }
 0x150   : > { %704 = vst [vmem:[#allocation2 + $0x10] sm:$0xff] %v700_v8  ;;  %v701_v11 = vadd.f32 %v693_v9, %v450_v7 }
 0x151   : > { %v695_v12 = vpop.f32.mrf.mxu0 }
 0x152   : > { %705 = vst [vmem:[#allocation2] sm:$0xff] %v701_v11  ;;  %v702_v14 = vadd.f32 %v695_v12, %v451_v10  ;;  %711 = sbr.rel (%p959_p5) target bundleno = 358 (0x166), region = 116 }
 0x153   : > { %v697_v15 = vpop.f32.mrf.mxu0 }
 0x154   : > { %706 = vst [vmem:[#allocation2 + $0x18] sm:$0xff] %v702_v14  ;;  %v703_v16 = vadd.f32 %v697_v15, %v452_v13 }
 0x156   : > { %707 = vst [vmem:[#allocation2 + $0x8] sm:$0xff] %v703_v16 }
 0x157   : > { %v718_v17 = vlaneseq  ;;  %v716_v19 = vld [vmem:[%s437_s29] sm:$0x3]  ;;  %v712_v20 = vld [vmem:[#allocation2 + $0x10] sm:$0xff] }
 0x159   : > { %v719_v18 = vshrl.u32 %v718_v17, 7  ;;  %v713_v23 = vld [vmem:[#allocation2] sm:$0xff] }
 0x15b   : > { %v720_v21 = vsub.s32 0, %v719_v18  ;;  %v724_v22 = vsub.s32 1, %v719_v18  ;;  %v714_v24 = vld [vmem:[#allocation2 + $0x18] sm:$0xff] }
 0x15d   : > { %v715_v25 = vld [vmem:[#allocation2 + $0x8] sm:$0xff]  ;;  %v721_v26 = vrot.slane %v716_v19, %v720_v21  ;;  %v725_v27 = vrot.slane %v716_v19, %v724_v22 }
 0x15f   : > { %v728_v28 = vadd.f32 %v721_v26, %v712_v20  ;;  %v729_v29 = vadd.f32 %v725_v27, %v713_v23  ;;  %v730_v30 = vadd.f32 %v721_v26, %v714_v24  ;;  %v731_v31 = vadd.f32 %v725_v27, %v715_v25 }
 0x161   : > { %v732_v32 = vmax.f32 %v728_v28, 0.0  ;;  %v733_v33 = vmax.f32 %v729_v29, 0.0  ;;  %v734_v34 = vmax.f32 %v730_v30, 0.0  ;;  %v735_v35 = vmax.f32 %v731_v31, 0.0 }
 0x163   : > { %v969_v36 = vpack.c.bf16 %v733_v33, %v732_v32  ;;  %v970_v37 = vpack.c.bf16 %v735_v35, %v734_v34 }
 0x165   : > { %748 = vst [vmem:[%s1420_s16] sm:$0xff] %v969_v36  ;;  %749 = vst [vmem:[%s1420_s16 + $0x8] sm:$0xff] %v970_v37 }
 0x166 PF: > { %756 = sbr.rel (!%p1315_p12) target bundleno = 366 (0x16e), region = 120  ;;  %s971_s18 = sshll.u32 (%p1315_p12), %s1186_s19, 3 }
 0x167   : > { %s762_s25 = scalar_lea.vmem (%p1315_p12), %s1511_s3, %s971_s18 }
 0x16c   : > { %v793_v38 = vld [vmem:[%s1420_s16] sm:$0xff]  ;;  %v795_v39 = vld [vmem:[%s1420_s16 + $0x8] sm:$0xff] }
 0x16d   : > { %794 = vst [vmem:[%s762_s25] sm:$0xff] %v793_v38  ;;  %796 = vst [vmem:[%s762_s25 + $0x10] sm:$0xff] %v795_v39 }
 0x16e PF: > { %s13_s22 = sadd.s32 1, %s1198_s22   ;;  %s1520_s10 = sld [smem:[#allocation8_spill]] }
 0x16f   : > { %p10_p6 = scmp.ge.s32.totalorder %s13_s22, 20   ;;  %s1521_s30 = sld [smem:[#allocation6_spill]] }
 0x170   : > { %s1522_s27 = sld [smem:[#allocation7_spill]]  ;;  %s1523_s12 = smov %s1162_s13 }
 0x171   : > { %s1524_s13 = smov %s1313_s9  ;;  %s1525_s14 = smov %s1170_s15 }
 0x172   : > { %s1526_s15 = smov %s1310_s8  ;;  %s1527_s16 = smov %s1178_s17 }
 0x173   : > { %s1529_s18 = smov %s1190_s20  ;;  %s1530_s19 = smov %s1194_s21 }
 0x174   : > { %s1528_s17 = smov %s1520_s10  ;;  %12 = sbr.rel (!%p10_p6) target bundleno = 6 (0x6), region = 200 }
 0x175   : > { %s1531_s20 = smov %s1521_s30 }
 0x176   : > { %s1532_s21 = smov %s1522_s27 }

// kernel: resnet18_forward.36
= control target key start
LH: loop header
LB: loop body
LE: loop exit
PB: predicated region body
PF: predicated region fallthrough
CT: control target
= control target key end

     0   :  { %s1081_s12 = smov 0   ;;  %s1083_s13 = smov 0   ;;  %s1269_s0 = inlined_call_operand.vmem [shape: bf16[16,256], index: 0, kind: input, shape index: {}]   ;;  %s1270_s1 = inlined_call_operand.vmem [shape: bf16[256,512], index: 1, kind: input, shape index: {}]   ;;  %s1271_s2 = inlined_call_operand.vmem [shape: f32[1,512], index: 2, kind: input, shape index: {}]   ;;  %s1272_s3 = inlined_call_operand.vmem [shape: bf16[16,512], index: 3, kind: output, shape index: {}]  }
   0x1   :  { %s1085_s14 = smov 0   ;;  %s1087_s15 = smov 0  }
   0x2   :  { %s1089_s16 = smov 0  }
   0x3 LB: > { %s28_s17 = sadd.s32 1, %s1055_s15  ;;  %s873_s18 = sadd.s32 4294967295, %s1059_s16   ;;  %s1059_s16 = sphi %s1089_s16, %s13_s16   ;;  %s1055_s15 = sphi %s1087_s15, %s1277_s15   ;;  %s1051_s14 = sphi %s1085_s14, %s1276_s14   ;;  %s1047_s13 = sphi %s1083_s13, %s1275_s13   ;;  %s1043_s12 = sphi %s1081_s12, %s1274_s12  }
   0x4   : > { %p30_p0 = scmp.ge.s32.totalorder %s28_s17, 2  ;;  %p76_p1 = scmp.ne.s32.totalorder %s1047_s13, %s1043_s12 }
   0x5   : > { %p77_p2 = scmp.eq.s32.totalorder %s1059_s16, 0  ;;  %p134_p4 = scmp.eq.s32.totalorder %s873_s18, 1 }
   0x6   : > { %s1279_s17 = smov (%p30_p0, %s28_s17), 0  ;;  %s69_s20 = sadd.s32 1, %s1047_s13 }
   0x7   : > { %p78_p3 = por %p77_p2, %p76_p1  ;;  %s65_s19 = ssub.s32 %s1055_s15, %s1279_s17 }
   0x8   : > { %p67_p5 = scmp.eq.s32.totalorder %s65_s19, 0  ;;  %p1116_p6 = por %p134_p4, %p76_p1 }
   0x9   : > { %p877_p7 = scmp.ge.s32.totalorder %s1059_s16, 2 }
   0xa   : > { %s1121_s22 = scalar_select %p67_p5, %s1047_s13, %s69_s20  }
   0xb   : > { %171 = sbr.rel (%p877_p7) target bundleno = 36 (0x24), region = 20 }
  0x10   : > { %174 = sbr.rel (!%p78_p3) target bundleno = 36 (0x24), region = 24  ;;  %s176_s23 = sand.u32 (%p78_p3), 1, %s1047_s13  }
  0x11   : > { %s926_s24 = sshll.u32 (%p78_p3), %s1055_s15, 3  ;;  %s878_s25 = sshll.u32 (%p78_p3), %s176_s23, 8 }
  0x12   : > { %s1129_s28 = scalar_lea.vmem (%p78_p3), %s1270_s1, %s926_s24  ;;  %s1134_s29 = scalar_lea.vmem (%p78_p3), [#allocation3], %s878_s25 }
  0x13   : > { %v275_v0 = vld [vmem:[%s1129_s28] sm:$0xff] (%p78_p3)  ;;  %v277_v1 = vld [vmem:[%s1129_s28 + $0x10] sm:$0xff] (%p78_p3) }
  0x14   : > { %v279_v2 = vld [vmem:[%s1129_s28 + $0x20] sm:$0xff] (%p78_p3)  ;;  %276 = vst [vmem:[%s1134_s29] sm:$0xff] (%p78_p3), %v275_v0  ;;  %278 = vst [vmem:[%s1134_s29 + $0x8] sm:$0xff] (%p78_p3), %v277_v1  ;;  %v281_v3 = vld [vmem:[%s1129_s28 + $0x30] sm:$0xff] (%p78_p3) }
  0x15   : > { %280 = vst [vmem:[%s1134_s29 + $0x10] sm:$0xff] %v279_v2  ;;  %v283_v4 = vld [vmem:[%s1129_s28 + $0x40] sm:$0xff]  ;;  %v285_v5 = vld [vmem:[%s1129_s28 + $0x50] sm:$0xff]  ;;  %282 = vst [vmem:[%s1134_s29 + $0x18] sm:$0xff] %v281_v3 }
  0x16   : > { %284 = vst [vmem:[%s1134_s29 + $0x20] sm:$0xff] %v283_v4  ;;  %286 = vst [vmem:[%s1134_s29 + $0x28] sm:$0xff] %v285_v5  ;;  %v287_v6 = vld [vmem:[%s1129_s28 + $0x60] sm:$0xff]  ;;  %v289_v7 = vld [vmem:[%s1129_s28 + $0x70] sm:$0xff] }
  0x17   : > { %v291_v8 = vld [vmem:[%s1129_s28 + $0x80] sm:$0xff]  ;;  %288 = vst [vmem:[%s1134_s29 + $0x30] sm:$0xff] %v287_v6  ;;  %290 = vst [vmem:[%s1134_s29 + $0x38] sm:$0xff] %v289_v7  ;;  %v293_v9 = vld [vmem:[%s1129_s28 + $0x90] sm:$0xff] }
  0x18   : > { %292 = vst [vmem:[%s1134_s29 + $0x40] sm:$0xff] %v291_v8  ;;  %v295_v10 = vld [vmem:[%s1129_s28 + $0xa0] sm:$0xff]  ;;  %v297_v11 = vld [vmem:[%s1129_s28 + $0xb0] sm:$0xff]  ;;  %294 = vst [vmem:[%s1134_s29 + $0x48] sm:$0xff] %v293_v9 }
  0x19   : > { %296 = vst [vmem:[%s1134_s29 + $0x50] sm:$0xff] %v295_v10  ;;  %298 = vst [vmem:[%s1134_s29 + $0x58] sm:$0xff] %v297_v11  ;;  %v299_v12 = vld [vmem:[%s1129_s28 + $0xc0] sm:$0xff]  ;;  %v301_v13 = vld [vmem:[%s1129_s28 + $0xd0] sm:$0xff] }
  0x1a   : > { %v303_v14 = vld [vmem:[%s1129_s28 + $0xe0] sm:$0xff]  ;;  %300 = vst [vmem:[%s1134_s29 + $0x60] sm:$0xff] %v299_v12  ;;  %302 = vst [vmem:[%s1134_s29 + $0x68] sm:$0xff] %v301_v13  ;;  %v305_v15 = vld [vmem:[%s1129_s28 + $0xf0] sm:$0xff] }
  0x1b   : > { %304 = vst [vmem:[%s1134_s29 + $0x70] sm:$0xff] %v303_v14  ;;  %v307_v16 = vld [vmem:[%s1129_s28 + $0x100] sm:$0xff]  ;;  %v309_v17 = vld [vmem:[%s1129_s28 + $0x110] sm:$0xff]  ;;  %306 = vst [vmem:[%s1134_s29 + $0x78] sm:$0xff] %v305_v15 }
  0x1c   : > { %308 = vst [vmem:[%s1134_s29 + $0x80] sm:$0xff] %v307_v16  ;;  %310 = vst [vmem:[%s1134_s29 + $0x88] sm:$0xff] %v309_v17  ;;  %v311_v18 = vld [vmem:[%s1129_s28 + $0x120] sm:$0xff]  ;;  %v313_v19 = vld [vmem:[%s1129_s28 + $0x130] sm:$0xff] }
  0x1d   : > { %v315_v20 = vld [vmem:[%s1129_s28 + $0x140] sm:$0xff]  ;;  %312 = vst [vmem:[%s1134_s29 + $0x90] sm:$0xff] %v311_v18  ;;  %314 = vst [vmem:[%s1134_s29 + $0x98] sm:$0xff] %v313_v19  ;;  %v317_v21 = vld [vmem:[%s1129_s28 + $0x150] sm:$0xff] }
  0x1e   : > { %316 = vst [vmem:[%s1134_s29 + $0xa0] sm:$0xff] %v315_v20  ;;  %v319_v22 = vld [vmem:[%s1129_s28 + $0x160] sm:$0xff]  ;;  %v321_v23 = vld [vmem:[%s1129_s28 + $0x170] sm:$0xff]  ;;  %318 = vst [vmem:[%s1134_s29 + $0xa8] sm:$0xff] %v317_v21 }
  0x1f   : > { %320 = vst [vmem:[%s1134_s29 + $0xb0] sm:$0xff] %v319_v22  ;;  %322 = vst [vmem:[%s1134_s29 + $0xb8] sm:$0xff] %v321_v23  ;;  %v323_v24 = vld [vmem:[%s1129_s28 + $0x180] sm:$0xff]  ;;  %v325_v25 = vld [vmem:[%s1129_s28 + $0x190] sm:$0xff] }
  0x20   : > { %v327_v26 = vld [vmem:[%s1129_s28 + $0x1a0] sm:$0xff]  ;;  %324 = vst [vmem:[%s1134_s29 + $0xc0] sm:$0xff] %v323_v24  ;;  %326 = vst [vmem:[%s1134_s29 + $0xc8] sm:$0xff] %v325_v25  ;;  %v329_v27 = vld [vmem:[%s1129_s28 + $0x1b0] sm:$0xff] }
  0x21   : > { %328 = vst [vmem:[%s1134_s29 + $0xd0] sm:$0xff] %v327_v26  ;;  %v331_v28 = vld [vmem:[%s1129_s28 + $0x1c0] sm:$0xff]  ;;  %v333_v29 = vld [vmem:[%s1129_s28 + $0x1d0] sm:$0xff]  ;;  %330 = vst [vmem:[%s1134_s29 + $0xd8] sm:$0xff] %v329_v27 }
  0x22   : > { %332 = vst [vmem:[%s1134_s29 + $0xe0] sm:$0xff] %v331_v28  ;;  %334 = vst [vmem:[%s1134_s29 + $0xe8] sm:$0xff] %v333_v29  ;;  %v335_v30 = vld [vmem:[%s1129_s28 + $0x1e0] sm:$0xff]  ;;  %v337_v31 = vld [vmem:[%s1129_s28 + $0x1f0] sm:$0xff] }
  0x23   : > { %336 = vst [vmem:[%s1134_s29 + $0xf0] sm:$0xff] %v335_v30  ;;  %338 = vst [vmem:[%s1134_s29 + $0xf8] sm:$0xff] %v337_v31 }
  0x24 PF: > { %p881_p8 = scmp.ge.s32.totalorder %s1059_s16, 1  ;;  %p351_p9 = scmp.lt.s32.totalorder %s1059_s16, 3 }
  0x26   : > { %p352_p10 = pnand %p881_p8, %p351_p9 }
  0x27   : > { %s358_s30 = sand.u32 (!%p352_p10), 1, %s1043_s12   ;;  %s884_s10 = sshll.u32 (!%p352_p10), %s1051_s14, 1 }
  0x28   : > { %355 = sbr.rel (%p352_p10) target bundleno = 322 (0x142), region = 66  ;;  %s882_s4 = sshll.u32 (!%p352_p10), %s358_s30, 8 }
  0x29   : > { %s1205_s7 = scalar_lea.vmem (!%p352_p10), [#allocation3], %s882_s4  ;;  %p409_p11 = scmp.lt.s32.totalorder (!%p352_p10), %s884_s10, 3 }
  0x2a   : > { %s883_s20 = sshll.u32 (!%p352_p10), %s358_s30, 4 }
  0x2b   : > { %s393_s23 = scalar_lea.vmem (!%p352_p10), [#allocation4], %s883_s20 }
  0x2d   : > { %v1020_v32 = vld [vmem:[%s1269_s0 + $0x4] ss:$8 sps:$4 sm:$0xff]   ;;  %v970_v33 = vld [vmem:[%s1205_s7 + $0x74] ss:$8 sps:$4 sm:$0xff]   ;;  %v972_v34 = vld [vmem:[%s1205_s7 + $0x70] ss:$8 sps:$4 sm:$0xff]   ;;  %v691_v2 = vlaneseq }
  0x2e   : > { %663 = vmatprep.mubr.bf16.mxu0 %v1020_v32  ;;  %631 = vmatprep.subr.bf16.mxu0 %v970_v33  ;;  %v973_v35 = vld [vmem:[%s1205_s7 + $0x64] ss:$8 sps:$4 sm:$0xff]   ;;  %v975_v36 = vld [vmem:[%s1205_s7 + $0x60] ss:$8 sps:$4 sm:$0xff]   ;;  %v976_v37 = vld [vmem:[%s1205_s7 + $0x54] ss:$8 sps:$4 sm:$0xff]  }
  0x2f   : > { %632 = vmatpush1.bf16.msra.mxu0 %v972_v34  ;;  %v978_v38 = vld [vmem:[%s1205_s7 + $0x50] ss:$8 sps:$4 sm:$0xff]   ;;  %v979_v39 = vld [vmem:[%s1205_s7 + $0x44] ss:$8 sps:$4 sm:$0xff]   ;;  %v981_v40 = vld [vmem:[%s1205_s7 + $0x40] ss:$8 sps:$4 sm:$0xff]  }
  0x30   : > { %633 = vmatprep.subr.bf16.mxu0 %v973_v35  ;;  %v982_v41 = vld [vmem:[%s1205_s7 + $0x34] ss:$8 sps:$4 sm:$0xff]   ;;  %v984_v42 = vld [vmem:[%s1205_s7 + $0x30] ss:$8 sps:$4 sm:$0xff]   ;;  %v985_v43 = vld [vmem:[%s1205_s7 + $0x24] ss:$8 sps:$4 sm:$0xff]  }
  0x31   : > { %v987_v44 = vld [vmem:[%s1205_s7 + $0x20] ss:$8 sps:$4 sm:$0xff]   ;;  %v988_v45 = vld [vmem:[%s1205_s7 + $0x14] ss:$8 sps:$4 sm:$0xff]   ;;  %v990_v46 = vld [vmem:[%s1205_s7 + $0x10] ss:$8 sps:$4 sm:$0xff]  }
  0x32   : > { %v991_v47 = vld [vmem:[%s1205_s7 + $0x4] ss:$8 sps:$4 sm:$0xff]   ;;  %v993_v48 = vld [vmem:[%s1205_s7] ss:$8 sps:$4 sm:$0xff]   ;;  %v994_v49 = vld [vmem:[%s1205_s7 + $0xf4] ss:$8 sps:$4 sm:$0xff]  }
  0x33   : > { %634 = vmatpush1.bf16.msra.mxu0 %v975_v36  ;;  %v996_v50 = vld [vmem:[%s1205_s7 + $0xf0] ss:$8 sps:$4 sm:$0xff]   ;;  %v997_v51 = vld [vmem:[%s1205_s7 + $0xe4] ss:$8 sps:$4 sm:$0xff]   ;;  %v999_v52 = vld [vmem:[%s1205_s7 + $0xe0] ss:$8 sps:$4 sm:$0xff]  }
  0x34   : > { %635 = vmatprep.subr.bf16.mxu0 %v976_v37  ;;  %v1000_v53 = vld [vmem:[%s1205_s7 + $0xd4] ss:$8 sps:$4 sm:$0xff]   ;;  %v1002_v54 = vld [vmem:[%s1205_s7 + $0xd0] ss:$8 sps:$4 sm:$0xff]   ;;  %v1003_v55 = vld [vmem:[%s1205_s7 + $0xc4] ss:$8 sps:$4 sm:$0xff]  }
  0x35   : > { %v1005_v56 = vld [vmem:[%s1205_s7 + $0xc0] ss:$8 sps:$4 sm:$0xff]   ;;  %v1006_v57 = vld [vmem:[%s1205_s7 + $0xb4] ss:$8 sps:$4 sm:$0xff]   ;;  %v1008_v58 = vld [vmem:[%s1205_s7 + $0xb0] ss:$8 sps:$4 sm:$0xff]  }
  0x36   : > { %v1009_v59 = vld [vmem:[%s1205_s7 + $0xa4] ss:$8 sps:$4 sm:$0xff]   ;;  %v1011_v60 = vld [vmem:[%s1205_s7 + $0xa0] ss:$8 sps:$4 sm:$0xff]   ;;  %v1012_v61 = vld [vmem:[%s1205_s7 + $0x94] ss:$8 sps:$4 sm:$0xff]  }
  0x37   : > { %636 = vmatpush1.bf16.msra.mxu0 %v978_v38  ;;  %v1014_v62 = vld [vmem:[%s1205_s7 + $0x90] ss:$8 sps:$4 sm:$0xff]   ;;  %v1015_v63 = vld [vmem:[%s1205_s7 + $0x84] ss:$8 sps:$4 sm:$0xff]   ;;  %v1017_v0 = vld [vmem:[%s1205_s7 + $0x80] ss:$8 sps:$4 sm:$0xff]  }
  0x38   : > { %637 = vmatprep.subr.bf16.mxu0 %v979_v39  ;;  %v1018_v1 = vld [vmem:[%s1269_s0] ss:$8 sps:$4 sm:$0xff]   ;;  %s1281_s10 = smov (!%p409_p11, %s884_s10), 3  ;;  %v692_v3 = vshrl.u32 %v691_v2, 7  ;;  %s929_s24 = sshll.u32 (%p1116_p6), %s1051_s14, 3 }
  0x39   : > { %s411_s19 = scalar_lea.vmem %s1271_s2, %s1281_s10  ;;  %s731_s26 = scalar_lea.vmem (%p1116_p6), %s1272_s3, %s929_s24 }
  0x3a   : > { %v693_v4 = vsub.s32 0, %v692_v3  ;;  %v697_v5 = vsub.s32 1, %v692_v3  ;;  %v689_v6 = vld [vmem:[%s411_s19] sm:$0x3] }
  0x3b   : > { %638 = vmatpush1.bf16.msra.mxu0 %v981_v40 }
  0x3c   : > { %639 = vmatprep.subr.bf16.mxu0 %v982_v41  ;;  %v694_v7 = vrot.slane %v689_v6, %v693_v4  ;;  %v698_v8 = vrot.slane %v689_v6, %v697_v5 }
  0x3f   : > { %640 = vmatpush1.bf16.msra.mxu0 %v984_v42 }
  0x40   : > { %641 = vmatprep.subr.bf16.mxu0 %v985_v43 }
  0x43   : > { %642 = vmatpush1.bf16.msra.mxu0 %v987_v44 }
  0x44   : > { %643 = vmatprep.subr.bf16.mxu0 %v988_v45 }
  0x47   : > { %644 = vmatpush1.bf16.msra.mxu0 %v990_v46 }
  0x48   : > { %645 = vmatprep.subr.bf16.mxu0 %v991_v47 }
  0x4b   : > { %646 = vmatpush1.bf16.msra.mxu0 %v993_v48 }
  0x4c   : > { %647 = vmatprep.subr.bf16.mxu0 %v994_v49 }
  0x4f   : > { %648 = vmatpush2.bf16.msra.mxu0 %v996_v50 }
  0x50   : > { %649 = vmatprep.subr.bf16.mxu0 %v997_v51 }
  0x53   : > { %650 = vmatpush2.bf16.msra.mxu0 %v999_v52 }
  0x54   : > { %651 = vmatprep.subr.bf16.mxu0 %v1000_v53 }
  0x57   : > { %652 = vmatpush2.bf16.msra.mxu0 %v1002_v54 }
  0x58   : > { %653 = vmatprep.subr.bf16.mxu0 %v1003_v55 }
  0x5b   : > { %654 = vmatpush2.bf16.msra.mxu0 %v1005_v56 }
  0x5c   : > { %655 = vmatprep.subr.bf16.mxu0 %v1006_v57 }
  0x5f   : > { %656 = vmatpush2.bf16.msra.mxu0 %v1008_v58 }
  0x60   : > { %657 = vmatprep.subr.bf16.mxu0 %v1009_v59 }
  0x63   : > { %658 = vmatpush2.bf16.msra.mxu0 %v1011_v60 }
  0x64   : > { %659 = vmatprep.subr.bf16.mxu0 %v1012_v61 }
  0x67   : > { %660 = vmatpush2.bf16.msra.mxu0 %v1014_v62 }
  0x68   : > { %661 = vmatprep.subr.bf16.mxu0 %v1015_v63 }
  0x6b   : > { %662 = vmatpush2.bf16.msra.mxu0 %v1017_v0 }
  0x6e   : > { %664 = vmatmul.mubr.bf16.vlgmr.msra.gmra.mxu0 %v1018_v1 }
 0x12e   : > { %v665_v9 = vpop.f32.mrf.mxu0 }
 0x12f   : > { %v701_v11 = vadd.f32 %v694_v7, %v665_v9 }
 0x130   : > { %v667_v10 = vpop.f32.mrf.mxu0 }
 0x131   : > { %v702_v12 = vadd.f32 %v698_v8, %v667_v10 }
 0x132   : > { %v669_v13 = vpop.f32.mrf.mxu0 }
 0x133   : > { %v927_v14 = vpack.c.bf16 %v702_v12, %v701_v11  ;;  %v703_v16 = vadd.f32 %v694_v7, %v669_v13 }
 0x134   : > { %v671_v15 = vpop.f32.mrf.mxu0 }
 0x135   : > { %717 = vst [vmem:[%s393_s23] sm:$0xff] %v927_v14  ;;  %v704_v17 = vadd.f32 %v698_v8, %v671_v15  ;;  %725 = sbr.rel (!%p1116_p6) target bundleno = 322 (0x142), region = 82 }
 0x137   : > { %v928_v18 = vpack.c.bf16 %v704_v17, %v703_v16 }
 0x139   : > { %718 = vst [vmem:[%s393_s23 + $0x8] sm:$0xff] %v928_v18 }
 0x13c   : > { %v762_v19 = vld [vmem:[%s393_s23] sm:$0xff] }
 0x13d   : > { %763 = vst [vmem:[%s731_s26] sm:$0xff] %v762_v19 }
 0x140   : > { %v764_v20 = vld [vmem:[%s393_s23 + $0x8] sm:$0xff] }
 0x141   : > { %765 = vst [vmem:[%s731_s26 + $0x10] sm:$0xff] %v764_v20 }
 0x142 PF: > { %s13_s16 = sadd.s32 1, %s1059_s16   ;;  %s1274_s12 = smov %s1047_s13 }
 0x143   : > { %p10_p12 = scmp.ge.s32.totalorder %s13_s16, 4   ;;  %s1275_s13 = smov %s1121_s22 }
 0x144   : > { %s1276_s14 = smov %s1055_s15  ;;  %s1277_s15 = smov %s1279_s17 }
 0x145   :  { %12 = sbr.rel (!%p10_p12) target bundleno = 3 (0x3), region = 157 }

// kernel: resnet18_forward.38
= control target key start
LH: loop header
LB: loop body
LE: loop exit
PB: predicated region body
PF: predicated region fallthrough
CT: control target
= control target key end

     0   :  { %s1356_s15 = smov 0   ;;  %s1358_s16 = smov 0   ;;  %s1668_s0 = inlined_call_operand.vmem [shape: bf16[16,4608], index: 0, kind: input, shape index: {}]   ;;  %s1669_s1 = inlined_call_operand.vmem [shape: bf16[4608,512], index: 1, kind: input, shape index: {}]   ;;  %s1670_s2 = inlined_call_operand.vmem [shape: f32[1,512], index: 2, kind: input, shape index: {}]   ;;  %s1671_s3 = inlined_call_operand.vmem [shape: bf16[16,512], index: 3, kind: input, shape index: {}]   ;;  %s1672_s4 = inlined_call_operand.vmem [shape: bf16[16,512], index: 4, kind: output, shape index: {}]  }
   0x1   :  { %s1360_s17 = smov 0   ;;  %s1362_s18 = smov 0  }
   0x2   :  { %s1364_s19 = smov 0   ;;  %s1366_s20 = smov 0  }
   0x3   :  { %s1368_s21 = smov 0   ;;  %s1370_s22 = smov 0  }
   0x4   :  { %s1372_s23 = smov 0   ;;  %s1374_s24 = smov 0  }
   0x5   :  { %s1376_s25 = smov 0  }
   0x6 LB: > { %1676 = sst [smem:[#allocation7_spill]] %s1308_s20  ;;  %s1032_s26 = sadd.s32 4294967295, %s1328_s25   ;;  %s1328_s25 = sphi %s1376_s25, %s14_s25   ;;  %s1324_s24 = sphi %s1374_s24, %s1697_s24   ;;  %s1320_s23 = sphi %s1372_s23, %s1696_s23   ;;  %s1316_s22 = sphi %s1370_s22, %s1695_s22   ;;  %s1312_s21 = sphi %s1368_s21, %s1694_s21   ;;  %s1308_s20 = sphi %s1366_s20, %s1687_s20   ;;  %s1304_s19 = sphi %s1364_s19, %s1686_s19   ;;  %s1300_s18 = sphi %s1362_s18, %s1693_s18   ;;  %s1296_s17 = sphi %s1360_s17, %s1692_s17   ;;  %s1292_s16 = sphi %s1358_s16, %s1691_s16   ;;  %s1288_s15 = sphi %s1356_s15, %s1690_s15  }
   0x7   : > { %s26_s27 = sadd.s32 1, %s1320_s23  ;;  %s29_s28 = sadd.s32 1, %s1324_s24 }
   0x8   : > { %p27_p0 = scmp.ge.s32.totalorder %s26_s27, 18  ;;  %s42_s29 = sadd.s32 1, %s1308_s20 }
   0x9   : > { %p49_p1 = scmp.ne.s32.totalorder %s1308_s20, %s1304_s19  ;;  %p50_p2 = scmp.eq.s32.totalorder %s1328_s25, 0 }
   0xa   : > { %s1699_s27 = smov (%p27_p0, %s26_s27), 0  ;;  %s1701_s28 = smov (!%p27_p0, %s29_s28), %s1324_s24 }
   0xb   : > { %1677 = sst [smem:[#allocation8_spill]] %s1699_s27  ;;  %s38_s30 = ssub.s32 %s1320_s23, %s1699_s27 }
   0xc   : > { %p31_p3 = scmp.ge.s32.totalorder %s1701_s28, 2  ;;  %p40_p4 = scmp.eq.s32.totalorder %s38_s30, 0 }
   0xd   : > { %p1425_p5 = por %p50_p2, %p49_p1  ;;  %s70_s6 = sadd.s32 1, %s1300_s18 }
   0xe   : > { %s1703_s28 = smov (%p31_p3, %s1701_s28), 0  ;;  %p77_p6 = scmp.ne.s32.totalorder %s1300_s18, %s1296_s17 }
   0xf   : > { %1679 = sst [smem:[#allocation9_spill]] %s1703_s28  ;;  %s66_s8 = ssub.s32 %s1324_s24, %s1703_s28 }
  0x10   : > { %s1433_s7 = scalar_select %p40_p4, %s1308_s20, %s42_s29  }
  0x11   : > { %s67_s9 = sor.u32 %s66_s8, %s38_s30  ;;  %p122_p7 = scmp.eq.s32.totalorder %s66_s8, 0 }
  0x12   : > { %1680 = sst [smem:[#allocation10_spill]] %s1433_s7  ;;  %p68_p8 = scmp.eq.s32.totalorder %s67_s9, 0 }
  0x13   : > { %p1441_p9 = por %p77_p6, %p50_p2  ;;  %s124_s11 = sadd.s32 1, %s1292_s16 }
  0x14   : > { %p131_p10 = scmp.ne.s32.totalorder %s1292_s16, %s1288_s15  ;;  %p163_p12 = scmp.eq.s32.totalorder %s1032_s26, 35 }
  0x15   : > { %s1449_s12 = scalar_select %p68_p8, %s1300_s18, %s70_s6  }
  0x16   : > { %s1452_s13 = scalar_select %p122_p7, %s1292_s16, %s124_s11  }
  0x17   : > { %1682 = sst [smem:[#allocation11_spill]] %s1449_s12  ;;  %p1456_p11 = por %p131_p10, %p50_p2 }
  0x18   : > { %p1460_p13 = por %p163_p12, %p131_p10  ;;  %p1035_p0 = scmp.ge.s32.totalorder %s1328_s25, 36 }
  0x1a   : > { %185 = sbr.rel (%p1035_p0) target bundleno = 64 (0x40), region = 16 }
  0x1f   : > { %188 = sbr.rel (!%p1425_p5) target bundleno = 36 (0x24), region = 20  ;;  %s190_s30 = sand.u32 (%p1425_p5), 1, %s1308_s20  }
  0x20   : > { %s1096_s6 = sshll.u32 (%p1425_p5), %s1320_s23, 3  ;;  %s1036_s8 = sshll.u32 (%p1425_p5), %s190_s30, 4 }
  0x21   : > { %s198_s28 = scalar_lea.vmem (%p1425_p5), %s1668_s0, %s1096_s6  ;;  %s192_s26 = scalar_lea.vmem (%p1425_p5), [#allocation3], %s1036_s8 }
  0x22   : > { %v229_v0 = vld [vmem:[%s198_s28] sm:$0xff] (%p1425_p5)  ;;  %v231_v1 = vld [vmem:[%s198_s28 + $0x90] sm:$0xff] (%p1425_p5) }
  0x23   : > { %230 = vst [vmem:[%s192_s26] sm:$0xff] (%p1425_p5), %v229_v0  ;;  %232 = vst [vmem:[%s192_s26 + $0x8] sm:$0xff] (%p1425_p5), %v231_v1 }
  0x24 PF: > { %238 = sbr.rel (!%p1441_p9) target bundleno = 59 (0x3b), region = 58  ;;  %s240_s5 = sand.u32 (%p1441_p9), 1, %s1300_s18  }
  0x25   : > { %s1041_s27 = sshll.u32 (%p1441_p9), %s1324_s24, 1  ;;  %s1039_s7 = sshll.u32 (%p1441_p9), %s240_s5, 8 }
  0x26   : > { %s1097_s30 = sshll.u32 (%p1441_p9), %s1320_s23, 7  ;;  %s1485_s10 = scalar_lea.vmem (%p1441_p9), [#allocation4], %s1039_s7 }
  0x27   : > { %s246_s20 = sadd.s32 (%p1441_p9), %s1097_s30, %s1041_s27 }
  0x28   : > { %s1043_s12 = sshll.u32 (%p1441_p9), %s246_s20, 2 }
  0x29   : > { %s1480_s28 = scalar_lea.vmem %s1669_s1, %s1043_s12 }
  0x2a   : > { %v339_v2 = vld [vmem:[%s1480_s28] sm:$0xff]  ;;  %v341_v3 = vld [vmem:[%s1480_s28 + $0x10] sm:$0xff] }
  0x2b   : > { %v343_v4 = vld [vmem:[%s1480_s28 + $0x20] sm:$0xff]  ;;  %340 = vst [vmem:[%s1485_s10] sm:$0xff] %v339_v2  ;;  %342 = vst [vmem:[%s1485_s10 + $0x8] sm:$0xff] %v341_v3  ;;  %v345_v5 = vld [vmem:[%s1480_s28 + $0x30] sm:$0xff] }
  0x2c   : > { %344 = vst [vmem:[%s1485_s10 + $0x10] sm:$0xff] %v343_v4  ;;  %v347_v6 = vld [vmem:[%s1480_s28 + $0x40] sm:$0xff]  ;;  %v349_v7 = vld [vmem:[%s1480_s28 + $0x50] sm:$0xff]  ;;  %346 = vst [vmem:[%s1485_s10 + $0x18] sm:$0xff] %v345_v5 }
  0x2d   : > { %348 = vst [vmem:[%s1485_s10 + $0x20] sm:$0xff] %v347_v6  ;;  %350 = vst [vmem:[%s1485_s10 + $0x28] sm:$0xff] %v349_v7  ;;  %v351_v8 = vld [vmem:[%s1480_s28 + $0x60] sm:$0xff]  ;;  %v353_v9 = vld [vmem:[%s1480_s28 + $0x70] sm:$0xff] }
  0x2e   : > { %v355_v10 = vld [vmem:[%s1480_s28 + $0x80] sm:$0xff]  ;;  %352 = vst [vmem:[%s1485_s10 + $0x30] sm:$0xff] %v351_v8  ;;  %354 = vst [vmem:[%s1485_s10 + $0x38] sm:$0xff] %v353_v9  ;;  %v357_v11 = vld [vmem:[%s1480_s28 + $0x90] sm:$0xff] }
  0x2f   : > { %356 = vst [vmem:[%s1485_s10 + $0x40] sm:$0xff] %v355_v10  ;;  %v359_v12 = vld [vmem:[%s1480_s28 + $0xa0] sm:$0xff]  ;;  %v361_v13 = vld [vmem:[%s1480_s28 + $0xb0] sm:$0xff]  ;;  %358 = vst [vmem:[%s1485_s10 + $0x48] sm:$0xff] %v357_v11 }
  0x30   : > { %360 = vst [vmem:[%s1485_s10 + $0x50] sm:$0xff] %v359_v12  ;;  %362 = vst [vmem:[%s1485_s10 + $0x58] sm:$0xff] %v361_v13  ;;  %v363_v14 = vld [vmem:[%s1480_s28 + $0xc0] sm:$0xff]  ;;  %v365_v15 = vld [vmem:[%s1480_s28 + $0xd0] sm:$0xff] }
  0x31   : > { %v367_v16 = vld [vmem:[%s1480_s28 + $0xe0] sm:$0xff]  ;;  %364 = vst [vmem:[%s1485_s10 + $0x60] sm:$0xff] %v363_v14  ;;  %366 = vst [vmem:[%s1485_s10 + $0x68] sm:$0xff] %v365_v15  ;;  %v369_v17 = vld [vmem:[%s1480_s28 + $0xf0] sm:$0xff] }
  0x32   : > { %368 = vst [vmem:[%s1485_s10 + $0x70] sm:$0xff] %v367_v16  ;;  %v371_v18 = vld [vmem:[%s1480_s28 + $0x100] sm:$0xff]  ;;  %v373_v19 = vld [vmem:[%s1480_s28 + $0x110] sm:$0xff]  ;;  %370 = vst [vmem:[%s1485_s10 + $0x78] sm:$0xff] %v369_v17 }
  0x33   : > { %372 = vst [vmem:[%s1485_s10 + $0x80] sm:$0xff] %v371_v18  ;;  %374 = vst [vmem:[%s1485_s10 + $0x88] sm:$0xff] %v373_v19  ;;  %v375_v20 = vld [vmem:[%s1480_s28 + $0x120] sm:$0xff]  ;;  %v377_v21 = vld [vmem:[%s1480_s28 + $0x130] sm:$0xff] }
  0x34   : > { %v379_v22 = vld [vmem:[%s1480_s28 + $0x140] sm:$0xff]  ;;  %376 = vst [vmem:[%s1485_s10 + $0x90] sm:$0xff] %v375_v20  ;;  %378 = vst [vmem:[%s1485_s10 + $0x98] sm:$0xff] %v377_v21  ;;  %v381_v23 = vld [vmem:[%s1480_s28 + $0x150] sm:$0xff] }
  0x35   : > { %380 = vst [vmem:[%s1485_s10 + $0xa0] sm:$0xff] %v379_v22  ;;  %v383_v24 = vld [vmem:[%s1480_s28 + $0x160] sm:$0xff]  ;;  %v385_v25 = vld [vmem:[%s1480_s28 + $0x170] sm:$0xff]  ;;  %382 = vst [vmem:[%s1485_s10 + $0xa8] sm:$0xff] %v381_v23 }
  0x36   : > { %384 = vst [vmem:[%s1485_s10 + $0xb0] sm:$0xff] %v383_v24  ;;  %386 = vst [vmem:[%s1485_s10 + $0xb8] sm:$0xff] %v385_v25  ;;  %v387_v26 = vld [vmem:[%s1480_s28 + $0x180] sm:$0xff]  ;;  %v389_v27 = vld [vmem:[%s1480_s28 + $0x190] sm:$0xff] }
  0x37   : > { %v391_v28 = vld [vmem:[%s1480_s28 + $0x1a0] sm:$0xff]  ;;  %388 = vst [vmem:[%s1485_s10 + $0xc0] sm:$0xff] %v387_v26  ;;  %390 = vst [vmem:[%s1485_s10 + $0xc8] sm:$0xff] %v389_v27  ;;  %v393_v29 = vld [vmem:[%s1480_s28 + $0x1b0] sm:$0xff] }
  0x38   : > { %392 = vst [vmem:[%s1485_s10 + $0xd0] sm:$0xff] %v391_v28  ;;  %v395_v30 = vld [vmem:[%s1480_s28 + $0x1c0] sm:$0xff]  ;;  %v397_v31 = vld [vmem:[%s1480_s28 + $0x1d0] sm:$0xff]  ;;  %394 = vst [vmem:[%s1485_s10 + $0xd8] sm:$0xff] %v393_v29 }
  0x39   : > { %396 = vst [vmem:[%s1485_s10 + $0xe0] sm:$0xff] %v395_v30  ;;  %398 = vst [vmem:[%s1485_s10 + $0xe8] sm:$0xff] %v397_v31  ;;  %v399_v32 = vld [vmem:[%s1480_s28 + $0x1e0] sm:$0xff]  ;;  %v401_v33 = vld [vmem:[%s1480_s28 + $0x1f0] sm:$0xff] }
  0x3a   : > { %400 = vst [vmem:[%s1485_s10 + $0xf0] sm:$0xff] %v399_v32  ;;  %402 = vst [vmem:[%s1485_s10 + $0xf8] sm:$0xff] %v401_v33 }
  0x3b PF: > { %416 = sbr.rel (!%p1456_p11) target bundleno = 64 (0x40), region = 100  ;;  %s418_s20 = sand.u32 (%p1456_p11), 1, %s1292_s16  }
  0x3c   : > { %s1098_s27 = sshll.u32 (%p1456_p11), %s1324_s24, 3  ;;  %s1044_s7 = sshll.u32 (%p1456_p11), %s418_s20, 4 }
  0x3d   : > { %s426_s11 = scalar_lea.vmem (%p1456_p11), %s1671_s3, %s1098_s27  ;;  %s420_s26 = scalar_lea.vmem (%p1456_p11), [#allocation5], %s1044_s7 }
  0x3e   : > { %v457_v34 = vld [vmem:[%s426_s11] sm:$0xff] (%p1456_p11)  ;;  %v459_v35 = vld [vmem:[%s426_s11 + $0x10] sm:$0xff] (%p1456_p11) }
  0x3f   : > { %458 = vst [vmem:[%s420_s26] sm:$0xff] (%p1456_p11), %v457_v34  ;;  %460 = vst [vmem:[%s420_s26 + $0x8] sm:$0xff] (%p1456_p11), %v459_v35 }
  0x40 PF: > { %p1047_p1 = scmp.ge.s32.totalorder %s1328_s25, 1  ;;  %p465_p2 = scmp.lt.s32.totalorder %s1328_s25, 37 }
  0x42   : > { %p466_p3 = pnand %p1047_p1, %p465_p2 }
  0x43   : > { %s472_s14 = sand.u32 (!%p466_p3), 1, %s1304_s19   ;;  %s479_s5 = sand.u32 (!%p466_p3), 1, %s1296_s17  }
  0x44   : > { %469 = sbr.rel (%p466_p3) target bundleno = 376 (0x178), region = 138  ;;  %s1559_s30 = sshll.u32 (!%p466_p3), %s472_s14, 4 }
  0x45   : > { %s1049_s9 = sshll.u32 (!%p466_p3), %s479_s5, 8  ;;  %s486_s6 = sand.u32 (!%p466_p3), 1, %s1288_s15  }
  0x46   : > { %s1052_s28 = sshll.u32 (!%p466_p3), %s1316_s22, 1  ;;  %s1563_s10 = sshll.u32 (!%p466_p3), %s486_s6, 4 }
  0x47   : > { %p527_p4 = scmp.lt.s32.totalorder (!%p466_p3), %s1052_s28, 3  ;;  %s474_s19 = scalar_lea.vmem (!%p466_p3), [#allocation3], %s1559_s30 }
  0x48   : > { %s1572_s17 = scalar_lea.vmem (!%p466_p3), [#allocation4], %s1049_s9  ;;  %s488_s12 = scalar_lea.vmem (!%p466_p3), [#allocation5], %s1563_s10 }
  0x49   : > { %s1705_s28 = smov (!%p527_p4, %s1052_s28), 3  ;;  %s1576_s8 = scalar_lea.vmem [#allocation6], %s1563_s10 }
  0x4a   : > { %s529_s7 = scalar_lea.vmem %s1670_s2, %s1705_s28  ;;  %p1053_p5 = scmp.ne.s32.totalorder %s1312_s21, 0 }
  0x4c   : > { %538 = sbr.rel (%p1053_p5) target bundleno = 84 (0x54), region = 154 }
  0x51   : > { %v1330_v36 = vmov 0.0  }
  0x52   : > { %539 = vst [vmem:[#allocation2 + $0x10] sm:$0xff] %v1330_v36  ;;  %540 = vst [vmem:[#allocation2] sm:$0xff] %v1330_v36 }
  0x53   : > { %541 = vst [vmem:[#allocation2 + $0x18] sm:$0xff] %v1330_v36  ;;  %542 = vst [vmem:[#allocation2 + $0x8] sm:$0xff] %v1330_v36 }
  0x54 PF: > { %v1191_v37 = vld [vmem:[%s1572_s17 + $0x74] ss:$8 sps:$4 sm:$0xff]   ;;  %v1193_v38 = vld [vmem:[%s1572_s17 + $0x70] ss:$8 sps:$4 sm:$0xff]   ;;  %v1194_v39 = vld [vmem:[%s1572_s17 + $0x64] ss:$8 sps:$4 sm:$0xff]  }
  0x55   : > { %751 = vmatprep.subr.bf16.mxu0 %v1191_v37  ;;  %v1196_v40 = vld [vmem:[%s1572_s17 + $0x60] ss:$8 sps:$4 sm:$0xff]   ;;  %v1197_v41 = vld [vmem:[%s1572_s17 + $0x54] ss:$8 sps:$4 sm:$0xff]   ;;  %v1199_v42 = vld [vmem:[%s1572_s17 + $0x50] ss:$8 sps:$4 sm:$0xff]  }
  0x56   : > { %752 = vmatpush1.bf16.msra.mxu0 %v1193_v38  ;;  %v1200_v43 = vld [vmem:[%s1572_s17 + $0x44] ss:$8 sps:$4 sm:$0xff]   ;;  %v1202_v44 = vld [vmem:[%s1572_s17 + $0x40] ss:$8 sps:$4 sm:$0xff]   ;;  %v1203_v45 = vld [vmem:[%s1572_s17 + $0x34] ss:$8 sps:$4 sm:$0xff]  }
  0x57   : > { %753 = vmatprep.subr.bf16.mxu0 %v1194_v39  ;;  %v1205_v46 = vld [vmem:[%s1572_s17 + $0x30] ss:$8 sps:$4 sm:$0xff]   ;;  %v1206_v47 = vld [vmem:[%s1572_s17 + $0x24] ss:$8 sps:$4 sm:$0xff]   ;;  %v1208_v48 = vld [vmem:[%s1572_s17 + $0x20] ss:$8 sps:$4 sm:$0xff]  }
  0x58   : > { %v1209_v49 = vld [vmem:[%s1572_s17 + $0x14] ss:$8 sps:$4 sm:$0xff]   ;;  %v1211_v51 = vld [vmem:[%s1572_s17 + $0x10] ss:$8 sps:$4 sm:$0xff]   ;;  %v1212_v52 = vld [vmem:[%s1572_s17 + $0x4] ss:$8 sps:$4 sm:$0xff]  }
  0x59   : > { %v1241_v50 = vld [vmem:[%s474_s19 + $0x4] ss:$8 sps:$4 sm:$0xff]   ;;  %v1214_v53 = vld [vmem:[%s1572_s17] ss:$8 sps:$4 sm:$0xff]   ;;  %v1217_v55 = vld [vmem:[%s1572_s17 + $0xf0] ss:$8 sps:$4 sm:$0xff]  }
  0x5a   : > { %754 = vmatpush1.bf16.msra.mxu0 %v1196_v40  ;;  %783 = vmatprep.mubr.bf16.mxu0 %v1241_v50  ;;  %v1215_v54 = vld [vmem:[%s1572_s17 + $0xf4] ss:$8 sps:$4 sm:$0xff]   ;;  %v1218_v56 = vld [vmem:[%s1572_s17 + $0xe4] ss:$8 sps:$4 sm:$0xff]   ;;  %v1220_v57 = vld [vmem:[%s1572_s17 + $0xe0] ss:$8 sps:$4 sm:$0xff]  }
  0x5b   : > { %755 = vmatprep.subr.bf16.mxu0 %v1197_v41  ;;  %v1221_v58 = vld [vmem:[%s1572_s17 + $0xd4] ss:$8 sps:$4 sm:$0xff]   ;;  %v1223_v59 = vld [vmem:[%s1572_s17 + $0xd0] ss:$8 sps:$4 sm:$0xff]   ;;  %v1224_v60 = vld [vmem:[%s1572_s17 + $0xc4] ss:$8 sps:$4 sm:$0xff]  }
  0x5c   : > { %v1226_v61 = vld [vmem:[%s1572_s17 + $0xc0] ss:$8 sps:$4 sm:$0xff]   ;;  %v1227_v62 = vld [vmem:[%s1572_s17 + $0xb4] ss:$8 sps:$4 sm:$0xff]   ;;  %v1229_v63 = vld [vmem:[%s1572_s17 + $0xb0] ss:$8 sps:$4 sm:$0xff]  }
  0x5d   : > { %v1230_v0 = vld [vmem:[%s1572_s17 + $0xa4] ss:$8 sps:$4 sm:$0xff]   ;;  %v1232_v1 = vld [vmem:[%s1572_s17 + $0xa0] ss:$8 sps:$4 sm:$0xff]   ;;  %v1233_v2 = vld [vmem:[%s1572_s17 + $0x94] ss:$8 sps:$4 sm:$0xff]  }
  0x5e   : > { %756 = vmatpush1.bf16.msra.mxu0 %v1199_v42  ;;  %v1235_v3 = vld [vmem:[%s1572_s17 + $0x90] ss:$8 sps:$4 sm:$0xff]   ;;  %v1236_v4 = vld [vmem:[%s1572_s17 + $0x84] ss:$8 sps:$4 sm:$0xff]   ;;  %v1238_v5 = vld [vmem:[%s1572_s17 + $0x80] ss:$8 sps:$4 sm:$0xff]  }
  0x5f   : > { %757 = vmatprep.subr.bf16.mxu0 %v1200_v43  ;;  %v1239_v6 = vld [vmem:[%s474_s19] ss:$8 sps:$4 sm:$0xff]   ;;  %p1088_p6 = scmp.ne.s32.totalorder %s1312_s21, 17 }
  0x60   : > { %v543_v7 = vld [vmem:[#allocation2 + $0x10] sm:$0xff]  ;;  %v544_v9 = vld [vmem:[#allocation2] sm:$0xff]  ;;  %v545_v12 = vld [vmem:[#allocation2 + $0x18] sm:$0xff] }
  0x61   : > { %v546_v15 = vld [vmem:[#allocation2 + $0x8] sm:$0xff] }
  0x62   : > { %758 = vmatpush1.bf16.msra.mxu0 %v1202_v44 }
  0x63   : > { %759 = vmatprep.subr.bf16.mxu0 %v1203_v45 }
  0x66   : > { %760 = vmatpush1.bf16.msra.mxu0 %v1205_v46 }
  0x67   : > { %761 = vmatprep.subr.bf16.mxu0 %v1206_v47 }
  0x6a   : > { %762 = vmatpush1.bf16.msra.mxu0 %v1208_v48 }
  0x6b   : > { %763 = vmatprep.subr.bf16.mxu0 %v1209_v49 }
  0x6e   : > { %764 = vmatpush1.bf16.msra.mxu0 %v1211_v51 }
  0x6f   : > { %765 = vmatprep.subr.bf16.mxu0 %v1212_v52 }
  0x72   : > { %766 = vmatpush1.bf16.msra.mxu0 %v1214_v53 }
  0x73   : > { %767 = vmatprep.subr.bf16.mxu0 %v1215_v54 }
  0x76   : > { %768 = vmatpush2.bf16.msra.mxu0 %v1217_v55 }
  0x77   : > { %769 = vmatprep.subr.bf16.mxu0 %v1218_v56 }
  0x7a   : > { %770 = vmatpush2.bf16.msra.mxu0 %v1220_v57 }
  0x7b   : > { %771 = vmatprep.subr.bf16.mxu0 %v1221_v58 }
  0x7e   : > { %772 = vmatpush2.bf16.msra.mxu0 %v1223_v59 }
  0x7f   : > { %773 = vmatprep.subr.bf16.mxu0 %v1224_v60 }
  0x82   : > { %774 = vmatpush2.bf16.msra.mxu0 %v1226_v61 }
  0x83   : > { %775 = vmatprep.subr.bf16.mxu0 %v1227_v62 }
  0x86   : > { %776 = vmatpush2.bf16.msra.mxu0 %v1229_v63 }
  0x87   : > { %777 = vmatprep.subr.bf16.mxu0 %v1230_v0 }
  0x8a   : > { %778 = vmatpush2.bf16.msra.mxu0 %v1232_v1 }
  0x8b   : > { %779 = vmatprep.subr.bf16.mxu0 %v1233_v2 }
  0x8e   : > { %780 = vmatpush2.bf16.msra.mxu0 %v1235_v3 }
  0x8f   : > { %781 = vmatprep.subr.bf16.mxu0 %v1236_v4 }
  0x92   : > { %782 = vmatpush2.bf16.msra.mxu0 %v1238_v5 }
  0x95   : > { %784 = vmatmul.mubr.bf16.vlgmr.msra.gmra.mxu0 %v1239_v6 }
 0x155   : > { %v785_v8 = vpop.f32.mrf.mxu0 }
 0x156   : > { %v794_v10 = vadd.f32 %v785_v8, %v543_v7 }
 0x157   : > { %v787_v11 = vpop.f32.mrf.mxu0 }
 0x158   : > { %798 = vst [vmem:[#allocation2 + $0x10] sm:$0xff] %v794_v10  ;;  %v795_v13 = vadd.f32 %v787_v11, %v544_v9 }
 0x159   : > { %v789_v14 = vpop.f32.mrf.mxu0 }
 0x15a   : > { %799 = vst [vmem:[#allocation2] sm:$0xff] %v795_v13  ;;  %v796_v16 = vadd.f32 %v789_v14, %v545_v12  ;;  %805 = sbr.rel (%p1088_p6) target bundleno = 368 (0x170), region = 158 }
 0x15b   : > { %v791_v17 = vpop.f32.mrf.mxu0 }
 0x15c   : > { %800 = vst [vmem:[#allocation2 + $0x18] sm:$0xff] %v796_v16  ;;  %v797_v18 = vadd.f32 %v791_v17, %v546_v15 }
 0x15e   : > { %801 = vst [vmem:[#allocation2 + $0x8] sm:$0xff] %v797_v18 }
 0x15f   : > { %v812_v19 = vlaneseq  ;;  %v826_v21 = vld [vmem:[%s488_s12] sm:$0xff]  ;;  %v827_v23 = vld [vmem:[%s488_s12 + $0x8] sm:$0xff] }
 0x160   : > { %v810_v22 = vld [vmem:[%s529_s7] sm:$0x3]  ;;  %v806_v24 = vld [vmem:[#allocation2 + $0x10] sm:$0xff]  ;;  %v828_v28 = vunpack.c.l.bf16 %v826_v21  ;;  %v829_v29 = vunpack.c.h.bf16 %v826_v21  ;;  %v830_v34 = vunpack.c.l.bf16 %v827_v23  ;;  %v831_v35 = vunpack.c.h.bf16 %v827_v23 }
 0x161   : > { %v813_v20 = vshrl.u32 %v812_v19, 7  ;;  %v807_v27 = vld [vmem:[#allocation2] sm:$0xff] }
 0x163   : > { %v814_v25 = vsub.s32 0, %v813_v20  ;;  %v818_v26 = vsub.s32 1, %v813_v20  ;;  %v808_v30 = vld [vmem:[#allocation2 + $0x18] sm:$0xff] }
 0x165   : > { %v809_v31 = vld [vmem:[#allocation2 + $0x8] sm:$0xff]  ;;  %v815_v32 = vrot.slane %v810_v22, %v814_v25  ;;  %v819_v33 = vrot.slane %v810_v22, %v818_v26 }
 0x167   : > { %v822_v36 = vadd.f32 %v815_v32, %v806_v24  ;;  %v823_v37 = vadd.f32 %v819_v33, %v807_v27  ;;  %v824_v38 = vadd.f32 %v815_v32, %v808_v30  ;;  %v825_v39 = vadd.f32 %v819_v33, %v809_v31 }
 0x169   : > { %v832_v40 = vadd.f32 %v828_v28, %v822_v36  ;;  %v833_v41 = vadd.f32 %v829_v29, %v823_v37  ;;  %v834_v42 = vadd.f32 %v830_v34, %v824_v38  ;;  %v835_v43 = vadd.f32 %v831_v35, %v825_v39 }
 0x16b   : > { %v836_v44 = vmax.f32 %v832_v40, 0.0  ;;  %v837_v45 = vmax.f32 %v833_v41, 0.0  ;;  %v838_v46 = vmax.f32 %v834_v42, 0.0  ;;  %v839_v47 = vmax.f32 %v835_v43, 0.0 }
 0x16d   : > { %v1099_v48 = vpack.c.bf16 %v837_v45, %v836_v44  ;;  %v1100_v49 = vpack.c.bf16 %v839_v47, %v838_v46 }
 0x16f   : > { %852 = vst [vmem:[%s1576_s8] sm:$0xff] %v1099_v48  ;;  %853 = vst [vmem:[%s1576_s8 + $0x8] sm:$0xff] %v1100_v49 }
 0x170 PF: > { %860 = sbr.rel (!%p1460_p13) target bundleno = 376 (0x178), region = 162  ;;  %s1101_s21 = sshll.u32 (%p1460_p13), %s1316_s22, 3 }
 0x171   : > { %s866_s5 = scalar_lea.vmem (%p1460_p13), %s1672_s4, %s1101_s21 }
 0x176   : > { %v897_v50 = vld [vmem:[%s1576_s8] sm:$0xff]  ;;  %v899_v51 = vld [vmem:[%s1576_s8 + $0x8] sm:$0xff] }
 0x177   : > { %898 = vst [vmem:[%s866_s5] sm:$0xff] %v897_v50  ;;  %900 = vst [vmem:[%s866_s5 + $0x10] sm:$0xff] %v899_v51 }
 0x178 PF: > { %s14_s25 = sadd.s32 1, %s1328_s25   ;;  %s1685_s29 = sld [smem:[#allocation11_spill]] }
 0x179   : > { %p11_p7 = scmp.ge.s32.totalorder %s14_s25, 38   ;;  %s1686_s19 = sld [smem:[#allocation7_spill]] }
 0x17a   : > { %s1687_s20 = sld [smem:[#allocation10_spill]]  ;;  %s1690_s15 = smov %s1292_s16 }
 0x17b   : > { %s1688_s30 = sld [smem:[#allocation8_spill]]  ;;  %s1691_s16 = smov %s1452_s13 }
 0x17c   : > { %s1689_s9 = sld [smem:[#allocation9_spill]]  ;;  %s1692_s17 = smov %s1300_s18 }
 0x17d   : > { %s1694_s21 = smov %s1320_s23  ;;  %s1695_s22 = smov %s1324_s24 }
 0x17e   : > { %s1693_s18 = smov %s1685_s29  ;;  %13 = sbr.rel (!%p11_p7) target bundleno = 6 (0x6), region = 250 }
 0x181   : > { %s1696_s23 = smov %s1688_s30 }
 0x182   : > { %s1697_s24 = smov %s1689_s9 }

// kernel: resnet18_forward.39
= control target key start
LH: loop header
LB: loop body
LE: loop exit
PB: predicated region body
PF: predicated region fallthrough
CT: control target
= control target key end

     0   :  { %s1221_s12 = smov 0   ;;  %s1223_s13 = smov 0   ;;  %s1508_s0 = inlined_call_operand.vmem [shape: bf16[16,4608], index: 0, kind: input, shape index: {}]   ;;  %s1509_s1 = inlined_call_operand.vmem [shape: bf16[4608,512], index: 1, kind: input, shape index: {}]   ;;  %s1510_s2 = inlined_call_operand.vmem [shape: f32[1,512], index: 2, kind: input, shape index: {}]   ;;  %s1511_s3 = inlined_call_operand.vmem [shape: bf16[16,512], index: 3, kind: output, shape index: {}]  }
   0x1   :  { %s1225_s14 = smov 0   ;;  %s1227_s15 = smov 0  }
   0x2   :  { %s1229_s16 = smov 0   ;;  %s1231_s17 = smov 0  }
   0x3   :  { %s1233_s18 = smov 0   ;;  %s1235_s19 = smov 0  }
   0x4   :  { %s1237_s20 = smov 0   ;;  %s1239_s21 = smov 0  }
   0x5   :  { %s1241_s22 = smov 0  }
   0x6 LB: > { %s907_s23 = sadd.s32 4294967295, %s1198_s22   ;;  %s25_s24 = sadd.s32 1, %s1190_s20  ;;  %s1198_s22 = sphi %s1241_s22, %s13_s22   ;;  %s1194_s21 = sphi %s1239_s21, %s1532_s21   ;;  %s1190_s20 = sphi %s1237_s20, %s1531_s20   ;;  %s1186_s19 = sphi %s1235_s19, %s1530_s19   ;;  %s1182_s18 = sphi %s1233_s18, %s1529_s18   ;;  %s1178_s17 = sphi %s1231_s17, %s1528_s17   ;;  %s1174_s16 = sphi %s1229_s16, %s1527_s16   ;;  %s1170_s15 = sphi %s1227_s15, %s1526_s15   ;;  %s1166_s14 = sphi %s1225_s14, %s1525_s14   ;;  %s1162_s13 = sphi %s1223_s13, %s1524_s13   ;;  %s1158_s12 = sphi %s1221_s12, %s1523_s12  }
   0x7   : > { %p26_p0 = scmp.ge.s32.totalorder %s25_s24, 18  ;;  %s28_s25 = sadd.s32 1, %s1194_s21 }
   0x8   : > { %s41_s26 = sadd.s32 1, %s1178_s17  ;;  %p48_p1 = scmp.ne.s32.totalorder %s1178_s17, %s1174_s16 }
   0x9   : > { %s1534_s24 = smov (%p26_p0, %s25_s24), 0  ;;  %s1536_s25 = smov (!%p26_p0, %s28_s25), %s1194_s21 }
   0xa   : > { %1514 = sst [smem:[#allocation6_spill]] %s1534_s24  ;;  %s37_s27 = ssub.s32 %s1190_s20, %s1534_s24 }
   0xb   : > { %p49_p2 = scmp.eq.s32.totalorder %s1198_s22, 0  ;;  %p30_p3 = scmp.ge.s32.totalorder %s1536_s25, 2 }
   0xc   : > { %p39_p4 = scmp.eq.s32.totalorder %s37_s27, 0  ;;  %s69_s29 = sadd.s32 1, %s1170_s15 }
   0xd   : > { %p1288_p5 = por %p49_p2, %p48_p1  ;;  %s1538_s25 = smov (%p30_p3, %s1536_s25), 0 }
   0xe   : > { %1516 = sst [smem:[#allocation7_spill]] %s1538_s25  ;;  %s65_s4 = ssub.s32 %s1194_s21, %s1538_s25 }
   0xf   : > { %s1296_s30 = scalar_select %p39_p4, %s1178_s17, %s41_s26  }
  0x10   : > { %p76_p6 = scmp.ne.s32.totalorder %s1170_s15, %s1166_s14  ;;  %s66_s5 = sor.u32 %s65_s4, %s37_s27 }
  0x11   : > { %1517 = sst [smem:[#allocation8_spill]] %s1296_s30  ;;  %p121_p7 = scmp.eq.s32.totalorder %s65_s4, 0 }
  0x12   : > { %p67_p8 = scmp.eq.s32.totalorder %s66_s5, 0  ;;  %p1302_p9 = por %p76_p6, %p49_p2 }
  0x13   : > { %s123_s7 = sadd.s32 1, %s1162_s13  ;;  %p133_p10 = scmp.ne.s32.totalorder %s1162_s13, %s1158_s12 }
  0x14   : > { %s1310_s8 = scalar_select %p67_p8, %s1170_s15, %s69_s29  }
  0x15   : > { %s1313_s9 = scalar_select %p121_p7, %s1162_s13, %s123_s7  }
  0x16   : > { %p134_p11 = scmp.eq.s32.totalorder %s907_s23, 35  ;;  %p910_p13 = scmp.ge.s32.totalorder %s1198_s22, 36 }
  0x18   : > { %p1315_p12 = por %p134_p11, %p133_p10  ;;  %156 = sbr.rel (%p910_p13) target bundleno = 57 (0x39), region = 16 }
  0x1d   : > { %159 = sbr.rel (!%p1288_p5) target bundleno = 34 (0x22), region = 20  ;;  %s161_s11 = sand.u32 (%p1288_p5), 1, %s1178_s17  }
  0x1e   : > { %s967_s26 = sshll.u32 (%p1288_p5), %s1190_s20, 3  ;;  %s911_s27 = sshll.u32 (%p1288_p5), %s161_s11, 4 }
  0x1f   : > { %s169_s5 = scalar_lea.vmem (%p1288_p5), %s1508_s0, %s967_s26  ;;  %s163_s23 = scalar_lea.vmem (%p1288_p5), [#allocation3], %s911_s27 }
  0x20   : > { %v200_v0 = vld [vmem:[%s169_s5] sm:$0xff] (%p1288_p5)  ;;  %v202_v1 = vld [vmem:[%s169_s5 + $0x90] sm:$0xff] (%p1288_p5) }
  0x21   : > { %201 = vst [vmem:[%s163_s23] sm:$0xff] (%p1288_p5), %v200_v0  ;;  %203 = vst [vmem:[%s163_s23 + $0x8] sm:$0xff] (%p1288_p5), %v202_v1 }
  0x22 PF: > { %209 = sbr.rel (!%p1302_p9) target bundleno = 57 (0x39), region = 58  ;;  %s211_s28 = sand.u32 (%p1302_p9), 1, %s1170_s15  }
  0x23   : > { %s916_s7 = sshll.u32 (%p1302_p9), %s1194_s21, 1  ;;  %s914_s25 = sshll.u32 (%p1302_p9), %s211_s28, 8 }
  0x24   : > { %s968_s11 = sshll.u32 (%p1302_p9), %s1190_s20, 7  ;;  %s1340_s6 = scalar_lea.vmem (%p1302_p9), [#allocation4], %s914_s25 }
  0x25   : > { %s217_s24 = sadd.s32 (%p1302_p9), %s968_s11, %s916_s7 }
  0x26   : > { %s918_s30 = sshll.u32 (%p1302_p9), %s217_s24, 2 }
  0x27   : > { %s1335_s4 = scalar_lea.vmem %s1509_s1, %s918_s30 }
  0x28   : > { %v310_v2 = vld [vmem:[%s1335_s4] sm:$0xff]  ;;  %v312_v3 = vld [vmem:[%s1335_s4 + $0x10] sm:$0xff] }
  0x29   : > { %v314_v4 = vld [vmem:[%s1335_s4 + $0x20] sm:$0xff]  ;;  %311 = vst [vmem:[%s1340_s6] sm:$0xff] %v310_v2  ;;  %313 = vst [vmem:[%s1340_s6 + $0x8] sm:$0xff] %v312_v3  ;;  %v316_v5 = vld [vmem:[%s1335_s4 + $0x30] sm:$0xff] }
  0x2a   : > { %315 = vst [vmem:[%s1340_s6 + $0x10] sm:$0xff] %v314_v4  ;;  %v318_v6 = vld [vmem:[%s1335_s4 + $0x40] sm:$0xff]  ;;  %v320_v7 = vld [vmem:[%s1335_s4 + $0x50] sm:$0xff]  ;;  %317 = vst [vmem:[%s1340_s6 + $0x18] sm:$0xff] %v316_v5 }
  0x2b   : > { %319 = vst [vmem:[%s1340_s6 + $0x20] sm:$0xff] %v318_v6  ;;  %321 = vst [vmem:[%s1340_s6 + $0x28] sm:$0xff] %v320_v7  ;;  %v322_v8 = vld [vmem:[%s1335_s4 + $0x60] sm:$0xff]  ;;  %v324_v9 = vld [vmem:[%s1335_s4 + $0x70] sm:$0xff] }
  0x2c   : > { %v326_v10 = vld [vmem:[%s1335_s4 + $0x80] sm:$0xff]  ;;  %323 = vst [vmem:[%s1340_s6 + $0x30] sm:$0xff] %v322_v8  ;;  %325 = vst [vmem:[%s1340_s6 + $0x38] sm:$0xff] %v324_v9  ;;  %v328_v11 = vld [vmem:[%s1335_s4 + $0x90] sm:$0xff] }
  0x2d   : > { %327 = vst [vmem:[%s1340_s6 + $0x40] sm:$0xff] %v326_v10  ;;  %v330_v12 = vld [vmem:[%s1335_s4 + $0xa0] sm:$0xff]  ;;  %v332_v13 = vld [vmem:[%s1335_s4 + $0xb0] sm:$0xff]  ;;  %329 = vst [vmem:[%s1340_s6 + $0x48] sm:$0xff] %v328_v11 }
  0x2e   : > { %331 = vst [vmem:[%s1340_s6 + $0x50] sm:$0xff] %v330_v12  ;;  %333 = vst [vmem:[%s1340_s6 + $0x58] sm:$0xff] %v332_v13  ;;  %v334_v14 = vld [vmem:[%s1335_s4 + $0xc0] sm:$0xff]  ;;  %v336_v15 = vld [vmem:[%s1335_s4 + $0xd0] sm:$0xff] }
  0x2f   : > { %v338_v16 = vld [vmem:[%s1335_s4 + $0xe0] sm:$0xff]  ;;  %335 = vst [vmem:[%s1340_s6 + $0x60] sm:$0xff] %v334_v14  ;;  %337 = vst [vmem:[%s1340_s6 + $0x68] sm:$0xff] %v336_v15  ;;  %v340_v17 = vld [vmem:[%s1335_s4 + $0xf0] sm:$0xff] }
  0x30   : > { %339 = vst [vmem:[%s1340_s6 + $0x70] sm:$0xff] %v338_v16  ;;  %v342_v18 = vld [vmem:[%s1335_s4 + $0x100] sm:$0xff]  ;;  %v344_v19 = vld [vmem:[%s1335_s4 + $0x110] sm:$0xff]  ;;  %341 = vst [vmem:[%s1340_s6 + $0x78] sm:$0xff] %v340_v17 }
  0x31   : > { %343 = vst [vmem:[%s1340_s6 + $0x80] sm:$0xff] %v342_v18  ;;  %345 = vst [vmem:[%s1340_s6 + $0x88] sm:$0xff] %v344_v19  ;;  %v346_v20 = vld [vmem:[%s1335_s4 + $0x120] sm:$0xff]  ;;  %v348_v21 = vld [vmem:[%s1335_s4 + $0x130] sm:$0xff] }
  0x32   : > { %v350_v22 = vld [vmem:[%s1335_s4 + $0x140] sm:$0xff]  ;;  %347 = vst [vmem:[%s1340_s6 + $0x90] sm:$0xff] %v346_v20  ;;  %349 = vst [vmem:[%s1340_s6 + $0x98] sm:$0xff] %v348_v21  ;;  %v352_v23 = vld [vmem:[%s1335_s4 + $0x150] sm:$0xff] }
  0x33   : > { %351 = vst [vmem:[%s1340_s6 + $0xa0] sm:$0xff] %v350_v22  ;;  %v354_v24 = vld [vmem:[%s1335_s4 + $0x160] sm:$0xff]  ;;  %v356_v25 = vld [vmem:[%s1335_s4 + $0x170] sm:$0xff]  ;;  %353 = vst [vmem:[%s1340_s6 + $0xa8] sm:$0xff] %v352_v23 }
  0x34   : > { %355 = vst [vmem:[%s1340_s6 + $0xb0] sm:$0xff] %v354_v24  ;;  %357 = vst [vmem:[%s1340_s6 + $0xb8] sm:$0xff] %v356_v25  ;;  %v358_v26 = vld [vmem:[%s1335_s4 + $0x180] sm:$0xff]  ;;  %v360_v27 = vld [vmem:[%s1335_s4 + $0x190] sm:$0xff] }
  0x35   : > { %v362_v28 = vld [vmem:[%s1335_s4 + $0x1a0] sm:$0xff]  ;;  %359 = vst [vmem:[%s1340_s6 + $0xc0] sm:$0xff] %v358_v26  ;;  %361 = vst [vmem:[%s1340_s6 + $0xc8] sm:$0xff] %v360_v27  ;;  %v364_v29 = vld [vmem:[%s1335_s4 + $0x1b0] sm:$0xff] }
  0x36   : > { %363 = vst [vmem:[%s1340_s6 + $0xd0] sm:$0xff] %v362_v28  ;;  %v366_v30 = vld [vmem:[%s1335_s4 + $0x1c0] sm:$0xff]  ;;  %v368_v31 = vld [vmem:[%s1335_s4 + $0x1d0] sm:$0xff]  ;;  %365 = vst [vmem:[%s1340_s6 + $0xd8] sm:$0xff] %v364_v29 }
  0x37   : > { %367 = vst [vmem:[%s1340_s6 + $0xe0] sm:$0xff] %v366_v30  ;;  %369 = vst [vmem:[%s1340_s6 + $0xe8] sm:$0xff] %v368_v31  ;;  %v370_v32 = vld [vmem:[%s1335_s4 + $0x1e0] sm:$0xff]  ;;  %v372_v33 = vld [vmem:[%s1335_s4 + $0x1f0] sm:$0xff] }
  0x38   : > { %371 = vst [vmem:[%s1340_s6 + $0xf0] sm:$0xff] %v370_v32  ;;  %373 = vst [vmem:[%s1340_s6 + $0xf8] sm:$0xff] %v372_v33 }
  0x39 PF: > { %p919_p0 = scmp.ge.s32.totalorder %s1198_s22, 1  ;;  %p386_p1 = scmp.lt.s32.totalorder %s1198_s22, 37 }
  0x3b   : > { %p387_p2 = pnand %p919_p0, %p386_p1 }
  0x3c   : > { %s393_s24 = sand.u32 (!%p387_p2), 1, %s1174_s16   ;;  %s400_s25 = sand.u32 (!%p387_p2), 1, %s1166_s14  }
  0x3d   : > { %390 = sbr.rel (%p387_p2) target bundleno = 366 (0x16e), region = 100  ;;  %s1407_s30 = sshll.u32 (!%p387_p2), %s393_s24, 4 }
  0x3e   : > { %s921_s27 = sshll.u32 (!%p387_p2), %s400_s25, 8  ;;  %s427_s5 = sand.u32 (!%p387_p2), 1, %s1158_s12  }
  0x3f   : > { %s923_s23 = sshll.u32 (!%p387_p2), %s1186_s19, 1  ;;  %s922_s28 = sshll.u32 (!%p387_p2), %s427_s5, 4 }
  0x40   : > { %p435_p3 = scmp.lt.s32.totalorder (!%p387_p2), %s923_s23, 3  ;;  %s395_s26 = scalar_lea.vmem (!%p387_p2), [#allocation3], %s1407_s30 }
  0x41   : > { %s1418_s4 = scalar_lea.vmem (!%p387_p2), [#allocation4], %s921_s27  ;;  %s1420_s16 = scalar_lea.vmem (!%p387_p2), [#allocation5], %s922_s28 }
  0x42   : > { %s1540_s23 = smov (!%p435_p3, %s923_s23), 3  ;;  %p924_p4 = scmp.ne.s32.totalorder %s1182_s18, 0 }
  0x43   : > { %s437_s29 = scalar_lea.vmem %s1510_s2, %s1540_s23 }
  0x44   : > { %444 = sbr.rel (%p924_p4) target bundleno = 76 (0x4c), region = 112 }
  0x49   : > { %v1200_v34 = vmov 0.0  }
  0x4a   : > { %445 = vst [vmem:[#allocation2 + $0x10] sm:$0xff] %v1200_v34  ;;  %446 = vst [vmem:[#allocation2] sm:$0xff] %v1200_v34 }
  0x4b   : > { %447 = vst [vmem:[#allocation2 + $0x18] sm:$0xff] %v1200_v34  ;;  %448 = vst [vmem:[#allocation2 + $0x8] sm:$0xff] %v1200_v34 }
  0x4c PF: > { %v1061_v35 = vld [vmem:[%s1418_s4 + $0x74] ss:$8 sps:$4 sm:$0xff]   ;;  %v1063_v36 = vld [vmem:[%s1418_s4 + $0x70] ss:$8 sps:$4 sm:$0xff]   ;;  %v1064_v37 = vld [vmem:[%s1418_s4 + $0x64] ss:$8 sps:$4 sm:$0xff]  }
  0x4d   : > { %657 = vmatprep.subr.bf16.mxu0 %v1061_v35  ;;  %v1066_v38 = vld [vmem:[%s1418_s4 + $0x60] ss:$8 sps:$4 sm:$0xff]   ;;  %v1067_v39 = vld [vmem:[%s1418_s4 + $0x54] ss:$8 sps:$4 sm:$0xff]   ;;  %v1069_v40 = vld [vmem:[%s1418_s4 + $0x50] ss:$8 sps:$4 sm:$0xff]  }
  0x4e   : > { %658 = vmatpush1.bf16.msra.mxu0 %v1063_v36  ;;  %v1070_v41 = vld [vmem:[%s1418_s4 + $0x44] ss:$8 sps:$4 sm:$0xff]   ;;  %v1072_v42 = vld [vmem:[%s1418_s4 + $0x40] ss:$8 sps:$4 sm:$0xff]   ;;  %v1073_v43 = vld [vmem:[%s1418_s4 + $0x34] ss:$8 sps:$4 sm:$0xff]  }
  0x4f   : > { %659 = vmatprep.subr.bf16.mxu0 %v1064_v37  ;;  %v1075_v44 = vld [vmem:[%s1418_s4 + $0x30] ss:$8 sps:$4 sm:$0xff]   ;;  %v1076_v45 = vld [vmem:[%s1418_s4 + $0x24] ss:$8 sps:$4 sm:$0xff]   ;;  %v1078_v46 = vld [vmem:[%s1418_s4 + $0x20] ss:$8 sps:$4 sm:$0xff]  }
  0x50   : > { %v1079_v47 = vld [vmem:[%s1418_s4 + $0x14] ss:$8 sps:$4 sm:$0xff]   ;;  %v1081_v49 = vld [vmem:[%s1418_s4 + $0x10] ss:$8 sps:$4 sm:$0xff]   ;;  %v1082_v50 = vld [vmem:[%s1418_s4 + $0x4] ss:$8 sps:$4 sm:$0xff]  }
  0x51   : > { %v1111_v48 = vld [vmem:[%s395_s26 + $0x4] ss:$8 sps:$4 sm:$0xff]   ;;  %v1084_v51 = vld [vmem:[%s1418_s4] ss:$8 sps:$4 sm:$0xff]   ;;  %v1087_v53 = vld [vmem:[%s1418_s4 + $0xf0] ss:$8 sps:$4 sm:$0xff]  }
  0x52   : > { %660 = vmatpush1.bf16.msra.mxu0 %v1066_v38  ;;  %689 = vmatprep.mubr.bf16.mxu0 %v1111_v48  ;;  %v1085_v52 = vld [vmem:[%s1418_s4 + $0xf4] ss:$8 sps:$4 sm:$0xff]   ;;  %v1088_v54 = vld [vmem:[%s1418_s4 + $0xe4] ss:$8 sps:$4 sm:$0xff]   ;;  %v1090_v55 = vld [vmem:[%s1418_s4 + $0xe0] ss:$8 sps:$4 sm:$0xff]  }
  0x53   : > { %661 = vmatprep.subr.bf16.mxu0 %v1067_v39  ;;  %v1091_v56 = vld [vmem:[%s1418_s4 + $0xd4] ss:$8 sps:$4 sm:$0xff]   ;;  %v1093_v57 = vld [vmem:[%s1418_s4 + $0xd0] ss:$8 sps:$4 sm:$0xff]   ;;  %v1094_v58 = vld [vmem:[%s1418_s4 + $0xc4] ss:$8 sps:$4 sm:$0xff]  }
  0x54   : > { %v1096_v59 = vld [vmem:[%s1418_s4 + $0xc0] ss:$8 sps:$4 sm:$0xff]   ;;  %v1097_v60 = vld [vmem:[%s1418_s4 + $0xb4] ss:$8 sps:$4 sm:$0xff]   ;;  %v1099_v61 = vld [vmem:[%s1418_s4 + $0xb0] ss:$8 sps:$4 sm:$0xff]  }
  0x55   : > { %v1100_v62 = vld [vmem:[%s1418_s4 + $0xa4] ss:$8 sps:$4 sm:$0xff]   ;;  %v1102_v63 = vld [vmem:[%s1418_s4 + $0xa0] ss:$8 sps:$4 sm:$0xff]   ;;  %v1103_v0 = vld [vmem:[%s1418_s4 + $0x94] ss:$8 sps:$4 sm:$0xff]  }
  0x56   : > { %662 = vmatpush1.bf16.msra.mxu0 %v1069_v40  ;;  %v1105_v1 = vld [vmem:[%s1418_s4 + $0x90] ss:$8 sps:$4 sm:$0xff]   ;;  %v1106_v2 = vld [vmem:[%s1418_s4 + $0x84] ss:$8 sps:$4 sm:$0xff]   ;;  %v1108_v3 = vld [vmem:[%s1418_s4 + $0x80] ss:$8 sps:$4 sm:$0xff]  }
  0x57   : > { %663 = vmatprep.subr.bf16.mxu0 %v1070_v41  ;;  %v1109_v4 = vld [vmem:[%s395_s26] ss:$8 sps:$4 sm:$0xff]   ;;  %p959_p5 = scmp.ne.s32.totalorder %s1182_s18, 17 }
  0x58   : > { %v449_v5 = vld [vmem:[#allocation2 + $0x10] sm:$0xff]  ;;  %v450_v7 = vld [vmem:[#allocation2] sm:$0xff]  ;;  %v451_v10 = vld [vmem:[#allocation2 + $0x18] sm:$0xff] }
  0x59   : > { %v452_v13 = vld [vmem:[#allocation2 + $0x8] sm:$0xff] }
  0x5a   : > { %664 = vmatpush1.bf16.msra.mxu0 %v1072_v42 }
  0x5b   : > { %665 = vmatprep.subr.bf16.mxu0 %v1073_v43 }
  0x5e   : > { %666 = vmatpush1.bf16.msra.mxu0 %v1075_v44 }
  0x5f   : > { %667 = vmatprep.subr.bf16.mxu0 %v1076_v45 }
  0x62   : > { %668 = vmatpush1.bf16.msra.mxu0 %v1078_v46 }
  0x63   : > { %669 = vmatprep.subr.bf16.mxu0 %v1079_v47 }
  0x66   : > { %670 = vmatpush1.bf16.msra.mxu0 %v1081_v49 }
  0x67   : > { %671 = vmatprep.subr.bf16.mxu0 %v1082_v50 }
  0x6a   : > { %672 = vmatpush1.bf16.msra.mxu0 %v1084_v51 }
  0x6b   : > { %673 = vmatprep.subr.bf16.mxu0 %v1085_v52 }
  0x6e   : > { %674 = vmatpush2.bf16.msra.mxu0 %v1087_v53 }
  0x6f   : > { %675 = vmatprep.subr.bf16.mxu0 %v1088_v54 }
  0x72   : > { %676 = vmatpush2.bf16.msra.mxu0 %v1090_v55 }
  0x73   : > { %677 = vmatprep.subr.bf16.mxu0 %v1091_v56 }
  0x76   : > { %678 = vmatpush2.bf16.msra.mxu0 %v1093_v57 }
  0x77   : > { %679 = vmatprep.subr.bf16.mxu0 %v1094_v58 }
  0x7a   : > { %680 = vmatpush2.bf16.msra.mxu0 %v1096_v59 }
  0x7b   : > { %681 = vmatprep.subr.bf16.mxu0 %v1097_v60 }
  0x7e   : > { %682 = vmatpush2.bf16.msra.mxu0 %v1099_v61 }
  0x7f   : > { %683 = vmatprep.subr.bf16.mxu0 %v1100_v62 }
  0x82   : > { %684 = vmatpush2.bf16.msra.mxu0 %v1102_v63 }
  0x83   : > { %685 = vmatprep.subr.bf16.mxu0 %v1103_v0 }
  0x86   : > { %686 = vmatpush2.bf16.msra.mxu0 %v1105_v1 }
  0x87   : > { %687 = vmatprep.subr.bf16.mxu0 %v1106_v2 }
  0x8a   : > { %688 = vmatpush2.bf16.msra.mxu0 %v1108_v3 }
  0x8d   : > { %690 = vmatmul.mubr.bf16.vlgmr.msra.gmra.mxu0 %v1109_v4 }
 0x14d   : > { %v691_v6 = vpop.f32.mrf.mxu0 }
 0x14e   : > { %v700_v8 = vadd.f32 %v691_v6, %v449_v5 }
 0x14f   : > { %v693_v9 = vpop.f32.mrf.mxu0 }
 0x150   : > { %704 = vst [vmem:[#allocation2 + $0x10] sm:$0xff] %v700_v8  ;;  %v701_v11 = vadd.f32 %v693_v9, %v450_v7 }
 0x151   : > { %v695_v12 = vpop.f32.mrf.mxu0 }
 0x152   : > { %705 = vst [vmem:[#allocation2] sm:$0xff] %v701_v11  ;;  %v702_v14 = vadd.f32 %v695_v12, %v451_v10  ;;  %711 = sbr.rel (%p959_p5) target bundleno = 358 (0x166), region = 116 }
 0x153   : > { %v697_v15 = vpop.f32.mrf.mxu0 }
 0x154   : > { %706 = vst [vmem:[#allocation2 + $0x18] sm:$0xff] %v702_v14  ;;  %v703_v16 = vadd.f32 %v697_v15, %v452_v13 }
 0x156   : > { %707 = vst [vmem:[#allocation2 + $0x8] sm:$0xff] %v703_v16 }
 0x157   : > { %v718_v17 = vlaneseq  ;;  %v716_v19 = vld [vmem:[%s437_s29] sm:$0x3]  ;;  %v712_v20 = vld [vmem:[#allocation2 + $0x10] sm:$0xff] }
 0x159   : > { %v719_v18 = vshrl.u32 %v718_v17, 7  ;;  %v713_v23 = vld [vmem:[#allocation2] sm:$0xff] }
 0x15b   : > { %v720_v21 = vsub.s32 0, %v719_v18  ;;  %v724_v22 = vsub.s32 1, %v719_v18  ;;  %v714_v24 = vld [vmem:[#allocation2 + $0x18] sm:$0xff] }
 0x15d   : > { %v715_v25 = vld [vmem:[#allocation2 + $0x8] sm:$0xff]  ;;  %v721_v26 = vrot.slane %v716_v19, %v720_v21  ;;  %v725_v27 = vrot.slane %v716_v19, %v724_v22 }
 0x15f   : > { %v728_v28 = vadd.f32 %v721_v26, %v712_v20  ;;  %v729_v29 = vadd.f32 %v725_v27, %v713_v23  ;;  %v730_v30 = vadd.f32 %v721_v26, %v714_v24  ;;  %v731_v31 = vadd.f32 %v725_v27, %v715_v25 }
 0x161   : > { %v732_v32 = vmax.f32 %v728_v28, 0.0  ;;  %v733_v33 = vmax.f32 %v729_v29, 0.0  ;;  %v734_v34 = vmax.f32 %v730_v30, 0.0  ;;  %v735_v35 = vmax.f32 %v731_v31, 0.0 }
 0x163   : > { %v969_v36 = vpack.c.bf16 %v733_v33, %v732_v32  ;;  %v970_v37 = vpack.c.bf16 %v735_v35, %v734_v34 }
 0x165   : > { %748 = vst [vmem:[%s1420_s16] sm:$0xff] %v969_v36  ;;  %749 = vst [vmem:[%s1420_s16 + $0x8] sm:$0xff] %v970_v37 }
 0x166 PF: > { %756 = sbr.rel (!%p1315_p12) target bundleno = 366 (0x16e), region = 120  ;;  %s971_s18 = sshll.u32 (%p1315_p12), %s1186_s19, 3 }
 0x167   : > { %s762_s25 = scalar_lea.vmem (%p1315_p12), %s1511_s3, %s971_s18 }
 0x16c   : > { %v793_v38 = vld [vmem:[%s1420_s16] sm:$0xff]  ;;  %v795_v39 = vld [vmem:[%s1420_s16 + $0x8] sm:$0xff] }
 0x16d   : > { %794 = vst [vmem:[%s762_s25] sm:$0xff] %v793_v38  ;;  %796 = vst [vmem:[%s762_s25 + $0x10] sm:$0xff] %v795_v39 }
 0x16e PF: > { %s13_s22 = sadd.s32 1, %s1198_s22   ;;  %s1520_s10 = sld [smem:[#allocation8_spill]] }
 0x16f   : > { %p10_p6 = scmp.ge.s32.totalorder %s13_s22, 38   ;;  %s1521_s30 = sld [smem:[#allocation6_spill]] }
 0x170   : > { %s1522_s27 = sld [smem:[#allocation7_spill]]  ;;  %s1523_s12 = smov %s1162_s13 }
 0x171   : > { %s1524_s13 = smov %s1313_s9  ;;  %s1525_s14 = smov %s1170_s15 }
 0x172   : > { %s1526_s15 = smov %s1310_s8  ;;  %s1527_s16 = smov %s1178_s17 }
 0x173   : > { %s1529_s18 = smov %s1190_s20  ;;  %s1530_s19 = smov %s1194_s21 }
 0x174   : > { %s1528_s17 = smov %s1520_s10  ;;  %12 = sbr.rel (!%p10_p6) target bundleno = 6 (0x6), region = 200 }
 0x175   : > { %s1531_s20 = smov %s1521_s30 }
 0x176   : > { %s1532_s21 = smov %s1522_s27 }

// kernel: resnet18_forward.41
= control target key start
LH: loop header
LB: loop body
LE: loop exit
PB: predicated region body
PF: predicated region fallthrough
CT: control target
= control target key end

     0   :  { %s795_s12 = smov 0   ;;  %s797_s13 = smov 0   ;;  %s896_s0 = inlined_call_operand.vmem [shape: bf16[16,512], index: 0, kind: input, shape index: {}]   ;;  %s897_s1 = inlined_call_operand.vmem [shape: bf16[512,128], index: 1, kind: input, shape index: {}]   ;;  %s898_s2 = inlined_call_operand.vmem [shape: f32[1,128], index: 2, kind: input, shape index: {}]   ;;  %s899_s3 = inlined_call_operand.vmem [shape: f32[16,128], index: 3, kind: output, shape index: {}]  }
   0x1   :  { %s799_s14 = smov 0   ;;  %s801_s15 = smov 0  }
   0x2   :  { %s803_s16 = smov 0  }
   0x3 LB: > { %s25_s17 = sadd.s32 1, %s768_s15  ;;  %p48_p1 = scmp.ne.s32.totalorder %s760_s13, %s756_s12  ;;  %s772_s16 = sphi %s803_s16, %s13_s16   ;;  %s768_s15 = sphi %s801_s15, %s903_s15   ;;  %s764_s14 = sphi %s799_s14, %s902_s14   ;;  %s760_s13 = sphi %s797_s13, %s901_s13   ;;  %s756_s12 = sphi %s795_s12, %s900_s12  }
   0x4   : > { %p26_p0 = scmp.ge.s32.totalorder %s25_s17, 2  ;;  %p49_p2 = scmp.eq.s32.totalorder %s772_s16, 0 }
   0x5   : > { %s41_s19 = sadd.s32 1, %s760_s13  ;;  %p618_p5 = scmp.ge.s32.totalorder %s772_s16, 2 }
   0x6   : > { %s905_s17 = smov (%p26_p0, %s25_s17), 0  ;;  %p50_p3 = por %p49_p2, %p48_p1 }
   0x7   : > { %s37_s18 = ssub.s32 %s768_s15, %s905_s17  ;;  %162 = sbr.rel (%p618_p5) target bundleno = 17 (0x11), region = 20 }
   0x8   : > { %p39_p4 = scmp.eq.s32.totalorder %s37_s18, 0 }
   0xa   : > { %s830_s20 = scalar_select %p39_p4, %s760_s13, %s41_s19  }
   0xc   : > { %165 = sbr.rel (!%p50_p3) target bundleno = 17 (0x11), region = 24  ;;  %s167_s21 = sand.u32 (%p50_p3), 1, %s760_s13  }
   0xd   : > { %s651_s22 = sshll.u32 (%p50_p3), %s768_s15, 3  ;;  %s619_s23 = sshll.u32 (%p50_p3), %s167_s21, 4 }
   0xe   : > { %s175_s26 = scalar_lea.vmem (%p50_p3), %s896_s0, %s651_s22  ;;  %s169_s27 = scalar_lea.vmem (%p50_p3), [#allocation3], %s619_s23 }
   0xf   : > { %v206_v0 = vld [vmem:[%s175_s26] sm:$0xff] (%p50_p3)  ;;  %v208_v1 = vld [vmem:[%s175_s26 + $0x10] sm:$0xff] (%p50_p3) }
  0x10   : > { %207 = vst [vmem:[%s169_s27] sm:$0xff] (%p50_p3), %v206_v0  ;;  %209 = vst [vmem:[%s169_s27 + $0x8] sm:$0xff] (%p50_p3), %v208_v1 }
  0x11 PF: > { %p622_p6 = scmp.ge.s32.totalorder %s772_s16, 1  ;;  %p226_p7 = scmp.lt.s32.totalorder %s772_s16, 3 }
  0x13   : > { %p227_p8 = pnand %p622_p6, %p226_p7 }
  0x14   : > { %s233_s28 = sand.u32 (!%p227_p8), 1, %s756_s12   ;;  %s624_s29 = sshll.u32 (!%p227_p8), %s764_s14, 5 }
  0x15   : > { %230 = sbr.rel (%p227_p8) target bundleno = 280 (0x118), region = 66  ;;  %s842_s30 = sshll.u32 (!%p227_p8), %s233_s28, 4 }
  0x16   : > { %p273_p9 = scmp.lt.s32.totalorder (!%p227_p8), %s624_s29, 63  ;;  %s235_s8 = scalar_lea.vmem (!%p227_p8), [#allocation3], %s842_s30 }
  0x17   : > { %p626_p10 = scmp.ne.s32.totalorder (!%p227_p8), %s764_s14, 0 }
  0x1a   : > { %s907_s29 = smov (!%p273_p9, %s624_s29), 63  ;;  %297 = sbr.rel (%p626_p10) target bundleno = 33 (0x21), region = 74 }
  0x1b   : > { %s625_s4 = sshll.u32 %s907_s29, 2 }
  0x1c   : > { %s847_s7 = scalar_lea.vmem %s897_s1, %s625_s4 }
  0x1f   : > { %v774_v2 = vmov 0.0  }
  0x20   : > { %298 = vst [vmem:[#allocation2] sm:$0xff] %v774_v2  ;;  %299 = vst [vmem:[#allocation2 + $0x8] sm:$0xff] %v774_v2 }
  0x21 PF: > { %v715_v3 = vld [vmem:[%s847_s7 + $0x78] sm:$0xff]   ;;  %v717_v5 = vld [vmem:[%s847_s7 + $0x70] sm:$0xff]   ;;  %v719_v7 = vld [vmem:[%s847_s7 + $0x68] sm:$0xff]   ;;  %p645_p11 = scmp.ne.s32.totalorder %s764_s14, 1 }
  0x22   : > { %v716_v4 = vld [vmem:[%s847_s7 + $0x38] sm:$0xff]   ;;  %652 = vmatprep.subr.bf16.mxu0 %v715_v3  ;;  %v718_v6 = vld [vmem:[%s847_s7 + $0x30] sm:$0xff]   ;;  %v720_v8 = vld [vmem:[%s847_s7 + $0x28] sm:$0xff]  }
  0x23   : > { %653 = vmatpush3.bf16.msra.mxu0 %v716_v4  ;;  %v721_v9 = vld [vmem:[%s847_s7 + $0x60] sm:$0xff]   ;;  %v723_v11 = vld [vmem:[%s847_s7 + $0x58] sm:$0xff]   ;;  %v725_v13 = vld [vmem:[%s847_s7 + $0x50] sm:$0xff]  }
  0x24   : > { %654 = vmatprep.subr.bf16.mxu0 %v717_v5  ;;  %v722_v10 = vld [vmem:[%s847_s7 + $0x20] sm:$0xff]   ;;  %v724_v12 = vld [vmem:[%s847_s7 + $0x18] sm:$0xff]   ;;  %v726_v15 = vld [vmem:[%s847_s7 + $0x10] sm:$0xff]  }
  0x25   : > { %v733_v14 = vld [vmem:[%s235_s8 + $0x4] ss:$8 sps:$4 sm:$0xff]   ;;  %v731_v20 = vld [vmem:[%s235_s8] ss:$8 sps:$4 sm:$0xff]  }
  0x26   : > { %474 = vmatprep.mubr.bf16.mxu0 %v733_v14  ;;  %v727_v16 = vld [vmem:[%s847_s7 + $0x48] sm:$0xff]   ;;  %v729_v18 = vld [vmem:[%s847_s7 + $0x40] sm:$0xff]  }
  0x27   : > { %655 = vmatpush3.bf16.msra.mxu0 %v718_v6  ;;  %v728_v17 = vld [vmem:[%s847_s7 + $0x8] sm:$0xff]   ;;  %v730_v19 = vld [vmem:[%s847_s7] sm:$0xff]  }
  0x28   : > { %656 = vmatprep.subr.bf16.mxu0 %v719_v7  ;;  %v300_v22 = vld [vmem:[#allocation2] sm:$0xff]  ;;  %v301_v27 = vld [vmem:[#allocation2 + $0x8] sm:$0xff] }
  0x2b   : > { %657 = vmatpush3.bf16.msra.mxu0 %v720_v8 }
  0x2c   : > { %658 = vmatprep.subr.bf16.mxu0 %v721_v9 }
  0x2f   : > { %659 = vmatpush3.bf16.msra.mxu0 %v722_v10 }
  0x30   : > { %660 = vmatprep.subr.bf16.mxu0 %v723_v11 }
  0x33   : > { %661 = vmatpush3.bf16.msra.mxu0 %v724_v12 }
  0x34   : > { %662 = vmatprep.subr.bf16.mxu0 %v725_v13 }
  0x37   : > { %663 = vmatpush3.bf16.msra.mxu0 %v726_v15 }
  0x38   : > { %664 = vmatprep.subr.bf16.mxu0 %v727_v16 }
  0x3b   : > { %665 = vmatpush3.bf16.msra.mxu0 %v728_v17 }
  0x3c   : > { %666 = vmatprep.subr.bf16.mxu0 %v729_v18 }
  0x3f   : > { %667 = vmatpush3.bf16.msra.mxu0 %v730_v19 }
  0x42   : > { %475 = vmatmul.mubr.bf16.vlgmr.msra.gmra.mxu0 %v731_v20 }
 0x102   : > { %v668_v21 = vpop.f32.mrf.mxu0 }
 0x104   : > { %v669_v23 = vpop.f32.mrf.mxu0 }
 0x105   : > { %v670_v24 = vadd.f32 %v669_v23, %v668_v21 }
 0x106   : > { %v671_v25 = vpop.f32.mrf.mxu0 }
 0x107   : > { %v483_v26 = vadd.f32 %v670_v24, %v300_v22 }
 0x108   : > { %v672_v28 = vpop.f32.mrf.mxu0 }
 0x109   : > { %485 = vst [vmem:[#allocation2] sm:$0xff] %v483_v26  ;;  %v673_v29 = vadd.f32 %v672_v28, %v671_v25  ;;  %490 = sbr.rel (%p645_p11) target bundleno = 280 (0x118), region = 78 }
 0x10b   : > { %v484_v30 = vadd.f32 %v673_v29, %v301_v27 }
 0x10d   : > { %486 = vst [vmem:[#allocation2 + $0x8] sm:$0xff] %v484_v30 }
 0x10e   : > { %v646_v32 = vld [vmem:[%s898_s2] ss:$0 sm:$0xff] }
 0x110   : > { %v491_v31 = vld [vmem:[#allocation2] sm:$0xff] }
 0x111   : > { %v500_v34 = vadd.f32 %v646_v32, %v491_v31 }
 0x113   : > { %502 = vst [vmem:[%s899_s3] sm:$0xff] %v500_v34 }
 0x114   : > { %v492_v33 = vld [vmem:[#allocation2 + $0x8] sm:$0xff] }
 0x115   : > { %v501_v35 = vadd.f32 %v646_v32, %v492_v33 }
 0x117   : > { %503 = vst [vmem:[%s899_s3 + $0x8] sm:$0xff] %v501_v35 }
 0x118 PF: > { %s13_s16 = sadd.s32 1, %s772_s16   ;;  %s900_s12 = smov %s760_s13 }
 0x119   : > { %p10_p12 = scmp.ge.s32.totalorder %s13_s16, 4   ;;  %s901_s13 = smov %s830_s20 }
 0x11a   : > { %s902_s14 = smov %s768_s15  ;;  %s903_s15 = smov %s905_s17 }
 0x11b   :  { %12 = sbr.rel (!%p10_p12) target bundleno = 3 (0x3), region = 119 }

</bundles_post_ra>
